<compile_context>
chip_gen: v7x
topology: tpu7x:2x2x1
jax: 0.10.0
libtpu: 0.0.40
codegen_flags: <defaults>
</compile_context>

<pallas_src>
import functools
import math

import jax
import jax.numpy as jnp
from jax.experimental import pallas as pl
from jax.experimental.pallas import tpu as pltpu


def _round_up(x, m):
    return ((x + m - 1) // m) * m


_VMEM_LIMIT = 48 * 1024 * 1024  # safe on v5e/v6e (128 MiB) and v7x (64 MiB physical)


# ------------------------------------------------------------------ matmul kernel

def _matmul_bias_kernel(x_ref, w_ref, b_ref, o_ref, acc_ref, *, relu):
    @pl.when(pl.program_id(2) == 0)
    def _():
        acc_ref[...] = jnp.zeros_like(acc_ref)

    acc_ref[...] += jnp.dot(x_ref[...], w_ref[...],
                            preferred_element_type=jnp.float32)

    @pl.when(pl.program_id(2) == pl.num_programs(2) - 1)
    def _():
        y = acc_ref[...] + b_ref[...]        # f32 epilogue (v5e-safe)
        if relu:
            y = jnp.maximum(y, 0.0)
        o_ref[...] = y.astype(o_ref.dtype)


def matmul_bias(x2d, w2d, bias, relu, out_dtype=jnp.bfloat16):
    """out = act(x2d @ w2d + bias): bf16 MXU inputs, f32 accumulation, fused epilogue."""
    M, K = x2d.shape
    K2, N = w2d.shape
    assert K == K2
    assert K % 128 == 0 and N % 128 == 0, "channel dims must be 128-aligned"

    # Tile selection. N/K are always 128-aligned in this network, so no channel padding.
    tn = 256 if N % 256 == 0 else 128   # 256 fills the v6e/v7x MXU; still correct on v5e
    tk = 512 if K % 512 == 0 else (256 if K % 256 == 0 else 128)

    Mp = _round_up(M, 16)               # bf16 sublane packing
    if Mp <= 1024:
        tm = Mp                         # single full-height block, <=15 padded rows
    else:
        tm = 512
        Mp = _round_up(M, tm)

    x2d = x2d.astype(jnp.bfloat16)
    if Mp != M:
        x2d = jnp.pad(x2d, ((0, Mp - M), (0, 0)))
    w2d = w2d.astype(jnp.bfloat16)
    bias = bias.reshape(1, N).astype(jnp.float32)

    grid = (Mp // tm, N // tn, K // tk)
    out_bytes = Mp * N * (2 if out_dtype == jnp.bfloat16 else 4)
    cost = pl.CostEstimate(flops=2 * Mp * N * K, transcendentals=0,
                           bytes_accessed=(Mp * K + K * N) * 2 + out_bytes)

    out = pl.pallas_call(
        functools.partial(_matmul_bias_kernel, relu=relu),
        out_shape=jax.ShapeDtypeStruct((Mp, N), out_dtype),
        grid_spec=pltpu.PrefetchScalarGridSpec(
            num_scalar_prefetch=0,
            grid=grid,
            in_specs=[
                pl.BlockSpec((tm, tk), lambda i, j, k: (i, k)),
                pl.BlockSpec((tk, tn), lambda i, j, k: (k, j)),
                pl.BlockSpec((1, tn), lambda i, j, k: (0, j)),   # bias, last-k only
            ],
            out_specs=pl.BlockSpec((tm, tn), lambda i, j, k: (i, j)),
            scratch_shapes=[pltpu.VMEM((tm, tn), jnp.float32)],
        ),
        compiler_params=pltpu.CompilerParams(
            dimension_semantics=("parallel", "parallel", "arbitrary"),
            vmem_limit_bytes=_VMEM_LIMIT),
        cost_estimate=cost,
    )(x2d, w2d, bias)
    if Mp != M:
        out = out[:M]
    return out


# ------------------------------------------------------------------ conv glue

def conv2d(x, w_hwio, bias, stride, padding, relu):
    """NHWC conv -> Pallas MXU matmul with fused bias/ReLU epilogue."""
    B, H, W, C = x.shape
    kh, kw, cin, cout = w_hwio.shape
    sh, sw = stride
    ph, pw = padding
    Ho = (H + 2 * ph - kh) // sh + 1
    Wo = (W + 2 * pw - kw) // sw + 1
    if kh == 1 and kw == 1 and (sh, sw) == (1, 1) and (ph, pw) == (0, 0):
        x2d = x.reshape(B * H * W, C)                       # 1x1 conv: pure matmul
    else:
        xpad = jnp.pad(x, ((0, 0), (ph, ph), (pw, pw), (0, 0)))
        cols = []
        for i in range(kh):
            for j in range(kw):
                cols.append(xpad[:, i:i + sh * (Ho - 1) + 1:sh,
                                 j:j + sw * (Wo - 1) + 1:sw, :])
        # TODO(synk): im2col still materializes kh*kw bf16 copies of the activation in
        # HBM (jit-fused); acceptable at Mixed_7a's 17x17 extent, a strided-window conv
        # kernel would remove it for larger feature maps.
        x2d = jnp.concatenate(cols, axis=-1).reshape(B * Ho * Wo, kh * kw * cin)
    w2d = w_hwio.reshape(kh * kw * cin, cout)
    out = matmul_bias(x2d, w2d, bias, relu)
    return out.reshape(B, Ho, Wo, cout)


# ------------------------------------------------------------------ max-pool kernel

def _maxpool_kernel(x_ref, o_ref, *, Ho):
    # x_ref: (3, 1, H, Wo, C)  three column-shifted stride-2 views of one image
    # o_ref: (1, Ho, Wo, C)
    for ho in range(Ho):                       # static unrolled loop over output rows
        m = x_ref[0, 0, 2 * ho]
        for i in range(3):                     # row taps
            for j in range(3):                 # column taps (pre-shifted views)
                if i == 0 and j == 0:
                    continue
                m = jnp.maximum(m, x_ref[j, 0, 2 * ho + i])
        o_ref[0, ho] = m


def maxpool3x3_s2(x):
    B, H, W, C = x.shape
    assert C % 128 == 0
    Ho, Wo = (H - 3) // 2 + 1, (W - 3) // 2 + 1
    # 3 column-shifted stride-2 views (~1.5x input bytes instead of a 9x window stack);
    # the 3x3 window max itself is reduced inside the kernel on the VPU.
    cols = jnp.stack(
        [x[:, :, j:j + 2 * (Wo - 1) + 1:2, :] for j in range(3)], axis=0)
    return pl.pallas_call(
        functools.partial(_maxpool_kernel, Ho=Ho),
        out_shape=jax.ShapeDtypeStruct((B, Ho, Wo, C), x.dtype),
        grid_spec=pltpu.PrefetchScalarGridSpec(
            num_scalar_prefetch=0,
            grid=(B,),
            in_specs=[pl.BlockSpec((3, 1, H, Wo, C), lambda b: (0, b, 0, 0, 0))],
            out_specs=pl.BlockSpec((1, Ho, Wo, C), lambda b: (b, 0, 0, 0)),
        ),
        compiler_params=pltpu.CompilerParams(
            dimension_semantics=("parallel",),
            vmem_limit_bytes=_VMEM_LIMIT),
    )(cols)


# ------------------------------------------------------------------ params

class KeyGen:
    def __init__(self, key):
        self._key = key

    def __call__(self):
        self._key, sub = jax.random.split(self._key)
        return sub


def init_basic_conv(kg, cin, cout, ksize):
    kh, kw = (ksize, ksize) if isinstance(ksize, int) else ksize
    w = jax.random.normal(kg(), (kh, kw, cin, cout), jnp.float32) / math.sqrt(kh * kw * cin)
    gamma = 1.0 + 0.1 * jax.random.normal(kg(), (cout,), jnp.float32)
    beta = 0.1 * jax.random.normal(kg(), (cout,), jnp.float32)
    # BN eval-mode fold (running_mean=0, running_var=1, eps=1e-3): fold scale into the
    # conv weights once (cast to bf16 once here), keep only the bias for the epilogue.
    scale = gamma / jnp.sqrt(1.0 + 1e-3)
    return dict(w=(w * scale).astype(jnp.bfloat16), bias=beta)


def init_mixed7a(kg):
    return dict(
        b0=[init_basic_conv(kg, 896, 256, 1),
            init_basic_conv(kg, 256, 384, 3)],
        b1=[init_basic_conv(kg, 896, 256, 1),
            init_basic_conv(kg, 256, 256, 3)],
        b2=[init_basic_conv(kg, 896, 256, 1),
            init_basic_conv(kg, 256, 256, 3),
            init_basic_conv(kg, 256, 256, 3)],
    )


# ------------------------------------------------------------------ Mixed_7a forward

def apply_mixed7a(p, x):
    B, H, W, C = x.shape
    # Fuse the three 896->256 1x1 branch heads (same input) into ONE 896->768 matmul:
    # one x DMA instead of three, wider N (3 parallel 256-wide tiles), fewer launches.
    h0, h1, h2 = p['b0'][0], p['b1'][0], p['b2'][0]
    w_fused = jnp.concatenate([h0['w'].reshape(C, -1),
                               h1['w'].reshape(C, -1),
                               h2['w'].reshape(C, -1)], axis=-1)
    b_fused = jnp.concatenate([h0['bias'], h1['bias'], h2['bias']])
    heads = matmul_bias(x.reshape(B * H * W, C), w_fused, b_fused, relu=True)
    heads = heads.reshape(B, H, W, 768)
    y0, y1, y2 = heads[..., :256], heads[..., 256:512], heads[..., 512:]

    x0 = conv2d(y0, p['b0'][1]['w'], p['b0'][1]['bias'], (2, 2), (0, 0), relu=True)
    x1 = conv2d(y1, p['b1'][1]['w'], p['b1'][1]['bias'], (2, 2), (0, 0), relu=True)
    x2 = conv2d(y2, p['b2'][1]['w'], p['b2'][1]['bias'], (1, 1), (1, 1), relu=True)
    x2 = conv2d(x2, p['b2'][2]['w'], p['b2'][2]['bias'], (2, 2), (0, 0), relu=True)
    x3 = maxpool3x3_s2(x)
    return jnp.concatenate([x0, x1, x2, x3], axis=-1)


def mixed7a_forward(p, x_nchw):
    x = jnp.transpose(x_nchw, (0, 2, 3, 1)).astype(jnp.bfloat16)   # NCHW -> NHWC, bf16
    out = apply_mixed7a(p, x)
    return jnp.transpose(out, (0, 3, 1, 2)).astype(jnp.float32)    # NHWC -> NCHW, f32


forward = jax.jit(mixed7a_forward)


if __name__ == "__main__":
    root = jax.random.PRNGKey(0)
    k_in, k_params = jax.random.split(root)
    params = init_mixed7a(KeyGen(k_params))
    # Mixed_7a sits at the 17x17x896 stage of InceptionResnetV1 (channel count is fixed
    # by the architecture); batch=2, spatial=17 is the natural small shape.
    x = jax.random.normal(k_in, (2, 896, 17, 17), jnp.float32)     # NCHW like PyTorch
    out = forward(params, x)
    out = jax.block_until_ready(out)
    assert out.shape == (2, 384 + 256 + 256 + 896, 8, 8)           # (2, 1792, 8, 8)
    assert bool(jnp.all(jnp.isfinite(out)))
    print("KERNEL_OK")
</pallas_src>

<mosaic_0001>
module attributes {stable_mosaic.version = 11 : i64} {
  func.func @_maxpool_kernel(%arg0: i32, %arg1: memref<3x1x17x8x896xbf16, #tpu.memory_space<vmem>>, %arg2: memref<1x8x8x896xbf16, #tpu.memory_space<vmem>>) attributes {dimension_semantics = [#tpu.dimension_semantics<parallel>], iteration_bounds = array<i64: 2>, scalar_prefetch = 0 : i64, scratch_operands = 0 : i64, tpu.core_type = #tpu.core_type<tc>, window_params = [{transform_indices = @transform_0, window_bounds = array<i64: 3, 1, 17, 8, 896>}, {transform_indices = @transform_1, window_bounds = array<i64: 1, 8, 8, 896>}]} {
    %c0 = arith.constant 0 : index
    %c0_0 = arith.constant 0 : index
    %c0_1 = arith.constant 0 : index
    %c0_2 = arith.constant 0 : index
    %c0_3 = arith.constant 0 : index
    %0 = vector.load %arg1[%c0, %c0_0, %c0_1, %c0_2, %c0_3] : memref<3x1x17x8x896xbf16, #tpu.memory_space<vmem>>, vector<1x1x1x8x896xbf16>
    %1 = vector.shape_cast %0 : vector<1x1x1x8x896xbf16> to vector<8x896xbf16>
    %c1 = arith.constant 1 : index
    %c0_4 = arith.constant 0 : index
    %c0_5 = arith.constant 0 : index
    %c0_6 = arith.constant 0 : index
    %c0_7 = arith.constant 0 : index
    %2 = vector.load %arg1[%c1, %c0_4, %c0_5, %c0_6, %c0_7] : memref<3x1x17x8x896xbf16, #tpu.memory_space<vmem>>, vector<1x1x1x8x896xbf16>
    %3 = vector.shape_cast %2 : vector<1x1x1x8x896xbf16> to vector<8x896xbf16>
    %4 = arith.maximumf %1, %3 : vector<8x896xbf16>
    %c2 = arith.constant 2 : index
    %c0_8 = arith.constant 0 : index
    %c0_9 = arith.constant 0 : index
    %c0_10 = arith.constant 0 : index
    %c0_11 = arith.constant 0 : index
    %5 = vector.load %arg1[%c2, %c0_8, %c0_9, %c0_10, %c0_11] : memref<3x1x17x8x896xbf16, #tpu.memory_space<vmem>>, vector<1x1x1x8x896xbf16>
    %6 = vector.shape_cast %5 : vector<1x1x1x8x896xbf16> to vector<8x896xbf16>
    %7 = arith.maximumf %4, %6 : vector<8x896xbf16>
    %c0_12 = arith.constant 0 : index
    %c0_13 = arith.constant 0 : index
    %c1_14 = arith.constant 1 : index
    %c0_15 = arith.constant 0 : index
    %c0_16 = arith.constant 0 : index
    %8 = vector.load %arg1[%c0_12, %c0_13, %c1_14, %c0_15, %c0_16] : memref<3x1x17x8x896xbf16, #tpu.memory_space<vmem>>, vector<1x1x1x8x896xbf16>
    %9 = vector.shape_cast %8 : vector<1x1x1x8x896xbf16> to vector<8x896xbf16>
    %10 = arith.maximumf %7, %9 : vector<8x896xbf16>
    %c1_17 = arith.constant 1 : index
    %c0_18 = arith.constant 0 : index
    %c1_19 = arith.constant 1 : index
    %c0_20 = arith.constant 0 : index
    %c0_21 = arith.constant 0 : index
    %11 = vector.load %arg1[%c1_17, %c0_18, %c1_19, %c0_20, %c0_21] : memref<3x1x17x8x896xbf16, #tpu.memory_space<vmem>>, vector<1x1x1x8x896xbf16>
    %12 = vector.shape_cast %11 : vector<1x1x1x8x896xbf16> to vector<8x896xbf16>
    %13 = arith.maximumf %10, %12 : vector<8x896xbf16>
    %c2_22 = arith.constant 2 : index
    %c0_23 = arith.constant 0 : index
    %c1_24 = arith.constant 1 : index
    %c0_25 = arith.constant 0 : index
    %c0_26 = arith.constant 0 : index
    %14 = vector.load %arg1[%c2_22, %c0_23, %c1_24, %c0_25, %c0_26] : memref<3x1x17x8x896xbf16, #tpu.memory_space<vmem>>, vector<1x1x1x8x896xbf16>
    %15 = vector.shape_cast %14 : vector<1x1x1x8x896xbf16> to vector<8x896xbf16>
    %16 = arith.maximumf %13, %15 : vector<8x896xbf16>
    %c0_27 = arith.constant 0 : index
    %c0_28 = arith.constant 0 : index
    %c2_29 = arith.constant 2 : index
    %c0_30 = arith.constant 0 : index
    %c0_31 = arith.constant 0 : index
    %17 = vector.load %arg1[%c0_27, %c0_28, %c2_29, %c0_30, %c0_31] : memref<3x1x17x8x896xbf16, #tpu.memory_space<vmem>>, vector<1x1x1x8x896xbf16>
    %18 = vector.shape_cast %17 : vector<1x1x1x8x896xbf16> to vector<8x896xbf16>
    %19 = arith.maximumf %16, %18 : vector<8x896xbf16>
    %c1_32 = arith.constant 1 : index
    %c0_33 = arith.constant 0 : index
    %c2_34 = arith.constant 2 : index
    %c0_35 = arith.constant 0 : index
    %c0_36 = arith.constant 0 : index
    %20 = vector.load %arg1[%c1_32, %c0_33, %c2_34, %c0_35, %c0_36] : memref<3x1x17x8x896xbf16, #tpu.memory_space<vmem>>, vector<1x1x1x8x896xbf16>
    %21 = vector.shape_cast %20 : vector<1x1x1x8x896xbf16> to vector<8x896xbf16>
    %22 = arith.maximumf %19, %21 : vector<8x896xbf16>
    %c2_37 = arith.constant 2 : index
    %c0_38 = arith.constant 0 : index
    %c2_39 = arith.constant 2 : index
    %c0_40 = arith.constant 0 : index
    %c0_41 = arith.constant 0 : index
    %23 = vector.load %arg1[%c2_37, %c0_38, %c2_39, %c0_40, %c0_41] : memref<3x1x17x8x896xbf16, #tpu.memory_space<vmem>>, vector<1x1x1x8x896xbf16>
    %24 = vector.shape_cast %23 : vector<1x1x1x8x896xbf16> to vector<8x896xbf16>
    %25 = arith.maximumf %22, %24 : vector<8x896xbf16>
    %c0_42 = arith.constant 0 : index
    %c0_43 = arith.constant 0 : index
    %c0_44 = arith.constant 0 : index
    %c0_45 = arith.constant 0 : index
    %26 = vector.load %arg2[%c0_42, %c0_43, %c0_44, %c0_45] : memref<1x8x8x896xbf16, #tpu.memory_space<vmem>>, vector<1x1x8x896xbf16>
    %27 = vector.shape_cast %26 : vector<1x1x8x896xbf16> to vector<8x896xbf16>
    %28 = vector.shape_cast %25 : vector<8x896xbf16> to vector<1x1x8x896xbf16>
    tpu.vector_store %arg2[%c0_42, %c0_43, %c0_44, %c0_45], %28 {strides = array<i32>} : memref<1x8x8x896xbf16, #tpu.memory_space<vmem>>, vector<1x1x8x896xbf16>,
    %c0_46 = arith.constant 0 : index
    %c0_47 = arith.constant 0 : index
    %c2_48 = arith.constant 2 : index
    %c0_49 = arith.constant 0 : index
    %c0_50 = arith.constant 0 : index
    %29 = vector.load %arg1[%c0_46, %c0_47, %c2_48, %c0_49, %c0_50] : memref<3x1x17x8x896xbf16, #tpu.memory_space<vmem>>, vector<1x1x1x8x896xbf16>
    %30 = vector.shape_cast %29 : vector<1x1x1x8x896xbf16> to vector<8x896xbf16>
    %c1_51 = arith.constant 1 : index
    %c0_52 = arith.constant 0 : index
    %c2_53 = arith.constant 2 : index
    %c0_54 = arith.constant 0 : index
    %c0_55 = arith.constant 0 : index
    %31 = vector.load %arg1[%c1_51, %c0_52, %c2_53, %c0_54, %c0_55] : memref<3x1x17x8x896xbf16, #tpu.memory_space<vmem>>, vector<1x1x1x8x896xbf16>
    %32 = vector.shape_cast %31 : vector<1x1x1x8x896xbf16> to vector<8x896xbf16>
    %33 = arith.maximumf %30, %32 : vector<8x896xbf16>
    %c2_56 = arith.constant 2 : index
    %c0_57 = arith.constant 0 : index
    %c2_58 = arith.constant 2 : index
    %c0_59 = arith.constant 0 : index
    %c0_60 = arith.constant 0 : index
    %34 = vector.load %arg1[%c2_56, %c0_57, %c2_58, %c0_59, %c0_60] : memref<3x1x17x8x896xbf16, #tpu.memory_space<vmem>>, vector<1x1x1x8x896xbf16>
    %35 = vector.shape_cast %34 : vector<1x1x1x8x896xbf16> to vector<8x896xbf16>
    %36 = arith.maximumf %33, %35 : vector<8x896xbf16>
    %c0_61 = arith.constant 0 : index
    %c0_62 = arith.constant 0 : index
    %c3 = arith.constant 3 : index
    %c0_63 = arith.constant 0 : index
    %c0_64 = arith.constant 0 : index
    %37 = vector.load %arg1[%c0_61, %c0_62, %c3, %c0_63, %c0_64] : memref<3x1x17x8x896xbf16, #tpu.memory_space<vmem>>, vector<1x1x1x8x896xbf16>
    %38 = vector.shape_cast %37 : vector<1x1x1x8x896xbf16> to vector<8x896xbf16>
    %39 = arith.maximumf %36, %38 : vector<8x896xbf16>
    %c1_65 = arith.constant 1 : index
    %c0_66 = arith.constant 0 : index
    %c3_67 = arith.constant 3 : index
    %c0_68 = arith.constant 0 : index
    %c0_69 = arith.constant 0 : index
    %40 = vector.load %arg1[%c1_65, %c0_66, %c3_67, %c0_68, %c0_69] : memref<3x1x17x8x896xbf16, #tpu.memory_space<vmem>>, vector<1x1x1x8x896xbf16>
    %41 = vector.shape_cast %40 : vector<1x1x1x8x896xbf16> to vector<8x896xbf16>
    %42 = arith.maximumf %39, %41 : vector<8x896xbf16>
    %c2_70 = arith.constant 2 : index
    %c0_71 = arith.constant 0 : index
    %c3_72 = arith.constant 3 : index
    %c0_73 = arith.constant 0 : index
    %c0_74 = arith.constant 0 : index
    %43 = vector.load %arg1[%c2_70, %c0_71, %c3_72, %c0_73, %c0_74] : memref<3x1x17x8x896xbf16, #tpu.memory_space<vmem>>, vector<1x1x1x8x896xbf16>
    %44 = vector.shape_cast %43 : vector<1x1x1x8x896xbf16> to vector<8x896xbf16>
    %45 = arith.maximumf %42, %44 : vector<8x896xbf16>
    %c0_75 = arith.constant 0 : index
    %c0_76 = arith.constant 0 : index
    %c4 = arith.constant 4 : index
    %c0_77 = arith.constant 0 : index
    %c0_78 = arith.constant 0 : index
    %46 = vector.load %arg1[%c0_75, %c0_76, %c4, %c0_77, %c0_78] : memref<3x1x17x8x896xbf16, #tpu.memory_space<vmem>>, vector<1x1x1x8x896xbf16>
    %47 = vector.shape_cast %46 : vector<1x1x1x8x896xbf16> to vector<8x896xbf16>
    %48 = arith.maximumf %45, %47 : vector<8x896xbf16>
    %c1_79 = arith.constant 1 : index
    %c0_80 = arith.constant 0 : index
    %c4_81 = arith.constant 4 : index
    %c0_82 = arith.constant 0 : index
    %c0_83 = arith.constant 0 : index
    %49 = vector.load %arg1[%c1_79, %c0_80, %c4_81, %c0_82, %c0_83] : memref<3x1x17x8x896xbf16, #tpu.memory_space<vmem>>, vector<1x1x1x8x896xbf16>
    %50 = vector.shape_cast %49 : vector<1x1x1x8x896xbf16> to vector<8x896xbf16>
    %51 = arith.maximumf %48, %50 : vector<8x896xbf16>
    %c2_84 = arith.constant 2 : index
    %c0_85 = arith.constant 0 : index
    %c4_86 = arith.constant 4 : index
    %c0_87 = arith.constant 0 : index
    %c0_88 = arith.constant 0 : index
    %52 = vector.load %arg1[%c2_84, %c0_85, %c4_86, %c0_87, %c0_88] : memref<3x1x17x8x896xbf16, #tpu.memory_space<vmem>>, vector<1x1x1x8x896xbf16>
    %53 = vector.shape_cast %52 : vector<1x1x1x8x896xbf16> to vector<8x896xbf16>
    %54 = arith.maximumf %51, %53 : vector<8x896xbf16>
    %c0_89 = arith.constant 0 : index
    %c1_90 = arith.constant 1 : index
    %c0_91 = arith.constant 0 : index
    %c0_92 = arith.constant 0 : index
    %55 = vector.load %arg2[%c0_89, %c1_90, %c0_91, %c0_92] : memref<1x8x8x896xbf16, #tpu.memory_space<vmem>>, vector<1x1x8x896xbf16>
    %56 = vector.shape_cast %55 : vector<1x1x8x896xbf16> to vector<8x896xbf16>
    %57 = vector.shape_cast %54 : vector<8x896xbf16> to vector<1x1x8x896xbf16>
    tpu.vector_store %arg2[%c0_89, %c1_90, %c0_91, %c0_92], %57 {strides = array<i32>} : memref<1x8x8x896xbf16, #tpu.memory_space<vmem>>, vector<1x1x8x896xbf16>,
    %c0_93 = arith.constant 0 : index
    %c0_94 = arith.constant 0 : index
    %c4_95 = arith.constant 4 : index
    %c0_96 = arith.constant 0 : index
    %c0_97 = arith.constant 0 : index
    %58 = vector.load %arg1[%c0_93, %c0_94, %c4_95, %c0_96, %c0_97] : memref<3x1x17x8x896xbf16, #tpu.memory_space<vmem>>, vector<1x1x1x8x896xbf16>
    %59 = vector.shape_cast %58 : vector<1x1x1x8x896xbf16> to vector<8x896xbf16>
    %c1_98 = arith.constant 1 : index
    %c0_99 = arith.constant 0 : index
    %c4_100 = arith.constant 4 : index
    %c0_101 = arith.constant 0 : index
    %c0_102 = arith.constant 0 : index
    %60 = vector.load %arg1[%c1_98, %c0_99, %c4_100, %c0_101, %c0_102] : memref<3x1x17x8x896xbf16, #tpu.memory_space<vmem>>, vector<1x1x1x8x896xbf16>
    %61 = vector.shape_cast %60 : vector<1x1x1x8x896xbf16> to vector<8x896xbf16>
    %62 = arith.maximumf %59, %61 : vector<8x896xbf16>
    %c2_103 = arith.constant 2 : index
    %c0_104 = arith.constant 0 : index
    %c4_105 = arith.constant 4 : index
    %c0_106 = arith.constant 0 : index
    %c0_107 = arith.constant 0 : index
    %63 = vector.load %arg1[%c2_103, %c0_104, %c4_105, %c0_106, %c0_107] : memref<3x1x17x8x896xbf16, #tpu.memory_space<vmem>>, vector<1x1x1x8x896xbf16>
    %64 = vector.shape_cast %63 : vector<1x1x1x8x896xbf16> to vector<8x896xbf16>
    %65 = arith.maximumf %62, %64 : vector<8x896xbf16>
    %c0_108 = arith.constant 0 : index
    %c0_109 = arith.constant 0 : index
    %c5 = arith.constant 5 : index
    %c0_110 = arith.constant 0 : index
    %c0_111 = arith.constant 0 : index
    %66 = vector.load %arg1[%c0_108, %c0_109, %c5, %c0_110, %c0_111] : memref<3x1x17x8x896xbf16, #tpu.memory_space<vmem>>, vector<1x1x1x8x896xbf16>
    %67 = vector.shape_cast %66 : vector<1x1x1x8x896xbf16> to vector<8x896xbf16>
    %68 = arith.maximumf %65, %67 : vector<8x896xbf16>
    %c1_112 = arith.constant 1 : index
    %c0_113 = arith.constant 0 : index
    %c5_114 = arith.constant 5 : index
    %c0_115 = arith.constant 0 : index
    %c0_116 = arith.constant 0 : index
    %69 = vector.load %arg1[%c1_112, %c0_113, %c5_114, %c0_115, %c0_116] : memref<3x1x17x8x896xbf16, #tpu.memory_space<vmem>>, vector<1x1x1x8x896xbf16>
    %70 = vector.shape_cast %69 : vector<1x1x1x8x896xbf16> to vector<8x896xbf16>
    %71 = arith.maximumf %68, %70 : vector<8x896xbf16>
    %c2_117 = arith.constant 2 : index
    %c0_118 = arith.constant 0 : index
    %c5_119 = arith.constant 5 : index
    %c0_120 = arith.constant 0 : index
    %c0_121 = arith.constant 0 : index
    %72 = vector.load %arg1[%c2_117, %c0_118, %c5_119, %c0_120, %c0_121] : memref<3x1x17x8x896xbf16, #tpu.memory_space<vmem>>, vector<1x1x1x8x896xbf16>
    %73 = vector.shape_cast %72 : vector<1x1x1x8x896xbf16> to vector<8x896xbf16>
    %74 = arith.maximumf %71, %73 : vector<8x896xbf16>
    %c0_122 = arith.constant 0 : index
    %c0_123 = arith.constant 0 : index
    %c6 = arith.constant 6 : index
    %c0_124 = arith.constant 0 : index
    %c0_125 = arith.constant 0 : index
    %75 = vector.load %arg1[%c0_122, %c0_123, %c6, %c0_124, %c0_125] : memref<3x1x17x8x896xbf16, #tpu.memory_space<vmem>>, vector<1x1x1x8x896xbf16>
    %76 = vector.shape_cast %75 : vector<1x1x1x8x896xbf16> to vector<8x896xbf16>
    %77 = arith.maximumf %74, %76 : vector<8x896xbf16>
    %c1_126 = arith.constant 1 : index
    %c0_127 = arith.constant 0 : index
    %c6_128 = arith.constant 6 : index
    %c0_129 = arith.constant 0 : index
    %c0_130 = arith.constant 0 : index
    %78 = vector.load %arg1[%c1_126, %c0_127, %c6_128, %c0_129, %c0_130] : memref<3x1x17x8x896xbf16, #tpu.memory_space<vmem>>, vector<1x1x1x8x896xbf16>
    %79 = vector.shape_cast %78 : vector<1x1x1x8x896xbf16> to vector<8x896xbf16>
    %80 = arith.maximumf %77, %79 : vector<8x896xbf16>
    %c2_131 = arith.constant 2 : index
    %c0_132 = arith.constant 0 : index
    %c6_133 = arith.constant 6 : index
    %c0_134 = arith.constant 0 : index
    %c0_135 = arith.constant 0 : index
    %81 = vector.load %arg1[%c2_131, %c0_132, %c6_133, %c0_134, %c0_135] : memref<3x1x17x8x896xbf16, #tpu.memory_space<vmem>>, vector<1x1x1x8x896xbf16>
    %82 = vector.shape_cast %81 : vector<1x1x1x8x896xbf16> to vector<8x896xbf16>
    %83 = arith.maximumf %80, %82 : vector<8x896xbf16>
    %c0_136 = arith.constant 0 : index
    %c2_137 = arith.constant 2 : index
    %c0_138 = arith.constant 0 : index
    %c0_139 = arith.constant 0 : index
    %84 = vector.load %arg2[%c0_136, %c2_137, %c0_138, %c0_139] : memref<1x8x8x896xbf16, #tpu.memory_space<vmem>>, vector<1x1x8x896xbf16>
    %85 = vector.shape_cast %84 : vector<1x1x8x896xbf16> to vector<8x896xbf16>
    %86 = vector.shape_cast %83 : vector<8x896xbf16> to vector<1x1x8x896xbf16>
    tpu.vector_store %arg2[%c0_136, %c2_137, %c0_138, %c0_139], %86 {strides = array<i32>} : memref<1x8x8x896xbf16, #tpu.memory_space<vmem>>, vector<1x1x8x896xbf16>,
    %c0_140 = arith.constant 0 : index
    %c0_141 = arith.constant 0 : index
    %c6_142 = arith.constant 6 : index
    %c0_143 = arith.constant 0 : index
    %c0_144 = arith.constant 0 : index
    %87 = vector.load %arg1[%c0_140, %c0_141, %c6_142, %c0_143, %c0_144] : memref<3x1x17x8x896xbf16, #tpu.memory_space<vmem>>, vector<1x1x1x8x896xbf16>
    %88 = vector.shape_cast %87 : vector<1x1x1x8x896xbf16> to vector<8x896xbf16>
    %c1_145 = arith.constant 1 : index
    %c0_146 = arith.constant 0 : index
    %c6_147 = arith.constant 6 : index
    %c0_148 = arith.constant 0 : index
    %c0_149 = arith.constant 0 : index
    %89 = vector.load %arg1[%c1_145, %c0_146, %c6_147, %c0_148, %c0_149] : memref<3x1x17x8x896xbf16, #tpu.memory_space<vmem>>, vector<1x1x1x8x896xbf16>
    %90 = vector.shape_cast %89 : vector<1x1x1x8x896xbf16> to vector<8x896xbf16>
    %91 = arith.maximumf %88, %90 : vector<8x896xbf16>
    %c2_150 = arith.constant 2 : index
    %c0_151 = arith.constant 0 : index
    %c6_152 = arith.constant 6 : index
    %c0_153 = arith.constant 0 : index
    %c0_154 = arith.constant 0 : index
    %92 = vector.load %arg1[%c2_150, %c0_151, %c6_152, %c0_153, %c0_154] : memref<3x1x17x8x896xbf16, #tpu.memory_space<vmem>>, vector<1x1x1x8x896xbf16>
    %93 = vector.shape_cast %92 : vector<1x1x1x8x896xbf16> to vector<8x896xbf16>
    %94 = arith.maximumf %91, %93 : vector<8x896xbf16>
    %c0_155 = arith.constant 0 : index
    %c0_156 = arith.constant 0 : index
    %c7 = arith.constant 7 : index
    %c0_157 = arith.constant 0 : index
    %c0_158 = arith.constant 0 : index
    %95 = vector.load %arg1[%c0_155, %c0_156, %c7, %c0_157, %c0_158] : memref<3x1x17x8x896xbf16, #tpu.memory_space<vmem>>, vector<1x1x1x8x896xbf16>
    %96 = vector.shape_cast %95 : vector<1x1x1x8x896xbf16> to vector<8x896xbf16>
    %97 = arith.maximumf %94, %96 : vector<8x896xbf16>
    %c1_159 = arith.constant 1 : index
    %c0_160 = arith.constant 0 : index
    %c7_161 = arith.constant 7 : index
    %c0_162 = arith.constant 0 : index
    %c0_163 = arith.constant 0 : index
    %98 = vector.load %arg1[%c1_159, %c0_160, %c7_161, %c0_162, %c0_163] : memref<3x1x17x8x896xbf16, #tpu.memory_space<vmem>>, vector<1x1x1x8x896xbf16>
    %99 = vector.shape_cast %98 : vector<1x1x1x8x896xbf16> to vector<8x896xbf16>
    %100 = arith.maximumf %97, %99 : vector<8x896xbf16>
    %c2_164 = arith.constant 2 : index
    %c0_165 = arith.constant 0 : index
    %c7_166 = arith.constant 7 : index
    %c0_167 = arith.constant 0 : index
    %c0_168 = arith.constant 0 : index
    %101 = vector.load %arg1[%c2_164, %c0_165, %c7_166, %c0_167, %c0_168] : memref<3x1x17x8x896xbf16, #tpu.memory_space<vmem>>, vector<1x1x1x8x896xbf16>
    %102 = vector.shape_cast %101 : vector<1x1x1x8x896xbf16> to vector<8x896xbf16>
    %103 = arith.maximumf %100, %102 : vector<8x896xbf16>
    %c0_169 = arith.constant 0 : index
    %c0_170 = arith.constant 0 : index
    %c8 = arith.constant 8 : index
    %c0_171 = arith.constant 0 : index
    %c0_172 = arith.constant 0 : index
    %104 = vector.load %arg1[%c0_169, %c0_170, %c8, %c0_171, %c0_172] : memref<3x1x17x8x896xbf16, #tpu.memory_space<vmem>>, vector<1x1x1x8x896xbf16>
    %105 = vector.shape_cast %104 : vector<1x1x1x8x896xbf16> to vector<8x896xbf16>
    %106 = arith.maximumf %103, %105 : vector<8x896xbf16>
    %c1_173 = arith.constant 1 : index
    %c0_174 = arith.constant 0 : index
    %c8_175 = arith.constant 8 : index
    %c0_176 = arith.constant 0 : index
    %c0_177 = arith.constant 0 : index
    %107 = vector.load %arg1[%c1_173, %c0_174, %c8_175, %c0_176, %c0_177] : memref<3x1x17x8x896xbf16, #tpu.memory_space<vmem>>, vector<1x1x1x8x896xbf16>
    %108 = vector.shape_cast %107 : vector<1x1x1x8x896xbf16> to vector<8x896xbf16>
    %109 = arith.maximumf %106, %108 : vector<8x896xbf16>
    %c2_178 = arith.constant 2 : index
    %c0_179 = arith.constant 0 : index
    %c8_180 = arith.constant 8 : index
    %c0_181 = arith.constant 0 : index
    %c0_182 = arith.constant 0 : index
    %110 = vector.load %arg1[%c2_178, %c0_179, %c8_180, %c0_181, %c0_182] : memref<3x1x17x8x896xbf16, #tpu.memory_space<vmem>>, vector<1x1x1x8x896xbf16>
    %111 = vector.shape_cast %110 : vector<1x1x1x8x896xbf16> to vector<8x896xbf16>
    %112 = arith.maximumf %109, %111 : vector<8x896xbf16>
    %c0_183 = arith.constant 0 : index
    %c3_184 = arith.constant 3 : index
    %c0_185 = arith.constant 0 : index
    %c0_186 = arith.constant 0 : index
    %113 = vector.load %arg2[%c0_183, %c3_184, %c0_185, %c0_186] : memref<1x8x8x896xbf16, #tpu.memory_space<vmem>>, vector<1x1x8x896xbf16>
    %114 = vector.shape_cast %113 : vector<1x1x8x896xbf16> to vector<8x896xbf16>
    %115 = vector.shape_cast %112 : vector<8x896xbf16> to vector<1x1x8x896xbf16>
    tpu.vector_store %arg2[%c0_183, %c3_184, %c0_185, %c0_186], %115 {strides = array<i32>} : memref<1x8x8x896xbf16, #tpu.memory_space<vmem>>, vector<1x1x8x896xbf16>,
    %c0_187 = arith.constant 0 : index
    %c0_188 = arith.constant 0 : index
    %c8_189 = arith.constant 8 : index
    %c0_190 = arith.constant 0 : index
    %c0_191 = arith.constant 0 : index
    %116 = vector.load %arg1[%c0_187, %c0_188, %c8_189, %c0_190, %c0_191] : memref<3x1x17x8x896xbf16, #tpu.memory_space<vmem>>, vector<1x1x1x8x896xbf16>
    %117 = vector.shape_cast %116 : vector<1x1x1x8x896xbf16> to vector<8x896xbf16>
    %c1_192 = arith.constant 1 : index
    %c0_193 = arith.constant 0 : index
    %c8_194 = arith.constant 8 : index
    %c0_195 = arith.constant 0 : index
    %c0_196 = arith.constant 0 : index
    %118 = vector.load %arg1[%c1_192, %c0_193, %c8_194, %c0_195, %c0_196] : memref<3x1x17x8x896xbf16, #tpu.memory_space<vmem>>, vector<1x1x1x8x896xbf16>
    %119 = vector.shape_cast %118 : vector<1x1x1x8x896xbf16> to vector<8x896xbf16>
    %120 = arith.maximumf %117, %119 : vector<8x896xbf16>
    %c2_197 = arith.constant 2 : index
    %c0_198 = arith.constant 0 : index
    %c8_199 = arith.constant 8 : index
    %c0_200 = arith.constant 0 : index
    %c0_201 = arith.constant 0 : index
    %121 = vector.load %arg1[%c2_197, %c0_198, %c8_199, %c0_200, %c0_201] : memref<3x1x17x8x896xbf16, #tpu.memory_space<vmem>>, vector<1x1x1x8x896xbf16>
    %122 = vector.shape_cast %121 : vector<1x1x1x8x896xbf16> to vector<8x896xbf16>
    %123 = arith.maximumf %120, %122 : vector<8x896xbf16>
    %c0_202 = arith.constant 0 : index
    %c0_203 = arith.constant 0 : index
    %c9 = arith.constant 9 : index
    %c0_204 = arith.constant 0 : index
    %c0_205 = arith.constant 0 : index
    %124 = vector.load %arg1[%c0_202, %c0_203, %c9, %c0_204, %c0_205] : memref<3x1x17x8x896xbf16, #tpu.memory_space<vmem>>, vector<1x1x1x8x896xbf16>
    %125 = vector.shape_cast %124 : vector<1x1x1x8x896xbf16> to vector<8x896xbf16>
    %126 = arith.maximumf %123, %125 : vector<8x896xbf16>
    %c1_206 = arith.constant 1 : index
    %c0_207 = arith.constant 0 : index
    %c9_208 = arith.constant 9 : index
    %c0_209 = arith.constant 0 : index
    %c0_210 = arith.constant 0 : index
    %127 = vector.load %arg1[%c1_206, %c0_207, %c9_208, %c0_209, %c0_210] : memref<3x1x17x8x896xbf16, #tpu.memory_space<vmem>>, vector<1x1x1x8x896xbf16>
    %128 = vector.shape_cast %127 : vector<1x1x1x8x896xbf16> to vector<8x896xbf16>
    %129 = arith.maximumf %126, %128 : vector<8x896xbf16>
    %c2_211 = arith.constant 2 : index
    %c0_212 = arith.constant 0 : index
    %c9_213 = arith.constant 9 : index
    %c0_214 = arith.constant 0 : index
    %c0_215 = arith.constant 0 : index
    %130 = vector.load %arg1[%c2_211, %c0_212, %c9_213, %c0_214, %c0_215] : memref<3x1x17x8x896xbf16, #tpu.memory_space<vmem>>, vector<1x1x1x8x896xbf16>
    %131 = vector.shape_cast %130 : vector<1x1x1x8x896xbf16> to vector<8x896xbf16>
    %132 = arith.maximumf %129, %131 : vector<8x896xbf16>
    %c0_216 = arith.constant 0 : index
    %c0_217 = arith.constant 0 : index
    %c10 = arith.constant 10 : index
    %c0_218 = arith.constant 0 : index
    %c0_219 = arith.constant 0 : index
    %133 = vector.load %arg1[%c0_216, %c0_217, %c10, %c0_218, %c0_219] : memref<3x1x17x8x896xbf16, #tpu.memory_space<vmem>>, vector<1x1x1x8x896xbf16>
    %134 = vector.shape_cast %133 : vector<1x1x1x8x896xbf16> to vector<8x896xbf16>
    %135 = arith.maximumf %132, %134 : vector<8x896xbf16>
    %c1_220 = arith.constant 1 : index
    %c0_221 = arith.constant 0 : index
    %c10_222 = arith.constant 10 : index
    %c0_223 = arith.constant 0 : index
    %c0_224 = arith.constant 0 : index
    %136 = vector.load %arg1[%c1_220, %c0_221, %c10_222, %c0_223, %c0_224] : memref<3x1x17x8x896xbf16, #tpu.memory_space<vmem>>, vector<1x1x1x8x896xbf16>
    %137 = vector.shape_cast %136 : vector<1x1x1x8x896xbf16> to vector<8x896xbf16>
    %138 = arith.maximumf %135, %137 : vector<8x896xbf16>
    %c2_225 = arith.constant 2 : index
    %c0_226 = arith.constant 0 : index
    %c10_227 = arith.constant 10 : index
    %c0_228 = arith.constant 0 : index
    %c0_229 = arith.constant 0 : index
    %139 = vector.load %arg1[%c2_225, %c0_226, %c10_227, %c0_228, %c0_229] : memref<3x1x17x8x896xbf16, #tpu.memory_space<vmem>>, vector<1x1x1x8x896xbf16>
    %140 = vector.shape_cast %139 : vector<1x1x1x8x896xbf16> to vector<8x896xbf16>
    %141 = arith.maximumf %138, %140 : vector<8x896xbf16>
    %c0_230 = arith.constant 0 : index
    %c4_231 = arith.constant 4 : index
    %c0_232 = arith.constant 0 : index
    %c0_233 = arith.constant 0 : index
    %142 = vector.load %arg2[%c0_230, %c4_231, %c0_232, %c0_233] : memref<1x8x8x896xbf16, #tpu.memory_space<vmem>>, vector<1x1x8x896xbf16>
    %143 = vector.shape_cast %142 : vector<1x1x8x896xbf16> to vector<8x896xbf16>
    %144 = vector.shape_cast %141 : vector<8x896xbf16> to vector<1x1x8x896xbf16>
    tpu.vector_store %arg2[%c0_230, %c4_231, %c0_232, %c0_233], %144 {strides = array<i32>} : memref<1x8x8x896xbf16, #tpu.memory_space<vmem>>, vector<1x1x8x896xbf16>,
    %c0_234 = arith.constant 0 : index
    %c0_235 = arith.constant 0 : index
    %c10_236 = arith.constant 10 : index
    %c0_237 = arith.constant 0 : index
    %c0_238 = arith.constant 0 : index
    %145 = vector.load %arg1[%c0_234, %c0_235, %c10_236, %c0_237, %c0_238] : memref<3x1x17x8x896xbf16, #tpu.memory_space<vmem>>, vector<1x1x1x8x896xbf16>
    %146 = vector.shape_cast %145 : vector<1x1x1x8x896xbf16> to vector<8x896xbf16>
    %c1_239 = arith.constant 1 : index
    %c0_240 = arith.constant 0 : index
    %c10_241 = arith.constant 10 : index
    %c0_242 = arith.constant 0 : index
    %c0_243 = arith.constant 0 : index
    %147 = vector.load %arg1[%c1_239, %c0_240, %c10_241, %c0_242, %c0_243] : memref<3x1x17x8x896xbf16, #tpu.memory_space<vmem>>, vector<1x1x1x8x896xbf16>
    %148 = vector.shape_cast %147 : vector<1x1x1x8x896xbf16> to vector<8x896xbf16>
    %149 = arith.maximumf %146, %148 : vector<8x896xbf16>
    %c2_244 = arith.constant 2 : index
    %c0_245 = arith.constant 0 : index
    %c10_246 = arith.constant 10 : index
    %c0_247 = arith.constant 0 : index
    %c0_248 = arith.constant 0 : index
    %150 = vector.load %arg1[%c2_244, %c0_245, %c10_246, %c0_247, %c0_248] : memref<3x1x17x8x896xbf16, #tpu.memory_space<vmem>>, vector<1x1x1x8x896xbf16>
    %151 = vector.shape_cast %150 : vector<1x1x1x8x896xbf16> to vector<8x896xbf16>
    %152 = arith.maximumf %149, %151 : vector<8x896xbf16>
    %c0_249 = arith.constant 0 : index
    %c0_250 = arith.constant 0 : index
    %c11 = arith.constant 11 : index
    %c0_251 = arith.constant 0 : index
    %c0_252 = arith.constant 0 : index
    %153 = vector.load %arg1[%c0_249, %c0_250, %c11, %c0_251, %c0_252] : memref<3x1x17x8x896xbf16, #tpu.memory_space<vmem>>, vector<1x1x1x8x896xbf16>
    %154 = vector.shape_cast %153 : vector<1x1x1x8x896xbf16> to vector<8x896xbf16>
    %155 = arith.maximumf %152, %154 : vector<8x896xbf16>
    %c1_253 = arith.constant 1 : index
    %c0_254 = arith.constant 0 : index
    %c11_255 = arith.constant 11 : index
    %c0_256 = arith.constant 0 : index
    %c0_257 = arith.constant 0 : index
    %156 = vector.load %arg1[%c1_253, %c0_254, %c11_255, %c0_256, %c0_257] : memref<3x1x17x8x896xbf16, #tpu.memory_space<vmem>>, vector<1x1x1x8x896xbf16>
    %157 = vector.shape_cast %156 : vector<1x1x1x8x896xbf16> to vector<8x896xbf16>
    %158 = arith.maximumf %155, %157 : vector<8x896xbf16>
    %c2_258 = arith.constant 2 : index
    %c0_259 = arith.constant 0 : index
    %c11_260 = arith.constant 11 : index
    %c0_261 = arith.constant 0 : index
    %c0_262 = arith.constant 0 : index
    %159 = vector.load %arg1[%c2_258, %c0_259, %c11_260, %c0_261, %c0_262] : memref<3x1x17x8x896xbf16, #tpu.memory_space<vmem>>, vector<1x1x1x8x896xbf16>
    %160 = vector.shape_cast %159 : vector<1x1x1x8x896xbf16> to vector<8x896xbf16>
    %161 = arith.maximumf %158, %160 : vector<8x896xbf16>
    %c0_263 = arith.constant 0 : index
    %c0_264 = arith.constant 0 : index
    %c12 = arith.constant 12 : index
    %c0_265 = arith.constant 0 : index
    %c0_266 = arith.constant 0 : index
    %162 = vector.load %arg1[%c0_263, %c0_264, %c12, %c0_265, %c0_266] : memref<3x1x17x8x896xbf16, #tpu.memory_space<vmem>>, vector<1x1x1x8x896xbf16>
    %163 = vector.shape_cast %162 : vector<1x1x1x8x896xbf16> to vector<8x896xbf16>
    %164 = arith.maximumf %161, %163 : vector<8x896xbf16>
    %c1_267 = arith.constant 1 : index
    %c0_268 = arith.constant 0 : index
    %c12_269 = arith.constant 12 : index
    %c0_270 = arith.constant 0 : index
    %c0_271 = arith.constant 0 : index
    %165 = vector.load %arg1[%c1_267, %c0_268, %c12_269, %c0_270, %c0_271] : memref<3x1x17x8x896xbf16, #tpu.memory_space<vmem>>, vector<1x1x1x8x896xbf16>
    %166 = vector.shape_cast %165 : vector<1x1x1x8x896xbf16> to vector<8x896xbf16>
    %167 = arith.maximumf %164, %166 : vector<8x896xbf16>
    %c2_272 = arith.constant 2 : index
    %c0_273 = arith.constant 0 : index
    %c12_274 = arith.constant 12 : index
    %c0_275 = arith.constant 0 : index
    %c0_276 = arith.constant 0 : index
    %168 = vector.load %arg1[%c2_272, %c0_273, %c12_274, %c0_275, %c0_276] : memref<3x1x17x8x896xbf16, #tpu.memory_space<vmem>>, vector<1x1x1x8x896xbf16>
    %169 = vector.shape_cast %168 : vector<1x1x1x8x896xbf16> to vector<8x896xbf16>
    %170 = arith.maximumf %167, %169 : vector<8x896xbf16>
    %c0_277 = arith.constant 0 : index
    %c5_278 = arith.constant 5 : index
    %c0_279 = arith.constant 0 : index
    %c0_280 = arith.constant 0 : index
    %171 = vector.load %arg2[%c0_277, %c5_278, %c0_279, %c0_280] : memref<1x8x8x896xbf16, #tpu.memory_space<vmem>>, vector<1x1x8x896xbf16>
    %172 = vector.shape_cast %171 : vector<1x1x8x896xbf16> to vector<8x896xbf16>
    %173 = vector.shape_cast %170 : vector<8x896xbf16> to vector<1x1x8x896xbf16>
    tpu.vector_store %arg2[%c0_277, %c5_278, %c0_279, %c0_280], %173 {strides = array<i32>} : memref<1x8x8x896xbf16, #tpu.memory_space<vmem>>, vector<1x1x8x896xbf16>,
    %c0_281 = arith.constant 0 : index
    %c0_282 = arith.constant 0 : index
    %c12_283 = arith.constant 12 : index
    %c0_284 = arith.constant 0 : index
    %c0_285 = arith.constant 0 : index
    %174 = vector.load %arg1[%c0_281, %c0_282, %c12_283, %c0_284, %c0_285] : memref<3x1x17x8x896xbf16, #tpu.memory_space<vmem>>, vector<1x1x1x8x896xbf16>
    %175 = vector.shape_cast %174 : vector<1x1x1x8x896xbf16> to vector<8x896xbf16>
    %c1_286 = arith.constant 1 : index
    %c0_287 = arith.constant 0 : index
    %c12_288 = arith.constant 12 : index
    %c0_289 = arith.constant 0 : index
    %c0_290 = arith.constant 0 : index
    %176 = vector.load %arg1[%c1_286, %c0_287, %c12_288, %c0_289, %c0_290] : memref<3x1x17x8x896xbf16, #tpu.memory_space<vmem>>, vector<1x1x1x8x896xbf16>
    %177 = vector.shape_cast %176 : vector<1x1x1x8x896xbf16> to vector<8x896xbf16>
    %178 = arith.maximumf %175, %177 : vector<8x896xbf16>
    %c2_291 = arith.constant 2 : index
    %c0_292 = arith.constant 0 : index
    %c12_293 = arith.constant 12 : index
    %c0_294 = arith.constant 0 : index
    %c0_295 = arith.constant 0 : index
    %179 = vector.load %arg1[%c2_291, %c0_292, %c12_293, %c0_294, %c0_295] : memref<3x1x17x8x896xbf16, #tpu.memory_space<vmem>>, vector<1x1x1x8x896xbf16>
    %180 = vector.shape_cast %179 : vector<1x1x1x8x896xbf16> to vector<8x896xbf16>
    %181 = arith.maximumf %178, %180 : vector<8x896xbf16>
    %c0_296 = arith.constant 0 : index
    %c0_297 = arith.constant 0 : index
    %c13 = arith.constant 13 : index
    %c0_298 = arith.constant 0 : index
    %c0_299 = arith.constant 0 : index
    %182 = vector.load %arg1[%c0_296, %c0_297, %c13, %c0_298, %c0_299] : memref<3x1x17x8x896xbf16, #tpu.memory_space<vmem>>, vector<1x1x1x8x896xbf16>
    %183 = vector.shape_cast %182 : vector<1x1x1x8x896xbf16> to vector<8x896xbf16>
    %184 = arith.maximumf %181, %183 : vector<8x896xbf16>
    %c1_300 = arith.constant 1 : index
    %c0_301 = arith.constant 0 : index
    %c13_302 = arith.constant 13 : index
    %c0_303 = arith.constant 0 : index
    %c0_304 = arith.constant 0 : index
    %185 = vector.load %arg1[%c1_300, %c0_301, %c13_302, %c0_303, %c0_304] : memref<3x1x17x8x896xbf16, #tpu.memory_space<vmem>>, vector<1x1x1x8x896xbf16>
    %186 = vector.shape_cast %185 : vector<1x1x1x8x896xbf16> to vector<8x896xbf16>
    %187 = arith.maximumf %184, %186 : vector<8x896xbf16>
    %c2_305 = arith.constant 2 : index
    %c0_306 = arith.constant 0 : index
    %c13_307 = arith.constant 13 : index
    %c0_308 = arith.constant 0 : index
    %c0_309 = arith.constant 0 : index
    %188 = vector.load %arg1[%c2_305, %c0_306, %c13_307, %c0_308, %c0_309] : memref<3x1x17x8x896xbf16, #tpu.memory_space<vmem>>, vector<1x1x1x8x896xbf16>
    %189 = vector.shape_cast %188 : vector<1x1x1x8x896xbf16> to vector<8x896xbf16>
    %190 = arith.maximumf %187, %189 : vector<8x896xbf16>
    %c0_310 = arith.constant 0 : index
    %c0_311 = arith.constant 0 : index
    %c14 = arith.constant 14 : index
    %c0_312 = arith.constant 0 : index
    %c0_313 = arith.constant 0 : index
    %191 = vector.load %arg1[%c0_310, %c0_311, %c14, %c0_312, %c0_313] : memref<3x1x17x8x896xbf16, #tpu.memory_space<vmem>>, vector<1x1x1x8x896xbf16>
    %192 = vector.shape_cast %191 : vector<1x1x1x8x896xbf16> to vector<8x896xbf16>
    %193 = arith.maximumf %190, %192 : vector<8x896xbf16>
    %c1_314 = arith.constant 1 : index
    %c0_315 = arith.constant 0 : index
    %c14_316 = arith.constant 14 : index
    %c0_317 = arith.constant 0 : index
    %c0_318 = arith.constant 0 : index
    %194 = vector.load %arg1[%c1_314, %c0_315, %c14_316, %c0_317, %c0_318] : memref<3x1x17x8x896xbf16, #tpu.memory_space<vmem>>, vector<1x1x1x8x896xbf16>
    %195 = vector.shape_cast %194 : vector<1x1x1x8x896xbf16> to vector<8x896xbf16>
    %196 = arith.maximumf %193, %195 : vector<8x896xbf16>
    %c2_319 = arith.constant 2 : index
    %c0_320 = arith.constant 0 : index
    %c14_321 = arith.constant 14 : index
    %c0_322 = arith.constant 0 : index
    %c0_323 = arith.constant 0 : index
    %197 = vector.load %arg1[%c2_319, %c0_320, %c14_321, %c0_322, %c0_323] : memref<3x1x17x8x896xbf16, #tpu.memory_space<vmem>>, vector<1x1x1x8x896xbf16>
    %198 = vector.shape_cast %197 : vector<1x1x1x8x896xbf16> to vector<8x896xbf16>
    %199 = arith.maximumf %196, %198 : vector<8x896xbf16>
    %c0_324 = arith.constant 0 : index
    %c6_325 = arith.constant 6 : index
    %c0_326 = arith.constant 0 : index
    %c0_327 = arith.constant 0 : index
    %200 = vector.load %arg2[%c0_324, %c6_325, %c0_326, %c0_327] : memref<1x8x8x896xbf16, #tpu.memory_space<vmem>>, vector<1x1x8x896xbf16>
    %201 = vector.shape_cast %200 : vector<1x1x8x896xbf16> to vector<8x896xbf16>
    %202 = vector.shape_cast %199 : vector<8x896xbf16> to vector<1x1x8x896xbf16>
    tpu.vector_store %arg2[%c0_324, %c6_325, %c0_326, %c0_327], %202 {strides = array<i32>} : memref<1x8x8x896xbf16, #tpu.memory_space<vmem>>, vector<1x1x8x896xbf16>,
    %c0_328 = arith.constant 0 : index
    %c0_329 = arith.constant 0 : index
    %c14_330 = arith.constant 14 : index
    %c0_331 = arith.constant 0 : index
    %c0_332 = arith.constant 0 : index
    %203 = vector.load %arg1[%c0_328, %c0_329, %c14_330, %c0_331, %c0_332] : memref<3x1x17x8x896xbf16, #tpu.memory_space<vmem>>, vector<1x1x1x8x896xbf16>
    %204 = vector.shape_cast %203 : vector<1x1x1x8x896xbf16> to vector<8x896xbf16>
    %c1_333 = arith.constant 1 : index
    %c0_334 = arith.constant 0 : index
    %c14_335 = arith.constant 14 : index
    %c0_336 = arith.constant 0 : index
    %c0_337 = arith.constant 0 : index
    %205 = vector.load %arg1[%c1_333, %c0_334, %c14_335, %c0_336, %c0_337] : memref<3x1x17x8x896xbf16, #tpu.memory_space<vmem>>, vector<1x1x1x8x896xbf16>
    %206 = vector.shape_cast %205 : vector<1x1x1x8x896xbf16> to vector<8x896xbf16>
    %207 = arith.maximumf %204, %206 : vector<8x896xbf16>
    %c2_338 = arith.constant 2 : index
    %c0_339 = arith.constant 0 : index
    %c14_340 = arith.constant 14 : index
    %c0_341 = arith.constant 0 : index
    %c0_342 = arith.constant 0 : index
    %208 = vector.load %arg1[%c2_338, %c0_339, %c14_340, %c0_341, %c0_342] : memref<3x1x17x8x896xbf16, #tpu.memory_space<vmem>>, vector<1x1x1x8x896xbf16>
    %209 = vector.shape_cast %208 : vector<1x1x1x8x896xbf16> to vector<8x896xbf16>
    %210 = arith.maximumf %207, %209 : vector<8x896xbf16>
    %c0_343 = arith.constant 0 : index
    %c0_344 = arith.constant 0 : index
    %c15 = arith.constant 15 : index
    %c0_345 = arith.constant 0 : index
    %c0_346 = arith.constant 0 : index
    %211 = vector.load %arg1[%c0_343, %c0_344, %c15, %c0_345, %c0_346] : memref<3x1x17x8x896xbf16, #tpu.memory_space<vmem>>, vector<1x1x1x8x896xbf16>
    %212 = vector.shape_cast %211 : vector<1x1x1x8x896xbf16> to vector<8x896xbf16>
    %213 = arith.maximumf %210, %212 : vector<8x896xbf16>
    %c1_347 = arith.constant 1 : index
    %c0_348 = arith.constant 0 : index
    %c15_349 = arith.constant 15 : index
    %c0_350 = arith.constant 0 : index
    %c0_351 = arith.constant 0 : index
    %214 = vector.load %arg1[%c1_347, %c0_348, %c15_349, %c0_350, %c0_351] : memref<3x1x17x8x896xbf16, #tpu.memory_space<vmem>>, vector<1x1x1x8x896xbf16>
    %215 = vector.shape_cast %214 : vector<1x1x1x8x896xbf16> to vector<8x896xbf16>
    %216 = arith.maximumf %213, %215 : vector<8x896xbf16>
    %c2_352 = arith.constant 2 : index
    %c0_353 = arith.constant 0 : index
    %c15_354 = arith.constant 15 : index
    %c0_355 = arith.constant 0 : index
    %c0_356 = arith.constant 0 : index
    %217 = vector.load %arg1[%c2_352, %c0_353, %c15_354, %c0_355, %c0_356] : memref<3x1x17x8x896xbf16, #tpu.memory_space<vmem>>, vector<1x1x1x8x896xbf16>
    %218 = vector.shape_cast %217 : vector<1x1x1x8x896xbf16> to vector<8x896xbf16>
    %219 = arith.maximumf %216, %218 : vector<8x896xbf16>
    %c0_357 = arith.constant 0 : index
    %c0_358 = arith.constant 0 : index
    %c16 = arith.constant 16 : index
    %c0_359 = arith.constant 0 : index
    %c0_360 = arith.constant 0 : index
    %220 = vector.load %arg1[%c0_357, %c0_358, %c16, %c0_359, %c0_360] : memref<3x1x17x8x896xbf16, #tpu.memory_space<vmem>>, vector<1x1x1x8x896xbf16>
    %221 = vector.shape_cast %220 : vector<1x1x1x8x896xbf16> to vector<8x896xbf16>
    %222 = arith.maximumf %219, %221 : vector<8x896xbf16>
    %c1_361 = arith.constant 1 : index
    %c0_362 = arith.constant 0 : index
    %c16_363 = arith.constant 16 : index
    %c0_364 = arith.constant 0 : index
    %c0_365 = arith.constant 0 : index
    %223 = vector.load %arg1[%c1_361, %c0_362, %c16_363, %c0_364, %c0_365] : memref<3x1x17x8x896xbf16, #tpu.memory_space<vmem>>, vector<1x1x1x8x896xbf16>
    %224 = vector.shape_cast %223 : vector<1x1x1x8x896xbf16> to vector<8x896xbf16>
    %225 = arith.maximumf %222, %224 : vector<8x896xbf16>
    %c2_366 = arith.constant 2 : index
    %c0_367 = arith.constant 0 : index
    %c16_368 = arith.constant 16 : index
    %c0_369 = arith.constant 0 : index
    %c0_370 = arith.constant 0 : index
    %226 = vector.load %arg1[%c2_366, %c0_367, %c16_368, %c0_369, %c0_370] : memref<3x1x17x8x896xbf16, #tpu.memory_space<vmem>>, vector<1x1x1x8x896xbf16>
    %227 = vector.shape_cast %226 : vector<1x1x1x8x896xbf16> to vector<8x896xbf16>
    %228 = arith.maximumf %225, %227 : vector<8x896xbf16>
    %c0_371 = arith.constant 0 : index
    %c7_372 = arith.constant 7 : index
    %c0_373 = arith.constant 0 : index
    %c0_374 = arith.constant 0 : index
    %229 = vector.load %arg2[%c0_371, %c7_372, %c0_373, %c0_374] : memref<1x8x8x896xbf16, #tpu.memory_space<vmem>>, vector<1x1x8x896xbf16>
    %230 = vector.shape_cast %229 : vector<1x1x8x896xbf16> to vector<8x896xbf16>
    %231 = vector.shape_cast %228 : vector<8x896xbf16> to vector<1x1x8x896xbf16>
    tpu.vector_store %arg2[%c0_371, %c7_372, %c0_373, %c0_374], %231 {strides = array<i32>} : memref<1x8x8x896xbf16, #tpu.memory_space<vmem>>, vector<1x1x8x896xbf16>,
    return
  }
  func.func @transform_0(%arg0: i32) -> (i32, i32, i32, i32, i32) {
    %c0_i32 = arith.constant 0 : i32
    %c0_i32_0 = arith.constant 0 : i32
    %c0_i32_1 = arith.constant 0 : i32
    %c0_i32_2 = arith.constant 0 : i32
    %c0_i32_3 = arith.constant 0 : i32
    return %c0_i32, %arg0, %c0_i32_0, %c0_i32_1, %c0_i32_2 : i32, i32, i32, i32, i32
  }
  func.func @transform_1(%arg0: i32) -> (i32, i32, i32, i32) {
    %c0_i32 = arith.constant 0 : i32
    %c0_i32_0 = arith.constant 0 : i32
    %c0_i32_1 = arith.constant 0 : i32
    %c0_i32_2 = arith.constant 0 : i32
    return %arg0, %c0_i32, %c0_i32_0, %c0_i32_1 : i32, i32, i32, i32
  }
}

module attributes {stable_mosaic.version = 11 : i64} {
  func.func @_matmul_bias_kernel(%arg0: i32, %arg1: i32, %arg2: i32, %arg3: memref<592x128xbf16, #tpu.memory_space<vmem>>, %arg4: memref<128x256xbf16, #tpu.memory_space<vmem>>, %arg5: memref<1x256xf32, #tpu.memory_space<vmem>>, %arg6: memref<592x256xbf16, #tpu.memory_space<vmem>>, %arg7: memref<592x256xf32, #tpu.memory_space<vmem>>) attributes {dimension_semantics = [#tpu.dimension_semantics<parallel>, #tpu.dimension_semantics<parallel>, #tpu.dimension_semantics<arbitrary>], iteration_bounds = array<i64: 1, 3, 7>, scalar_prefetch = 0 : i64, scratch_operands = 1 : i64, tpu.core_type = #tpu.core_type<tc>, window_params = [{transform_indices = @transform_0, window_bounds = array<i64: 592, 128>}, {transform_indices = @transform_1, window_bounds = array<i64: 128, 256>}, {transform_indices = @transform_2, window_bounds = array<i64: 1, 256>}, {transform_indices = @transform_3, window_bounds = array<i64: 592, 256>}]} {
    %c0_i32 = arith.constant 0 : i32
    %0 = arith.cmpi eq, %arg2, %c0_i32 : i32
    %1 = arith.extui %0 : i1 to i32
    %c0_i32_0 = arith.constant 0 : i32
    %2 = arith.cmpi ne, %1, %c0_i32_0 : i32
    scf.if %2 {
      %cst_9 = arith.constant 0.000000e+00 : f32
      %12 = vector.broadcast %cst_9 : f32 to vector<592x256xf32>
      %c0_10 = arith.constant 0 : index
      %c0_11 = arith.constant 0 : index
      %13 = vector.load %arg7[%c0_10, %c0_11] : memref<592x256xf32, #tpu.memory_space<vmem>>, vector<592x256xf32>
      tpu.vector_store %arg7[%c0_10, %c0_11], %12 {strides = array<i32>} : memref<592x256xf32, #tpu.memory_space<vmem>>, vector<592x256xf32>,
    } else {
    }
    %c0 = arith.constant 0 : index
    %c0_1 = arith.constant 0 : index
    %3 = vector.load %arg7[%c0, %c0_1] : memref<592x256xf32, #tpu.memory_space<vmem>>, vector<592x256xf32>
    %c0_2 = arith.constant 0 : index
    %c0_3 = arith.constant 0 : index
    %4 = vector.load %arg3[%c0_2, %c0_3] : memref<592x128xbf16, #tpu.memory_space<vmem>>, vector<592x128xbf16>
    %c0_4 = arith.constant 0 : index
    %c0_5 = arith.constant 0 : index
    %5 = vector.load %arg4[%c0_4, %c0_5] : memref<128x256xbf16, #tpu.memory_space<vmem>>, vector<128x256xbf16>
    %cst = arith.constant dense<0.000000e+00> : vector<592x256xf32>
    %6 = tpu.matmul %4, %5, %cst {dimension_numbers = #tpu.dot_dimension_numbers<[1], [0], [0], [1], [0, 0, 1, 1], [], []>} : vector<592x128xbf16>, vector<128x256xbf16>, vector<592x256xf32> -> vector<592x256xf32>
    %7 = arith.addf %3, %6 : vector<592x256xf32>
    %c0_6 = arith.constant 0 : index
    %c0_7 = arith.constant 0 : index
    %8 = vector.load %arg7[%c0_6, %c0_7] : memref<592x256xf32, #tpu.memory_space<vmem>>, vector<592x256xf32>
    tpu.vector_store %arg7[%c0_6, %c0_7], %7 {strides = array<i32>} : memref<592x256xf32, #tpu.memory_space<vmem>>, vector<592x256xf32>,
    %c6_i32 = arith.constant 6 : i32
    %9 = arith.cmpi eq, %arg2, %c6_i32 : i32
    %10 = arith.extui %9 : i1 to i32
    %c0_i32_8 = arith.constant 0 : i32
    %11 = arith.cmpi ne, %10, %c0_i32_8 : i32
    scf.if %11 {
      %c0_9 = arith.constant 0 : index
      %c0_10 = arith.constant 0 : index
      %12 = vector.load %arg7[%c0_9, %c0_10] : memref<592x256xf32, #tpu.memory_space<vmem>>, vector<592x256xf32>
      %c0_11 = arith.constant 0 : index
      %c0_12 = arith.constant 0 : index
      %13 = vector.load %arg5[%c0_11, %c0_12] : memref<1x256xf32, #tpu.memory_space<vmem>>, vector<1x256xf32>
      %14 = vector.broadcast %13 : vector<1x256xf32> to vector<592x256xf32>
      %15 = arith.addf %12, %14 : vector<592x256xf32>
      %cst_13 = arith.constant 0.000000e+00 : f32
      %16 = vector.broadcast %cst_13 : f32 to vector<592x256xf32>
      %17 = arith.maximumf %15, %16 : vector<592x256xf32>
      %18 = arith.truncf %17 : vector<592x256xf32> to vector<592x256xbf16>
      %c0_14 = arith.constant 0 : index
      %c0_15 = arith.constant 0 : index
      %19 = vector.load %arg6[%c0_14, %c0_15] : memref<592x256xbf16, #tpu.memory_space<vmem>>, vector<592x256xbf16>
      tpu.vector_store %arg6[%c0_14, %c0_15], %18 {strides = array<i32>} : memref<592x256xbf16, #tpu.memory_space<vmem>>, vector<592x256xbf16>,
    } else {
    }
    return
  }
  func.func @transform_0(%arg0: i32, %arg1: i32, %arg2: i32) -> (i32, i32) {
    %c0_i32 = arith.constant 0 : i32
    return %arg0, %arg2 : i32, i32
  }
  func.func @transform_1(%arg0: i32, %arg1: i32, %arg2: i32) -> (i32, i32) {
    %c0_i32 = arith.constant 0 : i32
    return %arg2, %arg1 : i32, i32
  }
  func.func @transform_2(%arg0: i32, %arg1: i32, %arg2: i32) -> (i32, i32) {
    %c0_i32 = arith.constant 0 : i32
    %c0_i32_0 = arith.constant 0 : i32
    return %c0_i32, %arg1 : i32, i32
  }
  func.func @transform_3(%arg0: i32, %arg1: i32, %arg2: i32) -> (i32, i32) {
    %c0_i32 = arith.constant 0 : i32
    return %arg0, %arg1 : i32, i32
  }
}

module attributes {stable_mosaic.version = 11 : i64} {
  func.func @_matmul_bias_kernel(%arg0: i32, %arg1: i32, %arg2: i32, %arg3: memref<592x256xbf16, #tpu.memory_space<vmem>>, %arg4: memref<256x256xbf16, #tpu.memory_space<vmem>>, %arg5: memref<1x256xf32, #tpu.memory_space<vmem>>, %arg6: memref<592x256xbf16, #tpu.memory_space<vmem>>, %arg7: memref<592x256xf32, #tpu.memory_space<vmem>>) attributes {dimension_semantics = [#tpu.dimension_semantics<parallel>, #tpu.dimension_semantics<parallel>, #tpu.dimension_semantics<arbitrary>], iteration_bounds = array<i64: 1, 1, 9>, scalar_prefetch = 0 : i64, scratch_operands = 1 : i64, tpu.core_type = #tpu.core_type<tc>, window_params = [{transform_indices = @transform_0, window_bounds = array<i64: 592, 256>}, {transform_indices = @transform_1, window_bounds = array<i64: 256, 256>}, {transform_indices = @transform_2, window_bounds = array<i64: 1, 256>}, {transform_indices = @transform_3, window_bounds = array<i64: 592, 256>}]} {
    %c0_i32 = arith.constant 0 : i32
    %0 = arith.cmpi eq, %arg2, %c0_i32 : i32
    %1 = arith.extui %0 : i1 to i32
    %c0_i32_0 = arith.constant 0 : i32
    %2 = arith.cmpi ne, %1, %c0_i32_0 : i32
    scf.if %2 {
      %cst_9 = arith.constant 0.000000e+00 : f32
      %12 = vector.broadcast %cst_9 : f32 to vector<592x256xf32>
      %c0_10 = arith.constant 0 : index
      %c0_11 = arith.constant 0 : index
      %13 = vector.load %arg7[%c0_10, %c0_11] : memref<592x256xf32, #tpu.memory_space<vmem>>, vector<592x256xf32>
      tpu.vector_store %arg7[%c0_10, %c0_11], %12 {strides = array<i32>} : memref<592x256xf32, #tpu.memory_space<vmem>>, vector<592x256xf32>,
    } else {
    }
    %c0 = arith.constant 0 : index
    %c0_1 = arith.constant 0 : index
    %3 = vector.load %arg7[%c0, %c0_1] : memref<592x256xf32, #tpu.memory_space<vmem>>, vector<592x256xf32>
    %c0_2 = arith.constant 0 : index
    %c0_3 = arith.constant 0 : index
    %4 = vector.load %arg3[%c0_2, %c0_3] : memref<592x256xbf16, #tpu.memory_space<vmem>>, vector<592x256xbf16>
    %c0_4 = arith.constant 0 : index
    %c0_5 = arith.constant 0 : index
    %5 = vector.load %arg4[%c0_4, %c0_5] : memref<256x256xbf16, #tpu.memory_space<vmem>>, vector<256x256xbf16>
    %cst = arith.constant dense<0.000000e+00> : vector<592x256xf32>
    %6 = tpu.matmul %4, %5, %cst {dimension_numbers = #tpu.dot_dimension_numbers<[1], [0], [0], [1], [0, 0, 1, 1], [], []>} : vector<592x256xbf16>, vector<256x256xbf16>, vector<592x256xf32> -> vector<592x256xf32>
    %7 = arith.addf %3, %6 : vector<592x256xf32>
    %c0_6 = arith.constant 0 : index
    %c0_7 = arith.constant 0 : index
    %8 = vector.load %arg7[%c0_6, %c0_7] : memref<592x256xf32, #tpu.memory_space<vmem>>, vector<592x256xf32>
    tpu.vector_store %arg7[%c0_6, %c0_7], %7 {strides = array<i32>} : memref<592x256xf32, #tpu.memory_space<vmem>>, vector<592x256xf32>,
    %c8_i32 = arith.constant 8 : i32
    %9 = arith.cmpi eq, %arg2, %c8_i32 : i32
    %10 = arith.extui %9 : i1 to i32
    %c0_i32_8 = arith.constant 0 : i32
    %11 = arith.cmpi ne, %10, %c0_i32_8 : i32
    scf.if %11 {
      %c0_9 = arith.constant 0 : index
      %c0_10 = arith.constant 0 : index
      %12 = vector.load %arg7[%c0_9, %c0_10] : memref<592x256xf32, #tpu.memory_space<vmem>>, vector<592x256xf32>
      %c0_11 = arith.constant 0 : index
      %c0_12 = arith.constant 0 : index
      %13 = vector.load %arg5[%c0_11, %c0_12] : memref<1x256xf32, #tpu.memory_space<vmem>>, vector<1x256xf32>
      %14 = vector.broadcast %13 : vector<1x256xf32> to vector<592x256xf32>
      %15 = arith.addf %12, %14 : vector<592x256xf32>
      %cst_13 = arith.constant 0.000000e+00 : f32
      %16 = vector.broadcast %cst_13 : f32 to vector<592x256xf32>
      %17 = arith.maximumf %15, %16 : vector<592x256xf32>
      %18 = arith.truncf %17 : vector<592x256xf32> to vector<592x256xbf16>
      %c0_14 = arith.constant 0 : index
      %c0_15 = arith.constant 0 : index
      %19 = vector.load %arg6[%c0_14, %c0_15] : memref<592x256xbf16, #tpu.memory_space<vmem>>, vector<592x256xbf16>
      tpu.vector_store %arg6[%c0_14, %c0_15], %18 {strides = array<i32>} : memref<592x256xbf16, #tpu.memory_space<vmem>>, vector<592x256xbf16>,
    } else {
    }
    return
  }
  func.func @transform_0(%arg0: i32, %arg1: i32, %arg2: i32) -> (i32, i32) {
    %c0_i32 = arith.constant 0 : i32
    return %arg0, %arg2 : i32, i32
  }
  func.func @transform_1(%arg0: i32, %arg1: i32, %arg2: i32) -> (i32, i32) {
    %c0_i32 = arith.constant 0 : i32
    return %arg2, %arg1 : i32, i32
  }
  func.func @transform_2(%arg0: i32, %arg1: i32, %arg2: i32) -> (i32, i32) {
    %c0_i32 = arith.constant 0 : i32
    %c0_i32_0 = arith.constant 0 : i32
    return %c0_i32, %arg1 : i32, i32
  }
  func.func @transform_3(%arg0: i32, %arg1: i32, %arg2: i32) -> (i32, i32) {
    %c0_i32 = arith.constant 0 : i32
    return %arg0, %arg1 : i32, i32
  }
}

module attributes {stable_mosaic.version = 11 : i64} {
  func.func @_matmul_bias_kernel(%arg0: i32, %arg1: i32, %arg2: i32, %arg3: memref<128x256xbf16, #tpu.memory_space<vmem>>, %arg4: memref<256x256xbf16, #tpu.memory_space<vmem>>, %arg5: memref<1x256xf32, #tpu.memory_space<vmem>>, %arg6: memref<128x256xbf16, #tpu.memory_space<vmem>>, %arg7: memref<128x256xf32, #tpu.memory_space<vmem>>) attributes {dimension_semantics = [#tpu.dimension_semantics<parallel>, #tpu.dimension_semantics<parallel>, #tpu.dimension_semantics<arbitrary>], iteration_bounds = array<i64: 1, 1, 9>, scalar_prefetch = 0 : i64, scratch_operands = 1 : i64, tpu.core_type = #tpu.core_type<tc>, window_params = [{transform_indices = @transform_0, window_bounds = array<i64: 128, 256>}, {transform_indices = @transform_1, window_bounds = array<i64: 256, 256>}, {transform_indices = @transform_2, window_bounds = array<i64: 1, 256>}, {transform_indices = @transform_3, window_bounds = array<i64: 128, 256>}]} {
    %c0_i32 = arith.constant 0 : i32
    %0 = arith.cmpi eq, %arg2, %c0_i32 : i32
    %1 = arith.extui %0 : i1 to i32
    %c0_i32_0 = arith.constant 0 : i32
    %2 = arith.cmpi ne, %1, %c0_i32_0 : i32
    scf.if %2 {
      %cst_9 = arith.constant 0.000000e+00 : f32
      %12 = vector.broadcast %cst_9 : f32 to vector<128x256xf32>
      %c0_10 = arith.constant 0 : index
      %c0_11 = arith.constant 0 : index
      %13 = vector.load %arg7[%c0_10, %c0_11] : memref<128x256xf32, #tpu.memory_space<vmem>>, vector<128x256xf32>
      tpu.vector_store %arg7[%c0_10, %c0_11], %12 {strides = array<i32>} : memref<128x256xf32, #tpu.memory_space<vmem>>, vector<128x256xf32>,
    } else {
    }
    %c0 = arith.constant 0 : index
    %c0_1 = arith.constant 0 : index
    %3 = vector.load %arg7[%c0, %c0_1] : memref<128x256xf32, #tpu.memory_space<vmem>>, vector<128x256xf32>
    %c0_2 = arith.constant 0 : index
    %c0_3 = arith.constant 0 : index
    %4 = vector.load %arg3[%c0_2, %c0_3] : memref<128x256xbf16, #tpu.memory_space<vmem>>, vector<128x256xbf16>
    %c0_4 = arith.constant 0 : index
    %c0_5 = arith.constant 0 : index
    %5 = vector.load %arg4[%c0_4, %c0_5] : memref<256x256xbf16, #tpu.memory_space<vmem>>, vector<256x256xbf16>
    %cst = arith.constant dense<0.000000e+00> : vector<128x256xf32>
    %6 = tpu.matmul %4, %5, %cst {dimension_numbers = #tpu.dot_dimension_numbers<[1], [0], [0], [1], [0, 0, 1, 1], [], []>} : vector<128x256xbf16>, vector<256x256xbf16>, vector<128x256xf32> -> vector<128x256xf32>
    %7 = arith.addf %3, %6 : vector<128x256xf32>
    %c0_6 = arith.constant 0 : index
    %c0_7 = arith.constant 0 : index
    %8 = vector.load %arg7[%c0_6, %c0_7] : memref<128x256xf32, #tpu.memory_space<vmem>>, vector<128x256xf32>
    tpu.vector_store %arg7[%c0_6, %c0_7], %7 {strides = array<i32>} : memref<128x256xf32, #tpu.memory_space<vmem>>, vector<128x256xf32>,
    %c8_i32 = arith.constant 8 : i32
    %9 = arith.cmpi eq, %arg2, %c8_i32 : i32
    %10 = arith.extui %9 : i1 to i32
    %c0_i32_8 = arith.constant 0 : i32
    %11 = arith.cmpi ne, %10, %c0_i32_8 : i32
    scf.if %11 {
      %c0_9 = arith.constant 0 : index
      %c0_10 = arith.constant 0 : index
      %12 = vector.load %arg7[%c0_9, %c0_10] : memref<128x256xf32, #tpu.memory_space<vmem>>, vector<128x256xf32>
      %c0_11 = arith.constant 0 : index
      %c0_12 = arith.constant 0 : index
      %13 = vector.load %arg5[%c0_11, %c0_12] : memref<1x256xf32, #tpu.memory_space<vmem>>, vector<1x256xf32>
      %14 = vector.broadcast %13 : vector<1x256xf32> to vector<128x256xf32>
      %15 = arith.addf %12, %14 : vector<128x256xf32>
      %cst_13 = arith.constant 0.000000e+00 : f32
      %16 = vector.broadcast %cst_13 : f32 to vector<128x256xf32>
      %17 = arith.maximumf %15, %16 : vector<128x256xf32>
      %18 = arith.truncf %17 : vector<128x256xf32> to vector<128x256xbf16>
      %c0_14 = arith.constant 0 : index
      %c0_15 = arith.constant 0 : index
      %19 = vector.load %arg6[%c0_14, %c0_15] : memref<128x256xbf16, #tpu.memory_space<vmem>>, vector<128x256xbf16>
      tpu.vector_store %arg6[%c0_14, %c0_15], %18 {strides = array<i32>} : memref<128x256xbf16, #tpu.memory_space<vmem>>, vector<128x256xbf16>,
    } else {
    }
    return
  }
  func.func @transform_0(%arg0: i32, %arg1: i32, %arg2: i32) -> (i32, i32) {
    %c0_i32 = arith.constant 0 : i32
    return %arg0, %arg2 : i32, i32
  }
  func.func @transform_1(%arg0: i32, %arg1: i32, %arg2: i32) -> (i32, i32) {
    %c0_i32 = arith.constant 0 : i32
    return %arg2, %arg1 : i32, i32
  }
  func.func @transform_2(%arg0: i32, %arg1: i32, %arg2: i32) -> (i32, i32) {
    %c0_i32 = arith.constant 0 : i32
    %c0_i32_0 = arith.constant 0 : i32
    return %c0_i32, %arg1 : i32, i32
  }
  func.func @transform_3(%arg0: i32, %arg1: i32, %arg2: i32) -> (i32, i32) {
    %c0_i32 = arith.constant 0 : i32
    return %arg0, %arg1 : i32, i32
  }
}

module attributes {stable_mosaic.version = 11 : i64} {
  func.func @_matmul_bias_kernel(%arg0: i32, %arg1: i32, %arg2: i32, %arg3: memref<128x256xbf16, #tpu.memory_space<vmem>>, %arg4: memref<256x128xbf16, #tpu.memory_space<vmem>>, %arg5: memref<1x128xf32, #tpu.memory_space<vmem>>, %arg6: memref<128x128xbf16, #tpu.memory_space<vmem>>, %arg7: memref<128x128xf32, #tpu.memory_space<vmem>>) attributes {dimension_semantics = [#tpu.dimension_semantics<parallel>, #tpu.dimension_semantics<parallel>, #tpu.dimension_semantics<arbitrary>], iteration_bounds = array<i64: 1, 3, 9>, scalar_prefetch = 0 : i64, scratch_operands = 1 : i64, tpu.core_type = #tpu.core_type<tc>, window_params = [{transform_indices = @transform_0, window_bounds = array<i64: 128, 256>}, {transform_indices = @transform_1, window_bounds = array<i64: 256, 128>}, {transform_indices = @transform_2, window_bounds = array<i64: 1, 128>}, {transform_indices = @transform_3, window_bounds = array<i64: 128, 128>}]} {
    %c0_i32 = arith.constant 0 : i32
    %0 = arith.cmpi eq, %arg2, %c0_i32 : i32
    %1 = arith.extui %0 : i1 to i32
    %c0_i32_0 = arith.constant 0 : i32
    %2 = arith.cmpi ne, %1, %c0_i32_0 : i32
    scf.if %2 {
      %cst_9 = arith.constant 0.000000e+00 : f32
      %12 = vector.broadcast %cst_9 : f32 to vector<128x128xf32>
      %c0_10 = arith.constant 0 : index
      %c0_11 = arith.constant 0 : index
      %13 = vector.load %arg7[%c0_10, %c0_11] : memref<128x128xf32, #tpu.memory_space<vmem>>, vector<128x128xf32>
      tpu.vector_store %arg7[%c0_10, %c0_11], %12 {strides = array<i32>} : memref<128x128xf32, #tpu.memory_space<vmem>>, vector<128x128xf32>,
    } else {
    }
    %c0 = arith.constant 0 : index
    %c0_1 = arith.constant 0 : index
    %3 = vector.load %arg7[%c0, %c0_1] : memref<128x128xf32, #tpu.memory_space<vmem>>, vector<128x128xf32>
    %c0_2 = arith.constant 0 : index
    %c0_3 = arith.constant 0 : index
    %4 = vector.load %arg3[%c0_2, %c0_3] : memref<128x256xbf16, #tpu.memory_space<vmem>>, vector<128x256xbf16>
    %c0_4 = arith.constant 0 : index
    %c0_5 = arith.constant 0 : index
    %5 = vector.load %arg4[%c0_4, %c0_5] : memref<256x128xbf16, #tpu.memory_space<vmem>>, vector<256x128xbf16>
    %cst = arith.constant dense<0.000000e+00> : vector<128x128xf32>
    %6 = tpu.matmul %4, %5, %cst {dimension_numbers = #tpu.dot_dimension_numbers<[1], [0], [0], [1], [0, 0, 1, 1], [], []>} : vector<128x256xbf16>, vector<256x128xbf16>, vector<128x128xf32> -> vector<128x128xf32>
    %7 = arith.addf %3, %6 : vector<128x128xf32>
    %c0_6 = arith.constant 0 : index
    %c0_7 = arith.constant 0 : index
    %8 = vector.load %arg7[%c0_6, %c0_7] : memref<128x128xf32, #tpu.memory_space<vmem>>, vector<128x128xf32>
    tpu.vector_store %arg7[%c0_6, %c0_7], %7 {strides = array<i32>} : memref<128x128xf32, #tpu.memory_space<vmem>>, vector<128x128xf32>,
    %c8_i32 = arith.constant 8 : i32
    %9 = arith.cmpi eq, %arg2, %c8_i32 : i32
    %10 = arith.extui %9 : i1 to i32
    %c0_i32_8 = arith.constant 0 : i32
    %11 = arith.cmpi ne, %10, %c0_i32_8 : i32
    scf.if %11 {
      %c0_9 = arith.constant 0 : index
      %c0_10 = arith.constant 0 : index
      %12 = vector.load %arg7[%c0_9, %c0_10] : memref<128x128xf32, #tpu.memory_space<vmem>>, vector<128x128xf32>
      %c0_11 = arith.constant 0 : index
      %c0_12 = arith.constant 0 : index
      %13 = vector.load %arg5[%c0_11, %c0_12] : memref<1x128xf32, #tpu.memory_space<vmem>>, vector<1x128xf32>
      %14 = vector.broadcast %13 : vector<1x128xf32> to vector<128x128xf32>
      %15 = arith.addf %12, %14 : vector<128x128xf32>
      %cst_13 = arith.constant 0.000000e+00 : f32
      %16 = vector.broadcast %cst_13 : f32 to vector<128x128xf32>
      %17 = arith.maximumf %15, %16 : vector<128x128xf32>
      %18 = arith.truncf %17 : vector<128x128xf32> to vector<128x128xbf16>
      %c0_14 = arith.constant 0 : index
      %c0_15 = arith.constant 0 : index
      %19 = vector.load %arg6[%c0_14, %c0_15] : memref<128x128xbf16, #tpu.memory_space<vmem>>, vector<128x128xbf16>
      tpu.vector_store %arg6[%c0_14, %c0_15], %18 {strides = array<i32>} : memref<128x128xbf16, #tpu.memory_space<vmem>>, vector<128x128xbf16>,
    } else {
    }
    return
  }
  func.func @transform_0(%arg0: i32, %arg1: i32, %arg2: i32) -> (i32, i32) {
    %c0_i32 = arith.constant 0 : i32
    return %arg0, %arg2 : i32, i32
  }
  func.func @transform_1(%arg0: i32, %arg1: i32, %arg2: i32) -> (i32, i32) {
    %c0_i32 = arith.constant 0 : i32
    return %arg2, %arg1 : i32, i32
  }
  func.func @transform_2(%arg0: i32, %arg1: i32, %arg2: i32) -> (i32, i32) {
    %c0_i32 = arith.constant 0 : i32
    %c0_i32_0 = arith.constant 0 : i32
    return %c0_i32, %arg1 : i32, i32
  }
  func.func @transform_3(%arg0: i32, %arg1: i32, %arg2: i32) -> (i32, i32) {
    %c0_i32 = arith.constant 0 : i32
    return %arg0, %arg1 : i32, i32
  }
}

</mosaic_0001>

<bundles_post_ra>
// kernel: mixed7a_forward.11
= control target key start
LH: loop header
LB: loop body
LE: loop exit
PB: predicated region body
PF: predicated region fallthrough
CT: control target
= control target key end

     0   :  { %s1735_s6 = smov 0   ;;  %s1737_s7 = smov 0   ;;  %s2559_s0 = inlined_call_operand.vmem [shape: bf16[3,2,17,8,896], index: 0, kind: input, shape index: {}]   ;;  %s2560_s1 = inlined_call_operand.vmem [shape: bf16[2,8,8,896], index: 1, kind: output, shape index: {}]  }
   0x1   :  { %s1739_s8 = smov 0  }
   0x2 LB: > { %s1250_s9 = sadd.s32 4294967295, %s1723_s8   ;;  %s1752_s10 = sadd.s32 1, %s1723_s8   ;;  %s1723_s8 = sphi %s1739_s8, %s2564_s8   ;;  %s1719_s7 = sphi %s1737_s7, %s2563_s7   ;;  %s1715_s6 = sphi %s1735_s6, %s2562_s6  }
   0x3   : > { %s15_s11 = ssub.s32 %s1723_s8, %s1752_s10  ;;  %s18_s12 = sadd.s32 1, %s1719_s7 }
   0x4   : > { %p16_p0 = scmp.eq.s32.totalorder %s15_s11, 0  ;;  %p25_p1 = scmp.ne.s32.totalorder %s1719_s7, %s1715_s6 }
   0x5   : > { %p26_p2 = scmp.eq.s32.totalorder %s1723_s8, 0  ;;  %p1253_p4 = scmp.ge.s32.totalorder %s1723_s8, 2 }
   0x6   : > { %s1761_s13 = scalar_select %p16_p0, %s1719_s7, %s18_s12  }
   0x7   : > { %p27_p3 = por %p26_p2, %p25_p1  ;;  %77 = sbr.rel (%p1253_p4) target bundleno = 129 (0x81), region = 16 }
   0xe   : > { %80 = sbr.rel (!%p27_p3) target bundleno = 129 (0x81), region = 20  ;;  %s82_s14 = sand.u32 (%p27_p3), 1, %s1719_s7  }
   0xf   : > { %s1674_s15 = smul.u32 (%p27_p3), 476, %s1723_s8 }
  0x10   : > { %s1673_s16 = smul.u32 (%p27_p3), 1428, %s82_s14 }
  0x11   : > { %s1769_s19 = scalar_lea.vmem (%p27_p3), %s2559_s0, %s1674_s15 }
  0x12   : > { %v102_v0 = vld [vmem:[%s1769_s19] sm:$0xff] (%p27_p3)  ;;  %v104_v1 = vld [vmem:[%s1769_s19 + $0x8] sm:$0xff] (%p27_p3)  ;;  %v106_v2 = vld [vmem:[%s1769_s19 + $0x10] sm:$0xff] (%p27_p3)  ;;  %s1774_s20 = scalar_lea.vmem (%p27_p3), [#allocation2], %s1673_s16 }
  0x13   : > { %103 = vst [vmem:[%s1774_s20] sm:$0xff] (%p27_p3), %v102_v0  ;;  %105 = vst [vmem:[%s1774_s20 + $0x8] sm:$0xff] (%p27_p3), %v104_v1  ;;  %v108_v3 = vld [vmem:[%s1769_s19 + $0x1c] sm:$0xff] (%p27_p3)  ;;  %v110_v4 = vld [vmem:[%s1769_s19 + $0x24] sm:$0xff] (%p27_p3) }
  0x14   : > { %107 = vst [vmem:[%s1774_s20 + $0x10] sm:$0xff] (%p27_p3), %v106_v2  ;;  %v112_v5 = vld [vmem:[%s1769_s19 + $0x2c] sm:$0xff] (%p27_p3)  ;;  %109 = vst [vmem:[%s1774_s20 + $0x1c] sm:$0xff] (%p27_p3), %v108_v3  ;;  %v114_v6 = vld [vmem:[%s1769_s19 + $0x38] sm:$0xff] (%p27_p3) }
  0x15   : > { %111 = vst [vmem:[%s1774_s20 + $0x24] sm:$0xff] %v110_v4  ;;  %113 = vst [vmem:[%s1774_s20 + $0x2c] sm:$0xff] %v112_v5  ;;  %v116_v7 = vld [vmem:[%s1769_s19 + $0x40] sm:$0xff]  ;;  %v118_v8 = vld [vmem:[%s1769_s19 + $0x48] sm:$0xff] }
  0x16   : > { %115 = vst [vmem:[%s1774_s20 + $0x38] sm:$0xff] %v114_v6  ;;  %117 = vst [vmem:[%s1774_s20 + $0x40] sm:$0xff] %v116_v7  ;;  %v120_v9 = vld [vmem:[%s1769_s19 + $0x54] sm:$0xff]  ;;  %v122_v10 = vld [vmem:[%s1769_s19 + $0x5c] sm:$0xff] }
  0x17   : > { %119 = vst [vmem:[%s1774_s20 + $0x48] sm:$0xff] %v118_v8  ;;  %v124_v11 = vld [vmem:[%s1769_s19 + $0x64] sm:$0xff]  ;;  %121 = vst [vmem:[%s1774_s20 + $0x54] sm:$0xff] %v120_v9  ;;  %v126_v12 = vld [vmem:[%s1769_s19 + $0x70] sm:$0xff] }
  0x18   : > { %123 = vst [vmem:[%s1774_s20 + $0x5c] sm:$0xff] %v122_v10  ;;  %125 = vst [vmem:[%s1774_s20 + $0x64] sm:$0xff] %v124_v11  ;;  %v128_v13 = vld [vmem:[%s1769_s19 + $0x78] sm:$0xff]  ;;  %v130_v14 = vld [vmem:[%s1769_s19 + $0x80] sm:$0xff] }
  0x19   : > { %127 = vst [vmem:[%s1774_s20 + $0x70] sm:$0xff] %v126_v12  ;;  %129 = vst [vmem:[%s1774_s20 + $0x78] sm:$0xff] %v128_v13  ;;  %v132_v15 = vld [vmem:[%s1769_s19 + $0x8c] sm:$0xff]  ;;  %v134_v16 = vld [vmem:[%s1769_s19 + $0x94] sm:$0xff] }
  0x1a   : > { %131 = vst [vmem:[%s1774_s20 + $0x80] sm:$0xff] %v130_v14  ;;  %v136_v17 = vld [vmem:[%s1769_s19 + $0x9c] sm:$0xff]  ;;  %133 = vst [vmem:[%s1774_s20 + $0x8c] sm:$0xff] %v132_v15  ;;  %v138_v18 = vld [vmem:[%s1769_s19 + $0xa8] sm:$0xff] }
  0x1b   : > { %135 = vst [vmem:[%s1774_s20 + $0x94] sm:$0xff] %v134_v16  ;;  %137 = vst [vmem:[%s1774_s20 + $0x9c] sm:$0xff] %v136_v17  ;;  %v140_v19 = vld [vmem:[%s1769_s19 + $0xb0] sm:$0xff]  ;;  %v142_v20 = vld [vmem:[%s1769_s19 + $0xb8] sm:$0xff] }
  0x1c   : > { %139 = vst [vmem:[%s1774_s20 + $0xa8] sm:$0xff] %v138_v18  ;;  %141 = vst [vmem:[%s1774_s20 + $0xb0] sm:$0xff] %v140_v19  ;;  %v144_v21 = vld [vmem:[%s1769_s19 + $0xc4] sm:$0xff]  ;;  %v146_v22 = vld [vmem:[%s1769_s19 + $0xcc] sm:$0xff] }
  0x1d   : > { %143 = vst [vmem:[%s1774_s20 + $0xb8] sm:$0xff] %v142_v20  ;;  %v148_v23 = vld [vmem:[%s1769_s19 + $0xd4] sm:$0xff]  ;;  %145 = vst [vmem:[%s1774_s20 + $0xc4] sm:$0xff] %v144_v21  ;;  %v150_v24 = vld [vmem:[%s1769_s19 + $0xe0] sm:$0xff] }
  0x1e   : > { %147 = vst [vmem:[%s1774_s20 + $0xcc] sm:$0xff] %v146_v22  ;;  %149 = vst [vmem:[%s1774_s20 + $0xd4] sm:$0xff] %v148_v23  ;;  %v152_v25 = vld [vmem:[%s1769_s19 + $0xe8] sm:$0xff]  ;;  %v154_v26 = vld [vmem:[%s1769_s19 + $0xf0] sm:$0xff] }
  0x1f   : > { %151 = vst [vmem:[%s1774_s20 + $0xe0] sm:$0xff] %v150_v24  ;;  %153 = vst [vmem:[%s1774_s20 + $0xe8] sm:$0xff] %v152_v25  ;;  %v156_v27 = vld [vmem:[%s1769_s19 + $0xfc] sm:$0xff]  ;;  %v158_v28 = vld [vmem:[%s1769_s19 + $0x104] sm:$0xff] }
  0x20   : > { %155 = vst [vmem:[%s1774_s20 + $0xf0] sm:$0xff] %v154_v26  ;;  %v160_v29 = vld [vmem:[%s1769_s19 + $0x10c] sm:$0xff]  ;;  %157 = vst [vmem:[%s1774_s20 + $0xfc] sm:$0xff] %v156_v27  ;;  %v162_v30 = vld [vmem:[%s1769_s19 + $0x118] sm:$0xff] }
  0x21   : > { %159 = vst [vmem:[%s1774_s20 + $0x104] sm:$0xff] %v158_v28  ;;  %161 = vst [vmem:[%s1774_s20 + $0x10c] sm:$0xff] %v160_v29  ;;  %v164_v31 = vld [vmem:[%s1769_s19 + $0x120] sm:$0xff]  ;;  %v166_v32 = vld [vmem:[%s1769_s19 + $0x128] sm:$0xff] }
  0x22   : > { %163 = vst [vmem:[%s1774_s20 + $0x118] sm:$0xff] %v162_v30  ;;  %165 = vst [vmem:[%s1774_s20 + $0x120] sm:$0xff] %v164_v31  ;;  %v168_v33 = vld [vmem:[%s1769_s19 + $0x134] sm:$0xff]  ;;  %v170_v34 = vld [vmem:[%s1769_s19 + $0x13c] sm:$0xff] }
  0x23   : > { %167 = vst [vmem:[%s1774_s20 + $0x128] sm:$0xff] %v166_v32  ;;  %v172_v35 = vld [vmem:[%s1769_s19 + $0x144] sm:$0xff]  ;;  %169 = vst [vmem:[%s1774_s20 + $0x134] sm:$0xff] %v168_v33  ;;  %v174_v36 = vld [vmem:[%s1769_s19 + $0x150] sm:$0xff] }
  0x24   : > { %171 = vst [vmem:[%s1774_s20 + $0x13c] sm:$0xff] %v170_v34  ;;  %173 = vst [vmem:[%s1774_s20 + $0x144] sm:$0xff] %v172_v35  ;;  %v176_v37 = vld [vmem:[%s1769_s19 + $0x158] sm:$0xff]  ;;  %v178_v38 = vld [vmem:[%s1769_s19 + $0x160] sm:$0xff] }
  0x25   : > { %175 = vst [vmem:[%s1774_s20 + $0x150] sm:$0xff] %v174_v36  ;;  %177 = vst [vmem:[%s1774_s20 + $0x158] sm:$0xff] %v176_v37  ;;  %v180_v39 = vld [vmem:[%s1769_s19 + $0x16c] sm:$0xff]  ;;  %v182_v40 = vld [vmem:[%s1769_s19 + $0x174] sm:$0xff] }
  0x26   : > { %179 = vst [vmem:[%s1774_s20 + $0x160] sm:$0xff] %v178_v38  ;;  %v184_v41 = vld [vmem:[%s1769_s19 + $0x17c] sm:$0xff]  ;;  %181 = vst [vmem:[%s1774_s20 + $0x16c] sm:$0xff] %v180_v39  ;;  %v186_v42 = vld [vmem:[%s1769_s19 + $0x188] sm:$0xff] }
  0x27   : > { %183 = vst [vmem:[%s1774_s20 + $0x174] sm:$0xff] %v182_v40  ;;  %185 = vst [vmem:[%s1774_s20 + $0x17c] sm:$0xff] %v184_v41  ;;  %v188_v43 = vld [vmem:[%s1769_s19 + $0x190] sm:$0xff]  ;;  %v190_v44 = vld [vmem:[%s1769_s19 + $0x198] sm:$0xff] }
  0x28   : > { %187 = vst [vmem:[%s1774_s20 + $0x188] sm:$0xff] %v186_v42  ;;  %189 = vst [vmem:[%s1774_s20 + $0x190] sm:$0xff] %v188_v43  ;;  %v192_v45 = vld [vmem:[%s1769_s19 + $0x1a4] sm:$0xff]  ;;  %v194_v46 = vld [vmem:[%s1769_s19 + $0x1ac] sm:$0xff] }
  0x29   : > { %191 = vst [vmem:[%s1774_s20 + $0x198] sm:$0xff] %v190_v44  ;;  %v196_v47 = vld [vmem:[%s1769_s19 + $0x1b4] sm:$0xff]  ;;  %193 = vst [vmem:[%s1774_s20 + $0x1a4] sm:$0xff] %v192_v45  ;;  %v198_v48 = vld [vmem:[%s1769_s19 + $0x1c0] sm:$0xff] }
  0x2a   : > { %195 = vst [vmem:[%s1774_s20 + $0x1ac] sm:$0xff] %v194_v46  ;;  %197 = vst [vmem:[%s1774_s20 + $0x1b4] sm:$0xff] %v196_v47  ;;  %v200_v49 = vld [vmem:[%s1769_s19 + $0x1c8] sm:$0xff]  ;;  %v202_v50 = vld [vmem:[%s1769_s19 + $0x1d0] sm:$0xff] }
  0x2b   : > { %199 = vst [vmem:[%s1774_s20 + $0x1c0] sm:$0xff] %v198_v48  ;;  %201 = vst [vmem:[%s1774_s20 + $0x1c8] sm:$0xff] %v200_v49  ;;  %v204_v51 = vld [vmem:[%s1769_s19 + $0x3b8] sm:$0xff]  ;;  %v206_v52 = vld [vmem:[%s1769_s19 + $0x3c0] sm:$0xff] }
  0x2c   : > { %203 = vst [vmem:[%s1774_s20 + $0x1d0] sm:$0xff] %v202_v50  ;;  %v208_v53 = vld [vmem:[%s1769_s19 + $0x3c8] sm:$0xff]  ;;  %205 = vst [vmem:[%s1774_s20 + $0x1dc] sm:$0xff] %v204_v51  ;;  %v210_v54 = vld [vmem:[%s1769_s19 + $0x3d4] sm:$0xff] }
  0x2d   : > { %207 = vst [vmem:[%s1774_s20 + $0x1e4] sm:$0xff] %v206_v52  ;;  %209 = vst [vmem:[%s1774_s20 + $0x1ec] sm:$0xff] %v208_v53  ;;  %v212_v55 = vld [vmem:[%s1769_s19 + $0x3dc] sm:$0xff]  ;;  %v214_v56 = vld [vmem:[%s1769_s19 + $0x3e4] sm:$0xff] }
  0x2e   : > { %211 = vst [vmem:[%s1774_s20 + $0x1f8] sm:$0xff] %v210_v54  ;;  %213 = vst [vmem:[%s1774_s20 + $0x200] sm:$0xff] %v212_v55  ;;  %v216_v57 = vld [vmem:[%s1769_s19 + $0x3f0] sm:$0xff]  ;;  %v218_v58 = vld [vmem:[%s1769_s19 + $0x3f8] sm:$0xff] }
  0x2f   : > { %215 = vst [vmem:[%s1774_s20 + $0x208] sm:$0xff] %v214_v56  ;;  %v220_v59 = vld [vmem:[%s1769_s19 + $0x400] sm:$0xff]  ;;  %217 = vst [vmem:[%s1774_s20 + $0x214] sm:$0xff] %v216_v57  ;;  %v222_v60 = vld [vmem:[%s1769_s19 + $0x40c] sm:$0xff] }
  0x30   : > { %219 = vst [vmem:[%s1774_s20 + $0x21c] sm:$0xff] %v218_v58  ;;  %221 = vst [vmem:[%s1774_s20 + $0x224] sm:$0xff] %v220_v59  ;;  %v224_v61 = vld [vmem:[%s1769_s19 + $0x414] sm:$0xff]  ;;  %v226_v62 = vld [vmem:[%s1769_s19 + $0x41c] sm:$0xff] }
  0x31   : > { %223 = vst [vmem:[%s1774_s20 + $0x230] sm:$0xff] %v222_v60  ;;  %225 = vst [vmem:[%s1774_s20 + $0x238] sm:$0xff] %v224_v61  ;;  %v228_v63 = vld [vmem:[%s1769_s19 + $0x428] sm:$0xff]  ;;  %v230_v0 = vld [vmem:[%s1769_s19 + $0x430] sm:$0xff] }
  0x32   : > { %227 = vst [vmem:[%s1774_s20 + $0x240] sm:$0xff] %v226_v62  ;;  %v232_v1 = vld [vmem:[%s1769_s19 + $0x438] sm:$0xff]  ;;  %229 = vst [vmem:[%s1774_s20 + $0x24c] sm:$0xff] %v228_v63  ;;  %v234_v2 = vld [vmem:[%s1769_s19 + $0x444] sm:$0xff] }
  0x33   : > { %231 = vst [vmem:[%s1774_s20 + $0x254] sm:$0xff] %v230_v0  ;;  %233 = vst [vmem:[%s1774_s20 + $0x25c] sm:$0xff] %v232_v1  ;;  %v236_v3 = vld [vmem:[%s1769_s19 + $0x44c] sm:$0xff]  ;;  %v238_v4 = vld [vmem:[%s1769_s19 + $0x454] sm:$0xff] }
  0x34   : > { %235 = vst [vmem:[%s1774_s20 + $0x268] sm:$0xff] %v234_v2  ;;  %237 = vst [vmem:[%s1774_s20 + $0x270] sm:$0xff] %v236_v3  ;;  %v240_v5 = vld [vmem:[%s1769_s19 + $0x460] sm:$0xff]  ;;  %v242_v6 = vld [vmem:[%s1769_s19 + $0x468] sm:$0xff] }
  0x35   : > { %239 = vst [vmem:[%s1774_s20 + $0x278] sm:$0xff] %v238_v4  ;;  %v244_v7 = vld [vmem:[%s1769_s19 + $0x470] sm:$0xff]  ;;  %241 = vst [vmem:[%s1774_s20 + $0x284] sm:$0xff] %v240_v5  ;;  %v246_v8 = vld [vmem:[%s1769_s19 + $0x47c] sm:$0xff] }
  0x36   : > { %243 = vst [vmem:[%s1774_s20 + $0x28c] sm:$0xff] %v242_v6  ;;  %245 = vst [vmem:[%s1774_s20 + $0x294] sm:$0xff] %v244_v7  ;;  %v248_v9 = vld [vmem:[%s1769_s19 + $0x484] sm:$0xff]  ;;  %v250_v10 = vld [vmem:[%s1769_s19 + $0x48c] sm:$0xff] }
  0x37   : > { %247 = vst [vmem:[%s1774_s20 + $0x2a0] sm:$0xff] %v246_v8  ;;  %249 = vst [vmem:[%s1774_s20 + $0x2a8] sm:$0xff] %v248_v9  ;;  %v252_v11 = vld [vmem:[%s1769_s19 + $0x498] sm:$0xff]  ;;  %v254_v12 = vld [vmem:[%s1769_s19 + $0x4a0] sm:$0xff] }
  0x38   : > { %251 = vst [vmem:[%s1774_s20 + $0x2b0] sm:$0xff] %v250_v10  ;;  %v256_v13 = vld [vmem:[%s1769_s19 + $0x4a8] sm:$0xff]  ;;  %253 = vst [vmem:[%s1774_s20 + $0x2bc] sm:$0xff] %v252_v11  ;;  %v258_v14 = vld [vmem:[%s1769_s19 + $0x4b4] sm:$0xff] }
  0x39   : > { %255 = vst [vmem:[%s1774_s20 + $0x2c4] sm:$0xff] %v254_v12  ;;  %257 = vst [vmem:[%s1774_s20 + $0x2cc] sm:$0xff] %v256_v13  ;;  %v260_v15 = vld [vmem:[%s1769_s19 + $0x4bc] sm:$0xff]  ;;  %v262_v16 = vld [vmem:[%s1769_s19 + $0x4c4] sm:$0xff] }
  0x3a   : > { %259 = vst [vmem:[%s1774_s20 + $0x2d8] sm:$0xff] %v258_v14  ;;  %261 = vst [vmem:[%s1774_s20 + $0x2e0] sm:$0xff] %v260_v15  ;;  %v264_v17 = vld [vmem:[%s1769_s19 + $0x4d0] sm:$0xff]  ;;  %v266_v18 = vld [vmem:[%s1769_s19 + $0x4d8] sm:$0xff] }
  0x3b   : > { %263 = vst [vmem:[%s1774_s20 + $0x2e8] sm:$0xff] %v262_v16  ;;  %v268_v19 = vld [vmem:[%s1769_s19 + $0x4e0] sm:$0xff]  ;;  %265 = vst [vmem:[%s1774_s20 + $0x2f4] sm:$0xff] %v264_v17  ;;  %v270_v20 = vld [vmem:[%s1769_s19 + $0x4ec] sm:$0xff] }
  0x3c   : > { %267 = vst [vmem:[%s1774_s20 + $0x2fc] sm:$0xff] %v266_v18  ;;  %269 = vst [vmem:[%s1774_s20 + $0x304] sm:$0xff] %v268_v19  ;;  %v272_v21 = vld [vmem:[%s1769_s19 + $0x4f4] sm:$0xff]  ;;  %v274_v22 = vld [vmem:[%s1769_s19 + $0x4fc] sm:$0xff] }
  0x3d   : > { %271 = vst [vmem:[%s1774_s20 + $0x310] sm:$0xff] %v270_v20  ;;  %273 = vst [vmem:[%s1774_s20 + $0x318] sm:$0xff] %v272_v21  ;;  %v276_v23 = vld [vmem:[%s1769_s19 + $0x508] sm:$0xff]  ;;  %v278_v24 = vld [vmem:[%s1769_s19 + $0x510] sm:$0xff] }
  0x3e   : > { %275 = vst [vmem:[%s1774_s20 + $0x320] sm:$0xff] %v274_v22  ;;  %v280_v25 = vld [vmem:[%s1769_s19 + $0x518] sm:$0xff]  ;;  %277 = vst [vmem:[%s1774_s20 + $0x32c] sm:$0xff] %v276_v23  ;;  %v282_v26 = vld [vmem:[%s1769_s19 + $0x524] sm:$0xff] }
  0x3f   : > { %279 = vst [vmem:[%s1774_s20 + $0x334] sm:$0xff] %v278_v24  ;;  %281 = vst [vmem:[%s1774_s20 + $0x33c] sm:$0xff] %v280_v25  ;;  %v284_v27 = vld [vmem:[%s1769_s19 + $0x52c] sm:$0xff]  ;;  %v286_v28 = vld [vmem:[%s1769_s19 + $0x534] sm:$0xff] }
  0x40   : > { %283 = vst [vmem:[%s1774_s20 + $0x348] sm:$0xff] %v282_v26  ;;  %285 = vst [vmem:[%s1774_s20 + $0x350] sm:$0xff] %v284_v27  ;;  %v288_v29 = vld [vmem:[%s1769_s19 + $0x540] sm:$0xff]  ;;  %v290_v30 = vld [vmem:[%s1769_s19 + $0x548] sm:$0xff] }
  0x41   : > { %287 = vst [vmem:[%s1774_s20 + $0x358] sm:$0xff] %v286_v28  ;;  %v292_v31 = vld [vmem:[%s1769_s19 + $0x550] sm:$0xff]  ;;  %289 = vst [vmem:[%s1774_s20 + $0x364] sm:$0xff] %v288_v29  ;;  %v294_v32 = vld [vmem:[%s1769_s19 + $0x55c] sm:$0xff] }
  0x42   : > { %291 = vst [vmem:[%s1774_s20 + $0x36c] sm:$0xff] %v290_v30  ;;  %293 = vst [vmem:[%s1774_s20 + $0x374] sm:$0xff] %v292_v31  ;;  %v296_v33 = vld [vmem:[%s1769_s19 + $0x564] sm:$0xff]  ;;  %v298_v34 = vld [vmem:[%s1769_s19 + $0x56c] sm:$0xff] }
  0x43   : > { %295 = vst [vmem:[%s1774_s20 + $0x380] sm:$0xff] %v294_v32  ;;  %297 = vst [vmem:[%s1774_s20 + $0x388] sm:$0xff] %v296_v33  ;;  %v300_v35 = vld [vmem:[%s1769_s19 + $0x578] sm:$0xff]  ;;  %v302_v36 = vld [vmem:[%s1769_s19 + $0x580] sm:$0xff] }
  0x44   : > { %299 = vst [vmem:[%s1774_s20 + $0x390] sm:$0xff] %v298_v34  ;;  %v304_v37 = vld [vmem:[%s1769_s19 + $0x588] sm:$0xff]  ;;  %301 = vst [vmem:[%s1774_s20 + $0x39c] sm:$0xff] %v300_v35  ;;  %v306_v38 = vld [vmem:[%s1769_s19 + $0x770] sm:$0xff] }
  0x45   : > { %303 = vst [vmem:[%s1774_s20 + $0x3a4] sm:$0xff] %v302_v36  ;;  %305 = vst [vmem:[%s1774_s20 + $0x3ac] sm:$0xff] %v304_v37  ;;  %v308_v39 = vld [vmem:[%s1769_s19 + $0x778] sm:$0xff]  ;;  %v310_v40 = vld [vmem:[%s1769_s19 + $0x780] sm:$0xff] }
  0x46   : > { %307 = vst [vmem:[%s1774_s20 + $0x3b8] sm:$0xff] %v306_v38  ;;  %309 = vst [vmem:[%s1774_s20 + $0x3c0] sm:$0xff] %v308_v39  ;;  %v312_v41 = vld [vmem:[%s1769_s19 + $0x78c] sm:$0xff]  ;;  %v314_v42 = vld [vmem:[%s1769_s19 + $0x794] sm:$0xff] }
  0x47   : > { %311 = vst [vmem:[%s1774_s20 + $0x3c8] sm:$0xff] %v310_v40  ;;  %v316_v43 = vld [vmem:[%s1769_s19 + $0x79c] sm:$0xff]  ;;  %313 = vst [vmem:[%s1774_s20 + $0x3d4] sm:$0xff] %v312_v41  ;;  %v318_v44 = vld [vmem:[%s1769_s19 + $0x7a8] sm:$0xff] }
  0x48   : > { %315 = vst [vmem:[%s1774_s20 + $0x3dc] sm:$0xff] %v314_v42  ;;  %317 = vst [vmem:[%s1774_s20 + $0x3e4] sm:$0xff] %v316_v43  ;;  %v320_v45 = vld [vmem:[%s1769_s19 + $0x7b0] sm:$0xff]  ;;  %v322_v46 = vld [vmem:[%s1769_s19 + $0x7b8] sm:$0xff] }
  0x49   : > { %319 = vst [vmem:[%s1774_s20 + $0x3f0] sm:$0xff] %v318_v44  ;;  %321 = vst [vmem:[%s1774_s20 + $0x3f8] sm:$0xff] %v320_v45  ;;  %v324_v47 = vld [vmem:[%s1769_s19 + $0x7c4] sm:$0xff]  ;;  %v326_v48 = vld [vmem:[%s1769_s19 + $0x7cc] sm:$0xff] }
  0x4a   : > { %323 = vst [vmem:[%s1774_s20 + $0x400] sm:$0xff] %v322_v46  ;;  %v328_v49 = vld [vmem:[%s1769_s19 + $0x7d4] sm:$0xff]  ;;  %325 = vst [vmem:[%s1774_s20 + $0x40c] sm:$0xff] %v324_v47  ;;  %v330_v50 = vld [vmem:[%s1769_s19 + $0x7e0] sm:$0xff] }
  0x4b   : > { %327 = vst [vmem:[%s1774_s20 + $0x414] sm:$0xff] %v326_v48  ;;  %329 = vst [vmem:[%s1774_s20 + $0x41c] sm:$0xff] %v328_v49  ;;  %v332_v51 = vld [vmem:[%s1769_s19 + $0x7e8] sm:$0xff]  ;;  %v334_v52 = vld [vmem:[%s1769_s19 + $0x7f0] sm:$0xff] }
  0x4c   : > { %331 = vst [vmem:[%s1774_s20 + $0x428] sm:$0xff] %v330_v50  ;;  %333 = vst [vmem:[%s1774_s20 + $0x430] sm:$0xff] %v332_v51  ;;  %v336_v53 = vld [vmem:[%s1769_s19 + $0x7fc] sm:$0xff]  ;;  %v338_v54 = vld [vmem:[%s1769_s19 + $0x804] sm:$0xff] }
  0x4d   : > { %335 = vst [vmem:[%s1774_s20 + $0x438] sm:$0xff] %v334_v52  ;;  %v340_v55 = vld [vmem:[%s1769_s19 + $0x80c] sm:$0xff]  ;;  %337 = vst [vmem:[%s1774_s20 + $0x444] sm:$0xff] %v336_v53  ;;  %v342_v56 = vld [vmem:[%s1769_s19 + $0x818] sm:$0xff] }
  0x4e   : > { %339 = vst [vmem:[%s1774_s20 + $0x44c] sm:$0xff] %v338_v54  ;;  %341 = vst [vmem:[%s1774_s20 + $0x454] sm:$0xff] %v340_v55  ;;  %v344_v57 = vld [vmem:[%s1769_s19 + $0x820] sm:$0xff]  ;;  %v346_v58 = vld [vmem:[%s1769_s19 + $0x828] sm:$0xff] }
  0x4f   : > { %343 = vst [vmem:[%s1774_s20 + $0x460] sm:$0xff] %v342_v56  ;;  %345 = vst [vmem:[%s1774_s20 + $0x468] sm:$0xff] %v344_v57  ;;  %v348_v59 = vld [vmem:[%s1769_s19 + $0x834] sm:$0xff]  ;;  %v350_v60 = vld [vmem:[%s1769_s19 + $0x83c] sm:$0xff] }
  0x50   : > { %347 = vst [vmem:[%s1774_s20 + $0x470] sm:$0xff] %v346_v58  ;;  %v352_v61 = vld [vmem:[%s1769_s19 + $0x844] sm:$0xff]  ;;  %349 = vst [vmem:[%s1774_s20 + $0x47c] sm:$0xff] %v348_v59  ;;  %v354_v62 = vld [vmem:[%s1769_s19 + $0x850] sm:$0xff] }
  0x51   : > { %351 = vst [vmem:[%s1774_s20 + $0x484] sm:$0xff] %v350_v60  ;;  %353 = vst [vmem:[%s1774_s20 + $0x48c] sm:$0xff] %v352_v61  ;;  %v356_v63 = vld [vmem:[%s1769_s19 + $0x858] sm:$0xff]  ;;  %v358_v0 = vld [vmem:[%s1769_s19 + $0x860] sm:$0xff] }
  0x52   : > { %355 = vst [vmem:[%s1774_s20 + $0x498] sm:$0xff] %v354_v62  ;;  %357 = vst [vmem:[%s1774_s20 + $0x4a0] sm:$0xff] %v356_v63  ;;  %v360_v1 = vld [vmem:[%s1769_s19 + $0x86c] sm:$0xff]  ;;  %v362_v2 = vld [vmem:[%s1769_s19 + $0x874] sm:$0xff] }
  0x53   : > { %359 = vst [vmem:[%s1774_s20 + $0x4a8] sm:$0xff] %v358_v0  ;;  %v364_v3 = vld [vmem:[%s1769_s19 + $0x87c] sm:$0xff]  ;;  %361 = vst [vmem:[%s1774_s20 + $0x4b4] sm:$0xff] %v360_v1  ;;  %v366_v4 = vld [vmem:[%s1769_s19 + $0x888] sm:$0xff] }
  0x54   : > { %363 = vst [vmem:[%s1774_s20 + $0x4bc] sm:$0xff] %v362_v2  ;;  %365 = vst [vmem:[%s1774_s20 + $0x4c4] sm:$0xff] %v364_v3  ;;  %v368_v5 = vld [vmem:[%s1769_s19 + $0x890] sm:$0xff]  ;;  %v370_v6 = vld [vmem:[%s1769_s19 + $0x898] sm:$0xff] }
  0x55   : > { %367 = vst [vmem:[%s1774_s20 + $0x4d0] sm:$0xff] %v366_v4  ;;  %369 = vst [vmem:[%s1774_s20 + $0x4d8] sm:$0xff] %v368_v5  ;;  %v372_v7 = vld [vmem:[%s1769_s19 + $0x8a4] sm:$0xff]  ;;  %v374_v8 = vld [vmem:[%s1769_s19 + $0x8ac] sm:$0xff] }
  0x56   : > { %371 = vst [vmem:[%s1774_s20 + $0x4e0] sm:$0xff] %v370_v6  ;;  %v376_v9 = vld [vmem:[%s1769_s19 + $0x8b4] sm:$0xff]  ;;  %373 = vst [vmem:[%s1774_s20 + $0x4ec] sm:$0xff] %v372_v7  ;;  %v378_v10 = vld [vmem:[%s1769_s19 + $0x8c0] sm:$0xff] }
  0x57   : > { %375 = vst [vmem:[%s1774_s20 + $0x4f4] sm:$0xff] %v374_v8  ;;  %377 = vst [vmem:[%s1774_s20 + $0x4fc] sm:$0xff] %v376_v9  ;;  %v380_v11 = vld [vmem:[%s1769_s19 + $0x8c8] sm:$0xff]  ;;  %v382_v12 = vld [vmem:[%s1769_s19 + $0x8d0] sm:$0xff] }
  0x58   : > { %379 = vst [vmem:[%s1774_s20 + $0x508] sm:$0xff] %v378_v10  ;;  %381 = vst [vmem:[%s1774_s20 + $0x510] sm:$0xff] %v380_v11  ;;  %v384_v13 = vld [vmem:[%s1769_s19 + $0x8dc] sm:$0xff]  ;;  %v386_v14 = vld [vmem:[%s1769_s19 + $0x8e4] sm:$0xff] }
  0x59   : > { %383 = vst [vmem:[%s1774_s20 + $0x518] sm:$0xff] %v382_v12  ;;  %v388_v15 = vld [vmem:[%s1769_s19 + $0x8ec] sm:$0xff]  ;;  %385 = vst [vmem:[%s1774_s20 + $0x524] sm:$0xff] %v384_v13  ;;  %v390_v16 = vld [vmem:[%s1769_s19 + $0x8f8] sm:$0xff] }
  0x5a   : > { %387 = vst [vmem:[%s1774_s20 + $0x52c] sm:$0xff] %v386_v14  ;;  %389 = vst [vmem:[%s1774_s20 + $0x534] sm:$0xff] %v388_v15  ;;  %v392_v17 = vld [vmem:[%s1769_s19 + $0x900] sm:$0xff]  ;;  %v394_v18 = vld [vmem:[%s1769_s19 + $0x908] sm:$0xff] }
  0x5b   : > { %391 = vst [vmem:[%s1774_s20 + $0x540] sm:$0xff] %v390_v16  ;;  %393 = vst [vmem:[%s1774_s20 + $0x548] sm:$0xff] %v392_v17  ;;  %v396_v19 = vld [vmem:[%s1769_s19 + $0x914] sm:$0xff]  ;;  %v398_v20 = vld [vmem:[%s1769_s19 + $0x91c] sm:$0xff] }
  0x5c   : > { %395 = vst [vmem:[%s1774_s20 + $0x550] sm:$0xff] %v394_v18  ;;  %v400_v21 = vld [vmem:[%s1769_s19 + $0x924] sm:$0xff]  ;;  %397 = vst [vmem:[%s1774_s20 + $0x55c] sm:$0xff] %v396_v19  ;;  %v402_v22 = vld [vmem:[%s1769_s19 + $0x930] sm:$0xff] }
  0x5d   : > { %399 = vst [vmem:[%s1774_s20 + $0x564] sm:$0xff] %v398_v20  ;;  %401 = vst [vmem:[%s1774_s20 + $0x56c] sm:$0xff] %v400_v21  ;;  %v404_v23 = vld [vmem:[%s1769_s19 + $0x938] sm:$0xff]  ;;  %v406_v24 = vld [vmem:[%s1769_s19 + $0x940] sm:$0xff] }
  0x5e   : > { %403 = vst [vmem:[%s1774_s20 + $0x578] sm:$0xff] %v402_v22  ;;  %405 = vst [vmem:[%s1774_s20 + $0x580] sm:$0xff] %v404_v23  ;;  %v1255_v25 = vld [vmem:[%s1769_s19 + $0x18] sm:$0xf]  ;;  %v1257_v26 = vld [vmem:[%s1769_s19 + $0x34] sm:$0xf] }
  0x5f   : > { %407 = vst [vmem:[%s1774_s20 + $0x588] sm:$0xff] %v406_v24  ;;  %v1259_v27 = vld [vmem:[%s1769_s19 + $0x50] sm:$0xf]  ;;  %1256 = vst [vmem:[%s1774_s20 + $0x18] sm:$0xf] %v1255_v25 }
  0x60   : > { %1258 = vst [vmem:[%s1774_s20 + $0x34] sm:$0xf] %v1257_v26  ;;  %1260 = vst [vmem:[%s1774_s20 + $0x50] sm:$0xf] %v1259_v27  ;;  %v1261_v28 = vld [vmem:[%s1769_s19 + $0x6c] sm:$0xf] }
  0x61   : > { %v1263_v29 = vld [vmem:[%s1769_s19 + $0x88] sm:$0xf]  ;;  %v1265_v30 = vld [vmem:[%s1769_s19 + $0xa4] sm:$0xf]  ;;  %1262 = vst [vmem:[%s1774_s20 + $0x6c] sm:$0xf] %v1261_v28 }
  0x62   : > { %1264 = vst [vmem:[%s1774_s20 + $0x88] sm:$0xf] %v1263_v29  ;;  %1266 = vst [vmem:[%s1774_s20 + $0xa4] sm:$0xf] %v1265_v30  ;;  %v1267_v31 = vld [vmem:[%s1769_s19 + $0xc0] sm:$0xf] }
  0x63   : > { %v1269_v32 = vld [vmem:[%s1769_s19 + $0xdc] sm:$0xf]  ;;  %v1271_v33 = vld [vmem:[%s1769_s19 + $0xf8] sm:$0xf]  ;;  %1268 = vst [vmem:[%s1774_s20 + $0xc0] sm:$0xf] %v1267_v31 }
  0x64   : > { %1270 = vst [vmem:[%s1774_s20 + $0xdc] sm:$0xf] %v1269_v32  ;;  %1272 = vst [vmem:[%s1774_s20 + $0xf8] sm:$0xf] %v1271_v33  ;;  %v1273_v34 = vld [vmem:[%s1769_s19 + $0x114] sm:$0xf] }
  0x65   : > { %v1275_v35 = vld [vmem:[%s1769_s19 + $0x130] sm:$0xf]  ;;  %v1277_v36 = vld [vmem:[%s1769_s19 + $0x14c] sm:$0xf]  ;;  %1274 = vst [vmem:[%s1774_s20 + $0x114] sm:$0xf] %v1273_v34 }
  0x66   : > { %1276 = vst [vmem:[%s1774_s20 + $0x130] sm:$0xf] %v1275_v35  ;;  %1278 = vst [vmem:[%s1774_s20 + $0x14c] sm:$0xf] %v1277_v36  ;;  %v1279_v37 = vld [vmem:[%s1769_s19 + $0x168] sm:$0xf] }
  0x67   : > { %v1281_v38 = vld [vmem:[%s1769_s19 + $0x184] sm:$0xf]  ;;  %v1283_v39 = vld [vmem:[%s1769_s19 + $0x1a0] sm:$0xf]  ;;  %1280 = vst [vmem:[%s1774_s20 + $0x168] sm:$0xf] %v1279_v37 }
  0x68   : > { %1282 = vst [vmem:[%s1774_s20 + $0x184] sm:$0xf] %v1281_v38  ;;  %1284 = vst [vmem:[%s1774_s20 + $0x1a0] sm:$0xf] %v1283_v39  ;;  %v1285_v40 = vld [vmem:[%s1769_s19 + $0x1bc] sm:$0xf] }
  0x69   : > { %v1287_v41 = vld [vmem:[%s1769_s19 + $0x1d8] sm:$0xf]  ;;  %v1289_v42 = vld [vmem:[%s1769_s19 + $0x3d0] sm:$0xf]  ;;  %1286 = vst [vmem:[%s1774_s20 + $0x1bc] sm:$0xf] %v1285_v40 }
  0x6a   : > { %1288 = vst [vmem:[%s1774_s20 + $0x1d8] sm:$0xf] %v1287_v41  ;;  %1290 = vst [vmem:[%s1774_s20 + $0x1f4] sm:$0xf] %v1289_v42  ;;  %v1291_v43 = vld [vmem:[%s1769_s19 + $0x3ec] sm:$0xf] }
  0x6b   : > { %v1293_v44 = vld [vmem:[%s1769_s19 + $0x408] sm:$0xf]  ;;  %v1295_v45 = vld [vmem:[%s1769_s19 + $0x424] sm:$0xf]  ;;  %1292 = vst [vmem:[%s1774_s20 + $0x210] sm:$0xf] %v1291_v43 }
  0x6c   : > { %1294 = vst [vmem:[%s1774_s20 + $0x22c] sm:$0xf] %v1293_v44  ;;  %1296 = vst [vmem:[%s1774_s20 + $0x248] sm:$0xf] %v1295_v45  ;;  %v1297_v46 = vld [vmem:[%s1769_s19 + $0x440] sm:$0xf] }
  0x6d   : > { %v1299_v47 = vld [vmem:[%s1769_s19 + $0x45c] sm:$0xf]  ;;  %v1301_v48 = vld [vmem:[%s1769_s19 + $0x478] sm:$0xf]  ;;  %1298 = vst [vmem:[%s1774_s20 + $0x264] sm:$0xf] %v1297_v46 }
  0x6e   : > { %1300 = vst [vmem:[%s1774_s20 + $0x280] sm:$0xf] %v1299_v47  ;;  %1302 = vst [vmem:[%s1774_s20 + $0x29c] sm:$0xf] %v1301_v48  ;;  %v1303_v49 = vld [vmem:[%s1769_s19 + $0x494] sm:$0xf] }
  0x6f   : > { %v1305_v50 = vld [vmem:[%s1769_s19 + $0x4b0] sm:$0xf]  ;;  %v1307_v51 = vld [vmem:[%s1769_s19 + $0x4cc] sm:$0xf]  ;;  %1304 = vst [vmem:[%s1774_s20 + $0x2b8] sm:$0xf] %v1303_v49 }
  0x70   : > { %1306 = vst [vmem:[%s1774_s20 + $0x2d4] sm:$0xf] %v1305_v50  ;;  %1308 = vst [vmem:[%s1774_s20 + $0x2f0] sm:$0xf] %v1307_v51  ;;  %v1309_v52 = vld [vmem:[%s1769_s19 + $0x4e8] sm:$0xf] }
  0x71   : > { %v1311_v53 = vld [vmem:[%s1769_s19 + $0x504] sm:$0xf]  ;;  %v1313_v54 = vld [vmem:[%s1769_s19 + $0x520] sm:$0xf]  ;;  %1310 = vst [vmem:[%s1774_s20 + $0x30c] sm:$0xf] %v1309_v52 }
  0x72   : > { %1312 = vst [vmem:[%s1774_s20 + $0x328] sm:$0xf] %v1311_v53  ;;  %1314 = vst [vmem:[%s1774_s20 + $0x344] sm:$0xf] %v1313_v54  ;;  %v1315_v55 = vld [vmem:[%s1769_s19 + $0x53c] sm:$0xf] }
  0x73   : > { %v1317_v56 = vld [vmem:[%s1769_s19 + $0x558] sm:$0xf]  ;;  %v1319_v57 = vld [vmem:[%s1769_s19 + $0x574] sm:$0xf]  ;;  %1316 = vst [vmem:[%s1774_s20 + $0x360] sm:$0xf] %v1315_v55 }
  0x74   : > { %1318 = vst [vmem:[%s1774_s20 + $0x37c] sm:$0xf] %v1317_v56  ;;  %1320 = vst [vmem:[%s1774_s20 + $0x398] sm:$0xf] %v1319_v57  ;;  %v1321_v58 = vld [vmem:[%s1769_s19 + $0x590] sm:$0xf] }
  0x75   : > { %v1323_v59 = vld [vmem:[%s1769_s19 + $0x788] sm:$0xf]  ;;  %v1325_v60 = vld [vmem:[%s1769_s19 + $0x7a4] sm:$0xf]  ;;  %1322 = vst [vmem:[%s1774_s20 + $0x3b4] sm:$0xf] %v1321_v58 }
  0x76   : > { %1324 = vst [vmem:[%s1774_s20 + $0x3d0] sm:$0xf] %v1323_v59  ;;  %1326 = vst [vmem:[%s1774_s20 + $0x3ec] sm:$0xf] %v1325_v60  ;;  %v1327_v61 = vld [vmem:[%s1769_s19 + $0x7c0] sm:$0xf] }
  0x77   : > { %v1329_v62 = vld [vmem:[%s1769_s19 + $0x7dc] sm:$0xf]  ;;  %v1331_v63 = vld [vmem:[%s1769_s19 + $0x7f8] sm:$0xf]  ;;  %1328 = vst [vmem:[%s1774_s20 + $0x408] sm:$0xf] %v1327_v61 }
  0x78   : > { %1330 = vst [vmem:[%s1774_s20 + $0x424] sm:$0xf] %v1329_v62  ;;  %1332 = vst [vmem:[%s1774_s20 + $0x440] sm:$0xf] %v1331_v63  ;;  %v1333_v0 = vld [vmem:[%s1769_s19 + $0x814] sm:$0xf] }
  0x79   : > { %v1335_v1 = vld [vmem:[%s1769_s19 + $0x830] sm:$0xf]  ;;  %v1337_v2 = vld [vmem:[%s1769_s19 + $0x84c] sm:$0xf]  ;;  %1334 = vst [vmem:[%s1774_s20 + $0x45c] sm:$0xf] %v1333_v0 }
  0x7a   : > { %1336 = vst [vmem:[%s1774_s20 + $0x478] sm:$0xf] %v1335_v1  ;;  %1338 = vst [vmem:[%s1774_s20 + $0x494] sm:$0xf] %v1337_v2  ;;  %v1339_v3 = vld [vmem:[%s1769_s19 + $0x868] sm:$0xf] }
  0x7b   : > { %v1341_v4 = vld [vmem:[%s1769_s19 + $0x884] sm:$0xf]  ;;  %v1343_v5 = vld [vmem:[%s1769_s19 + $0x8a0] sm:$0xf]  ;;  %1340 = vst [vmem:[%s1774_s20 + $0x4b0] sm:$0xf] %v1339_v3 }
  0x7c   : > { %1342 = vst [vmem:[%s1774_s20 + $0x4cc] sm:$0xf] %v1341_v4  ;;  %1344 = vst [vmem:[%s1774_s20 + $0x4e8] sm:$0xf] %v1343_v5  ;;  %v1345_v6 = vld [vmem:[%s1769_s19 + $0x8bc] sm:$0xf] }
  0x7d   : > { %v1347_v7 = vld [vmem:[%s1769_s19 + $0x8d8] sm:$0xf]  ;;  %v1349_v8 = vld [vmem:[%s1769_s19 + $0x8f4] sm:$0xf]  ;;  %1346 = vst [vmem:[%s1774_s20 + $0x504] sm:$0xf] %v1345_v6 }
  0x7e   : > { %1348 = vst [vmem:[%s1774_s20 + $0x520] sm:$0xf] %v1347_v7  ;;  %1350 = vst [vmem:[%s1774_s20 + $0x53c] sm:$0xf] %v1349_v8  ;;  %v1351_v9 = vld [vmem:[%s1769_s19 + $0x910] sm:$0xf] }
  0x7f   : > { %v1353_v10 = vld [vmem:[%s1769_s19 + $0x92c] sm:$0xf]  ;;  %v1355_v11 = vld [vmem:[%s1769_s19 + $0x948] sm:$0xf]  ;;  %1352 = vst [vmem:[%s1774_s20 + $0x558] sm:$0xf] %v1351_v9 }
  0x80   : > { %1354 = vst [vmem:[%s1774_s20 + $0x574] sm:$0xf] %v1353_v10  ;;  %1356 = vst [vmem:[%s1774_s20 + $0x590] sm:$0xf] %v1355_v11 }
  0x81 PF: > { %p1357_p5 = scmp.ge.s32.totalorder %s1723_s8, 1  ;;  %p521_p6 = scmp.lt.s32.totalorder %s1723_s8, 3 }
  0x83   : > { %p522_p7 = pnand %p1357_p5, %p521_p6 }
  0x84   : > { %s528_s21 = sand.u32 (!%p522_p7), 1, %s1715_s6   ;;  %p2191_p8 = scmp.lt.s32.totalorder (!%p522_p7), %s1250_s9, 1 }
  0x85   : > { %525 = sbr.rel (%p522_p7) target bundleno = 227 (0xe3), region = 46 }
  0x86   : > { %s1675_s22 = smul.u32 (!%p522_p7), 1428, %s528_s21 }
  0x88   : > { %s2184_s23 = scalar_lea.vmem (!%p522_p7), [#allocation2], %s1675_s22 }
  0x89   : > { %v552_v12 = vld [vmem:[%s2184_s23] sm:$0xff] (!%p522_p7)  ;;  %v1363_v14 = vld [vmem:[%s2184_s23 + $0x3b8] sm:$0xff] (!%p522_p7)  ;;  %v553_v20 = vld [vmem:[%s2184_s23 + $0x8] sm:$0xff] (!%p522_p7) }
  0x8a   : > { %v1359_v13 = vld [vmem:[%s2184_s23 + $0x1dc] sm:$0xff] (!%p522_p7)  ;;  %v2198_v18 = vld [vmem:[%s2184_s23 + $0x214] sm:$0xff] (!%p522_p7)  ;;  %v1360_v21 = vld [vmem:[%s2184_s23 + $0x1e4] sm:$0xff] (!%p522_p7) }
  0x8b   : > { %v561_v15 = vmax.bf16 (!%p522_p7), %v1359_v13, %v552_v12  ;;  %v1367_v16 = vld [vmem:[%s2184_s23 + $0x1c] sm:$0xff] (!%p522_p7)  ;;  %v1375_v24 = vld [vmem:[%s2184_s23 + $0x3d4] sm:$0xff] (!%p522_p7)  ;;  %v562_v26 = vmax.bf16 (!%p522_p7), %v1360_v21, %v553_v20  ;;  %v1368_v28 = vld [vmem:[%s2184_s23 + $0x24] sm:$0xff] (!%p522_p7) }
  0x8c   : > { %v1379_v17 = vld [vmem:[%s2184_s23 + $0x38] sm:$0xff]  ;;  %v1364_v22 = vld [vmem:[%s2184_s23 + $0x3c0] sm:$0xff]  ;;  %v1387_v25 = vld [vmem:[%s2184_s23 + $0x3f0] sm:$0xff]  ;;  %s2566_s9 = smov (!%p2191_p8, %s1250_s9), 1 }
  0x8d   : > { %v570_v19 = vmax.bf16 %v1363_v14, %v561_v15  ;;  %v1371_v23 = vld [vmem:[%s2184_s23 + $0x1f8] sm:$0xff]  ;;  %v1380_v29 = vld [vmem:[%s2184_s23 + $0x40] sm:$0xff]  ;;  %v640_v31 = vmax.bf16 %v2198_v18, %v1379_v17  ;;  %v571_v32 = vmax.bf16 %v1364_v22, %v562_v26  ;;  %v554_v33 = vld [vmem:[%s2184_s23 + $0x10] sm:$0xff]  ;;  %s1676_s25 = smul.u32 224, %s2566_s9 }
  0x8e   : > { %v2209_v30 = vld [vmem:[%s2184_s23 + $0x21c] sm:$0xff]  ;;  %v1361_v34 = vld [vmem:[%s2184_s23 + $0x1ec] sm:$0xff]  ;;  %v2230_v45 = vld [vmem:[%s2184_s23 + $0x224] sm:$0xff] }
  0x8f   : > { %v579_v27 = vmax.bf16 %v1367_v16, %v570_v19  ;;  %v1365_v35 = vld [vmem:[%s2184_s23 + $0x3c8] sm:$0xff]  ;;  %v1372_v37 = vld [vmem:[%s2184_s23 + $0x200] sm:$0xff]  ;;  %v2224_v39 = vld [vmem:[%s2184_s23 + $0x3f8] sm:$0xff]  ;;  %v563_v40 = vmax.bf16 %v1361_v34, %v554_v33  ;;  %v641_v41 = vmax.bf16 %v2209_v30, %v1380_v29  ;;  %v580_v42 = vmax.bf16 %v1368_v28, %v571_v32  ;;  %s2257_s28 = scalar_lea.vmem %s2560_s1, %s1676_s25 }
  0x90   : > { %v1376_v38 = vld [vmem:[%s2184_s23 + $0x3dc] sm:$0xff]  ;;  %v1369_v43 = vld [vmem:[%s2184_s23 + $0x2c] sm:$0xff]  ;;  %v555_v48 = vld [vmem:[%s2184_s23 + $0x18] sm:$0xf]  ;;  %v648_v51 = vmax.bf16 %v1387_v25, %v640_v31 }
  0x91   : > { %v588_v36 = vmax.bf16 %v1371_v23, %v579_v27  ;;  %v1381_v44 = vld [vmem:[%s2184_s23 + $0x48] sm:$0xff]  ;;  %v572_v47 = vmax.bf16 %v1365_v35, %v563_v40  ;;  %v1362_v49 = vld [vmem:[%s2184_s23 + $0x1f4] sm:$0xf]  ;;  %v1366_v50 = vld [vmem:[%s2184_s23 + $0x3d0] sm:$0xf]  ;;  %v589_v53 = vmax.bf16 %v1372_v37, %v580_v42  ;;  %v649_v61 = vmax.bf16 %v2224_v39, %v641_v41 }
  0x92   : > { %v642_v52 = vmax.bf16 %v2230_v45, %v1381_v44  ;;  %v1373_v54 = vld [vmem:[%s2184_s23 + $0x208] sm:$0xff]  ;;  %v2239_v55 = vld [vmem:[%s2184_s23 + $0x400] sm:$0xff]  ;;  %v564_v56 = vmax.bf16 %v1362_v49, %v555_v48  ;;  %v1370_v60 = vld [vmem:[%s2184_s23 + $0x34] sm:$0xf] }
  0x93   : > { %v597_v46 = vmax.bf16 %v1375_v24, %v588_v36  ;;  %v581_v58 = vmax.bf16 %v1369_v43, %v572_v47  ;;  %v1377_v59 = vld [vmem:[%s2184_s23 + $0x3e4] sm:$0xff]  ;;  %v598_v62 = vmax.bf16 %v1376_v38, %v589_v53  ;;  %v1374_v0 = vld [vmem:[%s2184_s23 + $0x210] sm:$0xf]  ;;  %v1403_v1 = vld [vmem:[%s2184_s23 + $0x54] sm:$0xff] }
  0x94   : > { %v573_v63 = vmax.bf16 %v1366_v50, %v564_v56  ;;  %v1407_v2 = vld [vmem:[%s2184_s23 + $0x230] sm:$0xff]  ;;  %v1378_v5 = vld [vmem:[%s2184_s23 + $0x3ec] sm:$0xf]  ;;  %v657_v6 = vmax.bf16 %v1403_v1, %v648_v51  ;;  %v650_v9 = vmax.bf16 %v2239_v55, %v642_v52  ;;  %v1404_v13 = vld [vmem:[%s2184_s23 + $0x5c] sm:$0xff] }
  0x95   : > { %v606_v57 = vmax.bf16 %v1379_v17, %v597_v46  ;;  %v590_v4 = vmax.bf16 %v1373_v54, %v581_v58  ;;  %v1415_v7 = vld [vmem:[%s2184_s23 + $0x70] sm:$0xff]  ;;  %v607_v10 = vmax.bf16 %v1380_v29, %v598_v62  ;;  %v1408_v14 = vld [vmem:[%s2184_s23 + $0x238] sm:$0xff]  ;;  %v1423_v20 = vld [vmem:[%s2184_s23 + $0x428] sm:$0xff]  ;;  %v658_v21 = vmax.bf16 %v1404_v13, %v649_v61 }
  0x96   : > { %v2251_v8 = vld [vmem:[%s2184_s23 + $0x24c] sm:$0xff]  ;;  %v582_v11 = vmax.bf16 %v1370_v60, %v573_v63  ;;  %v666_v19 = vmax.bf16 %v1407_v2, %v657_v6  ;;  %v1416_v22 = vld [vmem:[%s2184_s23 + $0x78] sm:$0xff]  ;;  %v1405_v28 = vld [vmem:[%s2184_s23 + $0x64] sm:$0xff] }
  0x97   : > { %v615_v3 = vmax.bf16 %v2198_v18, %v606_v57  ;;  %v1411_v12 = vld [vmem:[%s2184_s23 + $0x40c] sm:$0xff]  ;;  %v719_v15 = vmax.bf16 %v2251_v8, %v1415_v7  ;;  %v599_v17 = vmax.bf16 %v1377_v59, %v590_v4  ;;  %v2267_v23 = vld [vmem:[%s2184_s23 + $0x254] sm:$0xff]  ;;  %v616_v24 = vmax.bf16 %v2209_v30, %v607_v10  ;;  %v1417_v36 = vld [vmem:[%s2184_s23 + $0x80] sm:$0xff] }
  0x98   : > { %v1382_v18 = vld [vmem:[%s2184_s23 + $0x50] sm:$0xf]  ;;  %v591_v26 = vmax.bf16 %v1374_v0, %v582_v11  ;;  %v1412_v27 = vld [vmem:[%s2184_s23 + $0x414] sm:$0xff]  ;;  %v720_v29 = vmax.bf16 %v2267_v23, %v1416_v22  ;;  %v675_v32 = vmax.bf16 %v1411_v12, %v666_v19  ;;  %v667_v33 = vmax.bf16 %v1408_v14, %v658_v21  ;;  %v2278_v30 = vld [vmem:[%s2184_s23 + $0x25c] sm:$0xff] }
  0x99   : > { %v624_v16 = vmax.bf16 %v1387_v25, %v615_v3  ;;  %v1409_v25 = vld [vmem:[%s2184_s23 + $0x240] sm:$0xff]  ;;  %v608_v31 = vmax.bf16 %v1381_v44, %v599_v17  ;;  %v1424_v34 = vld [vmem:[%s2184_s23 + $0x430] sm:$0xff]  ;;  %v659_v35 = vmax.bf16 %v1405_v28, %v650_v9  ;;  %v625_v37 = vmax.bf16 %v2224_v39, %v616_v24  ;;  %v1398_v42 = vld [vmem:[%s2184_s23 + $0x22c] sm:$0xf] }
  0x9a   : > { %v600_v38 = vmax.bf16 %v1378_v5, %v591_v26  ;;  %v1413_v40 = vld [vmem:[%s2184_s23 + $0x41c] sm:$0xff]  ;;  %v1394_v41 = vld [vmem:[%s2184_s23 + $0x50] sm:$0xf]  ;;  %v727_v43 = vmax.bf16 %v1423_v20, %v719_v15  ;;  %v721_v44 = vmax.bf16 %v2278_v30, %v1417_v36  ;;  %v1386_v47 = vld [vmem:[%s2184_s23 + $0x22c] sm:$0xf]  ;;  %v684_v48 = vmax.bf16 %v1415_v7, %v675_v32 }
  0x9b   : > { %628 = vst [vmem:[%s2257_s28] sm:$0xff] %v624_v16  ;;  %v617_v46 = vmax.bf16 %v2230_v45, %v608_v31  ;;  %v676_v49 = vmax.bf16 %v1412_v27, %v667_v33  ;;  %v668_v50 = vmax.bf16 %v1409_v25, %v659_v35  ;;  %v1425_v51 = vld [vmem:[%s2184_s23 + $0x438] sm:$0xff]  ;;  %v1402_v39 = vld [vmem:[%s2184_s23 + $0x408] sm:$0xf]  ;;  %629 = vst [vmem:[%s2257_s28 + $0x8] sm:$0xff] %v625_v37 }
  0x9c   : > { %v609_v52 = vmax.bf16 %v1382_v18, %v600_v38  ;;  %v1390_v53 = vld [vmem:[%s2184_s23 + $0x408] sm:$0xf]  ;;  %v643_v54 = vmax.bf16 %v1398_v42, %v1394_v41  ;;  %v728_v56 = vmax.bf16 %v1424_v34, %v720_v29  ;;  %v693_v57 = vmax.bf16 %v2251_v8, %v684_v48  ;;  %v1406_v60 = vld [vmem:[%s2184_s23 + $0x6c] sm:$0xf]  ;;  %v1414_v8 = vld [vmem:[%s2184_s23 + $0x424] sm:$0xf] }
  0x9d   : > { %v626_v45 = vmax.bf16 %v2239_v55, %v617_v46  ;;  %v685_v58 = vmax.bf16 %v1416_v22, %v676_v49  ;;  %v677_v59 = vmax.bf16 %v1413_v40, %v668_v50  ;;  %v1443_v61 = vld [vmem:[%s2184_s23 + $0x8c] sm:$0xff]  ;;  %v1410_v1 = vld [vmem:[%s2184_s23 + $0x248] sm:$0xf]  ;;  %v729_v55 = vmax.bf16 %v1425_v51, %v721_v44  ;;  %v1444_v10 = vld [vmem:[%s2184_s23 + $0x94] sm:$0xff] }
  0x9e   : > { %v1447_v62 = vld [vmem:[%s2184_s23 + $0x268] sm:$0xff]  ;;  %v618_v63 = vmax.bf16 %v1386_v47, %v609_v52  ;;  %v651_v0 = vmax.bf16 %v1402_v39, %v643_v54  ;;  %v736_v2 = vmax.bf16 %v1443_v61, %v727_v43  ;;  %v702_v5 = vmax.bf16 %v1423_v20, %v693_v57  ;;  %v1448_v11 = vld [vmem:[%s2184_s23 + $0x270] sm:$0xff]  ;;  %v1463_v16 = vld [vmem:[%s2184_s23 + $0x460] sm:$0xff] }
  0x9f   : > { %v1455_v3 = vld [vmem:[%s2184_s23 + $0xa8] sm:$0xff]  ;;  %630 = vst [vmem:[%s2257_s28 + $0x10] sm:$0xff] %v626_v45  ;;  %v694_v6 = vmax.bf16 %v2267_v23, %v685_v58  ;;  %v686_v7 = vmax.bf16 %v1417_v36, %v677_v59  ;;  %v737_v17 = vmax.bf16 %v1444_v10, %v728_v56  ;;  %v1456_v18 = vld [vmem:[%s2184_s23 + $0xb0] sm:$0xff]  ;;  %v1445_v24 = vld [vmem:[%s2184_s23 + $0x9c] sm:$0xff] }
  0xa0   : > { %v2299_v4 = vld [vmem:[%s2184_s23 + $0x284] sm:$0xff]  ;;  %v627_v13 = vmax.bf16 %v1390_v53, %v618_v63  ;;  %v660_v14 = vmax.bf16 %v1406_v60, %v651_v0  ;;  %v745_v15 = vmax.bf16 %v1447_v62, %v736_v2  ;;  %v2311_v19 = vld [vmem:[%s2184_s23 + $0x28c] sm:$0xff]  ;;  %1427 = vst [vmem:[%s2257_s28 + $0x1c] sm:$0xff] %v702_v5  ;;  %v1449_v26 = vld [vmem:[%s2184_s23 + $0x278] sm:$0xff]  ;;  %v738_v32 = vmax.bf16 %v1445_v24, %v729_v55 }
  0xa1   : > { %v1451_v9 = vld [vmem:[%s2184_s23 + $0x444] sm:$0xff]  ;;  %v798_v12 = vmax.bf16 %v2299_v4, %v1455_v3  ;;  %v703_v20 = vmax.bf16 %v1424_v34, %v694_v6  ;;  %v695_v21 = vmax.bf16 %v2278_v30, %v686_v7  ;;  %v1452_v23 = vld [vmem:[%s2184_s23 + $0x44c] sm:$0xff]  ;;  %v799_v27 = vmax.bf16 %v2311_v19, %v1456_v18  ;;  %v1457_v33 = vld [vmem:[%s2184_s23 + $0xb8] sm:$0xff] }
  0xa2   : > { %v1418_v22 = vld [vmem:[%s2184_s23 + $0x88] sm:$0xf]  ;;  %631 = vst [vmem:[%s2257_s28 + $0x18] sm:$0xf] %v627_v13  ;;  %v669_v28 = vmax.bf16 %v1410_v1, %v660_v14  ;;  %v754_v25 = vmax.bf16 %v1451_v9, %v745_v15  ;;  %v746_v29 = vmax.bf16 %v1448_v11, %v737_v17  ;;  %v2324_v34 = vld [vmem:[%s2184_s23 + $0x294] sm:$0xff]  ;;  %v747_v44 = vmax.bf16 %v1449_v26, %v738_v32  ;;  %v1487_v57 = vld [vmem:[%s2184_s23 + $0x2a0] sm:$0xff] }
  0xa3   : > { %v1464_v31 = vld [vmem:[%s2184_s23 + $0x468] sm:$0xff]  ;;  %1428 = vst [vmem:[%s2257_s28 + $0x24] sm:$0xff] %v703_v20  ;;  %v704_v35 = vmax.bf16 %v1425_v51, %v695_v21  ;;  %v1453_v36 = vld [vmem:[%s2184_s23 + $0x454] sm:$0xff]  ;;  %v1438_v37 = vld [vmem:[%s2184_s23 + $0x264] sm:$0xf]  ;;  %v806_v38 = vmax.bf16 %v1463_v16, %v798_v12  ;;  %v800_v40 = vmax.bf16 %v2324_v34, %v1457_v33 }
  0xa4   : > { %v1434_v30 = vld [vmem:[%s2184_s23 + $0x88] sm:$0xf]  ;;  %v678_v41 = vmax.bf16 %v1414_v8, %v669_v28  ;;  %v763_v42 = vmax.bf16 %v1455_v3, %v754_v25  ;;  %v755_v43 = vmax.bf16 %v1452_v23, %v746_v29  ;;  %v1465_v46 = vld [vmem:[%s2184_s23 + $0x470] sm:$0xff]  ;;  %v1442_v47 = vld [vmem:[%s2184_s23 + $0x440] sm:$0xf]  ;;  %v807_v51 = vmax.bf16 %v1464_v31, %v799_v27 }
  0xa5   : > { %1429 = vst [vmem:[%s2257_s28 + $0x2c] sm:$0xff] %v704_v35  ;;  %v1422_v48 = vld [vmem:[%s2184_s23 + $0x264] sm:$0xf]  ;;  %v1426_v49 = vld [vmem:[%s2184_s23 + $0x440] sm:$0xf]  ;;  %v722_v50 = vmax.bf16 %v1438_v37, %v1434_v30  ;;  %v756_v54 = vmax.bf16 %v1453_v36, %v747_v44  ;;  %v808_v63 = vmax.bf16 %v1465_v46, %v800_v40  ;;  %v1484_v5 = vld [vmem:[%s2184_s23 + $0xcc] sm:$0xff] }
  0xa6   : > { %v687_v39 = vmax.bf16 %v1418_v22, %v678_v41  ;;  %v772_v52 = vmax.bf16 %v2299_v4, %v763_v42  ;;  %v764_v53 = vmax.bf16 %v1456_v18, %v755_v43  ;;  %v1446_v56 = vld [vmem:[%s2184_s23 + $0xa4] sm:$0xf]  ;;  %v1450_v59 = vld [vmem:[%s2184_s23 + $0x280] sm:$0xf]  ;;  %v1454_v4 = vld [vmem:[%s2184_s23 + $0x45c] sm:$0xf]  ;;  %v816_v10 = vmax.bf16 %v1484_v5, %v807_v51 }
  0xa7   : > { %v1483_v45 = vld [vmem:[%s2184_s23 + $0xc4] sm:$0xff]  ;;  %v730_v58 = vmax.bf16 %v1442_v47, %v722_v50  ;;  %v2343_v62 = vld [vmem:[%s2184_s23 + $0x2bc] sm:$0xff]  ;;  %v765_v3 = vmax.bf16 %v1457_v33, %v756_v54  ;;  %v1489_v20 = vld [vmem:[%s2184_s23 + $0x2b0] sm:$0xff] }
  0xa8   : > { %v815_v60 = vmax.bf16 %v1483_v45, %v806_v38  ;;  %v1495_v61 = vld [vmem:[%s2184_s23 + $0xe0] sm:$0xff]  ;;  %v696_v0 = vmax.bf16 %v1422_v48, %v687_v39  ;;  %v781_v1 = vmax.bf16 %v1463_v16, %v772_v52  ;;  %v773_v2 = vmax.bf16 %v2311_v19, %v764_v53  ;;  %v1488_v6 = vld [vmem:[%s2184_s23 + $0x2a8] sm:$0xff]  ;;  %v1503_v9 = vld [vmem:[%s2184_s23 + $0x498] sm:$0xff] }
  0xa9   : > { %v1491_v55 = vld [vmem:[%s2184_s23 + $0x47c] sm:$0xff]  ;;  %v739_v7 = vmax.bf16 %v1446_v56, %v730_v58  ;;  %v1496_v11 = vld [vmem:[%s2184_s23 + $0xe8] sm:$0xff]  ;;  %v877_v13 = vmax.bf16 %v2343_v62, %v1495_v61  ;;  %v774_v16 = vmax.bf16 %v2324_v34, %v765_v3  ;;  %v1485_v19 = vld [vmem:[%s2184_s23 + $0xd4] sm:$0xff]  ;;  %v825_v24 = vmax.bf16 %v1488_v6, %v816_v10 }
  0xaa   : > { %v824_v8 = vmax.bf16 %v1487_v57, %v815_v60  ;;  %v2353_v12 = vld [vmem:[%s2184_s23 + $0x2c4] sm:$0xff]  ;;  %v705_v14 = vmax.bf16 %v1426_v49, %v696_v0  ;;  %1467 = vst [vmem:[%s2257_s28 + $0x38] sm:$0xff] %v781_v1  ;;  %v782_v15 = vmax.bf16 %v1464_v31, %v773_v2  ;;  %v1458_v17 = vld [vmem:[%s2184_s23 + $0xc0] sm:$0xf]  ;;  %v817_v27 = vmax.bf16 %v1485_v19, %v808_v63  ;;  %v1497_v28 = vld [vmem:[%s2184_s23 + $0xf0] sm:$0xff] }
  0xab   : > { %v1492_v18 = vld [vmem:[%s2184_s23 + $0x484] sm:$0xff]  ;;  %v878_v21 = vmax.bf16 %v2353_v12, %v1496_v11  ;;  %v748_v22 = vmax.bf16 %v1450_v59, %v739_v7  ;;  %v2366_v25 = vld [vmem:[%s2184_s23 + $0x2cc] sm:$0xff]  ;;  %v783_v29 = vmax.bf16 %v1465_v46, %v774_v16  ;;  %v1474_v32 = vld [vmem:[%s2184_s23 + $0xc0] sm:$0xf]  ;;  %v885_v34 = vmax.bf16 %v1503_v9, %v877_v13 }
  0xac   : > { %v833_v23 = vmax.bf16 %v1491_v55, %v824_v8  ;;  %v1504_v26 = vld [vmem:[%s2184_s23 + $0x4a0] sm:$0xff]  ;;  %1430 = vst [vmem:[%s2257_s28 + $0x34] sm:$0xf] %v705_v14  ;;  %1468 = vst [vmem:[%s2257_s28 + $0x40] sm:$0xff] %v782_v15  ;;  %v1493_v31 = vld [vmem:[%s2184_s23 + $0x48c] sm:$0xff]  ;;  %v879_v35 = vmax.bf16 %v2366_v25, %v1497_v28  ;;  %v834_v37 = vmax.bf16 %v1492_v18, %v825_v24 }
  0xad   : > { %v1478_v33 = vld [vmem:[%s2184_s23 + $0x29c] sm:$0xf]  ;;  %v757_v36 = vmax.bf16 %v1454_v4, %v748_v22  ;;  %v826_v38 = vmax.bf16 %v1489_v20, %v817_v27  ;;  %v1505_v40 = vld [vmem:[%s2184_s23 + $0x4a8] sm:$0xff]  ;;  %v1482_v41 = vld [vmem:[%s2184_s23 + $0x478] sm:$0xf]  ;;  %1469 = vst [vmem:[%s2257_s28 + $0x48] sm:$0xff] %v783_v29  ;;  %v886_v46 = vmax.bf16 %v1504_v26, %v878_v21 }
  0xae   : > { %v842_v30 = vmax.bf16 %v1495_v61, %v833_v23  ;;  %v1462_v42 = vld [vmem:[%s2184_s23 + $0x29c] sm:$0xf]  ;;  %v1466_v43 = vld [vmem:[%s2184_s23 + $0x478] sm:$0xf]  ;;  %v801_v44 = vmax.bf16 %v1478_v33, %v1474_v32  ;;  %v843_v49 = vmax.bf16 %v1496_v11, %v834_v37  ;;  %v887_v58 = vmax.bf16 %v1505_v40, %v879_v35  ;;  %v1494_v63 = vld [vmem:[%s2184_s23 + $0x494] sm:$0xf] }
  0xaf   : > { %v766_v47 = vmax.bf16 %v1458_v17, %v757_v36  ;;  %v835_v50 = vmax.bf16 %v1493_v31, %v826_v38  ;;  %v1486_v51 = vld [vmem:[%s2184_s23 + $0xdc] sm:$0xf]  ;;  %v1490_v54 = vld [vmem:[%s2184_s23 + $0x2b8] sm:$0xf]  ;;  %v1524_v1 = vld [vmem:[%s2184_s23 + $0x104] sm:$0xff] }
  0xb0   : > { %v851_v48 = vmax.bf16 %v2343_v62, %v842_v30  ;;  %v1523_v39 = vld [vmem:[%s2184_s23 + $0xfc] sm:$0xff]  ;;  %v809_v53 = vmax.bf16 %v1482_v41, %v801_v44  ;;  %v2386_v57 = vld [vmem:[%s2184_s23 + $0x2f4] sm:$0xff]  ;;  %v852_v61 = vmax.bf16 %v2353_v12, %v843_v49  ;;  %v895_v5 = vmax.bf16 %v1524_v1, %v886_v46  ;;  %v1525_v14 = vld [vmem:[%s2184_s23 + $0x10c] sm:$0xff] }
  0xb1   : > { %v1527_v52 = vld [vmem:[%s2184_s23 + $0x2d8] sm:$0xff]  ;;  %v894_v56 = vmax.bf16 %v1523_v39, %v885_v34  ;;  %v775_v59 = vmax.bf16 %v1462_v42, %v766_v47  ;;  %v844_v62 = vmax.bf16 %v1497_v28, %v835_v50  ;;  %v1528_v2 = vld [vmem:[%s2184_s23 + $0x2e0] sm:$0xff]  ;;  %v1543_v55 = vld [vmem:[%s2184_s23 + $0x4d0] sm:$0xff]  ;;  %v896_v21 = vmax.bf16 %v1525_v14, %v887_v58 }
  0xb2   : > { %v1535_v45 = vld [vmem:[%s2184_s23 + $0x118] sm:$0xff]  ;;  %v860_v60 = vmax.bf16 %v1503_v9, %v851_v48  ;;  %v818_v3 = vmax.bf16 %v1486_v51, %v809_v53  ;;  %v1536_v6 = vld [vmem:[%s2184_s23 + $0x120] sm:$0xff]  ;;  %v861_v10 = vmax.bf16 %v1504_v26, %v852_v61  ;;  %v1529_v15 = vld [vmem:[%s2184_s23 + $0x2e8] sm:$0xff]  ;;  %v904_v19 = vmax.bf16 %v1528_v2, %v895_v5 }
  0xb3   : > { %v1531_v0 = vld [vmem:[%s2184_s23 + $0x4b4] sm:$0xff]  ;;  %v903_v4 = vmax.bf16 %v1527_v52, %v894_v56  ;;  %v2396_v7 = vld [vmem:[%s2184_s23 + $0x2fc] sm:$0xff]  ;;  %v956_v8 = vmax.bf16 %v2386_v57, %v1535_v45  ;;  %v784_v9 = vmax.bf16 %v1466_v43, %v775_v59  ;;  %v853_v11 = vmax.bf16 %v2366_v25, %v844_v62  ;;  %v1537_v22 = vld [vmem:[%s2184_s23 + $0x128] sm:$0xff] }
  0xb4   : > { %1507 = vst [vmem:[%s2257_s28 + $0x54] sm:$0xff] %v860_v60  ;;  %v1498_v12 = vld [vmem:[%s2184_s23 + $0xf8] sm:$0xf]  ;;  %v1532_v13 = vld [vmem:[%s2184_s23 + $0x4bc] sm:$0xff]  ;;  %v957_v16 = vmax.bf16 %v2396_v7, %v1536_v6  ;;  %v827_v17 = vmax.bf16 %v1490_v54, %v818_v3  ;;  %v2409_v23 = vld [vmem:[%s2184_s23 + $0x304] sm:$0xff]  ;;  %v905_v34 = vmax.bf16 %v1529_v15, %v896_v21 }
  0xb5   : > { %v912_v18 = vmax.bf16 %v1531_v0, %v903_v4  ;;  %v1544_v20 = vld [vmem:[%s2184_s23 + $0x4d8] sm:$0xff]  ;;  %1470 = vst [vmem:[%s2257_s28 + $0x50] sm:$0xf] %v784_v9  ;;  %1508 = vst [vmem:[%s2257_s28 + $0x5c] sm:$0xff] %v861_v10  ;;  %v862_v24 = vmax.bf16 %v1505_v40, %v853_v11  ;;  %v1533_v26 = vld [vmem:[%s2184_s23 + $0x4c4] sm:$0xff]  ;;  %v964_v25 = vmax.bf16 %v1543_v55, %v956_v8 }
  0xb6   : > { %v1514_v27 = vld [vmem:[%s2184_s23 + $0xf8] sm:$0xf]  ;;  %v1518_v28 = vld [vmem:[%s2184_s23 + $0x2d4] sm:$0xf]  ;;  %v958_v29 = vmax.bf16 %v2409_v23, %v1537_v22  ;;  %v836_v31 = vmax.bf16 %v1494_v63, %v827_v17  ;;  %v913_v33 = vmax.bf16 %v1532_v13, %v904_v19  ;;  %v1545_v35 = vld [vmem:[%s2184_s23 + $0x4e0] sm:$0xff]  ;;  %v965_v40 = vmax.bf16 %v1544_v20, %v957_v16 }
  0xb7   : > { %v921_v32 = vmax.bf16 %v1535_v45, %v912_v18  ;;  %v1522_v36 = vld [vmem:[%s2184_s23 + $0x4b0] sm:$0xf]  ;;  %1509 = vst [vmem:[%s2257_s28 + $0x64] sm:$0xff] %v862_v24  ;;  %v1502_v30 = vld [vmem:[%s2184_s23 + $0x2d4] sm:$0xf]  ;;  %v880_v38 = vmax.bf16 %v1518_v28, %v1514_v27  ;;  %v914_v44 = vmax.bf16 %v1533_v26, %v905_v34  ;;  %v1564_v60 = vld [vmem:[%s2184_s23 + $0x13c] sm:$0xff] }
  0xb8   : > { %v1506_v37 = vld [vmem:[%s2184_s23 + $0x4b0] sm:$0xf]  ;;  %v845_v41 = vmax.bf16 %v1498_v12, %v836_v31  ;;  %v922_v43 = vmax.bf16 %v1536_v6, %v913_v33  ;;  %v1526_v46 = vld [vmem:[%s2184_s23 + $0x114] sm:$0xf]  ;;  %v966_v53 = vmax.bf16 %v1545_v35, %v958_v29  ;;  %v1534_v58 = vld [vmem:[%s2184_s23 + $0x4cc] sm:$0xf]  ;;  %v974_v1 = vmax.bf16 %v1564_v60, %v965_v40 }
  0xb9   : > { %v930_v42 = vmax.bf16 %v2386_v57, %v921_v32  ;;  %v1563_v47 = vld [vmem:[%s2184_s23 + $0x134] sm:$0xff]  ;;  %v888_v49 = vmax.bf16 %v1522_v36, %v880_v38  ;;  %v1530_v50 = vld [vmem:[%s2184_s23 + $0x2f0] sm:$0xf]  ;;  %v923_v57 = vmax.bf16 %v1537_v22, %v914_v44  ;;  %v1583_v0 = vld [vmem:[%s2184_s23 + $0x508] sm:$0xff] }
  0xba   : > { %v1567_v48 = vld [vmem:[%s2184_s23 + $0x310] sm:$0xff]  ;;  %v973_v51 = vmax.bf16 %v1563_v47, %v964_v25  ;;  %v854_v54 = vmax.bf16 %v1502_v30, %v845_v41  ;;  %v931_v45 = vmax.bf16 %v2396_v7, %v922_v43  ;;  %v1568_v61 = vld [vmem:[%s2184_s23 + $0x318] sm:$0xff]  ;;  %v1565_v9 = vld [vmem:[%s2184_s23 + $0x144] sm:$0xff] }
  0xbb   : > { %v1575_v39 = vld [vmem:[%s2184_s23 + $0x150] sm:$0xff]  ;;  %v939_v56 = vmax.bf16 %v1543_v55, %v930_v42  ;;  %v897_v62 = vmax.bf16 %v1526_v46, %v888_v49  ;;  %v1576_v2 = vld [vmem:[%s2184_s23 + $0x158] sm:$0xff]  ;;  %v932_v6 = vmax.bf16 %v2409_v23, %v923_v57  ;;  %v1569_v10 = vld [vmem:[%s2184_s23 + $0x320] sm:$0xff]  ;;  %v983_v14 = vmax.bf16 %v1568_v61, %v974_v1 }
  0xbc   : > { %v2429_v52 = vld [vmem:[%s2184_s23 + $0x32c] sm:$0xff]  ;;  %v982_v63 = vmax.bf16 %v1567_v48, %v973_v51  ;;  %v2439_v3 = vld [vmem:[%s2184_s23 + $0x334] sm:$0xff]  ;;  %v863_v55 = vmax.bf16 %v1506_v37, %v854_v54  ;;  %v940_v5 = vmax.bf16 %v1544_v20, %v931_v45  ;;  %v975_v16 = vmax.bf16 %v1565_v9, %v966_v53  ;;  %v1577_v17 = vld [vmem:[%s2184_s23 + $0x160] sm:$0xff] }
  0xbd   : > { %v1571_v59 = vld [vmem:[%s2184_s23 + $0x4ec] sm:$0xff]  ;;  %v1035_v4 = vmax.bf16 %v2429_v52, %v1575_v39  ;;  %1547 = vst [vmem:[%s2257_s28 + $0x70] sm:$0xff] %v939_v56  ;;  %v1572_v8 = vld [vmem:[%s2184_s23 + $0x4f4] sm:$0xff]  ;;  %v1036_v11 = vmax.bf16 %v2439_v3, %v1576_v2  ;;  %v906_v12 = vmax.bf16 %v1530_v50, %v897_v62  ;;  %v2452_v18 = vld [vmem:[%s2184_s23 + $0x33c] sm:$0xff]  ;;  %v941_v19 = vmax.bf16 %v1545_v35, %v932_v6 }
  0xbe   : > { %v1538_v7 = vld [vmem:[%s2184_s23 + $0x130] sm:$0xf]  ;;  %v991_v13 = vmax.bf16 %v1571_v59, %v982_v63  ;;  %1510 = vst [vmem:[%s2257_s28 + $0x6c] sm:$0xf] %v863_v55  ;;  %1548 = vst [vmem:[%s2257_s28 + $0x78] sm:$0xff] %v940_v5  ;;  %v1573_v20 = vld [vmem:[%s2184_s23 + $0x4fc] sm:$0xff]  ;;  %v1037_v24 = vmax.bf16 %v2452_v18, %v1577_v17  ;;  %v992_v28 = vmax.bf16 %v1572_v8, %v983_v14 }
  0xbf   : > { %v1584_v15 = vld [vmem:[%s2184_s23 + $0x510] sm:$0xff]  ;;  %v1558_v22 = vld [vmem:[%s2184_s23 + $0x30c] sm:$0xf]  ;;  %v1043_v23 = vmax.bf16 %v1583_v0, %v1035_v4  ;;  %v915_v26 = vmax.bf16 %v1534_v58, %v906_v12  ;;  %v984_v25 = vmax.bf16 %v1569_v10, %v975_v16  ;;  %v1585_v29 = vld [vmem:[%s2184_s23 + $0x518] sm:$0xff]  ;;  %1549 = vst [vmem:[%s2257_s28 + $0x80] sm:$0xff] %v941_v19 }
  0xc0   : > { %v1554_v21 = vld [vmem:[%s2184_s23 + $0x130] sm:$0xf]  ;;  %v1000_v27 = vmax.bf16 %v1575_v39, %v991_v13  ;;  %v1562_v31 = vld [vmem:[%s2184_s23 + $0x4e8] sm:$0xf]  ;;  %v1542_v32 = vld [vmem:[%s2184_s23 + $0x30c] sm:$0xf]  ;;  %v1044_v35 = vmax.bf16 %v1584_v15, %v1036_v11  ;;  %v1001_v37 = vmax.bf16 %v1576_v2, %v992_v28  ;;  %v1045_v49 = vmax.bf16 %v1585_v29, %v1037_v24 }
  0xc1   : > { %v1546_v33 = vld [vmem:[%s2184_s23 + $0x4e8] sm:$0xf]  ;;  %v959_v34 = vmax.bf16 %v1558_v22, %v1554_v21  ;;  %v924_v36 = vmax.bf16 %v1538_v7, %v915_v26  ;;  %v993_v38 = vmax.bf16 %v1573_v20, %v984_v25  ;;  %v1566_v40 = vld [vmem:[%s2184_s23 + $0x14c] sm:$0xf]  ;;  %v1574_v53 = vld [vmem:[%s2184_s23 + $0x504] sm:$0xf] }
  0xc2   : > { %v1009_v30 = vmax.bf16 %v2429_v52, %v1000_v27  ;;  %v1603_v41 = vld [vmem:[%s2184_s23 + $0x16c] sm:$0xff]  ;;  %v1570_v44 = vld [vmem:[%s2184_s23 + $0x328] sm:$0xf]  ;;  %v1010_v39 = vmax.bf16 %v2439_v3, %v1001_v37  ;;  %v1604_v56 = vld [vmem:[%s2184_s23 + $0x174] sm:$0xff] }
  0xc3   : > { %v1607_v42 = vld [vmem:[%s2184_s23 + $0x348] sm:$0xff]  ;;  %v967_v43 = vmax.bf16 %v1562_v31, %v959_v34  ;;  %v1052_v46 = vmax.bf16 %v1603_v41, %v1043_v23  ;;  %v933_v50 = vmax.bf16 %v1542_v32, %v924_v36  ;;  %v1002_v52 = vmax.bf16 %v1577_v17, %v993_v38  ;;  %v1608_v45 = vld [vmem:[%s2184_s23 + $0x350] sm:$0xff]  ;;  %v1623_v59 = vld [vmem:[%s2184_s23 + $0x540] sm:$0xff] }
  0xc4   : > { %v1615_v47 = vld [vmem:[%s2184_s23 + $0x188] sm:$0xff]  ;;  %v1018_v51 = vmax.bf16 %v1583_v0, %v1009_v30  ;;  %v1053_v60 = vmax.bf16 %v1604_v56, %v1044_v35  ;;  %v1616_v61 = vld [vmem:[%s2184_s23 + $0x190] sm:$0xff]  ;;  %v1019_v1 = vmax.bf16 %v1584_v15, %v1010_v39  ;;  %v1605_v55 = vld [vmem:[%s2184_s23 + $0x17c] sm:$0xff] }
  0xc5   : > { %v2472_v48 = vld [vmem:[%s2184_s23 + $0x364] sm:$0xff]  ;;  %v976_v57 = vmax.bf16 %v1566_v40, %v967_v43  ;;  %v1061_v58 = vmax.bf16 %v1607_v42, %v1052_v46  ;;  %v2482_v62 = vld [vmem:[%s2184_s23 + $0x36c] sm:$0xff]  ;;  %v942_v0 = vmax.bf16 %v1546_v33, %v933_v50  ;;  %v1011_v2 = vmax.bf16 %v2452_v18, %v1002_v52  ;;  %v1609_v5 = vld [vmem:[%s2184_s23 + $0x358] sm:$0xff] }
  0xc6   : > { %v1611_v54 = vld [vmem:[%s2184_s23 + $0x524] sm:$0xff]  ;;  %v1114_v63 = vmax.bf16 %v2472_v48, %v1615_v47  ;;  %1587 = vst [vmem:[%s2257_s28 + $0x8c] sm:$0xff] %v1018_v51  ;;  %v1612_v4 = vld [vmem:[%s2184_s23 + $0x52c] sm:$0xff]  ;;  %v1115_v6 = vmax.bf16 %v2482_v62, %v1616_v61  ;;  %v1062_v9 = vmax.bf16 %v1608_v45, %v1053_v60  ;;  %v1054_v11 = vmax.bf16 %v1605_v55, %v1045_v49  ;;  %v1617_v12 = vld [vmem:[%s2184_s23 + $0x198] sm:$0xff] }
  0xc7   : > { %v1578_v3 = vld [vmem:[%s2184_s23 + $0x168] sm:$0xf]  ;;  %v985_v7 = vmax.bf16 %v1570_v44, %v976_v57  ;;  %v1070_v8 = vmax.bf16 %v1611_v54, %v1061_v58  ;;  %v1621_v13 = vld [vmem:[%s2184_s23 + $0x374] sm:$0xff]  ;;  %1550 = vst [vmem:[%s2257_s28 + $0x88] sm:$0xf] %v942_v0  ;;  %1588 = vst [vmem:[%s2257_s28 + $0x94] sm:$0xff] %v1019_v1  ;;  %v1020_v14 = vmax.bf16 %v1585_v29, %v1011_v2 }
  0xc8   : > { %v1624_v10 = vld [vmem:[%s2184_s23 + $0x548] sm:$0xff]  ;;  %v1613_v15 = vld [vmem:[%s2184_s23 + $0x534] sm:$0xff]  ;;  %v1598_v17 = vld [vmem:[%s2184_s23 + $0x344] sm:$0xf]  ;;  %v1122_v18 = vmax.bf16 %v1623_v59, %v1114_v63  ;;  %v1116_v19 = vmax.bf16 %v1621_v13, %v1617_v12  ;;  %v1071_v22 = vmax.bf16 %v1612_v4, %v1062_v9  ;;  %v1063_v23 = vmax.bf16 %v1609_v5, %v1054_v11 }
  0xc9   : > { %v1594_v16 = vld [vmem:[%s2184_s23 + $0x168] sm:$0xf]  ;;  %v994_v20 = vmax.bf16 %v1574_v53, %v985_v7  ;;  %v1079_v21 = vmax.bf16 %v1615_v47, %v1070_v8  ;;  %v1625_v24 = vld [vmem:[%s2184_s23 + $0x550] sm:$0xff]  ;;  %v1602_v26 = vld [vmem:[%s2184_s23 + $0x520] sm:$0xf]  ;;  %1589 = vst [vmem:[%s2257_s28 + $0x9c] sm:$0xff] %v1020_v14  ;;  %v1123_v25 = vmax.bf16 %v1624_v10, %v1115_v6 }
  0xca   : > { %v1582_v27 = vld [vmem:[%s2184_s23 + $0x344] sm:$0xf]  ;;  %v1038_v28 = vmax.bf16 %v1598_v17, %v1594_v16  ;;  %v1080_v32 = vmax.bf16 %v1616_v61, %v1071_v22  ;;  %v1072_v33 = vmax.bf16 %v1613_v15, %v1063_v23  ;;  %v1586_v30 = vld [vmem:[%s2184_s23 + $0x520] sm:$0xf]  ;;  %v1124_v41 = vmax.bf16 %v1625_v24, %v1116_v19  ;;  %v1648_v49 = vld [vmem:[%s2184_s23 + $0x388] sm:$0xff] }
  0xcb   : > { %v1003_v29 = vmax.bf16 %v1578_v3, %v994_v20  ;;  %v1088_v31 = vmax.bf16 %v2472_v48, %v1079_v21  ;;  %v1606_v34 = vld [vmem:[%s2184_s23 + $0x184] sm:$0xf]  ;;  %v1610_v38 = vld [vmem:[%s2184_s23 + $0x360] sm:$0xf]  ;;  %v1644_v48 = vld [vmem:[%s2184_s23 + $0x1ac] sm:$0xff] }
  0xcc   : > { %v1643_v35 = vld [vmem:[%s2184_s23 + $0x1a4] sm:$0xff]  ;;  %v1046_v37 = vmax.bf16 %v1602_v26, %v1038_v28  ;;  %v1089_v44 = vmax.bf16 %v2482_v62, %v1080_v32  ;;  %v1081_v46 = vmax.bf16 %v1617_v12, %v1072_v33  ;;  %v1651_v47 = vld [vmem:[%s2184_s23 + $0x55c] sm:$0xff]  ;;  %v1132_v53 = vmax.bf16 %v1644_v48, %v1123_v25  ;;  %v1645_v58 = vld [vmem:[%s2184_s23 + $0x1b4] sm:$0xff] }
  0xcd   : > { %v1647_v36 = vld [vmem:[%s2184_s23 + $0x380] sm:$0xff]  ;;  %v1131_v40 = vmax.bf16 %v1643_v35, %v1122_v18  ;;  %v1012_v42 = vmax.bf16 %v1582_v27, %v1003_v29  ;;  %v1097_v43 = vmax.bf16 %v1623_v59, %v1088_v31  ;;  %v1614_v51 = vld [vmem:[%s2184_s23 + $0x53c] sm:$0xf]  ;;  %v1649_v59 = vld [vmem:[%s2184_s23 + $0x390] sm:$0xff]  ;;  %v1133_v2 = vmax.bf16 %v1645_v58, %v1124_v41 }
  0xce   : > { %v1055_v50 = vmax.bf16 %v1606_v34, %v1046_v37  ;;  %v1655_v52 = vld [vmem:[%s2184_s23 + $0x1c0] sm:$0xff]  ;;  %v1098_v56 = vmax.bf16 %v1624_v10, %v1089_v44  ;;  %v1090_v45 = vmax.bf16 %v1621_v13, %v1081_v46  ;;  %v1141_v0 = vmax.bf16 %v1648_v49, %v1132_v53  ;;  %v1656_v1 = vld [vmem:[%s2184_s23 + $0x1c8] sm:$0xff]  ;;  %v1638_v5 = vld [vmem:[%s2184_s23 + $0x37c] sm:$0xf] }
  0xcf   : > { %v1140_v39 = vmax.bf16 %v1647_v36, %v1131_v40  ;;  %v1021_v54 = vmax.bf16 %v1586_v30, %v1012_v42  ;;  %1627 = vst [vmem:[%s2257_s28 + $0xa8] sm:$0xff] %v1097_v43  ;;  %v1652_v57 = vld [vmem:[%s2184_s23 + $0x564] sm:$0xff]  ;;  %v1618_v61 = vld [vmem:[%s2184_s23 + $0x1a0] sm:$0xf]  ;;  %v1653_v4 = vld [vmem:[%s2184_s23 + $0x56c] sm:$0xff]  ;;  %v1142_v10 = vmax.bf16 %v1649_v59, %v1133_v2 }
  0xd0   : > { %v1064_v60 = vmax.bf16 %v1610_v38, %v1055_v50  ;;  %v1659_v63 = vld [vmem:[%s2184_s23 + $0x39c] sm:$0xff]  ;;  %1628 = vst [vmem:[%s2257_s28 + $0xb0] sm:$0xff] %v1098_v56  ;;  %v1099_v3 = vmax.bf16 %v1625_v24, %v1090_v45  ;;  %v1150_v9 = vmax.bf16 %v1652_v57, %v1141_v0  ;;  %v1642_v11 = vld [vmem:[%s2184_s23 + $0x558] sm:$0xf]  ;;  %v1660_v13 = vld [vmem:[%s2184_s23 + $0x3a4] sm:$0xff] }
  0xd1   : > { %v1149_v62 = vmax.bf16 %v1651_v47, %v1140_v39  ;;  %1590 = vst [vmem:[%s2257_s28 + $0xa4] sm:$0xf] %v1021_v54  ;;  %v1634_v55 = vld [vmem:[%s2184_s23 + $0x1a0] sm:$0xf]  ;;  %v1622_v7 = vld [vmem:[%s2184_s23 + $0x37c] sm:$0xf]  ;;  %v1151_v19 = vmax.bf16 %v1653_v4, %v1142_v10 }
  0xd2   : > { %v1073_v6 = vmax.bf16 %v1614_v51, %v1064_v60  ;;  %1629 = vst [vmem:[%s2257_s28 + $0xb8] sm:$0xff] %v1099_v3  ;;  %v1663_v12 = vld [vmem:[%s2184_s23 + $0x578] sm:$0xff]  ;;  %v1657_v14 = vld [vmem:[%s2184_s23 + $0x1d0] sm:$0xff]  ;;  %v1117_v15 = vmax.bf16 %v1638_v5, %v1634_v55  ;;  %v1159_v18 = vmax.bf16 %v1656_v1, %v1150_v9  ;;  %v1664_v22 = vld [vmem:[%s2184_s23 + $0x580] sm:$0xff] }
  0xd3   : > { %v1158_v8 = vmax.bf16 %v1655_v52, %v1149_v62  ;;  %v1646_v20 = vld [vmem:[%s2184_s23 + $0x1bc] sm:$0xf]  ;;  %v1626_v21 = vld [vmem:[%s2184_s23 + $0x558] sm:$0xf]  ;;  %v1661_v23 = vld [vmem:[%s2184_s23 + $0x3ac] sm:$0xff]  ;;  %v1160_v25 = vmax.bf16 %v1657_v14, %v1151_v19 }
  0xd4   : > { %v1082_v16 = vmax.bf16 %v1618_v61, %v1073_v6  ;;  %v1125_v24 = vmax.bf16 %v1642_v11, %v1117_v15  ;;  %v1168_v28 = vmax.bf16 %v1660_v13, %v1159_v18  ;;  %v1650_v29 = vld [vmem:[%s2184_s23 + $0x398] sm:$0xf]  ;;  %v1665_v31 = vld [vmem:[%s2184_s23 + $0x588] sm:$0xff]  ;;  %v1654_v36 = vld [vmem:[%s2184_s23 + $0x574] sm:$0xf] }
  0xd5   : > { %v1167_v17 = vmax.bf16 %v1659_v63, %v1158_v8  ;;  %v1169_v35 = vmax.bf16 %v1661_v23, %v1160_v25  ;;  %v1658_v38 = vld [vmem:[%s2184_s23 + $0x1d8] sm:$0xf]  ;;  %v1662_v41 = vld [vmem:[%s2184_s23 + $0x3b4] sm:$0xf]  ;;  %v1666_v43 = vld [vmem:[%s2184_s23 + $0x590] sm:$0xf] }
  0xd6   : > { %v1091_v26 = vmax.bf16 %v1622_v7, %v1082_v16  ;;  %v1134_v32 = vmax.bf16 %v1646_v20, %v1125_v24  ;;  %v1177_v34 = vmax.bf16 %v1664_v22, %v1168_v28 }
  0xd7   : > { %v1176_v27 = vmax.bf16 %v1663_v12, %v1167_v17  ;;  %v1178_v37 = vmax.bf16 %v1665_v31, %v1169_v35 }
  0xd8   : > { %v1100_v33 = vmax.bf16 %v1626_v21, %v1091_v26  ;;  %v1143_v30 = vmax.bf16 %v1650_v29, %v1134_v32  ;;  %1668 = vst [vmem:[%s2257_s28 + $0xcc] sm:$0xff] %v1177_v34 }
  0xd9   : > { %1667 = vst [vmem:[%s2257_s28 + $0xc4] sm:$0xff] %v1176_v27  ;;  %1669 = vst [vmem:[%s2257_s28 + $0xd4] sm:$0xff] %v1178_v37 }
  0xda   : > { %1630 = vst [vmem:[%s2257_s28 + $0xc0] sm:$0xf] %v1100_v33  ;;  %v1152_v40 = vmax.bf16 %v1654_v36, %v1143_v30 }
  0xdc   : > { %v1161_v42 = vmax.bf16 %v1658_v38, %v1152_v40 }
  0xde   : > { %v1170_v44 = vmax.bf16 %v1662_v41, %v1161_v42 }
  0xe0   : > { %v1179_v46 = vmax.bf16 %v1666_v43, %v1170_v44 }
  0xe2   : > { %1670 = vst [vmem:[%s2257_s28 + $0xdc] sm:$0xf] %v1179_v46 }
  0xe3 PF: > { %p8_p9 = scmp.ge.s32.totalorder %s1752_s10, 4   ;;  %s2562_s6 = smov %s1719_s7 }
  0xe4   : > { %s2563_s7 = smov %s1761_s13  ;;  %s2564_s8 = smov %s1752_s10 }
  0xe5   :  { %10 = sbr.rel (!%p8_p9) target bundleno = 2 (0x2), region = 148 }

// kernel: mixed7a_forward.6
= control target key start
LH: loop header
LB: loop body
LE: loop exit
PB: predicated region body
PF: predicated region fallthrough
CT: control target
= control target key end

     0   :  { %s4945_s0 = inlined_call_operand.vmem [shape: bf16[592,896], index: 0, kind: input, shape index: {}]   ;;  %s4946_s1 = inlined_call_operand.vmem [shape: bf16[896,768], index: 1, kind: input, shape index: {}]   ;;  %s4947_s2 = inlined_call_operand.vmem [shape: f32[1,768], index: 2, kind: input, shape index: {}]   ;;  %s4948_s3 = inlined_call_operand.vmem [shape: bf16[592,768], index: 3, kind: output, shape index: {}]  }
   0x1   :  { %4950 = sst [smem:[#allocation7_spill]] %s4945_s0 }
   0x2   :  { %4951 = sst [smem:[#allocation8_spill]] %s4946_s1 }
   0x3   :  { %s3983_s12 = smov 0   ;;  %s3985_s13 = smov 0  }
   0x4   :  { %s3987_s14 = smov 0   ;;  %s3989_s15 = smov 0  }
   0x5   :  { %s3991_s16 = smov 0   ;;  %s3993_s17 = smov 0  }
   0x6   :  { %s3995_s18 = smov 0   ;;  %s3997_s19 = smov 0  }
   0x7   :  { %s3999_s20 = smov 0   ;;  %s4001_s21 = smov 0  }
   0x8   :  { %s4003_s22 = smov 0  }
   0x9 LB: > { %s3481_s23 = sadd.s32 4294967295, %s3959_s22   ;;  %s25_s24 = sadd.s32 1, %s3951_s20  ;;  %s3959_s22 = sphi %s4003_s22, %s13_s22   ;;  %s3955_s21 = sphi %s4001_s21, %s4968_s21   ;;  %s3951_s20 = sphi %s3999_s20, %s4967_s20   ;;  %s3947_s19 = sphi %s3997_s19, %s4966_s19   ;;  %s3943_s18 = sphi %s3995_s18, %s4965_s18   ;;  %s3939_s17 = sphi %s3993_s17, %s4964_s17   ;;  %s3935_s16 = sphi %s3991_s16, %s4963_s16   ;;  %s3931_s15 = sphi %s3989_s15, %s4962_s15   ;;  %s3927_s14 = sphi %s3987_s14, %s4961_s14   ;;  %s3923_s13 = sphi %s3985_s13, %s4960_s13   ;;  %s3919_s12 = sphi %s3983_s12, %s4959_s12  }
   0xa   : > { %p26_p0 = scmp.ge.s32.totalorder %s25_s24, 7  ;;  %s28_s25 = sadd.s32 1, %s3955_s21 }
   0xb   : > { %s41_s26 = sadd.s32 1, %s3939_s17  ;;  %p48_p1 = scmp.ne.s32.totalorder %s3939_s17, %s3935_s16 }
   0xc   : > { %s4970_s24 = smov (%p26_p0, %s25_s24), 0  ;;  %s4972_s25 = smov (!%p26_p0, %s28_s25), %s3955_s21 }
   0xd   : > { %s37_s27 = ssub.s32 %s3951_s20, %s4970_s24  ;;  %p49_p2 = scmp.eq.s32.totalorder %s3959_s22, 0 }
   0xe   : > { %p30_p3 = scmp.ge.s32.totalorder %s4972_s25, 3  ;;  %p39_p4 = scmp.eq.s32.totalorder %s37_s27, 0 }
   0xf   : > { %p4050_p5 = por %p49_p2, %p48_p1  ;;  %s69_s29 = sadd.s32 1, %s3931_s15 }
  0x10   : > { %s4974_s25 = smov (%p30_p3, %s4972_s25), 0  ;;  %p76_p6 = scmp.ne.s32.totalorder %s3931_s15, %s3927_s14 }
  0x11   : > { %4953 = sst [smem:[#allocation6_spill]] %s4974_s25  ;;  %s65_s4 = ssub.s32 %s3955_s21, %s4974_s25 }
  0x12   : > { %s4058_s30 = scalar_select %p39_p4, %s3939_s17, %s41_s26  }
  0x13   : > { %s66_s5 = sor.u32 %s65_s4, %s37_s27  ;;  %p121_p7 = scmp.eq.s32.totalorder %s65_s4, 0 }
  0x14   : > { %p67_p8 = scmp.eq.s32.totalorder %s66_s5, 0  ;;  %p4064_p9 = por %p76_p6, %p49_p2 }
  0x15   : > { %s123_s7 = sadd.s32 1, %s3923_s13  ;;  %p133_p10 = scmp.ne.s32.totalorder %s3923_s13, %s3919_s12 }
  0x16   : > { %s4072_s8 = scalar_select %p67_p8, %s3931_s15, %s69_s29  }
  0x17   : > { %s4075_s9 = scalar_select %p121_p7, %s3923_s13, %s123_s7  }
  0x18   : > { %p134_p11 = scmp.eq.s32.totalorder %s3481_s23, 20  ;;  %p3484_p13 = scmp.ge.s32.totalorder %s3959_s22, 21 }
  0x1a   : > { %p4077_p12 = por %p134_p11, %p133_p10  ;;  %156 = sbr.rel (%p3484_p13) target bundleno = 110 (0x6e), region = 16 }
  0x21   : > { %159 = sbr.rel (!%p4050_p5) target bundleno = 92 (0x5c), region = 20  ;;  %s161_s11 = sand.u32 (%p4050_p5), 1, %s3939_s17  }
  0x22   : > { %s3485_s26 = sshll.u32 (%p4050_p5), %s3951_s20, 2  ;;  %s3718_s27 = smul.u32 (%p4050_p5), 296, %s161_s11 }
  0x23   : > { %s4956_s0 = sld [smem:[#allocation7_spill]] (%p4050_p5) }
  0x24   : > { %s4096_s23 = scalar_lea.vmem (%p4050_p5), [#allocation3], %s3718_s27 }
  0x29   : > { %s4089_s5 = scalar_lea.vmem %s4956_s0, %s3485_s26 }
  0x2a   : > { %v184_v0 = vld [vmem:[%s4089_s5] sm:$0xf]  ;;  %v186_v1 = vld [vmem:[%s4089_s5 + $0x1c] sm:$0xf]  ;;  %v188_v2 = vld [vmem:[%s4089_s5 + $0x38] sm:$0xf] }
  0x2b   : > { %v190_v3 = vld [vmem:[%s4089_s5 + $0x54] sm:$0xf]  ;;  %v192_v4 = vld [vmem:[%s4089_s5 + $0x70] sm:$0xf]  ;;  %185 = vst [vmem:[%s4096_s23] sm:$0xf] %v184_v0 }
  0x2c   : > { %187 = vst [vmem:[%s4096_s23 + $0x4] sm:$0xf] %v186_v1  ;;  %189 = vst [vmem:[%s4096_s23 + $0x8] sm:$0xf] %v188_v2  ;;  %v194_v5 = vld [vmem:[%s4089_s5 + $0x8c] sm:$0xf] }
  0x2d   : > { %191 = vst [vmem:[%s4096_s23 + $0xc] sm:$0xf] %v190_v3  ;;  %193 = vst [vmem:[%s4096_s23 + $0x10] sm:$0xf] %v192_v4  ;;  %v196_v6 = vld [vmem:[%s4089_s5 + $0xa8] sm:$0xf] }
  0x2e   : > { %v198_v7 = vld [vmem:[%s4089_s5 + $0xc4] sm:$0xf]  ;;  %195 = vst [vmem:[%s4096_s23 + $0x14] sm:$0xf] %v194_v5  ;;  %197 = vst [vmem:[%s4096_s23 + $0x18] sm:$0xf] %v196_v6 }
  0x2f   : > { %199 = vst [vmem:[%s4096_s23 + $0x1c] sm:$0xf] %v198_v7  ;;  %v200_v8 = vld [vmem:[%s4089_s5 + $0xe0] sm:$0xf]  ;;  %v202_v9 = vld [vmem:[%s4089_s5 + $0xfc] sm:$0xf] }
  0x30   : > { %v204_v10 = vld [vmem:[%s4089_s5 + $0x118] sm:$0xf]  ;;  %201 = vst [vmem:[%s4096_s23 + $0x20] sm:$0xf] %v200_v8  ;;  %203 = vst [vmem:[%s4096_s23 + $0x24] sm:$0xf] %v202_v9 }
  0x31   : > { %205 = vst [vmem:[%s4096_s23 + $0x28] sm:$0xf] %v204_v10  ;;  %v206_v11 = vld [vmem:[%s4089_s5 + $0x134] sm:$0xf]  ;;  %v208_v12 = vld [vmem:[%s4089_s5 + $0x150] sm:$0xf] }
  0x32   : > { %v210_v13 = vld [vmem:[%s4089_s5 + $0x16c] sm:$0xf]  ;;  %207 = vst [vmem:[%s4096_s23 + $0x2c] sm:$0xf] %v206_v11  ;;  %209 = vst [vmem:[%s4096_s23 + $0x30] sm:$0xf] %v208_v12 }
  0x33   : > { %211 = vst [vmem:[%s4096_s23 + $0x34] sm:$0xf] %v210_v13  ;;  %v212_v14 = vld [vmem:[%s4089_s5 + $0x188] sm:$0xf]  ;;  %v214_v15 = vld [vmem:[%s4089_s5 + $0x1a4] sm:$0xf] }
  0x34   : > { %v216_v16 = vld [vmem:[%s4089_s5 + $0x1c0] sm:$0xf]  ;;  %213 = vst [vmem:[%s4096_s23 + $0x38] sm:$0xf] %v212_v14  ;;  %215 = vst [vmem:[%s4096_s23 + $0x3c] sm:$0xf] %v214_v15 }
  0x35   : > { %217 = vst [vmem:[%s4096_s23 + $0x40] sm:$0xf] %v216_v16  ;;  %v218_v17 = vld [vmem:[%s4089_s5 + $0x1dc] sm:$0xf]  ;;  %v220_v18 = vld [vmem:[%s4089_s5 + $0x1f8] sm:$0xf] }
  0x36   : > { %v222_v19 = vld [vmem:[%s4089_s5 + $0x214] sm:$0xf]  ;;  %219 = vst [vmem:[%s4096_s23 + $0x44] sm:$0xf] %v218_v17  ;;  %221 = vst [vmem:[%s4096_s23 + $0x48] sm:$0xf] %v220_v18 }
  0x37   : > { %223 = vst [vmem:[%s4096_s23 + $0x4c] sm:$0xf] %v222_v19  ;;  %v224_v20 = vld [vmem:[%s4089_s5 + $0x230] sm:$0xf]  ;;  %v226_v21 = vld [vmem:[%s4089_s5 + $0x24c] sm:$0xf] }
  0x38   : > { %v228_v22 = vld [vmem:[%s4089_s5 + $0x268] sm:$0xf]  ;;  %225 = vst [vmem:[%s4096_s23 + $0x50] sm:$0xf] %v224_v20  ;;  %227 = vst [vmem:[%s4096_s23 + $0x54] sm:$0xf] %v226_v21 }
  0x39   : > { %229 = vst [vmem:[%s4096_s23 + $0x58] sm:$0xf] %v228_v22  ;;  %v230_v23 = vld [vmem:[%s4089_s5 + $0x284] sm:$0xf]  ;;  %v232_v24 = vld [vmem:[%s4089_s5 + $0x2a0] sm:$0xf] }
  0x3a   : > { %v234_v25 = vld [vmem:[%s4089_s5 + $0x2bc] sm:$0xf]  ;;  %231 = vst [vmem:[%s4096_s23 + $0x5c] sm:$0xf] %v230_v23  ;;  %233 = vst [vmem:[%s4096_s23 + $0x60] sm:$0xf] %v232_v24 }
  0x3b   : > { %235 = vst [vmem:[%s4096_s23 + $0x64] sm:$0xf] %v234_v25  ;;  %v236_v26 = vld [vmem:[%s4089_s5 + $0x2d8] sm:$0xf]  ;;  %v238_v27 = vld [vmem:[%s4089_s5 + $0x2f4] sm:$0xf] }
  0x3c   : > { %v240_v28 = vld [vmem:[%s4089_s5 + $0x310] sm:$0xf]  ;;  %237 = vst [vmem:[%s4096_s23 + $0x68] sm:$0xf] %v236_v26  ;;  %239 = vst [vmem:[%s4096_s23 + $0x6c] sm:$0xf] %v238_v27 }
  0x3d   : > { %241 = vst [vmem:[%s4096_s23 + $0x70] sm:$0xf] %v240_v28  ;;  %v242_v29 = vld [vmem:[%s4089_s5 + $0x32c] sm:$0xf]  ;;  %v244_v30 = vld [vmem:[%s4089_s5 + $0x348] sm:$0xf] }
  0x3e   : > { %v246_v31 = vld [vmem:[%s4089_s5 + $0x364] sm:$0xf]  ;;  %243 = vst [vmem:[%s4096_s23 + $0x74] sm:$0xf] %v242_v29  ;;  %245 = vst [vmem:[%s4096_s23 + $0x78] sm:$0xf] %v244_v30 }
  0x3f   : > { %247 = vst [vmem:[%s4096_s23 + $0x7c] sm:$0xf] %v246_v31  ;;  %v248_v32 = vld [vmem:[%s4089_s5 + $0x380] sm:$0xf]  ;;  %v250_v33 = vld [vmem:[%s4089_s5 + $0x39c] sm:$0xf] }
  0x40   : > { %v252_v34 = vld [vmem:[%s4089_s5 + $0x3b8] sm:$0xf]  ;;  %249 = vst [vmem:[%s4096_s23 + $0x80] sm:$0xf] %v248_v32  ;;  %251 = vst [vmem:[%s4096_s23 + $0x84] sm:$0xf] %v250_v33 }
  0x41   : > { %253 = vst [vmem:[%s4096_s23 + $0x88] sm:$0xf] %v252_v34  ;;  %v254_v35 = vld [vmem:[%s4089_s5 + $0x3d4] sm:$0xf]  ;;  %v256_v36 = vld [vmem:[%s4089_s5 + $0x3f0] sm:$0xf] }
  0x42   : > { %v258_v37 = vld [vmem:[%s4089_s5 + $0x40c] sm:$0xf]  ;;  %255 = vst [vmem:[%s4096_s23 + $0x8c] sm:$0xf] %v254_v35  ;;  %257 = vst [vmem:[%s4096_s23 + $0x90] sm:$0xf] %v256_v36 }
  0x43   : > { %259 = vst [vmem:[%s4096_s23 + $0x94] sm:$0xf] %v258_v37  ;;  %v260_v38 = vld [vmem:[%s4089_s5 + $0x428] sm:$0xf]  ;;  %v262_v39 = vld [vmem:[%s4089_s5 + $0x444] sm:$0xf] }
  0x44   : > { %v264_v40 = vld [vmem:[%s4089_s5 + $0x460] sm:$0xf]  ;;  %261 = vst [vmem:[%s4096_s23 + $0x98] sm:$0xf] %v260_v38  ;;  %263 = vst [vmem:[%s4096_s23 + $0x9c] sm:$0xf] %v262_v39 }
  0x45   : > { %265 = vst [vmem:[%s4096_s23 + $0xa0] sm:$0xf] %v264_v40  ;;  %v266_v41 = vld [vmem:[%s4089_s5 + $0x47c] sm:$0xf]  ;;  %v268_v42 = vld [vmem:[%s4089_s5 + $0x498] sm:$0xf] }
  0x46   : > { %v270_v43 = vld [vmem:[%s4089_s5 + $0x4b4] sm:$0xf]  ;;  %267 = vst [vmem:[%s4096_s23 + $0xa4] sm:$0xf] %v266_v41  ;;  %269 = vst [vmem:[%s4096_s23 + $0xa8] sm:$0xf] %v268_v42 }
  0x47   : > { %271 = vst [vmem:[%s4096_s23 + $0xac] sm:$0xf] %v270_v43  ;;  %v272_v44 = vld [vmem:[%s4089_s5 + $0x4d0] sm:$0xf]  ;;  %v274_v45 = vld [vmem:[%s4089_s5 + $0x4ec] sm:$0xf] }
  0x48   : > { %v276_v46 = vld [vmem:[%s4089_s5 + $0x508] sm:$0xf]  ;;  %273 = vst [vmem:[%s4096_s23 + $0xb0] sm:$0xf] %v272_v44  ;;  %275 = vst [vmem:[%s4096_s23 + $0xb4] sm:$0xf] %v274_v45 }
  0x49   : > { %277 = vst [vmem:[%s4096_s23 + $0xb8] sm:$0xf] %v276_v46  ;;  %v278_v47 = vld [vmem:[%s4089_s5 + $0x524] sm:$0xf]  ;;  %v280_v48 = vld [vmem:[%s4089_s5 + $0x540] sm:$0xf] }
  0x4a   : > { %v282_v49 = vld [vmem:[%s4089_s5 + $0x55c] sm:$0xf]  ;;  %279 = vst [vmem:[%s4096_s23 + $0xbc] sm:$0xf] %v278_v47  ;;  %281 = vst [vmem:[%s4096_s23 + $0xc0] sm:$0xf] %v280_v48 }
  0x4b   : > { %283 = vst [vmem:[%s4096_s23 + $0xc4] sm:$0xf] %v282_v49  ;;  %v284_v50 = vld [vmem:[%s4089_s5 + $0x578] sm:$0xf]  ;;  %v286_v51 = vld [vmem:[%s4089_s5 + $0x594] sm:$0xf] }
  0x4c   : > { %v288_v52 = vld [vmem:[%s4089_s5 + $0x5b0] sm:$0xf]  ;;  %285 = vst [vmem:[%s4096_s23 + $0xc8] sm:$0xf] %v284_v50  ;;  %287 = vst [vmem:[%s4096_s23 + $0xcc] sm:$0xf] %v286_v51 }
  0x4d   : > { %289 = vst [vmem:[%s4096_s23 + $0xd0] sm:$0xf] %v288_v52  ;;  %v290_v53 = vld [vmem:[%s4089_s5 + $0x5cc] sm:$0xf]  ;;  %v292_v54 = vld [vmem:[%s4089_s5 + $0x5e8] sm:$0xf] }
  0x4e   : > { %v294_v55 = vld [vmem:[%s4089_s5 + $0x604] sm:$0xf]  ;;  %291 = vst [vmem:[%s4096_s23 + $0xd4] sm:$0xf] %v290_v53  ;;  %293 = vst [vmem:[%s4096_s23 + $0xd8] sm:$0xf] %v292_v54 }
  0x4f   : > { %295 = vst [vmem:[%s4096_s23 + $0xdc] sm:$0xf] %v294_v55  ;;  %v296_v56 = vld [vmem:[%s4089_s5 + $0x620] sm:$0xf]  ;;  %v298_v57 = vld [vmem:[%s4089_s5 + $0x63c] sm:$0xf] }
  0x50   : > { %v300_v58 = vld [vmem:[%s4089_s5 + $0x658] sm:$0xf]  ;;  %297 = vst [vmem:[%s4096_s23 + $0xe0] sm:$0xf] %v296_v56  ;;  %299 = vst [vmem:[%s4096_s23 + $0xe4] sm:$0xf] %v298_v57 }
  0x51   : > { %301 = vst [vmem:[%s4096_s23 + $0xe8] sm:$0xf] %v300_v58  ;;  %v302_v59 = vld [vmem:[%s4089_s5 + $0x674] sm:$0xf]  ;;  %v304_v60 = vld [vmem:[%s4089_s5 + $0x690] sm:$0xf] }
  0x52   : > { %v306_v61 = vld [vmem:[%s4089_s5 + $0x6ac] sm:$0xf]  ;;  %303 = vst [vmem:[%s4096_s23 + $0xec] sm:$0xf] %v302_v59  ;;  %305 = vst [vmem:[%s4096_s23 + $0xf0] sm:$0xf] %v304_v60 }
  0x53   : > { %307 = vst [vmem:[%s4096_s23 + $0xf4] sm:$0xf] %v306_v61  ;;  %v308_v62 = vld [vmem:[%s4089_s5 + $0x6c8] sm:$0xf]  ;;  %v310_v63 = vld [vmem:[%s4089_s5 + $0x6e4] sm:$0xf] }
  0x54   : > { %v312_v0 = vld [vmem:[%s4089_s5 + $0x700] sm:$0xf]  ;;  %309 = vst [vmem:[%s4096_s23 + $0xf8] sm:$0xf] %v308_v62  ;;  %311 = vst [vmem:[%s4096_s23 + $0xfc] sm:$0xf] %v310_v63 }
  0x55   : > { %313 = vst [vmem:[%s4096_s23 + $0x100] sm:$0xf] %v312_v0  ;;  %v314_v1 = vld [vmem:[%s4089_s5 + $0x71c] sm:$0xf]  ;;  %v316_v2 = vld [vmem:[%s4089_s5 + $0x738] sm:$0xf] }
  0x56   : > { %v318_v3 = vld [vmem:[%s4089_s5 + $0x754] sm:$0xf]  ;;  %315 = vst [vmem:[%s4096_s23 + $0x104] sm:$0xf] %v314_v1  ;;  %317 = vst [vmem:[%s4096_s23 + $0x108] sm:$0xf] %v316_v2 }
  0x57   : > { %319 = vst [vmem:[%s4096_s23 + $0x10c] sm:$0xf] %v318_v3  ;;  %v320_v4 = vld [vmem:[%s4089_s5 + $0x770] sm:$0xf]  ;;  %v322_v5 = vld [vmem:[%s4089_s5 + $0x78c] sm:$0xf] }
  0x58   : > { %v324_v6 = vld [vmem:[%s4089_s5 + $0x7a8] sm:$0xf]  ;;  %321 = vst [vmem:[%s4096_s23 + $0x110] sm:$0xf] %v320_v4  ;;  %323 = vst [vmem:[%s4096_s23 + $0x114] sm:$0xf] %v322_v5 }
  0x59   : > { %325 = vst [vmem:[%s4096_s23 + $0x118] sm:$0xf] %v324_v6  ;;  %v326_v7 = vld [vmem:[%s4089_s5 + $0x7c4] sm:$0xf]  ;;  %v328_v8 = vld [vmem:[%s4089_s5 + $0x7e0] sm:$0xf] }
  0x5a   : > { %v330_v9 = vld [vmem:[%s4089_s5 + $0x7fc] sm:$0xf]  ;;  %327 = vst [vmem:[%s4096_s23 + $0x11c] sm:$0xf] %v326_v7  ;;  %329 = vst [vmem:[%s4096_s23 + $0x120] sm:$0xf] %v328_v8 }
  0x5b   : > { %331 = vst [vmem:[%s4096_s23 + $0x124] sm:$0xf] %v330_v9 }
  0x5c PF: > { %502 = sbr.rel (!%p4064_p9) target bundleno = 110 (0x6e), region = 61  ;;  %s504_s28 = sand.u32 (%p4064_p9), 1, %s3931_s15  }
  0x5d   : > { %s3488_s7 = sshll.u32 (%p4064_p9), %s3955_s21, 1  ;;  %s3486_s11 = sshll.u32 (%p4064_p9), %s504_s28, 7 }
  0x5e   : > { %s3719_s26 = smul.u32 (%p4064_p9), 96, %s3951_s20  ;;  %s4957_s1 = sld [smem:[#allocation8_spill]] (%p4064_p9) }
  0x5f   : > { %s506_s6 = scalar_lea.vmem (%p4064_p9), [#allocation4], %s3486_s11 }
  0x60   : > { %s510_s27 = sadd.s32 (%p4064_p9), %s3719_s26, %s3488_s7 }
  0x61   : > { %s3490_s29 = sshll.u32 (%p4064_p9), %s510_s27, 2 }
  0x64   : > { %s4249_s5 = scalar_lea.vmem %s4957_s1, %s3490_s29 }
  0x65   : > { %v570_v10 = vld [vmem:[%s4249_s5] sm:$0xff]  ;;  %v572_v11 = vld [vmem:[%s4249_s5 + $0x18] sm:$0xff]  ;;  %v574_v12 = vld [vmem:[%s4249_s5 + $0x30] sm:$0xff] }
  0x66   : > { %571 = vst [vmem:[%s506_s6] sm:$0xff] %v570_v10  ;;  %573 = vst [vmem:[%s506_s6 + $0x8] sm:$0xff] %v572_v11  ;;  %v576_v13 = vld [vmem:[%s4249_s5 + $0x48] sm:$0xff]  ;;  %v578_v14 = vld [vmem:[%s4249_s5 + $0x60] sm:$0xff] }
  0x67   : > { %575 = vst [vmem:[%s506_s6 + $0x10] sm:$0xff] %v574_v12  ;;  %v580_v15 = vld [vmem:[%s4249_s5 + $0x78] sm:$0xff]  ;;  %577 = vst [vmem:[%s506_s6 + $0x18] sm:$0xff] %v576_v13  ;;  %v582_v16 = vld [vmem:[%s4249_s5 + $0x90] sm:$0xff] }
  0x68   : > { %579 = vst [vmem:[%s506_s6 + $0x20] sm:$0xff] %v578_v14  ;;  %581 = vst [vmem:[%s506_s6 + $0x28] sm:$0xff] %v580_v15  ;;  %v584_v17 = vld [vmem:[%s4249_s5 + $0xa8] sm:$0xff]  ;;  %v586_v18 = vld [vmem:[%s4249_s5 + $0xc0] sm:$0xff] }
  0x69   : > { %583 = vst [vmem:[%s506_s6 + $0x30] sm:$0xff] %v582_v16  ;;  %585 = vst [vmem:[%s506_s6 + $0x38] sm:$0xff] %v584_v17  ;;  %v588_v19 = vld [vmem:[%s4249_s5 + $0xd8] sm:$0xff]  ;;  %v590_v20 = vld [vmem:[%s4249_s5 + $0xf0] sm:$0xff] }
  0x6a   : > { %587 = vst [vmem:[%s506_s6 + $0x40] sm:$0xff] %v586_v18  ;;  %v592_v21 = vld [vmem:[%s4249_s5 + $0x108] sm:$0xff]  ;;  %589 = vst [vmem:[%s506_s6 + $0x48] sm:$0xff] %v588_v19  ;;  %v594_v22 = vld [vmem:[%s4249_s5 + $0x120] sm:$0xff] }
  0x6b   : > { %591 = vst [vmem:[%s506_s6 + $0x50] sm:$0xff] %v590_v20  ;;  %593 = vst [vmem:[%s506_s6 + $0x58] sm:$0xff] %v592_v21  ;;  %v596_v23 = vld [vmem:[%s4249_s5 + $0x138] sm:$0xff]  ;;  %v598_v24 = vld [vmem:[%s4249_s5 + $0x150] sm:$0xff] }
  0x6c   : > { %595 = vst [vmem:[%s506_s6 + $0x60] sm:$0xff] %v594_v22  ;;  %597 = vst [vmem:[%s506_s6 + $0x68] sm:$0xff] %v596_v23  ;;  %v600_v25 = vld [vmem:[%s4249_s5 + $0x168] sm:$0xff] }
  0x6d   : > { %599 = vst [vmem:[%s506_s6 + $0x70] sm:$0xff] %v598_v24  ;;  %601 = vst [vmem:[%s506_s6 + $0x78] sm:$0xff] %v600_v25 }
  0x6e PF: > { %p3491_p0 = scmp.ge.s32.totalorder %s3959_s22, 1  ;;  %p614_p1 = scmp.lt.s32.totalorder %s3959_s22, 22 }
  0x70   : > { %p615_p2 = pnand %p3491_p0, %p614_p1 }
  0x71   : > { %s621_s0 = sand.u32 (!%p615_p2), 1, %s3935_s16   ;;  %s628_s23 = sand.u32 (!%p615_p2), 1, %s3927_s14  }
  0x72   : > { %618 = sbr.rel (%p615_p2) target bundleno = 716 (0x2cc), region = 103  ;;  %s3492_s7 = sshll.u32 (!%p615_p2), %s628_s23, 7 }
  0x73   : > { %s3720_s28 = smul.u32 (!%p615_p2), 296, %s621_s0  ;;  %s655_s11 = sand.u32 (!%p615_p2), 1, %s3919_s12  }
  0x74   : > { %s3721_s26 = smul.u32 (!%p615_p2), 592, %s655_s11  ;;  %s3493_s27 = sshll.u32 (!%p615_p2), %s3947_s19, 1 }
  0x75   : > { %p662_p3 = scmp.lt.s32.totalorder (!%p615_p2), %s3493_s27, 5  ;;  %s4279_s6 = scalar_lea.vmem (!%p615_p2), [#allocation3], %s3720_s28 }
  0x76   : > { %s4281_s1 = scalar_lea.vmem (!%p615_p2), [#allocation4], %s3492_s7  ;;  %s4283_s25 = scalar_lea.vmem (!%p615_p2), [#allocation5], %s3721_s26 }
  0x77   : > { %p3494_p4 = scmp.ne.s32.totalorder (!%p615_p2), %s3943_s18, 0 }
  0x79   : > { %s4976_s27 = smov (!%p662_p3, %s3493_s27), 5  ;;  %672 = sbr.rel (%p3494_p4) target bundleno = 197 (0xc5), region = 115 }
  0x7a   : > { %s664_s5 = scalar_lea.vmem %s4947_s2, %s4976_s27  ;;  %v3961_v26 = vmov (!%p3494_p4), 0.0  }
  0x7b   : > { %673 = vst [vmem:[#allocation2] sm:$0xff] (!%p3494_p4), %v3961_v26  ;;  %674 = vst [vmem:[#allocation2 + $0x8] sm:$0xff] (!%p3494_p4), %v3961_v26 }
  0x7c   : > { %675 = vst [vmem:[#allocation2 + $0x10] sm:$0xff] (!%p3494_p4), %v3961_v26  ;;  %676 = vst [vmem:[#allocation2 + $0x18] sm:$0xff] (!%p3494_p4), %v3961_v26 }
  0x7d   : > { %677 = vst [vmem:[#allocation2 + $0x20] sm:$0xff] (!%p3494_p4), %v3961_v26  ;;  %678 = vst [vmem:[#allocation2 + $0x28] sm:$0xff] (!%p3494_p4), %v3961_v26 }
  0x7e   : > { %679 = vst [vmem:[#allocation2 + $0x30] sm:$0xff] (!%p3494_p4), %v3961_v26  ;;  %680 = vst [vmem:[#allocation2 + $0x38] sm:$0xff] (!%p3494_p4), %v3961_v26 }
  0x7f   : > { %681 = vst [vmem:[#allocation2 + $0x40] sm:$0xff] (!%p3494_p4), %v3961_v26  ;;  %682 = vst [vmem:[#allocation2 + $0x48] sm:$0xff] (!%p3494_p4), %v3961_v26 }
  0x80   : > { %683 = vst [vmem:[#allocation2 + $0x50] sm:$0xff] %v3961_v26  ;;  %684 = vst [vmem:[#allocation2 + $0x58] sm:$0xff] %v3961_v26 }
  0x81   : > { %685 = vst [vmem:[#allocation2 + $0x60] sm:$0xff] %v3961_v26  ;;  %686 = vst [vmem:[#allocation2 + $0x68] sm:$0xff] %v3961_v26 }
  0x82   : > { %687 = vst [vmem:[#allocation2 + $0x70] sm:$0xff] %v3961_v26  ;;  %688 = vst [vmem:[#allocation2 + $0x78] sm:$0xff] %v3961_v26 }
  0x83   : > { %689 = vst [vmem:[#allocation2 + $0x80] sm:$0xff] %v3961_v26  ;;  %690 = vst [vmem:[#allocation2 + $0x88] sm:$0xff] %v3961_v26 }
  0x84   : > { %691 = vst [vmem:[#allocation2 + $0x90] sm:$0xff] %v3961_v26  ;;  %692 = vst [vmem:[#allocation2 + $0x98] sm:$0xff] %v3961_v26 }
  0x85   : > { %693 = vst [vmem:[#allocation2 + $0xa0] sm:$0xff] %v3961_v26  ;;  %694 = vst [vmem:[#allocation2 + $0xa8] sm:$0xff] %v3961_v26 }
  0x86   : > { %695 = vst [vmem:[#allocation2 + $0xb0] sm:$0xff] %v3961_v26  ;;  %696 = vst [vmem:[#allocation2 + $0xb8] sm:$0xff] %v3961_v26 }
  0x87   : > { %697 = vst [vmem:[#allocation2 + $0xc0] sm:$0xff] %v3961_v26  ;;  %698 = vst [vmem:[#allocation2 + $0xc8] sm:$0xff] %v3961_v26 }
  0x88   : > { %699 = vst [vmem:[#allocation2 + $0xd0] sm:$0xff] %v3961_v26  ;;  %700 = vst [vmem:[#allocation2 + $0xd8] sm:$0xff] %v3961_v26 }
  0x89   : > { %701 = vst [vmem:[#allocation2 + $0xe0] sm:$0xff] %v3961_v26  ;;  %702 = vst [vmem:[#allocation2 + $0xe8] sm:$0xff] %v3961_v26 }
  0x8a   : > { %703 = vst [vmem:[#allocation2 + $0xf0] sm:$0xff] %v3961_v26  ;;  %704 = vst [vmem:[#allocation2 + $0xf8] sm:$0xff] %v3961_v26 }
  0x8b   : > { %705 = vst [vmem:[#allocation2 + $0x100] sm:$0xff] %v3961_v26  ;;  %706 = vst [vmem:[#allocation2 + $0x108] sm:$0xff] %v3961_v26 }
  0x8c   : > { %707 = vst [vmem:[#allocation2 + $0x110] sm:$0xff] %v3961_v26  ;;  %708 = vst [vmem:[#allocation2 + $0x118] sm:$0xff] %v3961_v26 }
  0x8d   : > { %709 = vst [vmem:[#allocation2 + $0x120] sm:$0xff] %v3961_v26  ;;  %710 = vst [vmem:[#allocation2 + $0x128] sm:$0xff] %v3961_v26 }
  0x8e   : > { %711 = vst [vmem:[#allocation2 + $0x130] sm:$0xff] %v3961_v26  ;;  %712 = vst [vmem:[#allocation2 + $0x138] sm:$0xff] %v3961_v26 }
  0x8f   : > { %713 = vst [vmem:[#allocation2 + $0x140] sm:$0xff] %v3961_v26  ;;  %714 = vst [vmem:[#allocation2 + $0x148] sm:$0xff] %v3961_v26 }
  0x90   : > { %715 = vst [vmem:[#allocation2 + $0x150] sm:$0xff] %v3961_v26  ;;  %716 = vst [vmem:[#allocation2 + $0x158] sm:$0xff] %v3961_v26 }
  0x91   : > { %717 = vst [vmem:[#allocation2 + $0x160] sm:$0xff] %v3961_v26  ;;  %718 = vst [vmem:[#allocation2 + $0x168] sm:$0xff] %v3961_v26 }
  0x92   : > { %719 = vst [vmem:[#allocation2 + $0x170] sm:$0xff] %v3961_v26  ;;  %720 = vst [vmem:[#allocation2 + $0x178] sm:$0xff] %v3961_v26 }
  0x93   : > { %721 = vst [vmem:[#allocation2 + $0x180] sm:$0xff] %v3961_v26  ;;  %722 = vst [vmem:[#allocation2 + $0x188] sm:$0xff] %v3961_v26 }
  0x94   : > { %723 = vst [vmem:[#allocation2 + $0x190] sm:$0xff] %v3961_v26  ;;  %724 = vst [vmem:[#allocation2 + $0x198] sm:$0xff] %v3961_v26 }
  0x95   : > { %725 = vst [vmem:[#allocation2 + $0x1a0] sm:$0xff] %v3961_v26  ;;  %726 = vst [vmem:[#allocation2 + $0x1a8] sm:$0xff] %v3961_v26 }
  0x96   : > { %727 = vst [vmem:[#allocation2 + $0x1b0] sm:$0xff] %v3961_v26  ;;  %728 = vst [vmem:[#allocation2 + $0x1b8] sm:$0xff] %v3961_v26 }
  0x97   : > { %729 = vst [vmem:[#allocation2 + $0x1c0] sm:$0xff] %v3961_v26  ;;  %730 = vst [vmem:[#allocation2 + $0x1c8] sm:$0xff] %v3961_v26 }
  0x98   : > { %731 = vst [vmem:[#allocation2 + $0x1d0] sm:$0xff] %v3961_v26  ;;  %732 = vst [vmem:[#allocation2 + $0x1d8] sm:$0xff] %v3961_v26 }
  0x99   : > { %733 = vst [vmem:[#allocation2 + $0x1e0] sm:$0xff] %v3961_v26  ;;  %734 = vst [vmem:[#allocation2 + $0x1e8] sm:$0xff] %v3961_v26 }
  0x9a   : > { %735 = vst [vmem:[#allocation2 + $0x1f0] sm:$0xff] %v3961_v26  ;;  %736 = vst [vmem:[#allocation2 + $0x1f8] sm:$0xff] %v3961_v26 }
  0x9b   : > { %737 = vst [vmem:[#allocation2 + $0x200] sm:$0xff] %v3961_v26  ;;  %738 = vst [vmem:[#allocation2 + $0x208] sm:$0xff] %v3961_v26 }
  0x9c   : > { %739 = vst [vmem:[#allocation2 + $0x210] sm:$0xff] %v3961_v26  ;;  %740 = vst [vmem:[#allocation2 + $0x218] sm:$0xff] %v3961_v26 }
  0x9d   : > { %741 = vst [vmem:[#allocation2 + $0x220] sm:$0xff] %v3961_v26  ;;  %742 = vst [vmem:[#allocation2 + $0x228] sm:$0xff] %v3961_v26 }
  0x9e   : > { %743 = vst [vmem:[#allocation2 + $0x230] sm:$0xff] %v3961_v26  ;;  %744 = vst [vmem:[#allocation2 + $0x238] sm:$0xff] %v3961_v26 }
  0x9f   : > { %745 = vst [vmem:[#allocation2 + $0x240] sm:$0xff] %v3961_v26  ;;  %746 = vst [vmem:[#allocation2 + $0x248] sm:$0xff] %v3961_v26 }
  0xa0   : > { %747 = vst [vmem:[#allocation2 + $0x250] sm:$0xff] %v3961_v26  ;;  %748 = vst [vmem:[#allocation2 + $0x258] sm:$0xff] %v3961_v26 }
  0xa1   : > { %749 = vst [vmem:[#allocation2 + $0x260] sm:$0xff] %v3961_v26  ;;  %750 = vst [vmem:[#allocation2 + $0x268] sm:$0xff] %v3961_v26 }
  0xa2   : > { %751 = vst [vmem:[#allocation2 + $0x270] sm:$0xff] %v3961_v26  ;;  %752 = vst [vmem:[#allocation2 + $0x278] sm:$0xff] %v3961_v26 }
  0xa3   : > { %753 = vst [vmem:[#allocation2 + $0x280] sm:$0xff] %v3961_v26  ;;  %754 = vst [vmem:[#allocation2 + $0x288] sm:$0xff] %v3961_v26 }
  0xa4   : > { %755 = vst [vmem:[#allocation2 + $0x290] sm:$0xff] %v3961_v26  ;;  %756 = vst [vmem:[#allocation2 + $0x298] sm:$0xff] %v3961_v26 }
  0xa5   : > { %757 = vst [vmem:[#allocation2 + $0x2a0] sm:$0xff] %v3961_v26  ;;  %758 = vst [vmem:[#allocation2 + $0x2a8] sm:$0xff] %v3961_v26 }
  0xa6   : > { %759 = vst [vmem:[#allocation2 + $0x2b0] sm:$0xff] %v3961_v26  ;;  %760 = vst [vmem:[#allocation2 + $0x2b8] sm:$0xff] %v3961_v26 }
  0xa7   : > { %761 = vst [vmem:[#allocation2 + $0x2c0] sm:$0xff] %v3961_v26  ;;  %762 = vst [vmem:[#allocation2 + $0x2c8] sm:$0xff] %v3961_v26 }
  0xa8   : > { %763 = vst [vmem:[#allocation2 + $0x2d0] sm:$0xff] %v3961_v26  ;;  %764 = vst [vmem:[#allocation2 + $0x2d8] sm:$0xff] %v3961_v26 }
  0xa9   : > { %765 = vst [vmem:[#allocation2 + $0x2e0] sm:$0xff] %v3961_v26  ;;  %766 = vst [vmem:[#allocation2 + $0x2e8] sm:$0xff] %v3961_v26 }
  0xaa   : > { %767 = vst [vmem:[#allocation2 + $0x2f0] sm:$0xff] %v3961_v26  ;;  %768 = vst [vmem:[#allocation2 + $0x2f8] sm:$0xff] %v3961_v26 }
  0xab   : > { %769 = vst [vmem:[#allocation2 + $0x300] sm:$0xff] %v3961_v26  ;;  %770 = vst [vmem:[#allocation2 + $0x308] sm:$0xff] %v3961_v26 }
  0xac   : > { %771 = vst [vmem:[#allocation2 + $0x310] sm:$0xff] %v3961_v26  ;;  %772 = vst [vmem:[#allocation2 + $0x318] sm:$0xff] %v3961_v26 }
  0xad   : > { %773 = vst [vmem:[#allocation2 + $0x320] sm:$0xff] %v3961_v26  ;;  %774 = vst [vmem:[#allocation2 + $0x328] sm:$0xff] %v3961_v26 }
  0xae   : > { %775 = vst [vmem:[#allocation2 + $0x330] sm:$0xff] %v3961_v26  ;;  %776 = vst [vmem:[#allocation2 + $0x338] sm:$0xff] %v3961_v26 }
  0xaf   : > { %777 = vst [vmem:[#allocation2 + $0x340] sm:$0xff] %v3961_v26  ;;  %778 = vst [vmem:[#allocation2 + $0x348] sm:$0xff] %v3961_v26 }
  0xb0   : > { %779 = vst [vmem:[#allocation2 + $0x350] sm:$0xff] %v3961_v26  ;;  %780 = vst [vmem:[#allocation2 + $0x358] sm:$0xff] %v3961_v26 }
  0xb1   : > { %781 = vst [vmem:[#allocation2 + $0x360] sm:$0xff] %v3961_v26  ;;  %782 = vst [vmem:[#allocation2 + $0x368] sm:$0xff] %v3961_v26 }
  0xb2   : > { %783 = vst [vmem:[#allocation2 + $0x370] sm:$0xff] %v3961_v26  ;;  %784 = vst [vmem:[#allocation2 + $0x378] sm:$0xff] %v3961_v26 }
  0xb3   : > { %785 = vst [vmem:[#allocation2 + $0x380] sm:$0xff] %v3961_v26  ;;  %786 = vst [vmem:[#allocation2 + $0x388] sm:$0xff] %v3961_v26 }
  0xb4   : > { %787 = vst [vmem:[#allocation2 + $0x390] sm:$0xff] %v3961_v26  ;;  %788 = vst [vmem:[#allocation2 + $0x398] sm:$0xff] %v3961_v26 }
  0xb5   : > { %789 = vst [vmem:[#allocation2 + $0x3a0] sm:$0xff] %v3961_v26  ;;  %790 = vst [vmem:[#allocation2 + $0x3a8] sm:$0xff] %v3961_v26 }
  0xb6   : > { %791 = vst [vmem:[#allocation2 + $0x3b0] sm:$0xff] %v3961_v26  ;;  %792 = vst [vmem:[#allocation2 + $0x3b8] sm:$0xff] %v3961_v26 }
  0xb7   : > { %793 = vst [vmem:[#allocation2 + $0x3c0] sm:$0xff] %v3961_v26  ;;  %794 = vst [vmem:[#allocation2 + $0x3c8] sm:$0xff] %v3961_v26 }
  0xb8   : > { %795 = vst [vmem:[#allocation2 + $0x3d0] sm:$0xff] %v3961_v26  ;;  %796 = vst [vmem:[#allocation2 + $0x3d8] sm:$0xff] %v3961_v26 }
  0xb9   : > { %797 = vst [vmem:[#allocation2 + $0x3e0] sm:$0xff] %v3961_v26  ;;  %798 = vst [vmem:[#allocation2 + $0x3e8] sm:$0xff] %v3961_v26 }
  0xba   : > { %799 = vst [vmem:[#allocation2 + $0x3f0] sm:$0xff] %v3961_v26  ;;  %800 = vst [vmem:[#allocation2 + $0x3f8] sm:$0xff] %v3961_v26 }
  0xbb   : > { %801 = vst [vmem:[#allocation2 + $0x400] sm:$0xff] %v3961_v26  ;;  %802 = vst [vmem:[#allocation2 + $0x408] sm:$0xff] %v3961_v26 }
  0xbc   : > { %803 = vst [vmem:[#allocation2 + $0x410] sm:$0xff] %v3961_v26  ;;  %804 = vst [vmem:[#allocation2 + $0x418] sm:$0xff] %v3961_v26 }
  0xbd   : > { %805 = vst [vmem:[#allocation2 + $0x420] sm:$0xff] %v3961_v26  ;;  %806 = vst [vmem:[#allocation2 + $0x428] sm:$0xff] %v3961_v26 }
  0xbe   : > { %807 = vst [vmem:[#allocation2 + $0x430] sm:$0xff] %v3961_v26  ;;  %808 = vst [vmem:[#allocation2 + $0x438] sm:$0xff] %v3961_v26 }
  0xbf   : > { %809 = vst [vmem:[#allocation2 + $0x440] sm:$0xff] %v3961_v26  ;;  %810 = vst [vmem:[#allocation2 + $0x448] sm:$0xff] %v3961_v26 }
  0xc0   : > { %811 = vst [vmem:[#allocation2 + $0x450] sm:$0xff] %v3961_v26  ;;  %812 = vst [vmem:[#allocation2 + $0x458] sm:$0xff] %v3961_v26 }
  0xc1   : > { %813 = vst [vmem:[#allocation2 + $0x460] sm:$0xff] %v3961_v26  ;;  %814 = vst [vmem:[#allocation2 + $0x468] sm:$0xff] %v3961_v26 }
  0xc2   : > { %815 = vst [vmem:[#allocation2 + $0x470] sm:$0xff] %v3961_v26  ;;  %816 = vst [vmem:[#allocation2 + $0x478] sm:$0xff] %v3961_v26 }
  0xc3   : > { %817 = vst [vmem:[#allocation2 + $0x480] sm:$0xff] %v3961_v26  ;;  %818 = vst [vmem:[#allocation2 + $0x488] sm:$0xff] %v3961_v26 }
  0xc4   : > { %819 = vst [vmem:[#allocation2 + $0x490] sm:$0xff] %v3961_v26  ;;  %820 = vst [vmem:[#allocation2 + $0x498] sm:$0xff] %v3961_v26 }
  0xc5 PF: > { %v3812_v27 = vld [vmem:[%s4281_s1 + $0x4] ss:$8 sps:$4 sm:$0xff]   ;;  %v3814_v28 = vld [vmem:[%s4281_s1] ss:$8 sps:$4 sm:$0xff]   ;;  %v3962_v29 = vmov 0   ;;  %v3836_v44 = vld [vmem:[%s4279_s6] sm:$0xff]  }
  0xc6   : > { %1393 = vmatprep.mubr.bf16.mxu0 %v3962_v29  ;;  %1583 = vmatprep.mubr.bf16.mxu1 %v3962_v29  ;;  %v3815_v30 = vld [vmem:[%s4281_s1 + $0x14] ss:$8 sps:$4 sm:$0xff]   ;;  %v3817_v31 = vld [vmem:[%s4281_s1 + $0x10] ss:$8 sps:$4 sm:$0xff]   ;;  %v3818_v32 = vld [vmem:[%s4281_s1 + $0x24] ss:$8 sps:$4 sm:$0xff]  }
  0xc7   : > { %1361 = vmatprep.subr.bf16.mxu0 %v3812_v27  ;;  %3702 = vmatprep.subr.bf16.mxu1 %v3812_v27  ;;  %v3820_v33 = vld [vmem:[%s4281_s1 + $0x20] ss:$8 sps:$4 sm:$0xff]   ;;  %v3821_v34 = vld [vmem:[%s4281_s1 + $0x34] ss:$8 sps:$4 sm:$0xff]   ;;  %v3823_v35 = vld [vmem:[%s4281_s1 + $0x30] ss:$8 sps:$4 sm:$0xff]  }
  0xc8   : > { %1362 = vmatpush1.bf16.msra.mxu0 %v3814_v28  ;;  %3710 = vmatpush1.bf16.msra.mxu1 %v3814_v28  ;;  %v3824_v36 = vld [vmem:[%s4281_s1 + $0x44] ss:$8 sps:$4 sm:$0xff]   ;;  %v3826_v37 = vld [vmem:[%s4281_s1 + $0x40] ss:$8 sps:$4 sm:$0xff]   ;;  %v3827_v38 = vld [vmem:[%s4281_s1 + $0x54] ss:$8 sps:$4 sm:$0xff]  }
  0xc9   : > { %1363 = vmatprep.subr.bf16.mxu0 %v3815_v30  ;;  %3703 = vmatprep.subr.bf16.mxu1 %v3815_v30  ;;  %v3829_v39 = vld [vmem:[%s4281_s1 + $0x50] ss:$8 sps:$4 sm:$0xff]   ;;  %v3830_v40 = vld [vmem:[%s4281_s1 + $0x64] ss:$8 sps:$4 sm:$0xff]   ;;  %v3832_v41 = vld [vmem:[%s4281_s1 + $0x60] ss:$8 sps:$4 sm:$0xff]  }
  0xca   : > { %v3833_v42 = vld [vmem:[%s4281_s1 + $0x74] ss:$8 sps:$4 sm:$0xff]   ;;  %v3835_v43 = vld [vmem:[%s4281_s1 + $0x70] ss:$8 sps:$4 sm:$0xff]   ;;  %v3840_v48 = vld [vmem:[%s4279_s6 + $0x10] sm:$0xff]   ;;  %p3548_p5 = scmp.ne.s32.totalorder %s3943_s18, 6 }
  0xcb   : > { %v3837_v45 = vld [vmem:[%s4279_s6 + $0x98] sm:$0xff]   ;;  %v3838_v46 = vld [vmem:[%s4279_s6 + $0x8] sm:$0xff]   ;;  %v3839_v47 = vld [vmem:[%s4279_s6 + $0xa0] sm:$0xff]  }
  0xcc   : > { %1364 = vmatpush1.bf16.msra.mxu0 %v3817_v31  ;;  %3711 = vmatpush1.bf16.msra.mxu1 %v3817_v31  ;;  %v3841_v49 = vld [vmem:[%s4279_s6 + $0xa8] sm:$0xff]   ;;  %v3842_v50 = vld [vmem:[%s4279_s6 + $0x18] sm:$0xff]   ;;  %v3843_v51 = vld [vmem:[%s4279_s6 + $0xb0] sm:$0xff]  }
  0xcd   : > { %1365 = vmatprep.subr.bf16.mxu0 %v3818_v32  ;;  %3704 = vmatprep.subr.bf16.mxu1 %v3818_v32  ;;  %v3844_v52 = vld [vmem:[%s4279_s6 + $0x20] sm:$0xff]   ;;  %v3845_v53 = vld [vmem:[%s4279_s6 + $0xb8] sm:$0xff]   ;;  %v3846_v54 = vld [vmem:[%s4279_s6 + $0x28] sm:$0xff]  }
  0xce   : > { %v3847_v55 = vld [vmem:[%s4279_s6 + $0xc0] sm:$0xff]   ;;  %v3848_v56 = vld [vmem:[%s4279_s6 + $0x30] sm:$0xff]   ;;  %v3849_v57 = vld [vmem:[%s4279_s6 + $0xc8] sm:$0xff]  }
  0xcf   : > { %v3850_v58 = vld [vmem:[%s4279_s6 + $0x38] sm:$0xff]   ;;  %v3851_v59 = vld [vmem:[%s4279_s6 + $0xd0] sm:$0xff]   ;;  %v3852_v60 = vld [vmem:[%s4279_s6 + $0x40] sm:$0xff]  }
  0xd0   : > { %1366 = vmatpush1.bf16.msra.mxu0 %v3820_v33  ;;  %3712 = vmatpush1.bf16.msra.mxu1 %v3820_v33  ;;  %v3853_v61 = vld [vmem:[%s4279_s6 + $0xd8] sm:$0xff]   ;;  %v3854_v62 = vld [vmem:[%s4279_s6 + $0x48] sm:$0xff]   ;;  %v3855_v63 = vld [vmem:[%s4279_s6 + $0xe0] sm:$0xff]  }
  0xd1   : > { %1367 = vmatprep.subr.bf16.mxu0 %v3821_v34  ;;  %3705 = vmatprep.subr.bf16.mxu1 %v3821_v34  ;;  %v3856_v0 = vld [vmem:[%s4279_s6 + $0x50] sm:$0xff]   ;;  %v3857_v1 = vld [vmem:[%s4279_s6 + $0xe8] sm:$0xff]   ;;  %v3858_v2 = vld [vmem:[%s4279_s6 + $0x58] sm:$0xff]  }
  0xd2   : > { %v3859_v3 = vld [vmem:[%s4279_s6 + $0xf0] sm:$0xff]   ;;  %v3860_v4 = vld [vmem:[%s4279_s6 + $0x60] sm:$0xff]   ;;  %v3861_v5 = vld [vmem:[%s4279_s6 + $0xf8] sm:$0xff]  }
  0xd3   : > { %v3862_v6 = vld [vmem:[%s4279_s6 + $0x68] sm:$0xff]   ;;  %v3863_v7 = vld [vmem:[%s4279_s6 + $0x100] sm:$0xff]   ;;  %v3864_v8 = vld [vmem:[%s4279_s6 + $0x70] sm:$0xff]  }
  0xd4   : > { %1368 = vmatpush1.bf16.msra.mxu0 %v3823_v35  ;;  %3713 = vmatpush1.bf16.msra.mxu1 %v3823_v35  ;;  %v3865_v9 = vld [vmem:[%s4279_s6 + $0x108] sm:$0xff]   ;;  %v3866_v10 = vld [vmem:[%s4279_s6 + $0x78] sm:$0xff]   ;;  %v3867_v11 = vld [vmem:[%s4279_s6 + $0x110] sm:$0xff]  }
  0xd5   : > { %1369 = vmatprep.subr.bf16.mxu0 %v3824_v36  ;;  %3706 = vmatprep.subr.bf16.mxu1 %v3824_v36  ;;  %v3868_v12 = vld [vmem:[%s4279_s6 + $0x80] sm:$0xff]   ;;  %v3869_v13 = vld [vmem:[%s4279_s6 + $0x118] sm:$0xff]   ;;  %v3870_v14 = vld [vmem:[%s4279_s6 + $0x88] sm:$0xff]  }
  0xd6   : > { %v3871_v15 = vld [vmem:[%s4279_s6 + $0x120] sm:$0xff]   ;;  %v3872_v16 = vld [vmem:[%s4279_s6 + $0x90] sm:$0xff]  }
  0xd7   : > { %v821_v17 = vld [vmem:[#allocation2] sm:$0xff]  ;;  %v822_v19 = vld [vmem:[#allocation2 + $0x8] sm:$0xff]  ;;  %v823_v22 = vld [vmem:[#allocation2 + $0x10] sm:$0xff] }
  0xd8   : > { %1370 = vmatpush1.bf16.msra.mxu0 %v3826_v37  ;;  %3714 = vmatpush1.bf16.msra.mxu1 %v3826_v37  ;;  %v897_v18 = vld [vmem:[#allocation2 + $0x260] sm:$0xff]  ;;  %v898_v20 = vld [vmem:[#allocation2 + $0x268] sm:$0xff]  ;;  %v899_v24 = vld [vmem:[#allocation2 + $0x270] sm:$0xff] }
  0xd9   : > { %1371 = vmatprep.subr.bf16.mxu0 %v3827_v38  ;;  %3707 = vmatprep.subr.bf16.mxu1 %v3827_v38  ;;  %v824_v27 = vld [vmem:[#allocation2 + $0x18] sm:$0xff] }
  0xda   : > { %v900_v31 = vld [vmem:[#allocation2 + $0x278] sm:$0xff] }
  0xdc   : > { %1372 = vmatpush1.bf16.msra.mxu0 %v3829_v39  ;;  %3715 = vmatpush1.bf16.msra.mxu1 %v3829_v39 }
  0xdd   : > { %1373 = vmatprep.subr.bf16.mxu0 %v3830_v40  ;;  %3708 = vmatprep.subr.bf16.mxu1 %v3830_v40 }
  0xe0   : > { %1374 = vmatpush1.bf16.msra.mxu0 %v3832_v41  ;;  %3716 = vmatpush1.bf16.msra.mxu1 %v3832_v41  ;;  %v825_v41 = vld [vmem:[#allocation2 + $0x20] sm:$0xff] }
  0xe1   : > { %1375 = vmatprep.subr.bf16.mxu0 %v3833_v42  ;;  %3709 = vmatprep.subr.bf16.mxu1 %v3833_v42  ;;  %v901_v42 = vld [vmem:[#allocation2 + $0x280] sm:$0xff] }
  0xe4   : > { %1376 = vmatpush1.bf16.msra.mxu0 %v3835_v43  ;;  %3717 = vmatpush1.bf16.msra.mxu1 %v3835_v43  ;;  %v826_v43 = vld [vmem:[#allocation2 + $0x28] sm:$0xff] }
  0xe7   : > { %1394 = vmatmul.mubr.bf16.vlgmr.msra.gmra.mrb[0].mxu0 %v3836_v44  ;;  %1584 = vmatmul.mubr.bf16.vlgmr.msra.gmra.mrb[0].mxu1 %v3837_v45  ;;  %v902_v44 = vld [vmem:[#allocation2 + $0x288] sm:$0xff] }
  0xe8   : > { %1403 = vmatprep.mubr.bf16.mxu0 %v3962_v29  ;;  %1593 = vmatprep.mubr.bf16.mxu1 %v3962_v29 }
  0xef   : > { %1404 = vmatmul.mubr.bf16.gmra.mrb[4].mxu0 %v3838_v46  ;;  %1594 = vmatmul.mubr.bf16.gmra.mrb[4].mxu1 %v3839_v47  ;;  %v827_v46 = vld [vmem:[#allocation2 + $0x30] sm:$0xff] }
  0xf0   : > { %1413 = vmatprep.mubr.bf16.mxu0 %v3962_v29  ;;  %1603 = vmatprep.mubr.bf16.mxu1 %v3962_v29 }
  0xf7   : > { %1414 = vmatmul.mubr.bf16.gmra.mrb[8].mxu0 %v3840_v48  ;;  %1604 = vmatmul.mubr.bf16.gmra.mrb[8].mxu1 %v3841_v49  ;;  %v903_v48 = vld [vmem:[#allocation2 + $0x290] sm:$0xff] }
  0xf8   : > { %1423 = vmatprep.mubr.bf16.mxu0 %v3962_v29  ;;  %1613 = vmatprep.mubr.bf16.mxu1 %v3962_v29 }
  0xff   : > { %1424 = vmatmul.mubr.bf16.gmra.mrb[12].mxu0 %v3842_v50  ;;  %1614 = vmatmul.mubr.bf16.gmra.mrb[12].mxu1 %v3843_v51  ;;  %v828_v51 = vld [vmem:[#allocation2 + $0x38] sm:$0xff] }
 0x100   : > { %1433 = vmatprep.mubr.bf16.mxu0 %v3962_v29  ;;  %1623 = vmatprep.mubr.bf16.mxu1 %v3962_v29 }
 0x107   : > { %1434 = vmatmul.mubr.bf16.gmra.mrb[16].mxu0 %v3844_v52  ;;  %1624 = vmatmul.mubr.bf16.gmra.mrb[16].mxu1 %v3845_v53 }
 0x108   : > { %1443 = vmatprep.mubr.bf16.mxu0 %v3962_v29  ;;  %1633 = vmatprep.mubr.bf16.mxu1 %v3962_v29 }
 0x10f   : > { %1444 = vmatmul.mubr.bf16.gmra.mrb[20].mxu0 %v3846_v54  ;;  %1634 = vmatmul.mubr.bf16.gmra.mrb[20].mxu1 %v3847_v55  ;;  %v904_v54 = vld [vmem:[#allocation2 + $0x298] sm:$0xff] }
 0x110   : > { %1453 = vmatprep.mubr.bf16.mxu0 %v3962_v29  ;;  %1643 = vmatprep.mubr.bf16.mxu1 %v3962_v29 }
 0x117   : > { %1454 = vmatmul.mubr.bf16.gmra.mrb[24].mxu0 %v3848_v56  ;;  %1644 = vmatmul.mubr.bf16.gmra.mrb[24].mxu1 %v3849_v57 }
 0x118   : > { %1463 = vmatprep.mubr.bf16.mxu0 %v3962_v29  ;;  %1653 = vmatprep.mubr.bf16.mxu1 %v3962_v29 }
 0x11f   : > { %1464 = vmatmul.mubr.bf16.gmra.mrb[28].mxu0 %v3850_v58  ;;  %1654 = vmatmul.mubr.bf16.gmra.mrb[28].mxu1 %v3851_v59 }
 0x120   : > { %1473 = vmatprep.mubr.bf16.mxu0 %v3962_v29  ;;  %1663 = vmatprep.mubr.bf16.mxu1 %v3962_v29 }
 0x127   : > { %1474 = vmatmul.mubr.bf16.gmra.mrb[32].mxu0 %v3852_v60  ;;  %1664 = vmatmul.mubr.bf16.gmra.mrb[32].mxu1 %v3853_v61 }
 0x128   : > { %1483 = vmatprep.mubr.bf16.mxu0 %v3962_v29  ;;  %1673 = vmatprep.mubr.bf16.mxu1 %v3962_v29 }
 0x12f   : > { %1484 = vmatmul.mubr.bf16.gmra.mrb[36].mxu0 %v3854_v62  ;;  %1674 = vmatmul.mubr.bf16.gmra.mrb[36].mxu1 %v3855_v63 }
 0x130   : > { %1493 = vmatprep.mubr.bf16.mxu0 %v3962_v29  ;;  %1683 = vmatprep.mubr.bf16.mxu1 %v3962_v29 }
 0x137   : > { %1494 = vmatmul.mubr.bf16.gmra.mrb[40].mxu0 %v3856_v0  ;;  %1684 = vmatmul.mubr.bf16.gmra.mrb[40].mxu1 %v3857_v1  ;;  %v829_v1 = vld [vmem:[#allocation2 + $0x40] sm:$0xff] }
 0x138   : > { %1503 = vmatprep.mubr.bf16.mxu0 %v3962_v29  ;;  %1693 = vmatprep.mubr.bf16.mxu1 %v3962_v29 }
 0x13f   : > { %1504 = vmatmul.mubr.bf16.gmra.mrb[44].mxu0 %v3858_v2  ;;  %1694 = vmatmul.mubr.bf16.gmra.mrb[44].mxu1 %v3859_v3  ;;  %v905_v2 = vld [vmem:[#allocation2 + $0x2a0] sm:$0xff]  ;;  %v830_v3 = vld [vmem:[#allocation2 + $0x48] sm:$0xff] }
 0x140   : > { %1513 = vmatprep.mubr.bf16.mxu0 %v3962_v29  ;;  %1703 = vmatprep.mubr.bf16.mxu1 %v3962_v29 }
 0x147   : > { %1514 = vmatmul.mubr.bf16.gmra.mrb[48].mxu0 %v3860_v4  ;;  %1704 = vmatmul.mubr.bf16.gmra.mrb[48].mxu1 %v3861_v5  ;;  %v906_v4 = vld [vmem:[#allocation2 + $0x2a8] sm:$0xff] }
 0x148   : > { %1523 = vmatprep.mubr.bf16.mxu0 %v3962_v29  ;;  %1713 = vmatprep.mubr.bf16.mxu1 %v3962_v29 }
 0x14f   : > { %1524 = vmatmul.mubr.bf16.gmra.mrb[52].mxu0 %v3862_v6  ;;  %1714 = vmatmul.mubr.bf16.gmra.mrb[52].mxu1 %v3863_v7  ;;  %v831_v6 = vld [vmem:[#allocation2 + $0x50] sm:$0xff] }
 0x150   : > { %1533 = vmatprep.mubr.bf16.mxu0 %v3962_v29  ;;  %1723 = vmatprep.mubr.bf16.mxu1 %v3962_v29 }
 0x157   : > { %1534 = vmatmul.mubr.bf16.gmra.mrb[56].mxu0 %v3864_v8  ;;  %1724 = vmatmul.mubr.bf16.gmra.mrb[56].mxu1 %v3865_v9  ;;  %v907_v8 = vld [vmem:[#allocation2 + $0x2b0] sm:$0xff] }
 0x158   : > { %1543 = vmatprep.mubr.bf16.mxu0 %v3962_v29  ;;  %1733 = vmatprep.mubr.bf16.mxu1 %v3962_v29 }
 0x15f   : > { %1544 = vmatmul.mubr.bf16.gmra.mrb[60].mxu0 %v3866_v10  ;;  %1734 = vmatmul.mubr.bf16.gmra.mrb[60].mxu1 %v3867_v11  ;;  %v832_v11 = vld [vmem:[#allocation2 + $0x58] sm:$0xff] }
 0x160   : > { %1553 = vmatprep.mubr.bf16.mxu0 %v3962_v29  ;;  %1743 = vmatprep.mubr.bf16.mxu1 %v3962_v29 }
 0x167   : > { %1554 = vmatmul.mubr.bf16.gmra.mrb[64].mxu0 %v3868_v12  ;;  %1744 = vmatmul.mubr.bf16.gmra.mrb[64].mxu1 %v3869_v13 }
 0x168   : > { %1563 = vmatprep.mubr.bf16.mxu0 %v3962_v29  ;;  %1753 = vmatprep.mubr.bf16.mxu1 %v3962_v29 }
 0x16f   : > { %1564 = vmatmul.mubr.bf16.gmra.mrb[68].mxu0 %v3870_v14  ;;  %1754 = vmatmul.mubr.bf16.gmra.mrb[68].mxu1 %v3871_v15  ;;  %v908_v14 = vld [vmem:[#allocation2 + $0x2b8] sm:$0xff] }
 0x170   : > { %1573 = vmatprep.mubr.bf16.mxu0 %v3962_v29 }
 0x177   : > { %1574 = vmatmul.mubr.bf16.gmra.mrb[72].mxu0 %v3872_v16 }
 0x1ba   : > { %v1395_v21 = vpop.f32.mrb[0].mxu0  ;;  %v1585_v23 = vpop.f32.mrb[0].mxu1 }
 0x1bb   : > { %v1764_v25 = vadd.f32 %v1395_v21, %v821_v17  ;;  %v1397_v26 = vpop.f32.mrb[1].mxu0  ;;  %v1840_v28 = vadd.f32 %v1585_v23, %v897_v18  ;;  %v1587_v30 = vpop.f32.mrb[1].mxu1 }
 0x1bc   : > { %v1765_v32 = vadd.f32 %v1397_v26, %v822_v19  ;;  %v1399_v33 = vpop.f32.mrb[2].mxu0  ;;  %v1841_v34 = vadd.f32 %v1587_v30, %v898_v20  ;;  %v1589_v29 = vpop.f32.mrb[2].mxu1  ;;  %v909_v26 = vld [vmem:[#allocation2 + $0x2c0] sm:$0xff] }
 0x1bd   : > { %1912 = vst [vmem:[#allocation2] sm:$0xff] %v1764_v25  ;;  %v1766_v35 = vadd.f32 %v1399_v33, %v823_v22  ;;  %v1401_v36 = vpop.f32.mrb[3].mxu0  ;;  %1988 = vst [vmem:[#allocation2 + $0x260] sm:$0xff] %v1840_v28  ;;  %v1842_v37 = vadd.f32 %v1589_v29, %v899_v24  ;;  %v1591_v38 = vpop.f32.mrb[3].mxu1  ;;  %v833_v25 = vld [vmem:[#allocation2 + $0x60] sm:$0xff]  ;;  %v910_v28 = vld [vmem:[#allocation2 + $0x2c8] sm:$0xff] }
 0x1be   : > { %1913 = vst [vmem:[#allocation2 + $0x8] sm:$0xff] %v1765_v32  ;;  %v1767_v39 = vadd.f32 %v1401_v36, %v824_v27  ;;  %1989 = vst [vmem:[#allocation2 + $0x268] sm:$0xff] %v1841_v34  ;;  %v1843_v40 = vadd.f32 %v1591_v38, %v900_v31  ;;  %v834_v27 = vld [vmem:[#allocation2 + $0x68] sm:$0xff]  ;;  %v835_v31 = vld [vmem:[#allocation2 + $0x70] sm:$0xff] }
 0x1bf   : > { %1914 = vst [vmem:[#allocation2 + $0x10] sm:$0xff] %v1766_v35  ;;  %1990 = vst [vmem:[#allocation2 + $0x270] sm:$0xff] %v1842_v37  ;;  %v911_v33 = vld [vmem:[#allocation2 + $0x2d0] sm:$0xff]  ;;  %v836_v35 = vld [vmem:[#allocation2 + $0x78] sm:$0xff] }
 0x1c0   : > { %1915 = vst [vmem:[#allocation2 + $0x18] sm:$0xff] %v1767_v39  ;;  %1991 = vst [vmem:[#allocation2 + $0x278] sm:$0xff] %v1843_v40  ;;  %v912_v38 = vld [vmem:[#allocation2 + $0x2d8] sm:$0xff] }
 0x1c2   : > { %v1405_v45 = vpop.f32.mrb[4].mxu0  ;;  %v1595_v47 = vpop.f32.mrb[4].mxu1 }
 0x1c3   : > { %v1768_v49 = vadd.f32 %v1405_v45, %v825_v41  ;;  %v1407_v50 = vpop.f32.mrb[5].mxu0  ;;  %v1844_v52 = vadd.f32 %v1595_v47, %v901_v42  ;;  %v1597_v53 = vpop.f32.mrb[5].mxu1 }
 0x1c4   : > { %v1769_v55 = vadd.f32 %v1407_v50, %v826_v43  ;;  %v1409_v56 = vpop.f32.mrb[6].mxu0  ;;  %v1845_v57 = vadd.f32 %v1597_v53, %v902_v44  ;;  %v1599_v58 = vpop.f32.mrb[6].mxu1  ;;  %v913_v50 = vld [vmem:[#allocation2 + $0x2e0] sm:$0xff] }
 0x1c5   : > { %1916 = vst [vmem:[#allocation2 + $0x20] sm:$0xff] %v1768_v49  ;;  %v1770_v59 = vadd.f32 %v1409_v56, %v827_v46  ;;  %v1411_v60 = vpop.f32.mrb[7].mxu0  ;;  %1992 = vst [vmem:[#allocation2 + $0x280] sm:$0xff] %v1844_v52  ;;  %v1846_v61 = vadd.f32 %v1599_v58, %v903_v48  ;;  %v1601_v62 = vpop.f32.mrb[7].mxu1  ;;  %v837_v49 = vld [vmem:[#allocation2 + $0x80] sm:$0xff]  ;;  %v914_v52 = vld [vmem:[#allocation2 + $0x2e8] sm:$0xff] }
 0x1c6   : > { %1917 = vst [vmem:[#allocation2 + $0x28] sm:$0xff] %v1769_v55  ;;  %v1771_v63 = vadd.f32 %v1411_v60, %v828_v51  ;;  %1993 = vst [vmem:[#allocation2 + $0x288] sm:$0xff] %v1845_v57  ;;  %v1847_v0 = vadd.f32 %v1601_v62, %v904_v54  ;;  %v838_v51 = vld [vmem:[#allocation2 + $0x88] sm:$0xff]  ;;  %v839_v54 = vld [vmem:[#allocation2 + $0x90] sm:$0xff] }
 0x1c7   : > { %1918 = vst [vmem:[#allocation2 + $0x30] sm:$0xff] %v1770_v59  ;;  %1994 = vst [vmem:[#allocation2 + $0x290] sm:$0xff] %v1846_v61  ;;  %v915_v56 = vld [vmem:[#allocation2 + $0x2f0] sm:$0xff]  ;;  %v840_v59 = vld [vmem:[#allocation2 + $0x98] sm:$0xff] }
 0x1c8   : > { %1919 = vst [vmem:[#allocation2 + $0x38] sm:$0xff] %v1771_v63  ;;  %1995 = vst [vmem:[#allocation2 + $0x298] sm:$0xff] %v1847_v0  ;;  %v916_v62 = vld [vmem:[#allocation2 + $0x2f8] sm:$0xff] }
 0x1ca   : > { %v1415_v5 = vpop.f32.mrb[8].mxu0  ;;  %v1605_v7 = vpop.f32.mrb[8].mxu1 }
 0x1cb   : > { %v1772_v9 = vadd.f32 %v1415_v5, %v829_v1  ;;  %v1417_v10 = vpop.f32.mrb[9].mxu0  ;;  %v1848_v12 = vadd.f32 %v1605_v7, %v905_v2  ;;  %v1607_v13 = vpop.f32.mrb[9].mxu1 }
 0x1cc   : > { %v1773_v15 = vadd.f32 %v1417_v10, %v830_v3  ;;  %v1419_v16 = vpop.f32.mrb[10].mxu0  ;;  %v1849_v17 = vadd.f32 %v1607_v13, %v906_v4  ;;  %v1609_v18 = vpop.f32.mrb[10].mxu1  ;;  %v917_v10 = vld [vmem:[#allocation2 + $0x300] sm:$0xff] }
 0x1cd   : > { %1920 = vst [vmem:[#allocation2 + $0x40] sm:$0xff] %v1772_v9  ;;  %v1774_v19 = vadd.f32 %v1419_v16, %v831_v6  ;;  %v1421_v20 = vpop.f32.mrb[11].mxu0  ;;  %1996 = vst [vmem:[#allocation2 + $0x2a0] sm:$0xff] %v1848_v12  ;;  %v1850_v21 = vadd.f32 %v1609_v18, %v907_v8  ;;  %v1611_v22 = vpop.f32.mrb[11].mxu1  ;;  %v841_v9 = vld [vmem:[#allocation2 + $0xa0] sm:$0xff]  ;;  %v918_v12 = vld [vmem:[#allocation2 + $0x308] sm:$0xff] }
 0x1ce   : > { %1921 = vst [vmem:[#allocation2 + $0x48] sm:$0xff] %v1773_v15  ;;  %v1775_v23 = vadd.f32 %v1421_v20, %v832_v11  ;;  %1997 = vst [vmem:[#allocation2 + $0x2a8] sm:$0xff] %v1849_v17  ;;  %v1851_v24 = vadd.f32 %v1611_v22, %v908_v14  ;;  %v842_v11 = vld [vmem:[#allocation2 + $0xa8] sm:$0xff]  ;;  %v843_v14 = vld [vmem:[#allocation2 + $0xb0] sm:$0xff] }
 0x1cf   : > { %1922 = vst [vmem:[#allocation2 + $0x50] sm:$0xff] %v1774_v19  ;;  %1998 = vst [vmem:[#allocation2 + $0x2b0] sm:$0xff] %v1850_v21  ;;  %v919_v16 = vld [vmem:[#allocation2 + $0x310] sm:$0xff]  ;;  %v844_v19 = vld [vmem:[#allocation2 + $0xb8] sm:$0xff] }
 0x1d0   : > { %1923 = vst [vmem:[#allocation2 + $0x58] sm:$0xff] %v1775_v23  ;;  %1999 = vst [vmem:[#allocation2 + $0x2b8] sm:$0xff] %v1851_v24  ;;  %v920_v22 = vld [vmem:[#allocation2 + $0x318] sm:$0xff] }
 0x1d2   : > { %v1425_v30 = vpop.f32.mrb[12].mxu0  ;;  %v1615_v32 = vpop.f32.mrb[12].mxu1 }
 0x1d3   : > { %v1776_v34 = vadd.f32 %v1425_v30, %v833_v25  ;;  %v1427_v29 = vpop.f32.mrb[13].mxu0  ;;  %v1852_v36 = vadd.f32 %v1615_v32, %v909_v26  ;;  %v1617_v37 = vpop.f32.mrb[13].mxu1 }
 0x1d4   : > { %v1777_v39 = vadd.f32 %v1427_v29, %v834_v27  ;;  %v1429_v40 = vpop.f32.mrb[14].mxu0  ;;  %v1853_v41 = vadd.f32 %v1617_v37, %v910_v28  ;;  %v1619_v42 = vpop.f32.mrb[14].mxu1  ;;  %v921_v29 = vld [vmem:[#allocation2 + $0x320] sm:$0xff] }
 0x1d5   : > { %1924 = vst [vmem:[#allocation2 + $0x60] sm:$0xff] %v1776_v34  ;;  %v1778_v43 = vadd.f32 %v1429_v40, %v835_v31  ;;  %v1431_v44 = vpop.f32.mrb[15].mxu0  ;;  %2000 = vst [vmem:[#allocation2 + $0x2c0] sm:$0xff] %v1852_v36  ;;  %v1854_v45 = vadd.f32 %v1619_v42, %v911_v33  ;;  %v1621_v46 = vpop.f32.mrb[15].mxu1  ;;  %v845_v34 = vld [vmem:[#allocation2 + $0xc0] sm:$0xff]  ;;  %v922_v36 = vld [vmem:[#allocation2 + $0x328] sm:$0xff] }
 0x1d6   : > { %1925 = vst [vmem:[#allocation2 + $0x68] sm:$0xff] %v1777_v39  ;;  %v1779_v47 = vadd.f32 %v1431_v44, %v836_v35  ;;  %2001 = vst [vmem:[#allocation2 + $0x2c8] sm:$0xff] %v1853_v41  ;;  %v1855_v48 = vadd.f32 %v1621_v46, %v912_v38  ;;  %v846_v35 = vld [vmem:[#allocation2 + $0xc8] sm:$0xff]  ;;  %v847_v38 = vld [vmem:[#allocation2 + $0xd0] sm:$0xff] }
 0x1d7   : > { %1926 = vst [vmem:[#allocation2 + $0x70] sm:$0xff] %v1778_v43  ;;  %2002 = vst [vmem:[#allocation2 + $0x2d0] sm:$0xff] %v1854_v45  ;;  %v923_v40 = vld [vmem:[#allocation2 + $0x330] sm:$0xff]  ;;  %v848_v43 = vld [vmem:[#allocation2 + $0xd8] sm:$0xff] }
 0x1d8   : > { %1927 = vst [vmem:[#allocation2 + $0x78] sm:$0xff] %v1779_v47  ;;  %2003 = vst [vmem:[#allocation2 + $0x2d8] sm:$0xff] %v1855_v48  ;;  %v924_v46 = vld [vmem:[#allocation2 + $0x338] sm:$0xff] }
 0x1da   : > { %v1435_v53 = vpop.f32.mrb[16].mxu0  ;;  %v1625_v55 = vpop.f32.mrb[16].mxu1 }
 0x1db   : > { %v1780_v57 = vadd.f32 %v1435_v53, %v837_v49  ;;  %v1437_v58 = vpop.f32.mrb[17].mxu0  ;;  %v1856_v60 = vadd.f32 %v1625_v55, %v913_v50  ;;  %v1627_v61 = vpop.f32.mrb[17].mxu1 }
 0x1dc   : > { %v1781_v63 = vadd.f32 %v1437_v58, %v838_v51  ;;  %v1439_v0 = vpop.f32.mrb[18].mxu0  ;;  %v1857_v1 = vadd.f32 %v1627_v61, %v914_v52  ;;  %v1629_v2 = vpop.f32.mrb[18].mxu1  ;;  %v925_v58 = vld [vmem:[#allocation2 + $0x340] sm:$0xff] }
 0x1dd   : > { %1928 = vst [vmem:[#allocation2 + $0x80] sm:$0xff] %v1780_v57  ;;  %v1782_v3 = vadd.f32 %v1439_v0, %v839_v54  ;;  %v1441_v4 = vpop.f32.mrb[19].mxu0  ;;  %2004 = vst [vmem:[#allocation2 + $0x2e0] sm:$0xff] %v1856_v60  ;;  %v1858_v5 = vadd.f32 %v1629_v2, %v915_v56  ;;  %v1631_v6 = vpop.f32.mrb[19].mxu1  ;;  %v849_v57 = vld [vmem:[#allocation2 + $0xe0] sm:$0xff]  ;;  %v926_v60 = vld [vmem:[#allocation2 + $0x348] sm:$0xff] }
 0x1de   : > { %1929 = vst [vmem:[#allocation2 + $0x88] sm:$0xff] %v1781_v63  ;;  %v1783_v7 = vadd.f32 %v1441_v4, %v840_v59  ;;  %2005 = vst [vmem:[#allocation2 + $0x2e8] sm:$0xff] %v1857_v1  ;;  %v1859_v8 = vadd.f32 %v1631_v6, %v916_v62  ;;  %v850_v59 = vld [vmem:[#allocation2 + $0xe8] sm:$0xff]  ;;  %v851_v62 = vld [vmem:[#allocation2 + $0xf0] sm:$0xff] }
 0x1df   : > { %1930 = vst [vmem:[#allocation2 + $0x90] sm:$0xff] %v1782_v3  ;;  %2006 = vst [vmem:[#allocation2 + $0x2f0] sm:$0xff] %v1858_v5  ;;  %v927_v0 = vld [vmem:[#allocation2 + $0x350] sm:$0xff]  ;;  %v852_v3 = vld [vmem:[#allocation2 + $0xf8] sm:$0xff] }
 0x1e0   : > { %1931 = vst [vmem:[#allocation2 + $0x98] sm:$0xff] %v1783_v7  ;;  %2007 = vst [vmem:[#allocation2 + $0x2f8] sm:$0xff] %v1859_v8  ;;  %v928_v6 = vld [vmem:[#allocation2 + $0x358] sm:$0xff] }
 0x1e2   : > { %v1445_v13 = vpop.f32.mrb[20].mxu0  ;;  %v1635_v15 = vpop.f32.mrb[20].mxu1 }
 0x1e3   : > { %v1784_v17 = vadd.f32 %v1445_v13, %v841_v9  ;;  %v1447_v18 = vpop.f32.mrb[21].mxu0  ;;  %v1860_v20 = vadd.f32 %v1635_v15, %v917_v10  ;;  %v1637_v21 = vpop.f32.mrb[21].mxu1 }
 0x1e4   : > { %v1785_v23 = vadd.f32 %v1447_v18, %v842_v11  ;;  %v1449_v24 = vpop.f32.mrb[22].mxu0  ;;  %v1861_v25 = vadd.f32 %v1637_v21, %v918_v12  ;;  %v1639_v26 = vpop.f32.mrb[22].mxu1  ;;  %v929_v18 = vld [vmem:[#allocation2 + $0x360] sm:$0xff] }
 0x1e5   : > { %1932 = vst [vmem:[#allocation2 + $0xa0] sm:$0xff] %v1784_v17  ;;  %v1786_v27 = vadd.f32 %v1449_v24, %v843_v14  ;;  %v1451_v28 = vpop.f32.mrb[23].mxu0  ;;  %2008 = vst [vmem:[#allocation2 + $0x300] sm:$0xff] %v1860_v20  ;;  %v1862_v30 = vadd.f32 %v1639_v26, %v919_v16  ;;  %v1641_v31 = vpop.f32.mrb[23].mxu1  ;;  %v853_v17 = vld [vmem:[#allocation2 + $0x100] sm:$0xff]  ;;  %v930_v20 = vld [vmem:[#allocation2 + $0x368] sm:$0xff] }
 0x1e6   : > { %1933 = vst [vmem:[#allocation2 + $0xa8] sm:$0xff] %v1785_v23  ;;  %v1787_v32 = vadd.f32 %v1451_v28, %v844_v19  ;;  %2009 = vst [vmem:[#allocation2 + $0x308] sm:$0xff] %v1861_v25  ;;  %v1863_v33 = vadd.f32 %v1641_v31, %v920_v22  ;;  %v854_v19 = vld [vmem:[#allocation2 + $0x108] sm:$0xff]  ;;  %v855_v22 = vld [vmem:[#allocation2 + $0x110] sm:$0xff] }
 0x1e7   : > { %1934 = vst [vmem:[#allocation2 + $0xb0] sm:$0xff] %v1786_v27  ;;  %2010 = vst [vmem:[#allocation2 + $0x310] sm:$0xff] %v1862_v30  ;;  %v931_v24 = vld [vmem:[#allocation2 + $0x370] sm:$0xff]  ;;  %v856_v27 = vld [vmem:[#allocation2 + $0x118] sm:$0xff] }
 0x1e8   : > { %1935 = vst [vmem:[#allocation2 + $0xb8] sm:$0xff] %v1787_v32  ;;  %2011 = vst [vmem:[#allocation2 + $0x318] sm:$0xff] %v1863_v33  ;;  %v932_v31 = vld [vmem:[#allocation2 + $0x378] sm:$0xff] }
 0x1ea   : > { %v1455_v37 = vpop.f32.mrb[24].mxu0  ;;  %v1645_v39 = vpop.f32.mrb[24].mxu1 }
 0x1eb   : > { %v1788_v41 = vadd.f32 %v1455_v37, %v845_v34  ;;  %v1457_v42 = vpop.f32.mrb[25].mxu0  ;;  %v1864_v44 = vadd.f32 %v1645_v39, %v921_v29  ;;  %v1647_v45 = vpop.f32.mrb[25].mxu1 }
 0x1ec   : > { %v1789_v47 = vadd.f32 %v1457_v42, %v846_v35  ;;  %v1459_v48 = vpop.f32.mrb[26].mxu0  ;;  %v1865_v49 = vadd.f32 %v1647_v45, %v922_v36  ;;  %v1649_v50 = vpop.f32.mrb[26].mxu1  ;;  %v933_v42 = vld [vmem:[#allocation2 + $0x380] sm:$0xff] }
 0x1ed   : > { %1936 = vst [vmem:[#allocation2 + $0xc0] sm:$0xff] %v1788_v41  ;;  %v1790_v51 = vadd.f32 %v1459_v48, %v847_v38  ;;  %v1461_v52 = vpop.f32.mrb[27].mxu0  ;;  %2012 = vst [vmem:[#allocation2 + $0x320] sm:$0xff] %v1864_v44  ;;  %v1866_v53 = vadd.f32 %v1649_v50, %v923_v40  ;;  %v1651_v54 = vpop.f32.mrb[27].mxu1  ;;  %v857_v41 = vld [vmem:[#allocation2 + $0x120] sm:$0xff]  ;;  %v934_v44 = vld [vmem:[#allocation2 + $0x388] sm:$0xff] }
 0x1ee   : > { %1937 = vst [vmem:[#allocation2 + $0xc8] sm:$0xff] %v1789_v47  ;;  %v1791_v55 = vadd.f32 %v1461_v52, %v848_v43  ;;  %2013 = vst [vmem:[#allocation2 + $0x328] sm:$0xff] %v1865_v49  ;;  %v1867_v56 = vadd.f32 %v1651_v54, %v924_v46  ;;  %v858_v43 = vld [vmem:[#allocation2 + $0x128] sm:$0xff]  ;;  %v859_v46 = vld [vmem:[#allocation2 + $0x130] sm:$0xff] }
 0x1ef   : > { %1938 = vst [vmem:[#allocation2 + $0xd0] sm:$0xff] %v1790_v51  ;;  %2014 = vst [vmem:[#allocation2 + $0x330] sm:$0xff] %v1866_v53  ;;  %v935_v48 = vld [vmem:[#allocation2 + $0x390] sm:$0xff]  ;;  %v860_v51 = vld [vmem:[#allocation2 + $0x138] sm:$0xff] }
 0x1f0   : > { %1939 = vst [vmem:[#allocation2 + $0xd8] sm:$0xff] %v1791_v55  ;;  %2015 = vst [vmem:[#allocation2 + $0x338] sm:$0xff] %v1867_v56  ;;  %v936_v54 = vld [vmem:[#allocation2 + $0x398] sm:$0xff] }
 0x1f2   : > { %v1465_v61 = vpop.f32.mrb[28].mxu0  ;;  %v1655_v63 = vpop.f32.mrb[28].mxu1 }
 0x1f3   : > { %v1792_v1 = vadd.f32 %v1465_v61, %v849_v57  ;;  %v1467_v2 = vpop.f32.mrb[29].mxu0  ;;  %v1868_v4 = vadd.f32 %v1655_v63, %v925_v58  ;;  %v1657_v5 = vpop.f32.mrb[29].mxu1 }
 0x1f4   : > { %v1793_v7 = vadd.f32 %v1467_v2, %v850_v59  ;;  %v1469_v8 = vpop.f32.mrb[30].mxu0  ;;  %v1869_v9 = vadd.f32 %v1657_v5, %v926_v60  ;;  %v1659_v10 = vpop.f32.mrb[30].mxu1  ;;  %v937_v2 = vld [vmem:[#allocation2 + $0x3a0] sm:$0xff] }
 0x1f5   : > { %1940 = vst [vmem:[#allocation2 + $0xe0] sm:$0xff] %v1792_v1  ;;  %v1794_v11 = vadd.f32 %v1469_v8, %v851_v62  ;;  %v1471_v12 = vpop.f32.mrb[31].mxu0  ;;  %2016 = vst [vmem:[#allocation2 + $0x340] sm:$0xff] %v1868_v4  ;;  %v1870_v13 = vadd.f32 %v1659_v10, %v927_v0  ;;  %v1661_v14 = vpop.f32.mrb[31].mxu1  ;;  %v861_v1 = vld [vmem:[#allocation2 + $0x140] sm:$0xff]  ;;  %v938_v4 = vld [vmem:[#allocation2 + $0x3a8] sm:$0xff] }
 0x1f6   : > { %1941 = vst [vmem:[#allocation2 + $0xe8] sm:$0xff] %v1793_v7  ;;  %v1795_v15 = vadd.f32 %v1471_v12, %v852_v3  ;;  %2017 = vst [vmem:[#allocation2 + $0x348] sm:$0xff] %v1869_v9  ;;  %v1871_v16 = vadd.f32 %v1661_v14, %v928_v6  ;;  %v862_v3 = vld [vmem:[#allocation2 + $0x148] sm:$0xff]  ;;  %v863_v6 = vld [vmem:[#allocation2 + $0x150] sm:$0xff] }
 0x1f7   : > { %1942 = vst [vmem:[#allocation2 + $0xf0] sm:$0xff] %v1794_v11  ;;  %2018 = vst [vmem:[#allocation2 + $0x350] sm:$0xff] %v1870_v13  ;;  %v939_v8 = vld [vmem:[#allocation2 + $0x3b0] sm:$0xff]  ;;  %v864_v11 = vld [vmem:[#allocation2 + $0x158] sm:$0xff] }
 0x1f8   : > { %1943 = vst [vmem:[#allocation2 + $0xf8] sm:$0xff] %v1795_v15  ;;  %2019 = vst [vmem:[#allocation2 + $0x358] sm:$0xff] %v1871_v16  ;;  %v940_v14 = vld [vmem:[#allocation2 + $0x3b8] sm:$0xff] }
 0x1fa   : > { %v1475_v21 = vpop.f32.mrb[32].mxu0  ;;  %v1665_v23 = vpop.f32.mrb[32].mxu1 }
 0x1fb   : > { %v1796_v25 = vadd.f32 %v1475_v21, %v853_v17  ;;  %v1477_v26 = vpop.f32.mrb[33].mxu0  ;;  %v1872_v28 = vadd.f32 %v1665_v23, %v929_v18  ;;  %v1667_v30 = vpop.f32.mrb[33].mxu1 }
 0x1fc   : > { %v1797_v32 = vadd.f32 %v1477_v26, %v854_v19  ;;  %v1479_v33 = vpop.f32.mrb[34].mxu0  ;;  %v1873_v34 = vadd.f32 %v1667_v30, %v930_v20  ;;  %v1669_v29 = vpop.f32.mrb[34].mxu1  ;;  %v941_v26 = vld [vmem:[#allocation2 + $0x3c0] sm:$0xff] }
 0x1fd   : > { %1944 = vst [vmem:[#allocation2 + $0x100] sm:$0xff] %v1796_v25  ;;  %v1798_v35 = vadd.f32 %v1479_v33, %v855_v22  ;;  %v1481_v36 = vpop.f32.mrb[35].mxu0  ;;  %2020 = vst [vmem:[#allocation2 + $0x360] sm:$0xff] %v1872_v28  ;;  %v1874_v37 = vadd.f32 %v1669_v29, %v931_v24  ;;  %v1671_v38 = vpop.f32.mrb[35].mxu1  ;;  %v865_v25 = vld [vmem:[#allocation2 + $0x160] sm:$0xff]  ;;  %v942_v28 = vld [vmem:[#allocation2 + $0x3c8] sm:$0xff] }
 0x1fe   : > { %1945 = vst [vmem:[#allocation2 + $0x108] sm:$0xff] %v1797_v32  ;;  %v1799_v39 = vadd.f32 %v1481_v36, %v856_v27  ;;  %2021 = vst [vmem:[#allocation2 + $0x368] sm:$0xff] %v1873_v34  ;;  %v1875_v40 = vadd.f32 %v1671_v38, %v932_v31  ;;  %v866_v27 = vld [vmem:[#allocation2 + $0x168] sm:$0xff]  ;;  %v867_v31 = vld [vmem:[#allocation2 + $0x170] sm:$0xff] }
 0x1ff   : > { %1946 = vst [vmem:[#allocation2 + $0x110] sm:$0xff] %v1798_v35  ;;  %2022 = vst [vmem:[#allocation2 + $0x370] sm:$0xff] %v1874_v37  ;;  %v943_v33 = vld [vmem:[#allocation2 + $0x3d0] sm:$0xff]  ;;  %v868_v35 = vld [vmem:[#allocation2 + $0x178] sm:$0xff] }
 0x200   : > { %1947 = vst [vmem:[#allocation2 + $0x118] sm:$0xff] %v1799_v39  ;;  %2023 = vst [vmem:[#allocation2 + $0x378] sm:$0xff] %v1875_v40  ;;  %v944_v38 = vld [vmem:[#allocation2 + $0x3d8] sm:$0xff] }
 0x202   : > { %v1485_v45 = vpop.f32.mrb[36].mxu0  ;;  %v1675_v47 = vpop.f32.mrb[36].mxu1 }
 0x203   : > { %v1800_v49 = vadd.f32 %v1485_v45, %v857_v41  ;;  %v1487_v50 = vpop.f32.mrb[37].mxu0  ;;  %v1876_v52 = vadd.f32 %v1675_v47, %v933_v42  ;;  %v1677_v53 = vpop.f32.mrb[37].mxu1 }
 0x204   : > { %v1801_v55 = vadd.f32 %v1487_v50, %v858_v43  ;;  %v1489_v56 = vpop.f32.mrb[38].mxu0  ;;  %v1877_v57 = vadd.f32 %v1677_v53, %v934_v44  ;;  %v1679_v58 = vpop.f32.mrb[38].mxu1  ;;  %v945_v50 = vld [vmem:[#allocation2 + $0x3e0] sm:$0xff] }
 0x205   : > { %1948 = vst [vmem:[#allocation2 + $0x120] sm:$0xff] %v1800_v49  ;;  %v1802_v59 = vadd.f32 %v1489_v56, %v859_v46  ;;  %v1491_v60 = vpop.f32.mrb[39].mxu0  ;;  %2024 = vst [vmem:[#allocation2 + $0x380] sm:$0xff] %v1876_v52  ;;  %v1878_v61 = vadd.f32 %v1679_v58, %v935_v48  ;;  %v1681_v62 = vpop.f32.mrb[39].mxu1  ;;  %v869_v49 = vld [vmem:[#allocation2 + $0x180] sm:$0xff]  ;;  %v946_v52 = vld [vmem:[#allocation2 + $0x3e8] sm:$0xff] }
 0x206   : > { %1949 = vst [vmem:[#allocation2 + $0x128] sm:$0xff] %v1801_v55  ;;  %v1803_v63 = vadd.f32 %v1491_v60, %v860_v51  ;;  %2025 = vst [vmem:[#allocation2 + $0x388] sm:$0xff] %v1877_v57  ;;  %v1879_v0 = vadd.f32 %v1681_v62, %v936_v54  ;;  %v870_v51 = vld [vmem:[#allocation2 + $0x188] sm:$0xff]  ;;  %v871_v54 = vld [vmem:[#allocation2 + $0x190] sm:$0xff] }
 0x207   : > { %1950 = vst [vmem:[#allocation2 + $0x130] sm:$0xff] %v1802_v59  ;;  %2026 = vst [vmem:[#allocation2 + $0x390] sm:$0xff] %v1878_v61  ;;  %v947_v56 = vld [vmem:[#allocation2 + $0x3f0] sm:$0xff]  ;;  %v872_v59 = vld [vmem:[#allocation2 + $0x198] sm:$0xff] }
 0x208   : > { %1951 = vst [vmem:[#allocation2 + $0x138] sm:$0xff] %v1803_v63  ;;  %2027 = vst [vmem:[#allocation2 + $0x398] sm:$0xff] %v1879_v0  ;;  %v948_v62 = vld [vmem:[#allocation2 + $0x3f8] sm:$0xff] }
 0x20a   : > { %v1495_v5 = vpop.f32.mrb[40].mxu0  ;;  %v1685_v7 = vpop.f32.mrb[40].mxu1 }
 0x20b   : > { %v1804_v9 = vadd.f32 %v1495_v5, %v861_v1  ;;  %v1497_v10 = vpop.f32.mrb[41].mxu0  ;;  %v1880_v12 = vadd.f32 %v1685_v7, %v937_v2  ;;  %v1687_v13 = vpop.f32.mrb[41].mxu1 }
 0x20c   : > { %v1805_v15 = vadd.f32 %v1497_v10, %v862_v3  ;;  %v1499_v16 = vpop.f32.mrb[42].mxu0  ;;  %v1881_v17 = vadd.f32 %v1687_v13, %v938_v4  ;;  %v1689_v18 = vpop.f32.mrb[42].mxu1  ;;  %v949_v10 = vld [vmem:[#allocation2 + $0x400] sm:$0xff] }
 0x20d   : > { %1952 = vst [vmem:[#allocation2 + $0x140] sm:$0xff] %v1804_v9  ;;  %v1806_v19 = vadd.f32 %v1499_v16, %v863_v6  ;;  %v1501_v20 = vpop.f32.mrb[43].mxu0  ;;  %2028 = vst [vmem:[#allocation2 + $0x3a0] sm:$0xff] %v1880_v12  ;;  %v1882_v21 = vadd.f32 %v1689_v18, %v939_v8  ;;  %v1691_v22 = vpop.f32.mrb[43].mxu1  ;;  %v873_v9 = vld [vmem:[#allocation2 + $0x1a0] sm:$0xff]  ;;  %v950_v12 = vld [vmem:[#allocation2 + $0x408] sm:$0xff] }
 0x20e   : > { %1953 = vst [vmem:[#allocation2 + $0x148] sm:$0xff] %v1805_v15  ;;  %v1807_v23 = vadd.f32 %v1501_v20, %v864_v11  ;;  %2029 = vst [vmem:[#allocation2 + $0x3a8] sm:$0xff] %v1881_v17  ;;  %v1883_v24 = vadd.f32 %v1691_v22, %v940_v14  ;;  %v874_v11 = vld [vmem:[#allocation2 + $0x1a8] sm:$0xff]  ;;  %v875_v14 = vld [vmem:[#allocation2 + $0x1b0] sm:$0xff] }
 0x20f   : > { %1954 = vst [vmem:[#allocation2 + $0x150] sm:$0xff] %v1806_v19  ;;  %2030 = vst [vmem:[#allocation2 + $0x3b0] sm:$0xff] %v1882_v21  ;;  %v951_v16 = vld [vmem:[#allocation2 + $0x410] sm:$0xff]  ;;  %v876_v19 = vld [vmem:[#allocation2 + $0x1b8] sm:$0xff] }
 0x210   : > { %1955 = vst [vmem:[#allocation2 + $0x158] sm:$0xff] %v1807_v23  ;;  %2031 = vst [vmem:[#allocation2 + $0x3b8] sm:$0xff] %v1883_v24  ;;  %v952_v22 = vld [vmem:[#allocation2 + $0x418] sm:$0xff] }
 0x212   : > { %v1505_v30 = vpop.f32.mrb[44].mxu0  ;;  %v1695_v32 = vpop.f32.mrb[44].mxu1 }
 0x213   : > { %v1808_v34 = vadd.f32 %v1505_v30, %v865_v25  ;;  %v1507_v29 = vpop.f32.mrb[45].mxu0  ;;  %v1884_v36 = vadd.f32 %v1695_v32, %v941_v26  ;;  %v1697_v37 = vpop.f32.mrb[45].mxu1 }
 0x214   : > { %v1809_v39 = vadd.f32 %v1507_v29, %v866_v27  ;;  %v1509_v40 = vpop.f32.mrb[46].mxu0  ;;  %v1885_v41 = vadd.f32 %v1697_v37, %v942_v28  ;;  %v1699_v42 = vpop.f32.mrb[46].mxu1  ;;  %v953_v29 = vld [vmem:[#allocation2 + $0x420] sm:$0xff] }
 0x215   : > { %1956 = vst [vmem:[#allocation2 + $0x160] sm:$0xff] %v1808_v34  ;;  %v1810_v43 = vadd.f32 %v1509_v40, %v867_v31  ;;  %v1511_v44 = vpop.f32.mrb[47].mxu0  ;;  %2032 = vst [vmem:[#allocation2 + $0x3c0] sm:$0xff] %v1884_v36  ;;  %v1886_v45 = vadd.f32 %v1699_v42, %v943_v33  ;;  %v1701_v46 = vpop.f32.mrb[47].mxu1  ;;  %v877_v34 = vld [vmem:[#allocation2 + $0x1c0] sm:$0xff]  ;;  %v954_v36 = vld [vmem:[#allocation2 + $0x428] sm:$0xff] }
 0x216   : > { %1957 = vst [vmem:[#allocation2 + $0x168] sm:$0xff] %v1809_v39  ;;  %v1811_v47 = vadd.f32 %v1511_v44, %v868_v35  ;;  %2033 = vst [vmem:[#allocation2 + $0x3c8] sm:$0xff] %v1885_v41  ;;  %v1887_v48 = vadd.f32 %v1701_v46, %v944_v38  ;;  %v878_v35 = vld [vmem:[#allocation2 + $0x1c8] sm:$0xff]  ;;  %v879_v38 = vld [vmem:[#allocation2 + $0x1d0] sm:$0xff] }
 0x217   : > { %1958 = vst [vmem:[#allocation2 + $0x170] sm:$0xff] %v1810_v43  ;;  %2034 = vst [vmem:[#allocation2 + $0x3d0] sm:$0xff] %v1886_v45  ;;  %v955_v40 = vld [vmem:[#allocation2 + $0x430] sm:$0xff]  ;;  %v880_v43 = vld [vmem:[#allocation2 + $0x1d8] sm:$0xff] }
 0x218   : > { %1959 = vst [vmem:[#allocation2 + $0x178] sm:$0xff] %v1811_v47  ;;  %2035 = vst [vmem:[#allocation2 + $0x3d8] sm:$0xff] %v1887_v48  ;;  %v956_v46 = vld [vmem:[#allocation2 + $0x438] sm:$0xff] }
 0x21a   : > { %v1515_v53 = vpop.f32.mrb[48].mxu0  ;;  %v1705_v55 = vpop.f32.mrb[48].mxu1 }
 0x21b   : > { %v1812_v57 = vadd.f32 %v1515_v53, %v869_v49  ;;  %v1517_v58 = vpop.f32.mrb[49].mxu0  ;;  %v1888_v60 = vadd.f32 %v1705_v55, %v945_v50  ;;  %v1707_v61 = vpop.f32.mrb[49].mxu1 }
 0x21c   : > { %v1813_v63 = vadd.f32 %v1517_v58, %v870_v51  ;;  %v1519_v0 = vpop.f32.mrb[50].mxu0  ;;  %v1889_v1 = vadd.f32 %v1707_v61, %v946_v52  ;;  %v1709_v2 = vpop.f32.mrb[50].mxu1  ;;  %v957_v58 = vld [vmem:[#allocation2 + $0x440] sm:$0xff] }
 0x21d   : > { %1960 = vst [vmem:[#allocation2 + $0x180] sm:$0xff] %v1812_v57  ;;  %v1814_v3 = vadd.f32 %v1519_v0, %v871_v54  ;;  %v1521_v4 = vpop.f32.mrb[51].mxu0  ;;  %2036 = vst [vmem:[#allocation2 + $0x3e0] sm:$0xff] %v1888_v60  ;;  %v1890_v5 = vadd.f32 %v1709_v2, %v947_v56  ;;  %v1711_v6 = vpop.f32.mrb[51].mxu1  ;;  %v881_v57 = vld [vmem:[#allocation2 + $0x1e0] sm:$0xff]  ;;  %v958_v60 = vld [vmem:[#allocation2 + $0x448] sm:$0xff] }
 0x21e   : > { %1961 = vst [vmem:[#allocation2 + $0x188] sm:$0xff] %v1813_v63  ;;  %v1815_v7 = vadd.f32 %v1521_v4, %v872_v59  ;;  %2037 = vst [vmem:[#allocation2 + $0x3e8] sm:$0xff] %v1889_v1  ;;  %v1891_v8 = vadd.f32 %v1711_v6, %v948_v62  ;;  %v882_v59 = vld [vmem:[#allocation2 + $0x1e8] sm:$0xff]  ;;  %v883_v62 = vld [vmem:[#allocation2 + $0x1f0] sm:$0xff] }
 0x21f   : > { %1962 = vst [vmem:[#allocation2 + $0x190] sm:$0xff] %v1814_v3  ;;  %2038 = vst [vmem:[#allocation2 + $0x3f0] sm:$0xff] %v1890_v5  ;;  %v959_v0 = vld [vmem:[#allocation2 + $0x450] sm:$0xff]  ;;  %v884_v3 = vld [vmem:[#allocation2 + $0x1f8] sm:$0xff] }
 0x220   : > { %1963 = vst [vmem:[#allocation2 + $0x198] sm:$0xff] %v1815_v7  ;;  %2039 = vst [vmem:[#allocation2 + $0x3f8] sm:$0xff] %v1891_v8  ;;  %v960_v6 = vld [vmem:[#allocation2 + $0x458] sm:$0xff] }
 0x222   : > { %v1525_v13 = vpop.f32.mrb[52].mxu0  ;;  %v1715_v15 = vpop.f32.mrb[52].mxu1 }
 0x223   : > { %v1816_v17 = vadd.f32 %v1525_v13, %v873_v9  ;;  %v1527_v18 = vpop.f32.mrb[53].mxu0  ;;  %v1892_v20 = vadd.f32 %v1715_v15, %v949_v10  ;;  %v1717_v21 = vpop.f32.mrb[53].mxu1 }
 0x224   : > { %v1817_v23 = vadd.f32 %v1527_v18, %v874_v11  ;;  %v1529_v24 = vpop.f32.mrb[54].mxu0  ;;  %v1893_v25 = vadd.f32 %v1717_v21, %v950_v12  ;;  %v1719_v26 = vpop.f32.mrb[54].mxu1  ;;  %v961_v18 = vld [vmem:[#allocation2 + $0x460] sm:$0xff] }
 0x225   : > { %1964 = vst [vmem:[#allocation2 + $0x1a0] sm:$0xff] %v1816_v17  ;;  %v1818_v27 = vadd.f32 %v1529_v24, %v875_v14  ;;  %v1531_v28 = vpop.f32.mrb[55].mxu0  ;;  %2040 = vst [vmem:[#allocation2 + $0x400] sm:$0xff] %v1892_v20  ;;  %v1894_v30 = vadd.f32 %v1719_v26, %v951_v16  ;;  %v1721_v31 = vpop.f32.mrb[55].mxu1  ;;  %v885_v17 = vld [vmem:[#allocation2 + $0x200] sm:$0xff]  ;;  %v962_v20 = vld [vmem:[#allocation2 + $0x468] sm:$0xff] }
 0x226   : > { %1965 = vst [vmem:[#allocation2 + $0x1a8] sm:$0xff] %v1817_v23  ;;  %v1819_v32 = vadd.f32 %v1531_v28, %v876_v19  ;;  %2041 = vst [vmem:[#allocation2 + $0x408] sm:$0xff] %v1893_v25  ;;  %v1895_v33 = vadd.f32 %v1721_v31, %v952_v22  ;;  %v886_v19 = vld [vmem:[#allocation2 + $0x208] sm:$0xff]  ;;  %v887_v22 = vld [vmem:[#allocation2 + $0x210] sm:$0xff] }
 0x227   : > { %1966 = vst [vmem:[#allocation2 + $0x1b0] sm:$0xff] %v1818_v27  ;;  %2042 = vst [vmem:[#allocation2 + $0x410] sm:$0xff] %v1894_v30  ;;  %v963_v24 = vld [vmem:[#allocation2 + $0x470] sm:$0xff]  ;;  %v888_v27 = vld [vmem:[#allocation2 + $0x218] sm:$0xff] }
 0x228   : > { %1967 = vst [vmem:[#allocation2 + $0x1b8] sm:$0xff] %v1819_v32  ;;  %2043 = vst [vmem:[#allocation2 + $0x418] sm:$0xff] %v1895_v33  ;;  %v964_v31 = vld [vmem:[#allocation2 + $0x478] sm:$0xff] }
 0x22a   : > { %v1535_v37 = vpop.f32.mrb[56].mxu0  ;;  %v1725_v39 = vpop.f32.mrb[56].mxu1 }
 0x22b   : > { %v1820_v41 = vadd.f32 %v1535_v37, %v877_v34  ;;  %v1537_v42 = vpop.f32.mrb[57].mxu0  ;;  %v1896_v44 = vadd.f32 %v1725_v39, %v953_v29  ;;  %v1727_v45 = vpop.f32.mrb[57].mxu1 }
 0x22c   : > { %v1821_v47 = vadd.f32 %v1537_v42, %v878_v35  ;;  %v1539_v48 = vpop.f32.mrb[58].mxu0  ;;  %v1897_v49 = vadd.f32 %v1727_v45, %v954_v36  ;;  %v1729_v50 = vpop.f32.mrb[58].mxu1  ;;  %v965_v42 = vld [vmem:[#allocation2 + $0x480] sm:$0xff] }
 0x22d   : > { %1968 = vst [vmem:[#allocation2 + $0x1c0] sm:$0xff] %v1820_v41  ;;  %v1822_v51 = vadd.f32 %v1539_v48, %v879_v38  ;;  %v1541_v52 = vpop.f32.mrb[59].mxu0  ;;  %2044 = vst [vmem:[#allocation2 + $0x420] sm:$0xff] %v1896_v44  ;;  %v1898_v53 = vadd.f32 %v1729_v50, %v955_v40  ;;  %v1731_v54 = vpop.f32.mrb[59].mxu1  ;;  %v889_v41 = vld [vmem:[#allocation2 + $0x220] sm:$0xff]  ;;  %v966_v44 = vld [vmem:[#allocation2 + $0x488] sm:$0xff] }
 0x22e   : > { %1969 = vst [vmem:[#allocation2 + $0x1c8] sm:$0xff] %v1821_v47  ;;  %v1823_v55 = vadd.f32 %v1541_v52, %v880_v43  ;;  %2045 = vst [vmem:[#allocation2 + $0x428] sm:$0xff] %v1897_v49  ;;  %v1899_v56 = vadd.f32 %v1731_v54, %v956_v46  ;;  %v890_v43 = vld [vmem:[#allocation2 + $0x228] sm:$0xff]  ;;  %v891_v46 = vld [vmem:[#allocation2 + $0x230] sm:$0xff] }
 0x22f   : > { %1970 = vst [vmem:[#allocation2 + $0x1d0] sm:$0xff] %v1822_v51  ;;  %2046 = vst [vmem:[#allocation2 + $0x430] sm:$0xff] %v1898_v53  ;;  %v967_v48 = vld [vmem:[#allocation2 + $0x490] sm:$0xff]  ;;  %v892_v51 = vld [vmem:[#allocation2 + $0x238] sm:$0xff] }
 0x230   : > { %1971 = vst [vmem:[#allocation2 + $0x1d8] sm:$0xff] %v1823_v55  ;;  %2047 = vst [vmem:[#allocation2 + $0x438] sm:$0xff] %v1899_v56  ;;  %v968_v54 = vld [vmem:[#allocation2 + $0x498] sm:$0xff] }
 0x232   : > { %v1545_v61 = vpop.f32.mrb[60].mxu0  ;;  %v1735_v63 = vpop.f32.mrb[60].mxu1 }
 0x233   : > { %v1824_v1 = vadd.f32 %v1545_v61, %v881_v57  ;;  %v1547_v2 = vpop.f32.mrb[61].mxu0  ;;  %v1900_v4 = vadd.f32 %v1735_v63, %v957_v58  ;;  %v1737_v5 = vpop.f32.mrb[61].mxu1 }
 0x234   : > { %v1825_v7 = vadd.f32 %v1547_v2, %v882_v59  ;;  %v1549_v8 = vpop.f32.mrb[62].mxu0  ;;  %v1901_v9 = vadd.f32 %v1737_v5, %v958_v60  ;;  %v1739_v10 = vpop.f32.mrb[62].mxu1  ;;  %v894_v2 = vld [vmem:[#allocation2 + $0x248] sm:$0xff] }
 0x235   : > { %1972 = vst [vmem:[#allocation2 + $0x1e0] sm:$0xff] %v1824_v1  ;;  %v1826_v11 = vadd.f32 %v1549_v8, %v883_v62  ;;  %v1551_v12 = vpop.f32.mrb[63].mxu0  ;;  %2048 = vst [vmem:[#allocation2 + $0x440] sm:$0xff] %v1900_v4  ;;  %v1902_v13 = vadd.f32 %v1739_v10, %v959_v0  ;;  %v1741_v14 = vpop.f32.mrb[63].mxu1  ;;  %v893_v1 = vld [vmem:[#allocation2 + $0x240] sm:$0xff]  ;;  %v895_v4 = vld [vmem:[#allocation2 + $0x250] sm:$0xff] }
 0x236   : > { %1973 = vst [vmem:[#allocation2 + $0x1e8] sm:$0xff] %v1825_v7  ;;  %v1827_v15 = vadd.f32 %v1551_v12, %v884_v3  ;;  %2049 = vst [vmem:[#allocation2 + $0x448] sm:$0xff] %v1901_v9  ;;  %v1903_v16 = vadd.f32 %v1741_v14, %v960_v6  ;;  %v896_v7 = vld [vmem:[#allocation2 + $0x258] sm:$0xff] }
 0x237   : > { %1974 = vst [vmem:[#allocation2 + $0x1f0] sm:$0xff] %v1826_v11  ;;  %2050 = vst [vmem:[#allocation2 + $0x450] sm:$0xff] %v1902_v13  ;;  %v2214_v13 = vlaneseq (!%p3548_p5) }
 0x238   : > { %1975 = vst [vmem:[#allocation2 + $0x1f8] sm:$0xff] %v1827_v15  ;;  %2051 = vst [vmem:[#allocation2 + $0x458] sm:$0xff] %v1903_v16  ;;  %v2212_v15 = vld [vmem:[%s664_s5] sm:$0x3] (!%p3548_p5) }
 0x239   : > { %v2215_v14 = vshrl.u32 (!%p3548_p5), %v2214_v13, 7  ;;  %v2064_v16 = vld [vmem:[#allocation2] sm:$0xff] (!%p3548_p5)  ;;  %v2085_v13 = vld [vmem:[#allocation2 + $0xa8] sm:$0xff] (!%p3548_p5) }
 0x23a   : > { %v1555_v21 = vpop.f32.mrb[64].mxu0  ;;  %v1745_v23 = vpop.f32.mrb[64].mxu1 }
 0x23b   : > { %v1828_v25 = vadd.f32 %v1555_v21, %v885_v17  ;;  %v1557_v26 = vpop.f32.mrb[65].mxu0  ;;  %v1904_v28 = vadd.f32 %v1745_v23, %v961_v18  ;;  %v1747_v30 = vpop.f32.mrb[65].mxu1  ;;  %v2065_v17 = vld [vmem:[#allocation2 + $0x8] sm:$0xff] (!%p3548_p5)  ;;  %v2216_v18 = vsub.s32 (!%p3548_p5), 0, %v2215_v14  ;;  %v2067_v21 = vld [vmem:[#allocation2 + $0x18] sm:$0xff] (!%p3548_p5) }
 0x23c   : > { %v1829_v32 = vadd.f32 %v1557_v26, %v886_v19  ;;  %v1559_v33 = vpop.f32.mrb[66].mxu0  ;;  %v1905_v34 = vadd.f32 %v1747_v30, %v962_v20  ;;  %v1749_v29 = vpop.f32.mrb[66].mxu1  ;;  %v2220_v19 = vsub.s32 (!%p3548_p5), 1, %v2215_v14  ;;  %v2066_v20 = vld [vmem:[#allocation2 + $0x10] sm:$0xff] (!%p3548_p5) }
 0x23d   : > { %1976 = vst [vmem:[#allocation2 + $0x200] sm:$0xff] %v1828_v25  ;;  %v1830_v35 = vadd.f32 %v1559_v33, %v887_v22  ;;  %v1561_v36 = vpop.f32.mrb[67].mxu0  ;;  %2052 = vst [vmem:[#allocation2 + $0x460] sm:$0xff] %v1904_v28  ;;  %v1906_v37 = vadd.f32 %v1749_v29, %v963_v24  ;;  %v1751_v38 = vpop.f32.mrb[67].mxu1  ;;  %v2068_v22 = vld [vmem:[#allocation2 + $0x20] sm:$0xff] (!%p3548_p5)  ;;  %v4530_v23 = vrot.slane (!%p3548_p5), %v2212_v15, %v2216_v18  ;;  %v2069_v25 = vld [vmem:[#allocation2 + $0x28] sm:$0xff] (!%p3548_p5) }
 0x23e   : > { %1977 = vst [vmem:[#allocation2 + $0x208] sm:$0xff] %v1829_v32  ;;  %v1831_v39 = vadd.f32 %v1561_v36, %v888_v27  ;;  %2053 = vst [vmem:[#allocation2 + $0x468] sm:$0xff] %v1905_v34  ;;  %v1907_v40 = vadd.f32 %v1751_v38, %v964_v31  ;;  %v4532_v24 = vrot.slane (!%p3548_p5), %v2212_v15, %v2220_v19  ;;  %v2070_v26 = vld [vmem:[#allocation2 + $0x30] sm:$0xff] (!%p3548_p5)  ;;  %v2071_v27 = vld [vmem:[#allocation2 + $0x38] sm:$0xff] (!%p3548_p5) }
 0x23f   : > { %1978 = vst [vmem:[#allocation2 + $0x210] sm:$0xff] %v1830_v35  ;;  %2054 = vst [vmem:[#allocation2 + $0x470] sm:$0xff] %v1906_v37  ;;  %v2224_v28 = vadd.f32 (!%p3548_p5), %v4530_v23, %v2064_v16  ;;  %v2226_v31 = vadd.f32 (!%p3548_p5), %v4530_v23, %v2066_v20  ;;  %v2228_v33 = vadd.f32 (!%p3548_p5), %v4530_v23, %v2068_v22  ;;  %v2072_v36 = vld [vmem:[#allocation2 + $0x40] sm:$0xff] (!%p3548_p5)  ;;  %v2073_v37 = vld [vmem:[#allocation2 + $0x48] sm:$0xff] (!%p3548_p5) }
 0x240   : > { %1979 = vst [vmem:[#allocation2 + $0x218] sm:$0xff] %v1831_v39  ;;  %2055 = vst [vmem:[#allocation2 + $0x478] sm:$0xff] %v1907_v40  ;;  %v2225_v30 = vadd.f32 (!%p3548_p5), %v4532_v24, %v2065_v17  ;;  %v2227_v32 = vadd.f32 (!%p3548_p5), %v4532_v24, %v2067_v21  ;;  %v2229_v34 = vadd.f32 (!%p3548_p5), %v4532_v24, %v2069_v25  ;;  %v2086_v18 = vld [vmem:[#allocation2 + $0xb0] sm:$0xff] (!%p3548_p5)  ;;  %v2087_v19 = vld [vmem:[#allocation2 + $0xb8] sm:$0xff] (!%p3548_p5) }
 0x241   : > { %v2230_v29 = vadd.f32 (!%p3548_p5), %v4530_v23, %v2070_v26  ;;  %v2231_v35 = vadd.f32 (!%p3548_p5), %v4532_v24, %v2071_v27  ;;  %v2372_v38 = vmax.f32 (!%p3548_p5), %v2224_v28, 0.0  ;;  %v2374_v40 = vmax.f32 (!%p3548_p5), %v2226_v31, 0.0  ;;  %v2088_v26 = vld [vmem:[#allocation2 + $0xc0] sm:$0xff] (!%p3548_p5) }
 0x242   : > { %v1565_v45 = vpop.f32.mrb[68].mxu0  ;;  %v1755_v47 = vpop.f32.mrb[68].mxu1  ;;  %v2373_v39 = vmax.f32 (!%p3548_p5), %v2225_v30, 0.0  ;;  %v2245_v31 = vadd.f32 (!%p3548_p5), %v4532_v24, %v2085_v13  ;;  %v2103_v13 = vld [vmem:[#allocation2 + $0x138] sm:$0xff] (!%p3548_p5) }
 0x243   : > { %v1832_v49 = vadd.f32 %v1565_v45, %v889_v41  ;;  %v1567_v50 = vpop.f32.mrb[69].mxu0  ;;  %v1908_v52 = vadd.f32 %v1755_v47, %v965_v42  ;;  %v1757_v53 = vpop.f32.mrb[69].mxu1  ;;  %v2375_v41 = vmax.f32 (!%p3548_p5), %v2227_v32, 0.0  ;;  %v2074_v42 = vld [vmem:[#allocation2 + $0x50] sm:$0xff] (!%p3548_p5)  ;;  %v2377_v45 = vmax.f32 (!%p3548_p5), %v2229_v34, 0.0  ;;  %v2089_v32 = vld [vmem:[#allocation2 + $0xc8] sm:$0xff] (!%p3548_p5) }
 0x244   : > { %v1833_v55 = vadd.f32 %v1567_v50, %v890_v43  ;;  %v1569_v56 = vpop.f32.mrb[70].mxu0  ;;  %v1909_v57 = vadd.f32 %v1757_v53, %v966_v44  ;;  %v1759_v58 = vpop.f32.mrb[70].mxu1  ;;  %v2075_v43 = vld [vmem:[#allocation2 + $0x58] sm:$0xff] (!%p3548_p5)  ;;  %v2376_v44 = vmax.f32 (!%p3548_p5), %v2228_v33, 0.0  ;;  %v2379_v47 = vmax.f32 (!%p3548_p5), %v2231_v35, 0.0 }
 0x245   : > { %1980 = vst [vmem:[#allocation2 + $0x220] sm:$0xff] %v1832_v49  ;;  %v1834_v59 = vadd.f32 %v1569_v56, %v891_v46  ;;  %v1571_v60 = vpop.f32.mrb[71].mxu0  ;;  %2056 = vst [vmem:[#allocation2 + $0x480] sm:$0xff] %v1908_v52  ;;  %v1910_v61 = vadd.f32 %v1759_v58, %v967_v48  ;;  %v1761_v62 = vpop.f32.mrb[71].mxu1  ;;  %v2378_v46 = vmax.f32 (!%p3548_p5), %v2230_v29, 0.0  ;;  %v2076_v48 = vld [vmem:[#allocation2 + $0x60] sm:$0xff] (!%p3548_p5)  ;;  %v3627_v50 = vpack.c.bf16 (!%p3548_p5), %v2373_v39, %v2372_v38 }
 0x246   : > { %1981 = vst [vmem:[#allocation2 + $0x228] sm:$0xff] %v1833_v55  ;;  %v1835_v63 = vadd.f32 %v1571_v60, %v892_v51  ;;  %2057 = vst [vmem:[#allocation2 + $0x488] sm:$0xff] %v1909_v57  ;;  %v1911_v0 = vadd.f32 %v1761_v62, %v968_v54  ;;  %v2077_v49 = vld [vmem:[#allocation2 + $0x68] sm:$0xff] (!%p3548_p5)  ;;  %v3628_v51 = vpack.c.bf16 (!%p3548_p5), %v2375_v41, %v2374_v40  ;;  %v2078_v54 = vld [vmem:[#allocation2 + $0x70] sm:$0xff] (!%p3548_p5)  ;;  %v2393_v40 = vmax.f32 (!%p3548_p5), %v2245_v31, 0.0 }
 0x247   : > { %1982 = vst [vmem:[#allocation2 + $0x230] sm:$0xff] %v1834_v59  ;;  %2058 = vst [vmem:[#allocation2 + $0x490] sm:$0xff] %v1910_v61  ;;  %v2232_v52 = vadd.f32 (!%p3548_p5), %v4530_v23, %v2072_v36  ;;  %v2233_v53 = vadd.f32 (!%p3548_p5), %v4532_v24, %v2073_v37  ;;  %v2079_v55 = vld [vmem:[#allocation2 + $0x78] sm:$0xff] (!%p3548_p5)  ;;  %v3629_v56 = vpack.c.bf16 (!%p3548_p5), %v2377_v45, %v2376_v44  ;;  %v2080_v60 = vld [vmem:[#allocation2 + $0x80] sm:$0xff] (!%p3548_p5) }
 0x248   : > { %1983 = vst [vmem:[#allocation2 + $0x238] sm:$0xff] %v1835_v63  ;;  %2059 = vst [vmem:[#allocation2 + $0x498] sm:$0xff] %v1911_v0  ;;  %v3630_v57 = vpack.c.bf16 (!%p3548_p5), %v2379_v47, %v2378_v46  ;;  %v2234_v58 = vadd.f32 (!%p3548_p5), %v4530_v23, %v2074_v42  ;;  %v2235_v59 = vadd.f32 (!%p3548_p5), %v4532_v24, %v2075_v43  ;;  %v2090_v36 = vld [vmem:[#allocation2 + $0xd0] sm:$0xff] (!%p3548_p5)  ;;  %v2091_v37 = vld [vmem:[#allocation2 + $0xd8] sm:$0xff] (!%p3548_p5) }
 0x249   : > { %2964 = vst [vmem:[%s4283_s25] sm:$0xff] (!%p3548_p5), %v3627_v50  ;;  %2965 = vst [vmem:[%s4283_s25 + $0x8] sm:$0xff] (!%p3548_p5), %v3628_v51  ;;  %v2380_v61 = vmax.f32 (!%p3548_p5), %v2232_v52, 0.0  ;;  %v2381_v62 = vmax.f32 (!%p3548_p5), %v2233_v53, 0.0  ;;  %v2236_v63 = vadd.f32 (!%p3548_p5), %v4530_v23, %v2076_v48  ;;  %v2237_v0 = vadd.f32 (!%p3548_p5), %v4532_v24, %v2077_v49  ;;  %v2092_v42 = vld [vmem:[#allocation2 + $0xe0] sm:$0xff] (!%p3548_p5)  ;;  %v2093_v43 = vld [vmem:[#allocation2 + $0xe8] sm:$0xff] (!%p3548_p5) }
 0x24a   : > { %v1575_v3 = vpop.f32.mrb[72].mxu0  ;;  %2063 = sbr.rel (%p3548_p5) target bundleno = 677 (0x2a5), region = 119  ;;  %2966 = vst [vmem:[%s4283_s25 + $0x10] sm:$0xff] (!%p3548_p5), %v3629_v56  ;;  %2967 = vst [vmem:[%s4283_s25 + $0x18] sm:$0xff] (!%p3548_p5), %v3630_v57  ;;  %v2246_v29 = vadd.f32 (!%p3548_p5), %v4530_v23, %v2086_v18  ;;  %v2247_v35 = vadd.f32 (!%p3548_p5), %v4532_v24, %v2087_v19  ;;  %v2248_v41 = vadd.f32 (!%p3548_p5), %v4530_v23, %v2088_v26  ;;  %v2094_v48 = vld [vmem:[#allocation2 + $0xf0] sm:$0xff] (!%p3548_p5)  ;;  %v2095_v49 = vld [vmem:[#allocation2 + $0xf8] sm:$0xff] (!%p3548_p5) }
 0x24b   : > { %v1836_v5 = vadd.f32 %v1575_v3, %v893_v1  ;;  %v1577_v6 = vpop.f32.mrb[73].mxu0  ;;  %v2081_v1 = vld [vmem:[#allocation2 + $0x88] sm:$0xff] (!%p3548_p5)  ;;  %v2383_v3 = vmax.f32 (!%p3548_p5), %v2235_v59, 0.0  ;;  %v2249_v47 = vadd.f32 (!%p3548_p5), %v4532_v24, %v2089_v32  ;;  %v2250_v52 = vadd.f32 (!%p3548_p5), %v4530_v23, %v2090_v36  ;;  %v2104_v18 = vld [vmem:[#allocation2 + $0x140] sm:$0xff] (!%p3548_p5)  ;;  %v2106_v31 = vld [vmem:[#allocation2 + $0x150] sm:$0xff] (!%p3548_p5) }
 0x24c   : > { %v1837_v8 = vadd.f32 %v1577_v6, %v894_v2  ;;  %v1579_v9 = vpop.f32.mrb[74].mxu0  ;;  %v2382_v2 = vmax.f32 (!%p3548_p5), %v2234_v58, 0.0  ;;  %v2082_v6 = vld [vmem:[#allocation2 + $0x90] sm:$0xff] (!%p3548_p5)  ;;  %v2241_v17 = vadd.f32 (!%p3548_p5), %v4532_v24, %v2081_v1  ;;  %v2394_v45 = vmax.f32 (!%p3548_p5), %v2246_v29, 0.0  ;;  %v2097_v59 = vld [vmem:[#allocation2 + $0x108] sm:$0xff] (!%p3548_p5)  ;;  %v2099_v1 = vld [vmem:[#allocation2 + $0x118] sm:$0xff] (!%p3548_p5) }
 0x24d   : > { %1984 = vst [vmem:[#allocation2 + $0x240] sm:$0xff] %v1836_v5  ;;  %v1838_v10 = vadd.f32 %v1579_v9, %v895_v4  ;;  %v1581_v11 = vpop.f32.mrb[75].mxu0  ;;  %v2238_v4 = vadd.f32 (!%p3548_p5), %v4530_v23, %v2078_v54  ;;  %v2239_v5 = vadd.f32 (!%p3548_p5), %v4532_v24, %v2079_v55  ;;  %v2384_v9 = vmax.f32 (!%p3548_p5), %v2236_v63, 0.0  ;;  %v2096_v54 = vld [vmem:[#allocation2 + $0x100] sm:$0xff] (!%p3548_p5)  ;;  %v2107_v32 = vld [vmem:[#allocation2 + $0x158] sm:$0xff] (!%p3548_p5) }
 0x24e   : > { %1985 = vst [vmem:[#allocation2 + $0x248] sm:$0xff] %v1837_v8  ;;  %v1839_v12 = vadd.f32 %v1581_v11, %v896_v7  ;;  %v2083_v7 = vld [vmem:[#allocation2 + $0x98] sm:$0xff] (!%p3548_p5)  ;;  %v3631_v8 = vpack.c.bf16 (!%p3548_p5), %v2381_v62, %v2380_v61  ;;  %v2240_v11 = vadd.f32 (!%p3548_p5), %v4530_v23, %v2080_v60  ;;  %v3632_v14 = vpack.c.bf16 (!%p3548_p5), %v2383_v3, %v2382_v2  ;;  %v2108_v36 = vld [vmem:[#allocation2 + $0x160] sm:$0xff] (!%p3548_p5) }
 0x24f   : > { %1986 = vst [vmem:[#allocation2 + $0x250] sm:$0xff] %v1838_v10  ;;  %v2385_v10 = vmax.f32 (!%p3548_p5), %v2237_v0, 0.0  ;;  %v2386_v15 = vmax.f32 (!%p3548_p5), %v2238_v4, 0.0  ;;  %v2387_v16 = vmax.f32 (!%p3548_p5), %v2239_v5, 0.0  ;;  %v2242_v22 = vadd.f32 (!%p3548_p5), %v4530_v23, %v2082_v6  ;;  %v2098_v0 = vld [vmem:[#allocation2 + $0x110] sm:$0xff] (!%p3548_p5)  ;;  %v2100_v6 = vld [vmem:[#allocation2 + $0x120] sm:$0xff] (!%p3548_p5) }
 0x250   : > { %1987 = vst [vmem:[#allocation2 + $0x258] sm:$0xff] %v1839_v12  ;;  %v2084_v12 = vld [vmem:[#allocation2 + $0xa0] sm:$0xff] (!%p3548_p5)  ;;  %2968 = vst [vmem:[%s4283_s25 + $0x20] sm:$0xff] (!%p3548_p5), %v3631_v8  ;;  %v2388_v21 = vmax.f32 (!%p3548_p5), %v2240_v11, 0.0  ;;  %v2243_v25 = vadd.f32 (!%p3548_p5), %v4532_v24, %v2083_v7  ;;  %v2389_v28 = vmax.f32 (!%p3548_p5), %v2241_v17, 0.0  ;;  %v2395_v46 = vmax.f32 (!%p3548_p5), %v2247_v35, 0.0 }
 0x251   : > { %v3633_v20 = vpack.c.bf16 %v2385_v10, %v2384_v9  ;;  %2969 = vst [vmem:[%s4283_s25 + $0x28] sm:$0xff] %v3632_v14  ;;  %v3634_v27 = vpack.c.bf16 %v2387_v16, %v2386_v15  ;;  %v2244_v30 = vadd.f32 %v4530_v23, %v2084_v12  ;;  %v2390_v33 = vmax.f32 %v2242_v22, 0.0  ;;  %v2101_v7 = vld [vmem:[#allocation2 + $0x128] sm:$0xff]  ;;  %v2102_v12 = vld [vmem:[#allocation2 + $0x130] sm:$0xff] }
 0x252   : > { %v2391_v34 = vmax.f32 %v2243_v25, 0.0  ;;  %v3635_v38 = vpack.c.bf16 %v2389_v28, %v2388_v21  ;;  %v2396_v51 = vmax.f32 %v2248_v41, 0.0  ;;  %v2251_v53 = vadd.f32 %v4532_v24, %v2091_v37  ;;  %v2105_v25 = vld [vmem:[#allocation2 + $0x148] sm:$0xff] }
 0x253   : > { %2970 = vst [vmem:[%s4283_s25 + $0x30] sm:$0xff] %v3633_v20  ;;  %2971 = vst [vmem:[%s4283_s25 + $0x38] sm:$0xff] %v3634_v27  ;;  %v2392_v39 = vmax.f32 %v2244_v30, 0.0  ;;  %v3638_v55 = vpack.c.bf16 %v2395_v46, %v2394_v45  ;;  %v2397_v56 = vmax.f32 %v2249_v47, 0.0  ;;  %v2252_v57 = vadd.f32 %v4530_v23, %v2092_v42  ;;  %v2109_v37 = vld [vmem:[#allocation2 + $0x168] sm:$0xff]  ;;  %v2110_v42 = vld [vmem:[#allocation2 + $0x170] sm:$0xff] }
 0x254   : > { %v3636_v44 = vpack.c.bf16 %v2391_v34, %v2390_v33  ;;  %2972 = vst [vmem:[%s4283_s25 + $0x40] sm:$0xff] %v3635_v38  ;;  %v2253_v58 = vadd.f32 %v4532_v24, %v2093_v43  ;;  %v2398_v60 = vmax.f32 %v2250_v52, 0.0  ;;  %v2399_v61 = vmax.f32 %v2251_v53, 0.0  ;;  %v2111_v43 = vld [vmem:[#allocation2 + $0x178] sm:$0xff]  ;;  %v2113_v53 = vld [vmem:[#allocation2 + $0x188] sm:$0xff] }
 0x255   : > { %v3637_v50 = vpack.c.bf16 %v2393_v40, %v2392_v39  ;;  %v2254_v62 = vadd.f32 %v4530_v23, %v2094_v48  ;;  %v2255_v63 = vadd.f32 %v4532_v24, %v2095_v49  ;;  %2975 = vst [vmem:[%s4283_s25 + $0x58] sm:$0xff] %v3638_v55  ;;  %v3639_v2 = vpack.c.bf16 %v2397_v56, %v2396_v51  ;;  %v2112_v48 = vld [vmem:[#allocation2 + $0x180] sm:$0xff] }
 0x256   : > { %2973 = vst [vmem:[%s4283_s25 + $0x48] sm:$0xff] %v3636_v44  ;;  %v2400_v3 = vmax.f32 %v2252_v57, 0.0  ;;  %v2401_v4 = vmax.f32 %v2253_v58, 0.0  ;;  %v2256_v5 = vadd.f32 %v4530_v23, %v2096_v54  ;;  %v3640_v8 = vpack.c.bf16 %v2399_v61, %v2398_v60  ;;  %v2114_v58 = vld [vmem:[#allocation2 + $0x190] sm:$0xff] }
 0x257   : > { %2974 = vst [vmem:[%s4283_s25 + $0x50] sm:$0xff] %v3637_v50  ;;  %v2402_v9 = vmax.f32 %v2254_v62, 0.0  ;;  %v2403_v10 = vmax.f32 %v2255_v63, 0.0  ;;  %v2257_v11 = vadd.f32 %v4532_v24, %v2097_v59  ;;  %2976 = vst [vmem:[%s4283_s25 + $0x60] sm:$0xff] %v3639_v2  ;;  %v2258_v16 = vadd.f32 %v4530_v23, %v2098_v0  ;;  %v2115_v59 = vld [vmem:[#allocation2 + $0x198] sm:$0xff]  ;;  %v2116_v0 = vld [vmem:[#allocation2 + $0x1a0] sm:$0xff] }
 0x258   : > { %v3641_v14 = vpack.c.bf16 %v2401_v4, %v2400_v3  ;;  %v2404_v15 = vmax.f32 %v2256_v5, 0.0  ;;  %v2259_v17 = vadd.f32 %v4532_v24, %v2099_v1  ;;  %2977 = vst [vmem:[%s4283_s25 + $0x68] sm:$0xff] %v3640_v8  ;;  %v2260_v21 = vadd.f32 %v4530_v23, %v2100_v6  ;;  %v2117_v1 = vld [vmem:[#allocation2 + $0x1a8] sm:$0xff]  ;;  %v2118_v6 = vld [vmem:[#allocation2 + $0x1b0] sm:$0xff] }
 0x259   : > { %v3642_v19 = vpack.c.bf16 %v2403_v10, %v2402_v9  ;;  %v2405_v20 = vmax.f32 %v2257_v11, 0.0  ;;  %v2261_v22 = vadd.f32 %v4532_v24, %v2101_v7  ;;  %v2406_v26 = vmax.f32 %v2258_v16, 0.0  ;;  %v2119_v7 = vld [vmem:[#allocation2 + $0x1b8] sm:$0xff] }
 0x25a   : > { %2978 = vst [vmem:[%s4283_s25 + $0x70] sm:$0xff] %v3641_v14  ;;  %v2407_v27 = vmax.f32 %v2259_v17, 0.0  ;;  %v2262_v28 = vadd.f32 %v4530_v23, %v2102_v12  ;;  %v2263_v30 = vadd.f32 %v4532_v24, %v2103_v13  ;;  %v2408_v34 = vmax.f32 %v2260_v21, 0.0  ;;  %v2120_v12 = vld [vmem:[#allocation2 + $0x1c0] sm:$0xff]  ;;  %v2121_v17 = vld [vmem:[#allocation2 + $0x1c8] sm:$0xff] }
 0x25b   : > { %2979 = vst [vmem:[%s4283_s25 + $0x78] sm:$0xff] %v3642_v19  ;;  %v3643_v33 = vpack.c.bf16 %v2405_v20, %v2404_v15  ;;  %v2409_v29 = vmax.f32 %v2261_v22, 0.0  ;;  %v2264_v35 = vadd.f32 %v4530_v23, %v2104_v18  ;;  %v2265_v41 = vadd.f32 %v4532_v24, %v2105_v25  ;;  %v2122_v22 = vld [vmem:[#allocation2 + $0x1d0] sm:$0xff]  ;;  %v2123_v25 = vld [vmem:[#allocation2 + $0x1d8] sm:$0xff] }
 0x25c   : > { %v3644_v38 = vpack.c.bf16 %v2407_v27, %v2406_v26  ;;  %v2410_v39 = vmax.f32 %v2262_v28, 0.0  ;;  %v2411_v40 = vmax.f32 %v2263_v30, 0.0  ;;  %v2266_v46 = vadd.f32 %v4530_v23, %v2106_v31  ;;  %v2124_v31 = vld [vmem:[#allocation2 + $0x1e0] sm:$0xff] }
 0x25d   : > { %2980 = vst [vmem:[%s4283_s25 + $0x80] sm:$0xff] %v3643_v33  ;;  %v3645_v44 = vpack.c.bf16 %v2409_v29, %v2408_v34  ;;  %v2412_v45 = vmax.f32 %v2264_v35, 0.0  ;;  %v2267_v47 = vadd.f32 %v4532_v24, %v2107_v32  ;;  %v2413_v50 = vmax.f32 %v2265_v41, 0.0  ;;  %v2125_v32 = vld [vmem:[#allocation2 + $0x1e8] sm:$0xff] }
 0x25e   : > { %2981 = vst [vmem:[%s4283_s25 + $0x88] sm:$0xff] %v3644_v38  ;;  %v3646_v49 = vpack.c.bf16 %v2411_v40, %v2410_v39  ;;  %v2268_v51 = vadd.f32 %v4530_v23, %v2108_v36  ;;  %v2269_v52 = vadd.f32 %v4532_v24, %v2109_v37  ;;  %v2414_v54 = vmax.f32 %v2266_v46, 0.0  ;;  %v2126_v36 = vld [vmem:[#allocation2 + $0x1f0] sm:$0xff]  ;;  %v2127_v37 = vld [vmem:[#allocation2 + $0x1f8] sm:$0xff] }
 0x25f   : > { %2982 = vst [vmem:[%s4283_s25 + $0x90] sm:$0xff] %v3645_v44  ;;  %v2415_v55 = vmax.f32 %v2267_v47, 0.0  ;;  %v2270_v56 = vadd.f32 %v4530_v23, %v2110_v42  ;;  %v2271_v57 = vadd.f32 %v4532_v24, %v2111_v43  ;;  %v3647_v60 = vpack.c.bf16 %v2413_v50, %v2412_v45  ;;  %v2128_v42 = vld [vmem:[#allocation2 + $0x200] sm:$0xff]  ;;  %v2129_v47 = vld [vmem:[#allocation2 + $0x208] sm:$0xff] }
 0x260   : > { %2983 = vst [vmem:[%s4283_s25 + $0x98] sm:$0xff] %v3646_v49  ;;  %v2416_v61 = vmax.f32 %v2268_v51, 0.0  ;;  %v2417_v62 = vmax.f32 %v2269_v52, 0.0  ;;  %v2272_v63 = vadd.f32 %v4530_v23, %v2112_v48  ;;  %v2273_v5 = vadd.f32 %v4532_v24, %v2113_v53  ;;  %v2130_v52 = vld [vmem:[#allocation2 + $0x210] sm:$0xff]  ;;  %v2131_v53 = vld [vmem:[#allocation2 + $0x218] sm:$0xff] }
 0x261   : > { %v3648_v2 = vpack.c.bf16 %v2415_v55, %v2414_v54  ;;  %v2418_v3 = vmax.f32 %v2270_v56, 0.0  ;;  %v2419_v4 = vmax.f32 %v2271_v57, 0.0  ;;  %2984 = vst [vmem:[%s4283_s25 + $0xa0] sm:$0xff] %v3647_v60  ;;  %v2274_v10 = vadd.f32 %v4530_v23, %v2114_v58  ;;  %v2132_v58 = vld [vmem:[#allocation2 + $0x220] sm:$0xff] }
 0x262   : > { %v3649_v8 = vpack.c.bf16 %v2417_v62, %v2416_v61  ;;  %v2420_v9 = vmax.f32 %v2272_v63, 0.0  ;;  %v2275_v11 = vadd.f32 %v4532_v24, %v2115_v59  ;;  %v2421_v14 = vmax.f32 %v2273_v5, 0.0  ;;  %v2133_v59 = vld [vmem:[#allocation2 + $0x228] sm:$0xff] }
 0x263   : > { %2985 = vst [vmem:[%s4283_s25 + $0xa8] sm:$0xff] %v3648_v2  ;;  %v3650_v13 = vpack.c.bf16 %v2419_v4, %v2418_v3  ;;  %v2276_v15 = vadd.f32 %v4530_v23, %v2116_v0  ;;  %v2277_v16 = vadd.f32 %v4532_v24, %v2117_v1  ;;  %v2422_v18 = vmax.f32 %v2274_v10, 0.0  ;;  %v2134_v0 = vld [vmem:[#allocation2 + $0x230] sm:$0xff]  ;;  %v2135_v1 = vld [vmem:[#allocation2 + $0x238] sm:$0xff] }
 0x264   : > { %2986 = vst [vmem:[%s4283_s25 + $0xb0] sm:$0xff] %v3649_v8  ;;  %v2423_v19 = vmax.f32 %v2275_v11, 0.0  ;;  %v2278_v20 = vadd.f32 %v4530_v23, %v2118_v6  ;;  %v2279_v21 = vadd.f32 %v4532_v24, %v2119_v7  ;;  %v3651_v26 = vpack.c.bf16 %v2421_v14, %v2420_v9  ;;  %v2136_v6 = vld [vmem:[#allocation2 + $0x240] sm:$0xff]  ;;  %v2137_v11 = vld [vmem:[#allocation2 + $0x248] sm:$0xff] }
 0x265   : > { %2987 = vst [vmem:[%s4283_s25 + $0xb8] sm:$0xff] %v3650_v13  ;;  %v2424_v27 = vmax.f32 %v2276_v15, 0.0  ;;  %v2425_v28 = vmax.f32 %v2277_v16, 0.0  ;;  %v2280_v30 = vadd.f32 %v4530_v23, %v2120_v12  ;;  %v2281_v35 = vadd.f32 %v4532_v24, %v2121_v17  ;;  %v2138_v16 = vld [vmem:[#allocation2 + $0x250] sm:$0xff]  ;;  %v2139_v17 = vld [vmem:[#allocation2 + $0x258] sm:$0xff] }
 0x266   : > { %v3652_v33 = vpack.c.bf16 %v2423_v19, %v2422_v18  ;;  %v2426_v34 = vmax.f32 %v2278_v20, 0.0  ;;  %v2427_v29 = vmax.f32 %v2279_v21, 0.0  ;;  %2988 = vst [vmem:[%s4283_s25 + $0xc0] sm:$0xff] %v3651_v26  ;;  %v2282_v40 = vadd.f32 %v4530_v23, %v2122_v22  ;;  %v2140_v22 = vld [vmem:[#allocation2 + $0x260] sm:$0xff] }
 0x267   : > { %v3653_v38 = vpack.c.bf16 %v2425_v28, %v2424_v27  ;;  %v2428_v39 = vmax.f32 %v2280_v30, 0.0  ;;  %v2283_v41 = vadd.f32 %v4532_v24, %v2123_v25  ;;  %v2429_v44 = vmax.f32 %v2281_v35, 0.0  ;;  %v2141_v25 = vld [vmem:[#allocation2 + $0x268] sm:$0xff] }
 0x268   : > { %2989 = vst [vmem:[%s4283_s25 + $0xc8] sm:$0xff] %v3652_v33  ;;  %v3654_v43 = vpack.c.bf16 %v2427_v29, %v2426_v34  ;;  %v2284_v45 = vadd.f32 %v4530_v23, %v2124_v31  ;;  %v2285_v46 = vadd.f32 %v4532_v24, %v2125_v32  ;;  %v2430_v48 = vmax.f32 %v2282_v40, 0.0  ;;  %v2142_v31 = vld [vmem:[#allocation2 + $0x270] sm:$0xff]  ;;  %v2143_v32 = vld [vmem:[#allocation2 + $0x278] sm:$0xff] }
 0x269   : > { %2990 = vst [vmem:[%s4283_s25 + $0xd0] sm:$0xff] %v3653_v38  ;;  %v2431_v49 = vmax.f32 %v2283_v41, 0.0  ;;  %v2286_v50 = vadd.f32 %v4530_v23, %v2126_v36  ;;  %v2287_v51 = vadd.f32 %v4532_v24, %v2127_v37  ;;  %v3655_v54 = vpack.c.bf16 %v2429_v44, %v2428_v39  ;;  %v2144_v36 = vld [vmem:[#allocation2 + $0x280] sm:$0xff]  ;;  %v2145_v41 = vld [vmem:[#allocation2 + $0x288] sm:$0xff] }
 0x26a   : > { %2991 = vst [vmem:[%s4283_s25 + $0xd8] sm:$0xff] %v3654_v43  ;;  %v2432_v55 = vmax.f32 %v2284_v45, 0.0  ;;  %v2433_v56 = vmax.f32 %v2285_v46, 0.0  ;;  %v2288_v57 = vadd.f32 %v4530_v23, %v2128_v42  ;;  %v2289_v63 = vadd.f32 %v4532_v24, %v2129_v47  ;;  %v2146_v46 = vld [vmem:[#allocation2 + $0x290] sm:$0xff]  ;;  %v2147_v47 = vld [vmem:[#allocation2 + $0x298] sm:$0xff] }
 0x26b   : > { %v3656_v60 = vpack.c.bf16 %v2431_v49, %v2430_v48  ;;  %v2434_v61 = vmax.f32 %v2286_v50, 0.0  ;;  %v2435_v62 = vmax.f32 %v2287_v51, 0.0  ;;  %2992 = vst [vmem:[%s4283_s25 + $0xe0] sm:$0xff] %v3655_v54  ;;  %v2290_v4 = vadd.f32 %v4530_v23, %v2130_v52  ;;  %v2148_v52 = vld [vmem:[#allocation2 + $0x2a0] sm:$0xff] }
 0x26c   : > { %v3657_v2 = vpack.c.bf16 %v2433_v56, %v2432_v55  ;;  %v2436_v3 = vmax.f32 %v2288_v57, 0.0  ;;  %v2291_v5 = vadd.f32 %v4532_v24, %v2131_v53  ;;  %v2437_v8 = vmax.f32 %v2289_v63, 0.0  ;;  %v2149_v53 = vld [vmem:[#allocation2 + $0x2a8] sm:$0xff] }
 0x26d   : > { %2993 = vst [vmem:[%s4283_s25 + $0xe8] sm:$0xff] %v3656_v60  ;;  %v3658_v7 = vpack.c.bf16 %v2435_v62, %v2434_v61  ;;  %v2292_v9 = vadd.f32 %v4530_v23, %v2132_v58  ;;  %v2293_v10 = vadd.f32 %v4532_v24, %v2133_v59  ;;  %v2438_v12 = vmax.f32 %v2290_v4, 0.0  ;;  %v2150_v58 = vld [vmem:[#allocation2 + $0x2b0] sm:$0xff]  ;;  %v2151_v59 = vld [vmem:[#allocation2 + $0x2b8] sm:$0xff] }
 0x26e   : > { %2994 = vst [vmem:[%s4283_s25 + $0xf0] sm:$0xff] %v3657_v2  ;;  %v2439_v13 = vmax.f32 %v2291_v5, 0.0  ;;  %v2294_v14 = vadd.f32 %v4530_v23, %v2134_v0  ;;  %v2295_v15 = vadd.f32 %v4532_v24, %v2135_v1  ;;  %v3659_v18 = vpack.c.bf16 %v2437_v8, %v2436_v3  ;;  %v2152_v0 = vld [vmem:[#allocation2 + $0x2c0] sm:$0xff]  ;;  %v2153_v5 = vld [vmem:[#allocation2 + $0x2c8] sm:$0xff] }
 0x26f   : > { %2995 = vst [vmem:[%s4283_s25 + $0xf8] sm:$0xff] %v3658_v7  ;;  %v2440_v19 = vmax.f32 %v2292_v9, 0.0  ;;  %v2441_v20 = vmax.f32 %v2293_v10, 0.0  ;;  %v2296_v21 = vadd.f32 %v4530_v23, %v2136_v6  ;;  %v2297_v30 = vadd.f32 %v4532_v24, %v2137_v11  ;;  %v2154_v10 = vld [vmem:[#allocation2 + $0x2d0] sm:$0xff]  ;;  %v2155_v11 = vld [vmem:[#allocation2 + $0x2d8] sm:$0xff] }
 0x270   : > { %v3660_v26 = vpack.c.bf16 %v2439_v13, %v2438_v12  ;;  %v2442_v27 = vmax.f32 %v2294_v14, 0.0  ;;  %v2443_v28 = vmax.f32 %v2295_v15, 0.0  ;;  %2996 = vst [vmem:[%s4283_s25 + $0x100] sm:$0xff] %v3659_v18  ;;  %v2298_v29 = vadd.f32 %v4530_v23, %v2138_v16  ;;  %v2156_v16 = vld [vmem:[#allocation2 + $0x2e0] sm:$0xff] }
 0x271   : > { %v3661_v33 = vpack.c.bf16 %v2441_v20, %v2440_v19  ;;  %v2444_v34 = vmax.f32 %v2296_v21, 0.0  ;;  %v2299_v35 = vadd.f32 %v4532_v24, %v2139_v17  ;;  %v2445_v38 = vmax.f32 %v2297_v30, 0.0  ;;  %v2157_v17 = vld [vmem:[#allocation2 + $0x2e8] sm:$0xff] }
 0x272   : > { %2997 = vst [vmem:[%s4283_s25 + $0x108] sm:$0xff] %v3660_v26  ;;  %v3662_v37 = vpack.c.bf16 %v2443_v28, %v2442_v27  ;;  %v2300_v39 = vadd.f32 %v4530_v23, %v2140_v22  ;;  %v2301_v40 = vadd.f32 %v4532_v24, %v2141_v25  ;;  %v2446_v42 = vmax.f32 %v2298_v29, 0.0  ;;  %v2158_v22 = vld [vmem:[#allocation2 + $0x2f0] sm:$0xff]  ;;  %v2159_v25 = vld [vmem:[#allocation2 + $0x2f8] sm:$0xff] }
 0x273   : > { %2998 = vst [vmem:[%s4283_s25 + $0x110] sm:$0xff] %v3661_v33  ;;  %v2447_v43 = vmax.f32 %v2299_v35, 0.0  ;;  %v2302_v44 = vadd.f32 %v4530_v23, %v2142_v31  ;;  %v2303_v45 = vadd.f32 %v4532_v24, %v2143_v32  ;;  %v3663_v48 = vpack.c.bf16 %v2445_v38, %v2444_v34  ;;  %v2160_v31 = vld [vmem:[#allocation2 + $0x300] sm:$0xff]  ;;  %v2161_v35 = vld [vmem:[#allocation2 + $0x308] sm:$0xff] }
 0x274   : > { %2999 = vst [vmem:[%s4283_s25 + $0x118] sm:$0xff] %v3662_v37  ;;  %v2448_v49 = vmax.f32 %v2300_v39, 0.0  ;;  %v2449_v50 = vmax.f32 %v2301_v40, 0.0  ;;  %v2304_v51 = vadd.f32 %v4530_v23, %v2144_v36  ;;  %v2305_v57 = vadd.f32 %v4532_v24, %v2145_v41  ;;  %v2162_v40 = vld [vmem:[#allocation2 + $0x310] sm:$0xff]  ;;  %v2163_v41 = vld [vmem:[#allocation2 + $0x318] sm:$0xff] }
 0x275   : > { %v3664_v54 = vpack.c.bf16 %v2447_v43, %v2446_v42  ;;  %v2450_v55 = vmax.f32 %v2302_v44, 0.0  ;;  %v2451_v56 = vmax.f32 %v2303_v45, 0.0  ;;  %3000 = vst [vmem:[%s4283_s25 + $0x120] sm:$0xff] %v3663_v48  ;;  %v2306_v62 = vadd.f32 %v4530_v23, %v2146_v46  ;;  %v2164_v46 = vld [vmem:[#allocation2 + $0x320] sm:$0xff] }
 0x276   : > { %v3665_v60 = vpack.c.bf16 %v2449_v50, %v2448_v49  ;;  %v2452_v61 = vmax.f32 %v2304_v51, 0.0  ;;  %v2307_v63 = vadd.f32 %v4532_v24, %v2147_v47  ;;  %v2453_v2 = vmax.f32 %v2305_v57, 0.0  ;;  %v2165_v47 = vld [vmem:[#allocation2 + $0x328] sm:$0xff] }
 0x277   : > { %3001 = vst [vmem:[%s4283_s25 + $0x128] sm:$0xff] %v3664_v54  ;;  %v3666_v1 = vpack.c.bf16 %v2451_v56, %v2450_v55  ;;  %v2308_v3 = vadd.f32 %v4530_v23, %v2148_v52  ;;  %v2309_v4 = vadd.f32 %v4532_v24, %v2149_v53  ;;  %v2454_v6 = vmax.f32 %v2306_v62, 0.0  ;;  %v2166_v52 = vld [vmem:[#allocation2 + $0x330] sm:$0xff]  ;;  %v2167_v53 = vld [vmem:[#allocation2 + $0x338] sm:$0xff] }
 0x278   : > { %3002 = vst [vmem:[%s4283_s25 + $0x130] sm:$0xff] %v3665_v60  ;;  %v2455_v7 = vmax.f32 %v2307_v63, 0.0  ;;  %v2310_v8 = vadd.f32 %v4530_v23, %v2150_v58  ;;  %v2311_v9 = vadd.f32 %v4532_v24, %v2151_v59  ;;  %v3667_v12 = vpack.c.bf16 %v2453_v2, %v2452_v61  ;;  %v2168_v58 = vld [vmem:[#allocation2 + $0x340] sm:$0xff]  ;;  %v2169_v63 = vld [vmem:[#allocation2 + $0x348] sm:$0xff] }
 0x279   : > { %3003 = vst [vmem:[%s4283_s25 + $0x138] sm:$0xff] %v3666_v1  ;;  %v2456_v13 = vmax.f32 %v2308_v3, 0.0  ;;  %v2457_v14 = vmax.f32 %v2309_v4, 0.0  ;;  %v2312_v15 = vadd.f32 %v4530_v23, %v2152_v0  ;;  %v2313_v21 = vadd.f32 %v4532_v24, %v2153_v5  ;;  %v2170_v4 = vld [vmem:[#allocation2 + $0x350] sm:$0xff]  ;;  %v2171_v5 = vld [vmem:[#allocation2 + $0x358] sm:$0xff] }
 0x27a   : > { %v3668_v18 = vpack.c.bf16 %v2455_v7, %v2454_v6  ;;  %v2458_v19 = vmax.f32 %v2310_v8, 0.0  ;;  %v2459_v20 = vmax.f32 %v2311_v9, 0.0  ;;  %3004 = vst [vmem:[%s4283_s25 + $0x140] sm:$0xff] %v3667_v12  ;;  %v2314_v28 = vadd.f32 %v4530_v23, %v2154_v10  ;;  %v2172_v10 = vld [vmem:[#allocation2 + $0x360] sm:$0xff] }
 0x27b   : > { %v3669_v26 = vpack.c.bf16 %v2457_v14, %v2456_v13  ;;  %v2460_v27 = vmax.f32 %v2312_v15, 0.0  ;;  %v2315_v30 = vadd.f32 %v4532_v24, %v2155_v11  ;;  %v2461_v33 = vmax.f32 %v2313_v21, 0.0  ;;  %v2173_v11 = vld [vmem:[#allocation2 + $0x368] sm:$0xff] }
 0x27c   : > { %3005 = vst [vmem:[%s4283_s25 + $0x148] sm:$0xff] %v3668_v18  ;;  %v3670_v32 = vpack.c.bf16 %v2459_v20, %v2458_v19  ;;  %v2316_v34 = vadd.f32 %v4530_v23, %v2156_v16  ;;  %v2317_v29 = vadd.f32 %v4532_v24, %v2157_v17  ;;  %v2462_v36 = vmax.f32 %v2314_v28, 0.0  ;;  %v2174_v16 = vld [vmem:[#allocation2 + $0x370] sm:$0xff]  ;;  %v2175_v17 = vld [vmem:[#allocation2 + $0x378] sm:$0xff] }
 0x27d   : > { %3006 = vst [vmem:[%s4283_s25 + $0x150] sm:$0xff] %v3669_v26  ;;  %v2463_v37 = vmax.f32 %v2315_v30, 0.0  ;;  %v2318_v38 = vadd.f32 %v4530_v23, %v2158_v22  ;;  %v2319_v39 = vadd.f32 %v4532_v24, %v2159_v25  ;;  %v3671_v42 = vpack.c.bf16 %v2461_v33, %v2460_v27  ;;  %v2176_v22 = vld [vmem:[#allocation2 + $0x380] sm:$0xff]  ;;  %v2177_v30 = vld [vmem:[#allocation2 + $0x388] sm:$0xff] }
 0x27e   : > { %3007 = vst [vmem:[%s4283_s25 + $0x158] sm:$0xff] %v3670_v32  ;;  %v2464_v43 = vmax.f32 %v2316_v34, 0.0  ;;  %v2465_v44 = vmax.f32 %v2317_v29, 0.0  ;;  %v2320_v45 = vadd.f32 %v4530_v23, %v2160_v31  ;;  %v2321_v51 = vadd.f32 %v4532_v24, %v2161_v35  ;;  %v2178_v29 = vld [vmem:[#allocation2 + $0x390] sm:$0xff]  ;;  %v2179_v35 = vld [vmem:[#allocation2 + $0x398] sm:$0xff] }
 0x27f   : > { %v3672_v48 = vpack.c.bf16 %v2463_v37, %v2462_v36  ;;  %v2466_v49 = vmax.f32 %v2318_v38, 0.0  ;;  %v2467_v50 = vmax.f32 %v2319_v39, 0.0  ;;  %3008 = vst [vmem:[%s4283_s25 + $0x160] sm:$0xff] %v3671_v42  ;;  %v2322_v56 = vadd.f32 %v4530_v23, %v2162_v40  ;;  %v2180_v40 = vld [vmem:[#allocation2 + $0x3a0] sm:$0xff] }
 0x280   : > { %v3673_v54 = vpack.c.bf16 %v2465_v44, %v2464_v43  ;;  %v2468_v55 = vmax.f32 %v2320_v45, 0.0  ;;  %v2323_v57 = vadd.f32 %v4532_v24, %v2163_v41  ;;  %v2469_v60 = vmax.f32 %v2321_v51, 0.0  ;;  %v2181_v41 = vld [vmem:[#allocation2 + $0x3a8] sm:$0xff] }
 0x281   : > { %3009 = vst [vmem:[%s4283_s25 + $0x168] sm:$0xff] %v3672_v48  ;;  %v3674_v59 = vpack.c.bf16 %v2467_v50, %v2466_v49  ;;  %v2324_v61 = vadd.f32 %v4530_v23, %v2164_v46  ;;  %v2325_v62 = vadd.f32 %v4532_v24, %v2165_v47  ;;  %v2470_v0 = vmax.f32 %v2322_v56, 0.0  ;;  %v2182_v46 = vld [vmem:[#allocation2 + $0x3b0] sm:$0xff]  ;;  %v2183_v47 = vld [vmem:[#allocation2 + $0x3b8] sm:$0xff] }
 0x282   : > { %3010 = vst [vmem:[%s4283_s25 + $0x170] sm:$0xff] %v3673_v54  ;;  %v2471_v1 = vmax.f32 %v2323_v57, 0.0  ;;  %v2326_v2 = vadd.f32 %v4530_v23, %v2166_v52  ;;  %v2327_v3 = vadd.f32 %v4532_v24, %v2167_v53  ;;  %v3675_v6 = vpack.c.bf16 %v2469_v60, %v2468_v55  ;;  %v2184_v52 = vld [vmem:[#allocation2 + $0x3c0] sm:$0xff]  ;;  %v2185_v57 = vld [vmem:[#allocation2 + $0x3c8] sm:$0xff] }
 0x283   : > { %3011 = vst [vmem:[%s4283_s25 + $0x178] sm:$0xff] %v3674_v59  ;;  %v2472_v7 = vmax.f32 %v2324_v61, 0.0  ;;  %v2473_v8 = vmax.f32 %v2325_v62, 0.0  ;;  %v2328_v9 = vadd.f32 %v4530_v23, %v2168_v58  ;;  %v2329_v15 = vadd.f32 %v4532_v24, %v2169_v63  ;;  %v2186_v62 = vld [vmem:[#allocation2 + $0x3d0] sm:$0xff]  ;;  %v2187_v63 = vld [vmem:[#allocation2 + $0x3d8] sm:$0xff] }
 0x284   : > { %v3676_v12 = vpack.c.bf16 %v2471_v1, %v2470_v0  ;;  %v2474_v13 = vmax.f32 %v2326_v2, 0.0  ;;  %v2475_v14 = vmax.f32 %v2327_v3, 0.0  ;;  %3012 = vst [vmem:[%s4283_s25 + $0x180] sm:$0xff] %v3675_v6  ;;  %v2330_v20 = vadd.f32 %v4530_v23, %v2170_v4  ;;  %v2188_v4 = vld [vmem:[#allocation2 + $0x3e0] sm:$0xff] }
 0x285   : > { %v3677_v18 = vpack.c.bf16 %v2473_v8, %v2472_v7  ;;  %v2476_v19 = vmax.f32 %v2328_v9, 0.0  ;;  %v2331_v21 = vadd.f32 %v4532_v24, %v2171_v5  ;;  %v2477_v26 = vmax.f32 %v2329_v15, 0.0  ;;  %v2189_v5 = vld [vmem:[#allocation2 + $0x3e8] sm:$0xff] }
 0x286   : > { %3013 = vst [vmem:[%s4283_s25 + $0x188] sm:$0xff] %v3676_v12  ;;  %v3678_v25 = vpack.c.bf16 %v2475_v14, %v2474_v13  ;;  %v2332_v27 = vadd.f32 %v4530_v23, %v2172_v10  ;;  %v2333_v28 = vadd.f32 %v4532_v24, %v2173_v11  ;;  %v2478_v31 = vmax.f32 %v2330_v20, 0.0  ;;  %v2190_v10 = vld [vmem:[#allocation2 + $0x3f0] sm:$0xff]  ;;  %v2191_v11 = vld [vmem:[#allocation2 + $0x3f8] sm:$0xff] }
 0x287   : > { %3014 = vst [vmem:[%s4283_s25 + $0x190] sm:$0xff] %v3677_v18  ;;  %v2479_v32 = vmax.f32 %v2331_v21, 0.0  ;;  %v2334_v33 = vadd.f32 %v4530_v23, %v2174_v16  ;;  %v2335_v34 = vadd.f32 %v4532_v24, %v2175_v17  ;;  %v3679_v36 = vpack.c.bf16 %v2477_v26, %v2476_v19  ;;  %v2192_v16 = vld [vmem:[#allocation2 + $0x400] sm:$0xff]  ;;  %v2193_v21 = vld [vmem:[#allocation2 + $0x408] sm:$0xff] }
 0x288   : > { %3015 = vst [vmem:[%s4283_s25 + $0x198] sm:$0xff] %v3678_v25  ;;  %v2480_v37 = vmax.f32 %v2332_v27, 0.0  ;;  %v2481_v38 = vmax.f32 %v2333_v28, 0.0  ;;  %v2336_v39 = vadd.f32 %v4530_v23, %v2176_v22  ;;  %v2337_v45 = vadd.f32 %v4532_v24, %v2177_v30  ;;  %v2194_v28 = vld [vmem:[#allocation2 + $0x410] sm:$0xff]  ;;  %v2195_v30 = vld [vmem:[#allocation2 + $0x418] sm:$0xff] }
 0x289   : > { %v3680_v42 = vpack.c.bf16 %v2479_v32, %v2478_v31  ;;  %v2482_v43 = vmax.f32 %v2334_v33, 0.0  ;;  %v2483_v44 = vmax.f32 %v2335_v34, 0.0  ;;  %3016 = vst [vmem:[%s4283_s25 + $0x1a0] sm:$0xff] %v3679_v36  ;;  %v2338_v50 = vadd.f32 %v4530_v23, %v2178_v29  ;;  %v2196_v29 = vld [vmem:[#allocation2 + $0x420] sm:$0xff] }
 0x28a   : > { %v3681_v48 = vpack.c.bf16 %v2481_v38, %v2480_v37  ;;  %v2484_v49 = vmax.f32 %v2336_v39, 0.0  ;;  %v2339_v51 = vadd.f32 %v4532_v24, %v2179_v35  ;;  %v2485_v54 = vmax.f32 %v2337_v45, 0.0  ;;  %v2197_v35 = vld [vmem:[#allocation2 + $0x428] sm:$0xff] }
 0x28b   : > { %3017 = vst [vmem:[%s4283_s25 + $0x1a8] sm:$0xff] %v3680_v42  ;;  %v3682_v53 = vpack.c.bf16 %v2483_v44, %v2482_v43  ;;  %v2340_v55 = vadd.f32 %v4530_v23, %v2180_v40  ;;  %v2341_v56 = vadd.f32 %v4532_v24, %v2181_v41  ;;  %v2486_v58 = vmax.f32 %v2338_v50, 0.0  ;;  %v2198_v40 = vld [vmem:[#allocation2 + $0x430] sm:$0xff]  ;;  %v2199_v41 = vld [vmem:[#allocation2 + $0x438] sm:$0xff] }
 0x28c   : > { %3018 = vst [vmem:[%s4283_s25 + $0x1b0] sm:$0xff] %v3681_v48  ;;  %v2487_v59 = vmax.f32 %v2339_v51, 0.0  ;;  %v2342_v60 = vadd.f32 %v4530_v23, %v2182_v46  ;;  %v2343_v61 = vadd.f32 %v4532_v24, %v2183_v47  ;;  %v3683_v0 = vpack.c.bf16 %v2485_v54, %v2484_v49  ;;  %v2200_v46 = vld [vmem:[#allocation2 + $0x440] sm:$0xff]  ;;  %v2201_v51 = vld [vmem:[#allocation2 + $0x448] sm:$0xff] }
 0x28d   : > { %3019 = vst [vmem:[%s4283_s25 + $0x1b8] sm:$0xff] %v3682_v53  ;;  %v2488_v1 = vmax.f32 %v2340_v55, 0.0  ;;  %v2489_v2 = vmax.f32 %v2341_v56, 0.0  ;;  %v2344_v3 = vadd.f32 %v4530_v23, %v2184_v52  ;;  %v2345_v9 = vadd.f32 %v4532_v24, %v2185_v57  ;;  %v2202_v56 = vld [vmem:[#allocation2 + $0x450] sm:$0xff]  ;;  %v2203_v57 = vld [vmem:[#allocation2 + $0x458] sm:$0xff] }
 0x28e   : > { %v3684_v6 = vpack.c.bf16 %v2487_v59, %v2486_v58  ;;  %v2490_v7 = vmax.f32 %v2342_v60, 0.0  ;;  %v2491_v8 = vmax.f32 %v2343_v61, 0.0  ;;  %3020 = vst [vmem:[%s4283_s25 + $0x1c0] sm:$0xff] %v3683_v0  ;;  %v2346_v14 = vadd.f32 %v4530_v23, %v2186_v62  ;;  %v2204_v62 = vld [vmem:[#allocation2 + $0x460] sm:$0xff] }
 0x28f   : > { %v3685_v12 = vpack.c.bf16 %v2489_v2, %v2488_v1  ;;  %v2492_v13 = vmax.f32 %v2344_v3, 0.0  ;;  %v2347_v15 = vadd.f32 %v4532_v24, %v2187_v63  ;;  %v2493_v18 = vmax.f32 %v2345_v9, 0.0  ;;  %v2205_v63 = vld [vmem:[#allocation2 + $0x468] sm:$0xff] }
 0x290   : > { %3021 = vst [vmem:[%s4283_s25 + $0x1c8] sm:$0xff] %v3684_v6  ;;  %v3686_v17 = vpack.c.bf16 %v2491_v8, %v2490_v7  ;;  %v2348_v19 = vadd.f32 %v4530_v23, %v2188_v4  ;;  %v2349_v20 = vadd.f32 %v4532_v24, %v2189_v5  ;;  %v2494_v22 = vmax.f32 %v2346_v14, 0.0  ;;  %v2206_v4 = vld [vmem:[#allocation2 + $0x470] sm:$0xff]  ;;  %v2207_v5 = vld [vmem:[#allocation2 + $0x478] sm:$0xff] }
 0x291   : > { %3022 = vst [vmem:[%s4283_s25 + $0x1d0] sm:$0xff] %v3685_v12  ;;  %v2495_v25 = vmax.f32 %v2347_v15, 0.0  ;;  %v2350_v26 = vadd.f32 %v4530_v23, %v2190_v10  ;;  %v2351_v27 = vadd.f32 %v4532_v24, %v2191_v11  ;;  %v3687_v31 = vpack.c.bf16 %v2493_v18, %v2492_v13  ;;  %v2208_v10 = vld [vmem:[#allocation2 + $0x480] sm:$0xff]  ;;  %v2209_v15 = vld [vmem:[#allocation2 + $0x488] sm:$0xff] }
 0x292   : > { %3023 = vst [vmem:[%s4283_s25 + $0x1d8] sm:$0xff] %v3686_v17  ;;  %v2496_v32 = vmax.f32 %v2348_v19, 0.0  ;;  %v2497_v33 = vmax.f32 %v2349_v20, 0.0  ;;  %v2352_v34 = vadd.f32 %v4530_v23, %v2192_v16  ;;  %v2353_v39 = vadd.f32 %v4532_v24, %v2193_v21  ;;  %v2210_v20 = vld [vmem:[#allocation2 + $0x490] sm:$0xff]  ;;  %v2211_v21 = vld [vmem:[#allocation2 + $0x498] sm:$0xff] }
 0x293   : > { %v3688_v36 = vpack.c.bf16 %v2495_v25, %v2494_v22  ;;  %v2498_v37 = vmax.f32 %v2350_v26, 0.0  ;;  %v2499_v38 = vmax.f32 %v2351_v27, 0.0  ;;  %3024 = vst [vmem:[%s4283_s25 + $0x1e0] sm:$0xff] %v3687_v31  ;;  %v2354_v44 = vadd.f32 %v4530_v23, %v2194_v28 }
 0x294   : > { %v3689_v42 = vpack.c.bf16 %v2497_v33, %v2496_v32  ;;  %v2500_v43 = vmax.f32 %v2352_v34, 0.0  ;;  %v2355_v45 = vadd.f32 %v4532_v24, %v2195_v30  ;;  %v2501_v48 = vmax.f32 %v2353_v39, 0.0 }
 0x295   : > { %3025 = vst [vmem:[%s4283_s25 + $0x1e8] sm:$0xff] %v3688_v36  ;;  %v3690_v47 = vpack.c.bf16 %v2499_v38, %v2498_v37  ;;  %v2356_v49 = vadd.f32 %v4530_v23, %v2196_v29  ;;  %v2357_v50 = vadd.f32 %v4532_v24, %v2197_v35  ;;  %v2502_v52 = vmax.f32 %v2354_v44, 0.0 }
 0x296   : > { %3026 = vst [vmem:[%s4283_s25 + $0x1f0] sm:$0xff] %v3689_v42  ;;  %v2503_v53 = vmax.f32 %v2355_v45, 0.0  ;;  %v2358_v54 = vadd.f32 %v4530_v23, %v2198_v40  ;;  %v2359_v55 = vadd.f32 %v4532_v24, %v2199_v41  ;;  %v3691_v58 = vpack.c.bf16 %v2501_v48, %v2500_v43 }
 0x297   : > { %3027 = vst [vmem:[%s4283_s25 + $0x1f8] sm:$0xff] %v3690_v47  ;;  %v2504_v59 = vmax.f32 %v2356_v49, 0.0  ;;  %v2505_v60 = vmax.f32 %v2357_v50, 0.0  ;;  %v2360_v61 = vadd.f32 %v4530_v23, %v2200_v46  ;;  %v2361_v3 = vadd.f32 %v4532_v24, %v2201_v51 }
 0x298   : > { %v3692_v0 = vpack.c.bf16 %v2503_v53, %v2502_v52  ;;  %v2506_v1 = vmax.f32 %v2358_v54, 0.0  ;;  %v2507_v2 = vmax.f32 %v2359_v55, 0.0  ;;  %3028 = vst [vmem:[%s4283_s25 + $0x200] sm:$0xff] %v3691_v58  ;;  %v2362_v8 = vadd.f32 %v4530_v23, %v2202_v56 }
 0x299   : > { %v3693_v6 = vpack.c.bf16 %v2505_v60, %v2504_v59  ;;  %v2508_v7 = vmax.f32 %v2360_v61, 0.0  ;;  %v2363_v9 = vadd.f32 %v4532_v24, %v2203_v57  ;;  %v2509_v12 = vmax.f32 %v2361_v3, 0.0 }
 0x29a   : > { %3029 = vst [vmem:[%s4283_s25 + $0x208] sm:$0xff] %v3692_v0  ;;  %v3694_v11 = vpack.c.bf16 %v2507_v2, %v2506_v1  ;;  %v2364_v13 = vadd.f32 %v4530_v23, %v2204_v62  ;;  %v2365_v14 = vadd.f32 %v4532_v24, %v2205_v63  ;;  %v2510_v16 = vmax.f32 %v2362_v8, 0.0 }
 0x29b   : > { %3030 = vst [vmem:[%s4283_s25 + $0x210] sm:$0xff] %v3693_v6  ;;  %v2511_v17 = vmax.f32 %v2363_v9, 0.0  ;;  %v2366_v18 = vadd.f32 %v4530_v23, %v2206_v4  ;;  %v2367_v19 = vadd.f32 %v4532_v24, %v2207_v5  ;;  %v3695_v22 = vpack.c.bf16 %v2509_v12, %v2508_v7 }
 0x29c   : > { %3031 = vst [vmem:[%s4283_s25 + $0x218] sm:$0xff] %v3694_v11  ;;  %v2512_v25 = vmax.f32 %v2364_v13, 0.0  ;;  %v2513_v26 = vmax.f32 %v2365_v14, 0.0  ;;  %v2368_v27 = vadd.f32 %v4530_v23, %v2208_v10  ;;  %v2369_v32 = vadd.f32 %v4532_v24, %v2209_v15 }
 0x29d   : > { %v3696_v28 = vpack.c.bf16 %v2511_v17, %v2510_v16  ;;  %v2514_v30 = vmax.f32 %v2366_v18, 0.0  ;;  %v2515_v31 = vmax.f32 %v2367_v19, 0.0  ;;  %3032 = vst [vmem:[%s4283_s25 + $0x220] sm:$0xff] %v3695_v22  ;;  %v2370_v29 = vadd.f32 %v4530_v23, %v2210_v20 }
 0x29e   : > { %v3697_v33 = vpack.c.bf16 %v2513_v26, %v2512_v25  ;;  %v2516_v34 = vmax.f32 %v2368_v27, 0.0  ;;  %v2371_v35 = vadd.f32 %v4532_v24, %v2211_v21  ;;  %v2517_v37 = vmax.f32 %v2369_v32, 0.0 }
 0x29f   : > { %3033 = vst [vmem:[%s4283_s25 + $0x228] sm:$0xff] %v3696_v28  ;;  %v3698_v36 = vpack.c.bf16 %v2515_v31, %v2514_v30  ;;  %v2518_v38 = vmax.f32 %v2370_v29, 0.0 }
 0x2a0   : > { %3034 = vst [vmem:[%s4283_s25 + $0x230] sm:$0xff] %v3697_v33  ;;  %v2519_v39 = vmax.f32 %v2371_v35, 0.0  ;;  %v3699_v40 = vpack.c.bf16 %v2517_v37, %v2516_v34 }
 0x2a1   : > { %3035 = vst [vmem:[%s4283_s25 + $0x238] sm:$0xff] %v3698_v36 }
 0x2a2   : > { %v3700_v41 = vpack.c.bf16 %v2519_v39, %v2518_v38  ;;  %3036 = vst [vmem:[%s4283_s25 + $0x240] sm:$0xff] %v3699_v40 }
 0x2a4   : > { %3037 = vst [vmem:[%s4283_s25 + $0x248] sm:$0xff] %v3700_v41 }
 0x2a5 PF: > { %3044 = sbr.rel (!%p4077_p12) target bundleno = 716 (0x2cc), region = 123  ;;  %s3701_s14 = sshll.u32 (%p4077_p12), %s3947_s19, 3  ;;  %v3224_v23 = vld [vmem:[%s4283_s25] sm:$0xff] (%p4077_p12)  ;;  %v3226_v24 = vld [vmem:[%s4283_s25 + $0x8] sm:$0xff] (%p4077_p12)  ;;  %v3228_v42 = vld [vmem:[%s4283_s25 + $0x10] sm:$0xff] (%p4077_p12) }
 0x2a6   : > { %s4765_s0 = scalar_lea.vmem (%p4077_p12), %s4948_s3, %s3701_s14  ;;  %v3230_v43 = vld [vmem:[%s4283_s25 + $0x18] sm:$0xff] (%p4077_p12)  ;;  %v3236_v46 = vld [vmem:[%s4283_s25 + $0x30] sm:$0xff] (%p4077_p12)  ;;  %v3240_v48 = vld [vmem:[%s4283_s25 + $0x40] sm:$0xff] (%p4077_p12) }
 0x2a7   : > { %3225 = vst [vmem:[%s4765_s0] sm:$0xff] (%p4077_p12), %v3224_v23  ;;  %3227 = vst [vmem:[%s4765_s0 + $0x18] sm:$0xff] (%p4077_p12), %v3226_v24  ;;  %v3238_v47 = vld [vmem:[%s4283_s25 + $0x38] sm:$0xff] (%p4077_p12)  ;;  %v3242_v49 = vld [vmem:[%s4283_s25 + $0x48] sm:$0xff] (%p4077_p12) }
 0x2a8   : > { %3229 = vst [vmem:[%s4765_s0 + $0x30] sm:$0xff] (%p4077_p12), %v3228_v42  ;;  %3231 = vst [vmem:[%s4765_s0 + $0x48] sm:$0xff] (%p4077_p12), %v3230_v43  ;;  %v3244_v50 = vld [vmem:[%s4283_s25 + $0x50] sm:$0xff] (%p4077_p12)  ;;  %v3246_v51 = vld [vmem:[%s4283_s25 + $0x58] sm:$0xff] (%p4077_p12) }
 0x2a9   : > { %3237 = vst [vmem:[%s4765_s0 + $0x90] sm:$0xff] (%p4077_p12), %v3236_v46  ;;  %3239 = vst [vmem:[%s4765_s0 + $0xa8] sm:$0xff] (%p4077_p12), %v3238_v47  ;;  %v3248_v52 = vld [vmem:[%s4283_s25 + $0x60] sm:$0xff] (%p4077_p12)  ;;  %v3250_v53 = vld [vmem:[%s4283_s25 + $0x68] sm:$0xff] (%p4077_p12) }
 0x2aa   : > { %3241 = vst [vmem:[%s4765_s0 + $0xc0] sm:$0xff] (%p4077_p12), %v3240_v48  ;;  %3243 = vst [vmem:[%s4765_s0 + $0xd8] sm:$0xff] (%p4077_p12), %v3242_v49  ;;  %v3252_v54 = vld [vmem:[%s4283_s25 + $0x70] sm:$0xff] (%p4077_p12)  ;;  %v3254_v55 = vld [vmem:[%s4283_s25 + $0x78] sm:$0xff] (%p4077_p12) }
 0x2ab   : > { %v3232_v44 = vld [vmem:[%s4283_s25 + $0x20] sm:$0xff] (%p4077_p12)  ;;  %3245 = vst [vmem:[%s4765_s0 + $0xf0] sm:$0xff] (%p4077_p12), %v3244_v50  ;;  %3247 = vst [vmem:[%s4765_s0 + $0x108] sm:$0xff] (%p4077_p12), %v3246_v51  ;;  %v3258_v57 = vld [vmem:[%s4283_s25 + $0x88] sm:$0xff] (%p4077_p12) }
 0x2ac   : > { %v3234_v45 = vld [vmem:[%s4283_s25 + $0x28] sm:$0xff]  ;;  %3233 = vst [vmem:[%s4765_s0 + $0x60] sm:$0xff] %v3232_v44  ;;  %3249 = vst [vmem:[%s4765_s0 + $0x120] sm:$0xff] %v3248_v52  ;;  %v3256_v56 = vld [vmem:[%s4283_s25 + $0x80] sm:$0xff] }
 0x2ad   : > { %3235 = vst [vmem:[%s4765_s0 + $0x78] sm:$0xff] %v3234_v45  ;;  %3251 = vst [vmem:[%s4765_s0 + $0x138] sm:$0xff] %v3250_v53  ;;  %v3260_v58 = vld [vmem:[%s4283_s25 + $0x90] sm:$0xff]  ;;  %v3262_v59 = vld [vmem:[%s4283_s25 + $0x98] sm:$0xff] }
 0x2ae   : > { %3253 = vst [vmem:[%s4765_s0 + $0x150] sm:$0xff] %v3252_v54  ;;  %3255 = vst [vmem:[%s4765_s0 + $0x168] sm:$0xff] %v3254_v55  ;;  %v3264_v60 = vld [vmem:[%s4283_s25 + $0xa0] sm:$0xff]  ;;  %v3266_v61 = vld [vmem:[%s4283_s25 + $0xa8] sm:$0xff] }
 0x2af   : > { %3257 = vst [vmem:[%s4765_s0 + $0x180] sm:$0xff] %v3256_v56  ;;  %3259 = vst [vmem:[%s4765_s0 + $0x198] sm:$0xff] %v3258_v57  ;;  %v3268_v62 = vld [vmem:[%s4283_s25 + $0xb0] sm:$0xff]  ;;  %v3270_v63 = vld [vmem:[%s4283_s25 + $0xb8] sm:$0xff] }
 0x2b0   : > { %3261 = vst [vmem:[%s4765_s0 + $0x1b0] sm:$0xff] %v3260_v58  ;;  %3263 = vst [vmem:[%s4765_s0 + $0x1c8] sm:$0xff] %v3262_v59  ;;  %v3272_v0 = vld [vmem:[%s4283_s25 + $0xc0] sm:$0xff]  ;;  %v3274_v1 = vld [vmem:[%s4283_s25 + $0xc8] sm:$0xff] }
 0x2b1   : > { %3265 = vst [vmem:[%s4765_s0 + $0x1e0] sm:$0xff] %v3264_v60  ;;  %3267 = vst [vmem:[%s4765_s0 + $0x1f8] sm:$0xff] %v3266_v61  ;;  %v3276_v2 = vld [vmem:[%s4283_s25 + $0xd0] sm:$0xff]  ;;  %v3278_v3 = vld [vmem:[%s4283_s25 + $0xd8] sm:$0xff] }
 0x2b2   : > { %3269 = vst [vmem:[%s4765_s0 + $0x210] sm:$0xff] %v3268_v62  ;;  %3271 = vst [vmem:[%s4765_s0 + $0x228] sm:$0xff] %v3270_v63  ;;  %v3280_v4 = vld [vmem:[%s4283_s25 + $0xe0] sm:$0xff]  ;;  %v3282_v5 = vld [vmem:[%s4283_s25 + $0xe8] sm:$0xff] }
 0x2b3   : > { %3273 = vst [vmem:[%s4765_s0 + $0x240] sm:$0xff] %v3272_v0  ;;  %3275 = vst [vmem:[%s4765_s0 + $0x258] sm:$0xff] %v3274_v1  ;;  %v3284_v6 = vld [vmem:[%s4283_s25 + $0xf0] sm:$0xff]  ;;  %v3286_v7 = vld [vmem:[%s4283_s25 + $0xf8] sm:$0xff] }
 0x2b4   : > { %3277 = vst [vmem:[%s4765_s0 + $0x270] sm:$0xff] %v3276_v2  ;;  %3279 = vst [vmem:[%s4765_s0 + $0x288] sm:$0xff] %v3278_v3  ;;  %v3288_v8 = vld [vmem:[%s4283_s25 + $0x100] sm:$0xff]  ;;  %v3290_v9 = vld [vmem:[%s4283_s25 + $0x108] sm:$0xff] }
 0x2b5   : > { %3281 = vst [vmem:[%s4765_s0 + $0x2a0] sm:$0xff] %v3280_v4  ;;  %3283 = vst [vmem:[%s4765_s0 + $0x2b8] sm:$0xff] %v3282_v5  ;;  %v3292_v10 = vld [vmem:[%s4283_s25 + $0x110] sm:$0xff]  ;;  %v3294_v11 = vld [vmem:[%s4283_s25 + $0x118] sm:$0xff] }
 0x2b6   : > { %3285 = vst [vmem:[%s4765_s0 + $0x2d0] sm:$0xff] %v3284_v6  ;;  %3287 = vst [vmem:[%s4765_s0 + $0x2e8] sm:$0xff] %v3286_v7  ;;  %v3296_v12 = vld [vmem:[%s4283_s25 + $0x120] sm:$0xff]  ;;  %v3298_v13 = vld [vmem:[%s4283_s25 + $0x128] sm:$0xff] }
 0x2b7   : > { %3289 = vst [vmem:[%s4765_s0 + $0x300] sm:$0xff] %v3288_v8  ;;  %3291 = vst [vmem:[%s4765_s0 + $0x318] sm:$0xff] %v3290_v9  ;;  %v3300_v14 = vld [vmem:[%s4283_s25 + $0x130] sm:$0xff]  ;;  %v3302_v15 = vld [vmem:[%s4283_s25 + $0x138] sm:$0xff] }
 0x2b8   : > { %3293 = vst [vmem:[%s4765_s0 + $0x330] sm:$0xff] %v3292_v10  ;;  %3295 = vst [vmem:[%s4765_s0 + $0x348] sm:$0xff] %v3294_v11  ;;  %v3304_v16 = vld [vmem:[%s4283_s25 + $0x140] sm:$0xff]  ;;  %v3306_v17 = vld [vmem:[%s4283_s25 + $0x148] sm:$0xff] }
 0x2b9   : > { %3297 = vst [vmem:[%s4765_s0 + $0x360] sm:$0xff] %v3296_v12  ;;  %3299 = vst [vmem:[%s4765_s0 + $0x378] sm:$0xff] %v3298_v13  ;;  %v3308_v18 = vld [vmem:[%s4283_s25 + $0x150] sm:$0xff]  ;;  %v3310_v19 = vld [vmem:[%s4283_s25 + $0x158] sm:$0xff] }
 0x2ba   : > { %3301 = vst [vmem:[%s4765_s0 + $0x390] sm:$0xff] %v3300_v14  ;;  %3303 = vst [vmem:[%s4765_s0 + $0x3a8] sm:$0xff] %v3302_v15  ;;  %v3312_v20 = vld [vmem:[%s4283_s25 + $0x160] sm:$0xff]  ;;  %v3314_v21 = vld [vmem:[%s4283_s25 + $0x168] sm:$0xff] }
 0x2bb   : > { %3305 = vst [vmem:[%s4765_s0 + $0x3c0] sm:$0xff] %v3304_v16  ;;  %3307 = vst [vmem:[%s4765_s0 + $0x3d8] sm:$0xff] %v3306_v17  ;;  %v3316_v22 = vld [vmem:[%s4283_s25 + $0x170] sm:$0xff]  ;;  %v3318_v25 = vld [vmem:[%s4283_s25 + $0x178] sm:$0xff] }
 0x2bc   : > { %3309 = vst [vmem:[%s4765_s0 + $0x3f0] sm:$0xff] %v3308_v18  ;;  %3311 = vst [vmem:[%s4765_s0 + $0x408] sm:$0xff] %v3310_v19  ;;  %v3320_v26 = vld [vmem:[%s4283_s25 + $0x180] sm:$0xff]  ;;  %v3322_v27 = vld [vmem:[%s4283_s25 + $0x188] sm:$0xff] }
 0x2bd   : > { %3313 = vst [vmem:[%s4765_s0 + $0x420] sm:$0xff] %v3312_v20  ;;  %3315 = vst [vmem:[%s4765_s0 + $0x438] sm:$0xff] %v3314_v21  ;;  %v3324_v28 = vld [vmem:[%s4283_s25 + $0x190] sm:$0xff]  ;;  %v3326_v30 = vld [vmem:[%s4283_s25 + $0x198] sm:$0xff] }
 0x2be   : > { %3317 = vst [vmem:[%s4765_s0 + $0x450] sm:$0xff] %v3316_v22  ;;  %3319 = vst [vmem:[%s4765_s0 + $0x468] sm:$0xff] %v3318_v25  ;;  %v3328_v31 = vld [vmem:[%s4283_s25 + $0x1a0] sm:$0xff]  ;;  %v3330_v32 = vld [vmem:[%s4283_s25 + $0x1a8] sm:$0xff] }
 0x2bf   : > { %3321 = vst [vmem:[%s4765_s0 + $0x480] sm:$0xff] %v3320_v26  ;;  %3323 = vst [vmem:[%s4765_s0 + $0x498] sm:$0xff] %v3322_v27  ;;  %v3332_v33 = vld [vmem:[%s4283_s25 + $0x1b0] sm:$0xff]  ;;  %v3334_v34 = vld [vmem:[%s4283_s25 + $0x1b8] sm:$0xff] }
 0x2c0   : > { %3325 = vst [vmem:[%s4765_s0 + $0x4b0] sm:$0xff] %v3324_v28  ;;  %3327 = vst [vmem:[%s4765_s0 + $0x4c8] sm:$0xff] %v3326_v30  ;;  %v3336_v29 = vld [vmem:[%s4283_s25 + $0x1c0] sm:$0xff]  ;;  %v3338_v35 = vld [vmem:[%s4283_s25 + $0x1c8] sm:$0xff] }
 0x2c1   : > { %3329 = vst [vmem:[%s4765_s0 + $0x4e0] sm:$0xff] %v3328_v31  ;;  %3331 = vst [vmem:[%s4765_s0 + $0x4f8] sm:$0xff] %v3330_v32  ;;  %v3340_v36 = vld [vmem:[%s4283_s25 + $0x1d0] sm:$0xff]  ;;  %v3342_v37 = vld [vmem:[%s4283_s25 + $0x1d8] sm:$0xff] }
 0x2c2   : > { %3333 = vst [vmem:[%s4765_s0 + $0x510] sm:$0xff] %v3332_v33  ;;  %3335 = vst [vmem:[%s4765_s0 + $0x528] sm:$0xff] %v3334_v34  ;;  %v3344_v38 = vld [vmem:[%s4283_s25 + $0x1e0] sm:$0xff]  ;;  %v3346_v39 = vld [vmem:[%s4283_s25 + $0x1e8] sm:$0xff] }
 0x2c3   : > { %3337 = vst [vmem:[%s4765_s0 + $0x540] sm:$0xff] %v3336_v29  ;;  %3339 = vst [vmem:[%s4765_s0 + $0x558] sm:$0xff] %v3338_v35  ;;  %v3348_v40 = vld [vmem:[%s4283_s25 + $0x1f0] sm:$0xff]  ;;  %v3350_v41 = vld [vmem:[%s4283_s25 + $0x1f8] sm:$0xff] }
 0x2c4   : > { %3341 = vst [vmem:[%s4765_s0 + $0x570] sm:$0xff] %v3340_v36  ;;  %3343 = vst [vmem:[%s4765_s0 + $0x588] sm:$0xff] %v3342_v37  ;;  %v3352_v23 = vld [vmem:[%s4283_s25 + $0x200] sm:$0xff]  ;;  %v3354_v24 = vld [vmem:[%s4283_s25 + $0x208] sm:$0xff] }
 0x2c5   : > { %3345 = vst [vmem:[%s4765_s0 + $0x5a0] sm:$0xff] %v3344_v38  ;;  %3347 = vst [vmem:[%s4765_s0 + $0x5b8] sm:$0xff] %v3346_v39  ;;  %v3356_v42 = vld [vmem:[%s4283_s25 + $0x210] sm:$0xff]  ;;  %v3358_v43 = vld [vmem:[%s4283_s25 + $0x218] sm:$0xff] }
 0x2c6   : > { %3349 = vst [vmem:[%s4765_s0 + $0x5d0] sm:$0xff] %v3348_v40  ;;  %3351 = vst [vmem:[%s4765_s0 + $0x5e8] sm:$0xff] %v3350_v41  ;;  %v3360_v44 = vld [vmem:[%s4283_s25 + $0x220] sm:$0xff]  ;;  %v3362_v45 = vld [vmem:[%s4283_s25 + $0x228] sm:$0xff] }
 0x2c7   : > { %3353 = vst [vmem:[%s4765_s0 + $0x600] sm:$0xff] %v3352_v23  ;;  %3355 = vst [vmem:[%s4765_s0 + $0x618] sm:$0xff] %v3354_v24  ;;  %v3364_v46 = vld [vmem:[%s4283_s25 + $0x230] sm:$0xff]  ;;  %v3366_v47 = vld [vmem:[%s4283_s25 + $0x238] sm:$0xff] }
 0x2c8   : > { %3357 = vst [vmem:[%s4765_s0 + $0x630] sm:$0xff] %v3356_v42  ;;  %3359 = vst [vmem:[%s4765_s0 + $0x648] sm:$0xff] %v3358_v43  ;;  %v3368_v48 = vld [vmem:[%s4283_s25 + $0x240] sm:$0xff]  ;;  %v3370_v49 = vld [vmem:[%s4283_s25 + $0x248] sm:$0xff] }
 0x2c9   : > { %3361 = vst [vmem:[%s4765_s0 + $0x660] sm:$0xff] %v3360_v44  ;;  %3363 = vst [vmem:[%s4765_s0 + $0x678] sm:$0xff] %v3362_v45 }
 0x2ca   : > { %3365 = vst [vmem:[%s4765_s0 + $0x690] sm:$0xff] %v3364_v46  ;;  %3367 = vst [vmem:[%s4765_s0 + $0x6a8] sm:$0xff] %v3366_v47 }
 0x2cb   : > { %3369 = vst [vmem:[%s4765_s0 + $0x6c0] sm:$0xff] %v3368_v48  ;;  %3371 = vst [vmem:[%s4765_s0 + $0x6d8] sm:$0xff] %v3370_v49 }
 0x2cc PF: > { %s13_s22 = sadd.s32 1, %s3959_s22   ;;  %s4958_s10 = sld [smem:[#allocation6_spill]] }
 0x2cd   : > { %p10_p6 = scmp.ge.s32.totalorder %s13_s22, 23   ;;  %s4959_s12 = smov %s3923_s13 }
 0x2ce   : > { %s4960_s13 = smov %s4075_s9  ;;  %s4961_s14 = smov %s3931_s15 }
 0x2cf   : > { %s4962_s15 = smov %s4072_s8  ;;  %s4963_s16 = smov %s3939_s17 }
 0x2d0   : > { %s4964_s17 = smov %s4058_s30  ;;  %s4965_s18 = smov %s3951_s20 }
 0x2d1   : > { %s4966_s19 = smov %s3955_s21  ;;  %s4967_s20 = smov %s4970_s24 }
 0x2d2   : > { %s4968_s21 = smov %s4958_s10  ;;  %12 = sbr.rel (!%p10_p6) target bundleno = 9 (0x9), region = 203 }

// kernel: mixed7a_forward.9
= control target key start
LH: loop header
LB: loop body
LE: loop exit
PB: predicated region body
PF: predicated region fallthrough
CT: control target
= control target key end

     0   :  { %s3901_s12 = smov 0   ;;  %s3903_s13 = smov 0   ;;  %s4755_s0 = inlined_call_operand.vmem [shape: bf16[592,2304], index: 0, kind: input, shape index: {}]   ;;  %s4756_s1 = inlined_call_operand.vmem [shape: bf16[2304,256], index: 1, kind: input, shape index: {}]   ;;  %s4757_s2 = inlined_call_operand.vmem [shape: f32[1,256], index: 2, kind: input, shape index: {}]   ;;  %s4758_s3 = inlined_call_operand.vmem [shape: bf16[592,256], index: 3, kind: output, shape index: {}]  }
   0x1   :  { %s3905_s14 = smov 0   ;;  %s3907_s15 = smov 0  }
   0x2   :  { %s3909_s16 = smov 0  }
   0x3 LB: > { %s25_s17 = sadd.s32 1, %s3874_s15  ;;  %p48_p1 = scmp.ne.s32.totalorder %s3866_s13, %s3862_s12  ;;  %s3878_s16 = sphi %s3909_s16, %s13_s16   ;;  %s3874_s15 = sphi %s3907_s15, %s4762_s15   ;;  %s3870_s14 = sphi %s3905_s14, %s4761_s14   ;;  %s3866_s13 = sphi %s3903_s13, %s4760_s13   ;;  %s3862_s12 = sphi %s3901_s12, %s4759_s12  }
   0x4   : > { %p26_p0 = scmp.ge.s32.totalorder %s25_s17, 9  ;;  %p49_p2 = scmp.eq.s32.totalorder %s3878_s16, 0 }
   0x5   : > { %s41_s19 = sadd.s32 1, %s3866_s13  ;;  %p3337_p5 = scmp.ge.s32.totalorder %s3878_s16, 9 }
   0x6   : > { %s4764_s17 = smov (%p26_p0, %s25_s17), 0  ;;  %p50_p3 = por %p49_p2, %p48_p1 }
   0x7   : > { %s37_s18 = ssub.s32 %s3874_s15, %s4764_s17  ;;  %164 = sbr.rel (%p3337_p5) target bundleno = 56 (0x38), region = 20 }
   0x8   : > { %p39_p4 = scmp.eq.s32.totalorder %s37_s18, 0 }
   0xa   : > { %s3936_s20 = scalar_select %p39_p4, %s3866_s13, %s41_s19  }
   0xe   : > { %167 = sbr.rel (!%p50_p3) target bundleno = 56 (0x38), region = 24  ;;  %s169_s21 = sand.u32 (%p50_p3), 1, %s3866_s13  }
   0xf   : > { %s3530_s22 = sshll.u32 (%p50_p3), %s3874_s15, 3  ;;  %s3638_s23 = smul.u32 (%p50_p3), 592, %s169_s21 }
  0x10   : > { %s3944_s26 = scalar_lea.vmem (%p50_p3), %s4755_s0, %s3530_s22 }
  0x11   : > { %v351_v0 = vld [vmem:[%s3944_s26] sm:$0xff] (%p50_p3)  ;;  %v353_v1 = vld [vmem:[%s3944_s26 + $0x48] sm:$0xff] (%p50_p3)  ;;  %v355_v2 = vld [vmem:[%s3944_s26 + $0x90] sm:$0xff] (%p50_p3)  ;;  %s3952_s27 = scalar_lea.vmem (%p50_p3), [#allocation3], %s3638_s23 }
  0x12   : > { %v357_v3 = vld [vmem:[%s3944_s26 + $0xd8] sm:$0xff] (%p50_p3)  ;;  %v359_v4 = vld [vmem:[%s3944_s26 + $0x120] sm:$0xff] (%p50_p3)  ;;  %v361_v5 = vld [vmem:[%s3944_s26 + $0x168] sm:$0xff] (%p50_p3)  ;;  %352 = vst [vmem:[%s3952_s27] sm:$0xff] (%p50_p3), %v351_v0 }
  0x13   : > { %354 = vst [vmem:[%s3952_s27 + $0x8] sm:$0xff] (%p50_p3), %v353_v1  ;;  %356 = vst [vmem:[%s3952_s27 + $0x10] sm:$0xff] (%p50_p3), %v355_v2  ;;  %v363_v6 = vld [vmem:[%s3944_s26 + $0x1b0] sm:$0xff] (%p50_p3)  ;;  %v365_v7 = vld [vmem:[%s3944_s26 + $0x1f8] sm:$0xff] (%p50_p3) }
  0x14   : > { %358 = vst [vmem:[%s3952_s27 + $0x18] sm:$0xff] (%p50_p3), %v357_v3  ;;  %360 = vst [vmem:[%s3952_s27 + $0x20] sm:$0xff] (%p50_p3), %v359_v4  ;;  %v367_v8 = vld [vmem:[%s3944_s26 + $0x240] sm:$0xff] (%p50_p3)  ;;  %v369_v9 = vld [vmem:[%s3944_s26 + $0x288] sm:$0xff] (%p50_p3) }
  0x15   : > { %362 = vst [vmem:[%s3952_s27 + $0x28] sm:$0xff] %v361_v5  ;;  %364 = vst [vmem:[%s3952_s27 + $0x30] sm:$0xff] %v363_v6  ;;  %v371_v10 = vld [vmem:[%s3944_s26 + $0x2d0] sm:$0xff]  ;;  %v373_v11 = vld [vmem:[%s3944_s26 + $0x318] sm:$0xff] }
  0x16   : > { %366 = vst [vmem:[%s3952_s27 + $0x38] sm:$0xff] %v365_v7  ;;  %368 = vst [vmem:[%s3952_s27 + $0x40] sm:$0xff] %v367_v8  ;;  %v375_v12 = vld [vmem:[%s3944_s26 + $0x360] sm:$0xff]  ;;  %v377_v13 = vld [vmem:[%s3944_s26 + $0x3a8] sm:$0xff] }
  0x17   : > { %370 = vst [vmem:[%s3952_s27 + $0x48] sm:$0xff] %v369_v9  ;;  %372 = vst [vmem:[%s3952_s27 + $0x50] sm:$0xff] %v371_v10  ;;  %v379_v14 = vld [vmem:[%s3944_s26 + $0x3f0] sm:$0xff]  ;;  %v381_v15 = vld [vmem:[%s3944_s26 + $0x438] sm:$0xff] }
  0x18   : > { %374 = vst [vmem:[%s3952_s27 + $0x58] sm:$0xff] %v373_v11  ;;  %376 = vst [vmem:[%s3952_s27 + $0x60] sm:$0xff] %v375_v12  ;;  %v383_v16 = vld [vmem:[%s3944_s26 + $0x480] sm:$0xff]  ;;  %v385_v17 = vld [vmem:[%s3944_s26 + $0x4c8] sm:$0xff] }
  0x19   : > { %378 = vst [vmem:[%s3952_s27 + $0x68] sm:$0xff] %v377_v13  ;;  %380 = vst [vmem:[%s3952_s27 + $0x70] sm:$0xff] %v379_v14  ;;  %v387_v18 = vld [vmem:[%s3944_s26 + $0x510] sm:$0xff]  ;;  %v389_v19 = vld [vmem:[%s3944_s26 + $0x558] sm:$0xff] }
  0x1a   : > { %382 = vst [vmem:[%s3952_s27 + $0x78] sm:$0xff] %v381_v15  ;;  %384 = vst [vmem:[%s3952_s27 + $0x80] sm:$0xff] %v383_v16  ;;  %v391_v20 = vld [vmem:[%s3944_s26 + $0x5a0] sm:$0xff]  ;;  %v393_v21 = vld [vmem:[%s3944_s26 + $0x5e8] sm:$0xff] }
  0x1b   : > { %386 = vst [vmem:[%s3952_s27 + $0x88] sm:$0xff] %v385_v17  ;;  %388 = vst [vmem:[%s3952_s27 + $0x90] sm:$0xff] %v387_v18  ;;  %v395_v22 = vld [vmem:[%s3944_s26 + $0x630] sm:$0xff]  ;;  %v397_v23 = vld [vmem:[%s3944_s26 + $0x678] sm:$0xff] }
  0x1c   : > { %390 = vst [vmem:[%s3952_s27 + $0x98] sm:$0xff] %v389_v19  ;;  %392 = vst [vmem:[%s3952_s27 + $0xa0] sm:$0xff] %v391_v20  ;;  %v399_v24 = vld [vmem:[%s3944_s26 + $0x6c0] sm:$0xff]  ;;  %v401_v25 = vld [vmem:[%s3944_s26 + $0x708] sm:$0xff] }
  0x1d   : > { %394 = vst [vmem:[%s3952_s27 + $0xa8] sm:$0xff] %v393_v21  ;;  %396 = vst [vmem:[%s3952_s27 + $0xb0] sm:$0xff] %v395_v22  ;;  %v403_v26 = vld [vmem:[%s3944_s26 + $0x750] sm:$0xff]  ;;  %v405_v27 = vld [vmem:[%s3944_s26 + $0x798] sm:$0xff] }
  0x1e   : > { %398 = vst [vmem:[%s3952_s27 + $0xb8] sm:$0xff] %v397_v23  ;;  %400 = vst [vmem:[%s3952_s27 + $0xc0] sm:$0xff] %v399_v24  ;;  %v407_v28 = vld [vmem:[%s3944_s26 + $0x7e0] sm:$0xff]  ;;  %v409_v29 = vld [vmem:[%s3944_s26 + $0x828] sm:$0xff] }
  0x1f   : > { %402 = vst [vmem:[%s3952_s27 + $0xc8] sm:$0xff] %v401_v25  ;;  %404 = vst [vmem:[%s3952_s27 + $0xd0] sm:$0xff] %v403_v26  ;;  %v411_v30 = vld [vmem:[%s3944_s26 + $0x870] sm:$0xff]  ;;  %v413_v31 = vld [vmem:[%s3944_s26 + $0x8b8] sm:$0xff] }
  0x20   : > { %406 = vst [vmem:[%s3952_s27 + $0xd8] sm:$0xff] %v405_v27  ;;  %408 = vst [vmem:[%s3952_s27 + $0xe0] sm:$0xff] %v407_v28  ;;  %v415_v32 = vld [vmem:[%s3944_s26 + $0x900] sm:$0xff]  ;;  %v417_v33 = vld [vmem:[%s3944_s26 + $0x948] sm:$0xff] }
  0x21   : > { %410 = vst [vmem:[%s3952_s27 + $0xe8] sm:$0xff] %v409_v29  ;;  %412 = vst [vmem:[%s3952_s27 + $0xf0] sm:$0xff] %v411_v30  ;;  %v419_v34 = vld [vmem:[%s3944_s26 + $0x990] sm:$0xff]  ;;  %v421_v35 = vld [vmem:[%s3944_s26 + $0x9d8] sm:$0xff] }
  0x22   : > { %414 = vst [vmem:[%s3952_s27 + $0xf8] sm:$0xff] %v413_v31  ;;  %416 = vst [vmem:[%s3952_s27 + $0x100] sm:$0xff] %v415_v32  ;;  %v423_v36 = vld [vmem:[%s3944_s26 + $0xa20] sm:$0xff]  ;;  %v425_v37 = vld [vmem:[%s3944_s26 + $0xa68] sm:$0xff] }
  0x23   : > { %418 = vst [vmem:[%s3952_s27 + $0x108] sm:$0xff] %v417_v33  ;;  %420 = vst [vmem:[%s3952_s27 + $0x110] sm:$0xff] %v419_v34  ;;  %v427_v38 = vld [vmem:[%s3944_s26 + $0xab0] sm:$0xff]  ;;  %v429_v39 = vld [vmem:[%s3944_s26 + $0xaf8] sm:$0xff] }
  0x24   : > { %422 = vst [vmem:[%s3952_s27 + $0x118] sm:$0xff] %v421_v35  ;;  %424 = vst [vmem:[%s3952_s27 + $0x120] sm:$0xff] %v423_v36  ;;  %v431_v40 = vld [vmem:[%s3944_s26 + $0xb40] sm:$0xff]  ;;  %v433_v41 = vld [vmem:[%s3944_s26 + $0xb88] sm:$0xff] }
  0x25   : > { %426 = vst [vmem:[%s3952_s27 + $0x128] sm:$0xff] %v425_v37  ;;  %428 = vst [vmem:[%s3952_s27 + $0x130] sm:$0xff] %v427_v38  ;;  %v435_v42 = vld [vmem:[%s3944_s26 + $0xbd0] sm:$0xff]  ;;  %v437_v43 = vld [vmem:[%s3944_s26 + $0xc18] sm:$0xff] }
  0x26   : > { %430 = vst [vmem:[%s3952_s27 + $0x138] sm:$0xff] %v429_v39  ;;  %432 = vst [vmem:[%s3952_s27 + $0x140] sm:$0xff] %v431_v40  ;;  %v439_v44 = vld [vmem:[%s3944_s26 + $0xc60] sm:$0xff]  ;;  %v441_v45 = vld [vmem:[%s3944_s26 + $0xca8] sm:$0xff] }
  0x27   : > { %434 = vst [vmem:[%s3952_s27 + $0x148] sm:$0xff] %v433_v41  ;;  %436 = vst [vmem:[%s3952_s27 + $0x150] sm:$0xff] %v435_v42  ;;  %v443_v46 = vld [vmem:[%s3944_s26 + $0xcf0] sm:$0xff]  ;;  %v445_v47 = vld [vmem:[%s3944_s26 + $0xd38] sm:$0xff] }
  0x28   : > { %438 = vst [vmem:[%s3952_s27 + $0x158] sm:$0xff] %v437_v43  ;;  %440 = vst [vmem:[%s3952_s27 + $0x160] sm:$0xff] %v439_v44  ;;  %v447_v48 = vld [vmem:[%s3944_s26 + $0xd80] sm:$0xff]  ;;  %v449_v49 = vld [vmem:[%s3944_s26 + $0xdc8] sm:$0xff] }
  0x29   : > { %442 = vst [vmem:[%s3952_s27 + $0x168] sm:$0xff] %v441_v45  ;;  %444 = vst [vmem:[%s3952_s27 + $0x170] sm:$0xff] %v443_v46  ;;  %v451_v50 = vld [vmem:[%s3944_s26 + $0xe10] sm:$0xff]  ;;  %v453_v51 = vld [vmem:[%s3944_s26 + $0xe58] sm:$0xff] }
  0x2a   : > { %446 = vst [vmem:[%s3952_s27 + $0x178] sm:$0xff] %v445_v47  ;;  %448 = vst [vmem:[%s3952_s27 + $0x180] sm:$0xff] %v447_v48  ;;  %v455_v52 = vld [vmem:[%s3944_s26 + $0xea0] sm:$0xff]  ;;  %v457_v53 = vld [vmem:[%s3944_s26 + $0xee8] sm:$0xff] }
  0x2b   : > { %450 = vst [vmem:[%s3952_s27 + $0x188] sm:$0xff] %v449_v49  ;;  %452 = vst [vmem:[%s3952_s27 + $0x190] sm:$0xff] %v451_v50  ;;  %v459_v54 = vld [vmem:[%s3944_s26 + $0xf30] sm:$0xff]  ;;  %v461_v55 = vld [vmem:[%s3944_s26 + $0xf78] sm:$0xff] }
  0x2c   : > { %454 = vst [vmem:[%s3952_s27 + $0x198] sm:$0xff] %v453_v51  ;;  %456 = vst [vmem:[%s3952_s27 + $0x1a0] sm:$0xff] %v455_v52  ;;  %v463_v56 = vld [vmem:[%s3944_s26 + $0xfc0] sm:$0xff]  ;;  %v465_v57 = vld [vmem:[%s3944_s26 + $0x1008] sm:$0xff] }
  0x2d   : > { %458 = vst [vmem:[%s3952_s27 + $0x1a8] sm:$0xff] %v457_v53  ;;  %460 = vst [vmem:[%s3952_s27 + $0x1b0] sm:$0xff] %v459_v54  ;;  %v467_v58 = vld [vmem:[%s3944_s26 + $0x1050] sm:$0xff]  ;;  %v469_v59 = vld [vmem:[%s3944_s26 + $0x1098] sm:$0xff] }
  0x2e   : > { %462 = vst [vmem:[%s3952_s27 + $0x1b8] sm:$0xff] %v461_v55  ;;  %464 = vst [vmem:[%s3952_s27 + $0x1c0] sm:$0xff] %v463_v56  ;;  %v471_v60 = vld [vmem:[%s3944_s26 + $0x10e0] sm:$0xff]  ;;  %v473_v61 = vld [vmem:[%s3944_s26 + $0x1128] sm:$0xff] }
  0x2f   : > { %466 = vst [vmem:[%s3952_s27 + $0x1c8] sm:$0xff] %v465_v57  ;;  %468 = vst [vmem:[%s3952_s27 + $0x1d0] sm:$0xff] %v467_v58  ;;  %v475_v62 = vld [vmem:[%s3944_s26 + $0x1170] sm:$0xff]  ;;  %v477_v63 = vld [vmem:[%s3944_s26 + $0x11b8] sm:$0xff] }
  0x30   : > { %470 = vst [vmem:[%s3952_s27 + $0x1d8] sm:$0xff] %v469_v59  ;;  %472 = vst [vmem:[%s3952_s27 + $0x1e0] sm:$0xff] %v471_v60  ;;  %v479_v0 = vld [vmem:[%s3944_s26 + $0x1200] sm:$0xff]  ;;  %v481_v1 = vld [vmem:[%s3944_s26 + $0x1248] sm:$0xff] }
  0x31   : > { %474 = vst [vmem:[%s3952_s27 + $0x1e8] sm:$0xff] %v473_v61  ;;  %476 = vst [vmem:[%s3952_s27 + $0x1f0] sm:$0xff] %v475_v62  ;;  %v483_v2 = vld [vmem:[%s3944_s26 + $0x1290] sm:$0xff]  ;;  %v485_v3 = vld [vmem:[%s3944_s26 + $0x12d8] sm:$0xff] }
  0x32   : > { %478 = vst [vmem:[%s3952_s27 + $0x1f8] sm:$0xff] %v477_v63  ;;  %480 = vst [vmem:[%s3952_s27 + $0x200] sm:$0xff] %v479_v0  ;;  %v487_v4 = vld [vmem:[%s3944_s26 + $0x1320] sm:$0xff]  ;;  %v489_v5 = vld [vmem:[%s3944_s26 + $0x1368] sm:$0xff] }
  0x33   : > { %482 = vst [vmem:[%s3952_s27 + $0x208] sm:$0xff] %v481_v1  ;;  %484 = vst [vmem:[%s3952_s27 + $0x210] sm:$0xff] %v483_v2  ;;  %v491_v6 = vld [vmem:[%s3944_s26 + $0x13b0] sm:$0xff]  ;;  %v493_v7 = vld [vmem:[%s3944_s26 + $0x13f8] sm:$0xff] }
  0x34   : > { %486 = vst [vmem:[%s3952_s27 + $0x218] sm:$0xff] %v485_v3  ;;  %488 = vst [vmem:[%s3952_s27 + $0x220] sm:$0xff] %v487_v4  ;;  %v495_v8 = vld [vmem:[%s3944_s26 + $0x1440] sm:$0xff]  ;;  %v497_v9 = vld [vmem:[%s3944_s26 + $0x1488] sm:$0xff] }
  0x35   : > { %490 = vst [vmem:[%s3952_s27 + $0x228] sm:$0xff] %v489_v5  ;;  %492 = vst [vmem:[%s3952_s27 + $0x230] sm:$0xff] %v491_v6 }
  0x36   : > { %494 = vst [vmem:[%s3952_s27 + $0x238] sm:$0xff] %v493_v7  ;;  %496 = vst [vmem:[%s3952_s27 + $0x240] sm:$0xff] %v495_v8 }
  0x37   : > { %498 = vst [vmem:[%s3952_s27 + $0x248] sm:$0xff] %v497_v9 }
  0x38 PF: > { %p3340_p6 = scmp.ge.s32.totalorder %s3878_s16, 1  ;;  %p518_p7 = scmp.lt.s32.totalorder %s3878_s16, 10 }
  0x3a   : > { %p519_p8 = pnand %p3340_p6, %p518_p7 }
  0x3b   : > { %s525_s28 = sand.u32 (!%p519_p8), 1, %s3862_s12   ;;  %s3341_s29 = sshll.u32 (!%p519_p8), %s3870_s14, 5 }
  0x3c   : > { %522 = sbr.rel (%p519_p8) target bundleno = 654 (0x28e), region = 66  ;;  %p571_p9 = scmp.lt.s32.totalorder (!%p519_p8), %s3341_s29, 287 }
  0x3d   : > { %s3639_s30 = smul.u32 (!%p519_p8), 592, %s525_s28  ;;  %p3344_p10 = scmp.ne.s32.totalorder (!%p519_p8), %s3870_s14, 0 }
  0x3f   : > { %s4105_s8 = scalar_lea.vmem (!%p519_p8), [#allocation3], %s3639_s30 }
  0x43   : > { %s4766_s29 = smov (!%p571_p9, %s3341_s29), 287  ;;  %601 = sbr.rel (%p3344_p10) target bundleno = 143 (0x8f), region = 74 }
  0x44   : > { %s3531_s4 = sshll.u32 %s4766_s29, 3  ;;  %v3880_v10 = vmov (!%p3344_p10), 0.0  }
  0x45   : > { %s4103_s7 = scalar_lea.vmem %s4756_s1, %s3531_s4  ;;  %602 = vst [vmem:[#allocation2] sm:$0xff] (!%p3344_p10), %v3880_v10  ;;  %603 = vst [vmem:[#allocation2 + $0x8] sm:$0xff] (!%p3344_p10), %v3880_v10 }
  0x46   : > { %604 = vst [vmem:[#allocation2 + $0x10] sm:$0xff] (!%p3344_p10), %v3880_v10  ;;  %605 = vst [vmem:[#allocation2 + $0x18] sm:$0xff] (!%p3344_p10), %v3880_v10 }
  0x47   : > { %606 = vst [vmem:[#allocation2 + $0x20] sm:$0xff] (!%p3344_p10), %v3880_v10  ;;  %607 = vst [vmem:[#allocation2 + $0x28] sm:$0xff] (!%p3344_p10), %v3880_v10 }
  0x48   : > { %608 = vst [vmem:[#allocation2 + $0x30] sm:$0xff] (!%p3344_p10), %v3880_v10  ;;  %609 = vst [vmem:[#allocation2 + $0x38] sm:$0xff] (!%p3344_p10), %v3880_v10 }
  0x49   : > { %610 = vst [vmem:[#allocation2 + $0x40] sm:$0xff] (!%p3344_p10), %v3880_v10  ;;  %611 = vst [vmem:[#allocation2 + $0x48] sm:$0xff] (!%p3344_p10), %v3880_v10 }
  0x4a   : > { %612 = vst [vmem:[#allocation2 + $0x50] sm:$0xff] %v3880_v10  ;;  %613 = vst [vmem:[#allocation2 + $0x58] sm:$0xff] %v3880_v10 }
  0x4b   : > { %614 = vst [vmem:[#allocation2 + $0x60] sm:$0xff] %v3880_v10  ;;  %615 = vst [vmem:[#allocation2 + $0x68] sm:$0xff] %v3880_v10 }
  0x4c   : > { %616 = vst [vmem:[#allocation2 + $0x70] sm:$0xff] %v3880_v10  ;;  %617 = vst [vmem:[#allocation2 + $0x78] sm:$0xff] %v3880_v10 }
  0x4d   : > { %618 = vst [vmem:[#allocation2 + $0x80] sm:$0xff] %v3880_v10  ;;  %619 = vst [vmem:[#allocation2 + $0x88] sm:$0xff] %v3880_v10 }
  0x4e   : > { %620 = vst [vmem:[#allocation2 + $0x90] sm:$0xff] %v3880_v10  ;;  %621 = vst [vmem:[#allocation2 + $0x98] sm:$0xff] %v3880_v10 }
  0x4f   : > { %622 = vst [vmem:[#allocation2 + $0xa0] sm:$0xff] %v3880_v10  ;;  %623 = vst [vmem:[#allocation2 + $0xa8] sm:$0xff] %v3880_v10 }
  0x50   : > { %624 = vst [vmem:[#allocation2 + $0xb0] sm:$0xff] %v3880_v10  ;;  %625 = vst [vmem:[#allocation2 + $0xb8] sm:$0xff] %v3880_v10 }
  0x51   : > { %626 = vst [vmem:[#allocation2 + $0xc0] sm:$0xff] %v3880_v10  ;;  %627 = vst [vmem:[#allocation2 + $0xc8] sm:$0xff] %v3880_v10 }
  0x52   : > { %628 = vst [vmem:[#allocation2 + $0xd0] sm:$0xff] %v3880_v10  ;;  %629 = vst [vmem:[#allocation2 + $0xd8] sm:$0xff] %v3880_v10 }
  0x53   : > { %630 = vst [vmem:[#allocation2 + $0xe0] sm:$0xff] %v3880_v10  ;;  %631 = vst [vmem:[#allocation2 + $0xe8] sm:$0xff] %v3880_v10 }
  0x54   : > { %632 = vst [vmem:[#allocation2 + $0xf0] sm:$0xff] %v3880_v10  ;;  %633 = vst [vmem:[#allocation2 + $0xf8] sm:$0xff] %v3880_v10 }
  0x55   : > { %634 = vst [vmem:[#allocation2 + $0x100] sm:$0xff] %v3880_v10  ;;  %635 = vst [vmem:[#allocation2 + $0x108] sm:$0xff] %v3880_v10 }
  0x56   : > { %636 = vst [vmem:[#allocation2 + $0x110] sm:$0xff] %v3880_v10  ;;  %637 = vst [vmem:[#allocation2 + $0x118] sm:$0xff] %v3880_v10 }
  0x57   : > { %638 = vst [vmem:[#allocation2 + $0x120] sm:$0xff] %v3880_v10  ;;  %639 = vst [vmem:[#allocation2 + $0x128] sm:$0xff] %v3880_v10 }
  0x58   : > { %640 = vst [vmem:[#allocation2 + $0x130] sm:$0xff] %v3880_v10  ;;  %641 = vst [vmem:[#allocation2 + $0x138] sm:$0xff] %v3880_v10 }
  0x59   : > { %642 = vst [vmem:[#allocation2 + $0x140] sm:$0xff] %v3880_v10  ;;  %643 = vst [vmem:[#allocation2 + $0x148] sm:$0xff] %v3880_v10 }
  0x5a   : > { %644 = vst [vmem:[#allocation2 + $0x150] sm:$0xff] %v3880_v10  ;;  %645 = vst [vmem:[#allocation2 + $0x158] sm:$0xff] %v3880_v10 }
  0x5b   : > { %646 = vst [vmem:[#allocation2 + $0x160] sm:$0xff] %v3880_v10  ;;  %647 = vst [vmem:[#allocation2 + $0x168] sm:$0xff] %v3880_v10 }
  0x5c   : > { %648 = vst [vmem:[#allocation2 + $0x170] sm:$0xff] %v3880_v10  ;;  %649 = vst [vmem:[#allocation2 + $0x178] sm:$0xff] %v3880_v10 }
  0x5d   : > { %650 = vst [vmem:[#allocation2 + $0x180] sm:$0xff] %v3880_v10  ;;  %651 = vst [vmem:[#allocation2 + $0x188] sm:$0xff] %v3880_v10 }
  0x5e   : > { %652 = vst [vmem:[#allocation2 + $0x190] sm:$0xff] %v3880_v10  ;;  %653 = vst [vmem:[#allocation2 + $0x198] sm:$0xff] %v3880_v10 }
  0x5f   : > { %654 = vst [vmem:[#allocation2 + $0x1a0] sm:$0xff] %v3880_v10  ;;  %655 = vst [vmem:[#allocation2 + $0x1a8] sm:$0xff] %v3880_v10 }
  0x60   : > { %656 = vst [vmem:[#allocation2 + $0x1b0] sm:$0xff] %v3880_v10  ;;  %657 = vst [vmem:[#allocation2 + $0x1b8] sm:$0xff] %v3880_v10 }
  0x61   : > { %658 = vst [vmem:[#allocation2 + $0x1c0] sm:$0xff] %v3880_v10  ;;  %659 = vst [vmem:[#allocation2 + $0x1c8] sm:$0xff] %v3880_v10 }
  0x62   : > { %660 = vst [vmem:[#allocation2 + $0x1d0] sm:$0xff] %v3880_v10  ;;  %661 = vst [vmem:[#allocation2 + $0x1d8] sm:$0xff] %v3880_v10 }
  0x63   : > { %662 = vst [vmem:[#allocation2 + $0x1e0] sm:$0xff] %v3880_v10  ;;  %663 = vst [vmem:[#allocation2 + $0x1e8] sm:$0xff] %v3880_v10 }
  0x64   : > { %664 = vst [vmem:[#allocation2 + $0x1f0] sm:$0xff] %v3880_v10  ;;  %665 = vst [vmem:[#allocation2 + $0x1f8] sm:$0xff] %v3880_v10 }
  0x65   : > { %666 = vst [vmem:[#allocation2 + $0x200] sm:$0xff] %v3880_v10  ;;  %667 = vst [vmem:[#allocation2 + $0x208] sm:$0xff] %v3880_v10 }
  0x66   : > { %668 = vst [vmem:[#allocation2 + $0x210] sm:$0xff] %v3880_v10  ;;  %669 = vst [vmem:[#allocation2 + $0x218] sm:$0xff] %v3880_v10 }
  0x67   : > { %670 = vst [vmem:[#allocation2 + $0x220] sm:$0xff] %v3880_v10  ;;  %671 = vst [vmem:[#allocation2 + $0x228] sm:$0xff] %v3880_v10 }
  0x68   : > { %672 = vst [vmem:[#allocation2 + $0x230] sm:$0xff] %v3880_v10  ;;  %673 = vst [vmem:[#allocation2 + $0x238] sm:$0xff] %v3880_v10 }
  0x69   : > { %674 = vst [vmem:[#allocation2 + $0x240] sm:$0xff] %v3880_v10  ;;  %675 = vst [vmem:[#allocation2 + $0x248] sm:$0xff] %v3880_v10 }
  0x6a   : > { %676 = vst [vmem:[#allocation2 + $0x250] sm:$0xff] %v3880_v10  ;;  %677 = vst [vmem:[#allocation2 + $0x258] sm:$0xff] %v3880_v10 }
  0x6b   : > { %678 = vst [vmem:[#allocation2 + $0x260] sm:$0xff] %v3880_v10  ;;  %679 = vst [vmem:[#allocation2 + $0x268] sm:$0xff] %v3880_v10 }
  0x6c   : > { %680 = vst [vmem:[#allocation2 + $0x270] sm:$0xff] %v3880_v10  ;;  %681 = vst [vmem:[#allocation2 + $0x278] sm:$0xff] %v3880_v10 }
  0x6d   : > { %682 = vst [vmem:[#allocation2 + $0x280] sm:$0xff] %v3880_v10  ;;  %683 = vst [vmem:[#allocation2 + $0x288] sm:$0xff] %v3880_v10 }
  0x6e   : > { %684 = vst [vmem:[#allocation2 + $0x290] sm:$0xff] %v3880_v10  ;;  %685 = vst [vmem:[#allocation2 + $0x298] sm:$0xff] %v3880_v10 }
  0x6f   : > { %686 = vst [vmem:[#allocation2 + $0x2a0] sm:$0xff] %v3880_v10  ;;  %687 = vst [vmem:[#allocation2 + $0x2a8] sm:$0xff] %v3880_v10 }
  0x70   : > { %688 = vst [vmem:[#allocation2 + $0x2b0] sm:$0xff] %v3880_v10  ;;  %689 = vst [vmem:[#allocation2 + $0x2b8] sm:$0xff] %v3880_v10 }
  0x71   : > { %690 = vst [vmem:[#allocation2 + $0x2c0] sm:$0xff] %v3880_v10  ;;  %691 = vst [vmem:[#allocation2 + $0x2c8] sm:$0xff] %v3880_v10 }
  0x72   : > { %692 = vst [vmem:[#allocation2 + $0x2d0] sm:$0xff] %v3880_v10  ;;  %693 = vst [vmem:[#allocation2 + $0x2d8] sm:$0xff] %v3880_v10 }
  0x73   : > { %694 = vst [vmem:[#allocation2 + $0x2e0] sm:$0xff] %v3880_v10  ;;  %695 = vst [vmem:[#allocation2 + $0x2e8] sm:$0xff] %v3880_v10 }
  0x74   : > { %696 = vst [vmem:[#allocation2 + $0x2f0] sm:$0xff] %v3880_v10  ;;  %697 = vst [vmem:[#allocation2 + $0x2f8] sm:$0xff] %v3880_v10 }
  0x75   : > { %698 = vst [vmem:[#allocation2 + $0x300] sm:$0xff] %v3880_v10  ;;  %699 = vst [vmem:[#allocation2 + $0x308] sm:$0xff] %v3880_v10 }
  0x76   : > { %700 = vst [vmem:[#allocation2 + $0x310] sm:$0xff] %v3880_v10  ;;  %701 = vst [vmem:[#allocation2 + $0x318] sm:$0xff] %v3880_v10 }
  0x77   : > { %702 = vst [vmem:[#allocation2 + $0x320] sm:$0xff] %v3880_v10  ;;  %703 = vst [vmem:[#allocation2 + $0x328] sm:$0xff] %v3880_v10 }
  0x78   : > { %704 = vst [vmem:[#allocation2 + $0x330] sm:$0xff] %v3880_v10  ;;  %705 = vst [vmem:[#allocation2 + $0x338] sm:$0xff] %v3880_v10 }
  0x79   : > { %706 = vst [vmem:[#allocation2 + $0x340] sm:$0xff] %v3880_v10  ;;  %707 = vst [vmem:[#allocation2 + $0x348] sm:$0xff] %v3880_v10 }
  0x7a   : > { %708 = vst [vmem:[#allocation2 + $0x350] sm:$0xff] %v3880_v10  ;;  %709 = vst [vmem:[#allocation2 + $0x358] sm:$0xff] %v3880_v10 }
  0x7b   : > { %710 = vst [vmem:[#allocation2 + $0x360] sm:$0xff] %v3880_v10  ;;  %711 = vst [vmem:[#allocation2 + $0x368] sm:$0xff] %v3880_v10 }
  0x7c   : > { %712 = vst [vmem:[#allocation2 + $0x370] sm:$0xff] %v3880_v10  ;;  %713 = vst [vmem:[#allocation2 + $0x378] sm:$0xff] %v3880_v10 }
  0x7d   : > { %714 = vst [vmem:[#allocation2 + $0x380] sm:$0xff] %v3880_v10  ;;  %715 = vst [vmem:[#allocation2 + $0x388] sm:$0xff] %v3880_v10 }
  0x7e   : > { %716 = vst [vmem:[#allocation2 + $0x390] sm:$0xff] %v3880_v10  ;;  %717 = vst [vmem:[#allocation2 + $0x398] sm:$0xff] %v3880_v10 }
  0x7f   : > { %718 = vst [vmem:[#allocation2 + $0x3a0] sm:$0xff] %v3880_v10  ;;  %719 = vst [vmem:[#allocation2 + $0x3a8] sm:$0xff] %v3880_v10 }
  0x80   : > { %720 = vst [vmem:[#allocation2 + $0x3b0] sm:$0xff] %v3880_v10  ;;  %721 = vst [vmem:[#allocation2 + $0x3b8] sm:$0xff] %v3880_v10 }
  0x81   : > { %722 = vst [vmem:[#allocation2 + $0x3c0] sm:$0xff] %v3880_v10  ;;  %723 = vst [vmem:[#allocation2 + $0x3c8] sm:$0xff] %v3880_v10 }
  0x82   : > { %724 = vst [vmem:[#allocation2 + $0x3d0] sm:$0xff] %v3880_v10  ;;  %725 = vst [vmem:[#allocation2 + $0x3d8] sm:$0xff] %v3880_v10 }
  0x83   : > { %726 = vst [vmem:[#allocation2 + $0x3e0] sm:$0xff] %v3880_v10  ;;  %727 = vst [vmem:[#allocation2 + $0x3e8] sm:$0xff] %v3880_v10 }
  0x84   : > { %728 = vst [vmem:[#allocation2 + $0x3f0] sm:$0xff] %v3880_v10  ;;  %729 = vst [vmem:[#allocation2 + $0x3f8] sm:$0xff] %v3880_v10 }
  0x85   : > { %730 = vst [vmem:[#allocation2 + $0x400] sm:$0xff] %v3880_v10  ;;  %731 = vst [vmem:[#allocation2 + $0x408] sm:$0xff] %v3880_v10 }
  0x86   : > { %732 = vst [vmem:[#allocation2 + $0x410] sm:$0xff] %v3880_v10  ;;  %733 = vst [vmem:[#allocation2 + $0x418] sm:$0xff] %v3880_v10 }
  0x87   : > { %734 = vst [vmem:[#allocation2 + $0x420] sm:$0xff] %v3880_v10  ;;  %735 = vst [vmem:[#allocation2 + $0x428] sm:$0xff] %v3880_v10 }
  0x88   : > { %736 = vst [vmem:[#allocation2 + $0x430] sm:$0xff] %v3880_v10  ;;  %737 = vst [vmem:[#allocation2 + $0x438] sm:$0xff] %v3880_v10 }
  0x89   : > { %738 = vst [vmem:[#allocation2 + $0x440] sm:$0xff] %v3880_v10  ;;  %739 = vst [vmem:[#allocation2 + $0x448] sm:$0xff] %v3880_v10 }
  0x8a   : > { %740 = vst [vmem:[#allocation2 + $0x450] sm:$0xff] %v3880_v10  ;;  %741 = vst [vmem:[#allocation2 + $0x458] sm:$0xff] %v3880_v10 }
  0x8b   : > { %742 = vst [vmem:[#allocation2 + $0x460] sm:$0xff] %v3880_v10  ;;  %743 = vst [vmem:[#allocation2 + $0x468] sm:$0xff] %v3880_v10 }
  0x8c   : > { %744 = vst [vmem:[#allocation2 + $0x470] sm:$0xff] %v3880_v10  ;;  %745 = vst [vmem:[#allocation2 + $0x478] sm:$0xff] %v3880_v10 }
  0x8d   : > { %746 = vst [vmem:[#allocation2 + $0x480] sm:$0xff] %v3880_v10  ;;  %747 = vst [vmem:[#allocation2 + $0x488] sm:$0xff] %v3880_v10 }
  0x8e   : > { %748 = vst [vmem:[#allocation2 + $0x490] sm:$0xff] %v3880_v10  ;;  %749 = vst [vmem:[#allocation2 + $0x498] sm:$0xff] %v3880_v10 }
  0x8f PF: > { %v3681_v11 = vld [vmem:[%s4103_s7 + $0x4] ss:$8 sps:$4 sm:$0xff]   ;;  %v3683_v12 = vld [vmem:[%s4103_s7] ss:$8 sps:$4 sm:$0xff]   ;;  %v3684_v13 = vld [vmem:[%s4103_s7 + $0x14] ss:$8 sps:$4 sm:$0xff]  }
  0x90   : > { %1534 = vmatprep.subr.bf16.mxu0 %v3681_v11  ;;  %3606 = vmatprep.subr.bf16.mxu1 %v3681_v11  ;;  %v3686_v14 = vld [vmem:[%s4103_s7 + $0x10] ss:$8 sps:$4 sm:$0xff]   ;;  %v3687_v15 = vld [vmem:[%s4103_s7 + $0x24] ss:$8 sps:$4 sm:$0xff]   ;;  %v3689_v16 = vld [vmem:[%s4103_s7 + $0x20] ss:$8 sps:$4 sm:$0xff]  }
  0x91   : > { %1535 = vmatpush1.bf16.msra.mxu0 %v3683_v12  ;;  %3622 = vmatpush1.bf16.msra.mxu1 %v3683_v12  ;;  %v3690_v17 = vld [vmem:[%s4103_s7 + $0x34] ss:$8 sps:$4 sm:$0xff]   ;;  %v3692_v18 = vld [vmem:[%s4103_s7 + $0x30] ss:$8 sps:$4 sm:$0xff]   ;;  %v3693_v19 = vld [vmem:[%s4103_s7 + $0x44] ss:$8 sps:$4 sm:$0xff]  }
  0x92   : > { %1536 = vmatprep.subr.bf16.mxu0 %v3684_v13  ;;  %3607 = vmatprep.subr.bf16.mxu1 %v3684_v13  ;;  %v3695_v20 = vld [vmem:[%s4103_s7 + $0x40] ss:$8 sps:$4 sm:$0xff]   ;;  %v3696_v21 = vld [vmem:[%s4103_s7 + $0x54] ss:$8 sps:$4 sm:$0xff]   ;;  %v3698_v22 = vld [vmem:[%s4103_s7 + $0x50] ss:$8 sps:$4 sm:$0xff]  }
  0x93   : > { %v3699_v23 = vld [vmem:[%s4103_s7 + $0x64] ss:$8 sps:$4 sm:$0xff]   ;;  %v3701_v25 = vld [vmem:[%s4103_s7 + $0x60] ss:$8 sps:$4 sm:$0xff]   ;;  %v3702_v27 = vld [vmem:[%s4103_s7 + $0x74] ss:$8 sps:$4 sm:$0xff]  }
  0x94   : > { %v3731_v24 = vld [vmem:[%s4105_s8 + $0x4] ss:$8 sps:$4 sm:$0xff]   ;;  %v3734_v26 = vld [vmem:[%s4105_s8 + $0x134] ss:$8 sps:$4 sm:$0xff]   ;;  %v3704_v28 = vld [vmem:[%s4103_s7 + $0x70] ss:$8 sps:$4 sm:$0xff]  }
  0x95   : > { %1537 = vmatpush1.bf16.msra.mxu0 %v3686_v14  ;;  %3623 = vmatpush1.bf16.msra.mxu1 %v3686_v14  ;;  %v3705_v29 = vld [vmem:[%s4103_s7 + $0x84] ss:$8 sps:$4 sm:$0xff]   ;;  %v3707_v30 = vld [vmem:[%s4103_s7 + $0x80] ss:$8 sps:$4 sm:$0xff]   ;;  %v3708_v31 = vld [vmem:[%s4103_s7 + $0x94] ss:$8 sps:$4 sm:$0xff]  }
  0x96   : > { %1538 = vmatprep.subr.bf16.mxu0 %v3687_v15  ;;  %3608 = vmatprep.subr.bf16.mxu1 %v3687_v15  ;;  %v3710_v32 = vld [vmem:[%s4103_s7 + $0x90] ss:$8 sps:$4 sm:$0xff]   ;;  %v3711_v33 = vld [vmem:[%s4103_s7 + $0xa4] ss:$8 sps:$4 sm:$0xff]   ;;  %v3713_v34 = vld [vmem:[%s4103_s7 + $0xa0] ss:$8 sps:$4 sm:$0xff]  }
  0x97   : > { %1566 = vmatprep.mubr.bf16.mxu0 %v3731_v24  ;;  %1756 = vmatprep.mubr.bf16.mxu1 %v3734_v26  ;;  %v3714_v35 = vld [vmem:[%s4103_s7 + $0xb4] ss:$8 sps:$4 sm:$0xff]   ;;  %v3716_v36 = vld [vmem:[%s4103_s7 + $0xb0] ss:$8 sps:$4 sm:$0xff]   ;;  %v3717_v37 = vld [vmem:[%s4103_s7 + $0xc4] ss:$8 sps:$4 sm:$0xff]  }
  0x98   : > { %v3719_v38 = vld [vmem:[%s4103_s7 + $0xc0] ss:$8 sps:$4 sm:$0xff]   ;;  %v3720_v39 = vld [vmem:[%s4103_s7 + $0xd4] ss:$8 sps:$4 sm:$0xff]   ;;  %v3722_v40 = vld [vmem:[%s4103_s7 + $0xd0] ss:$8 sps:$4 sm:$0xff]  }
  0x99   : > { %1539 = vmatpush1.bf16.msra.mxu0 %v3689_v16  ;;  %3624 = vmatpush1.bf16.msra.mxu1 %v3689_v16  ;;  %v3723_v41 = vld [vmem:[%s4103_s7 + $0xe4] ss:$8 sps:$4 sm:$0xff]   ;;  %v3725_v42 = vld [vmem:[%s4103_s7 + $0xe0] ss:$8 sps:$4 sm:$0xff]   ;;  %v3726_v43 = vld [vmem:[%s4103_s7 + $0xf4] ss:$8 sps:$4 sm:$0xff]  }
  0x9a   : > { %1540 = vmatprep.subr.bf16.mxu0 %v3690_v17  ;;  %3609 = vmatprep.subr.bf16.mxu1 %v3690_v17  ;;  %v3728_v44 = vld [vmem:[%s4103_s7 + $0xf0] ss:$8 sps:$4 sm:$0xff]   ;;  %v3735_v47 = vld [vmem:[%s4105_s8 + $0x14] ss:$8 sps:$4 sm:$0xff]   ;;  %v3738_v48 = vld [vmem:[%s4105_s8 + $0x144] ss:$8 sps:$4 sm:$0xff]  }
  0x9b   : > { %v3729_v45 = vld [vmem:[%s4105_s8] ss:$8 sps:$4 sm:$0xff]   ;;  %v3732_v46 = vld [vmem:[%s4105_s8 + $0x130] ss:$8 sps:$4 sm:$0xff]   ;;  %v3741_v51 = vld [vmem:[%s4105_s8 + $0x24] ss:$8 sps:$4 sm:$0xff]  }
  0x9c   : > { %v3737_v49 = vld [vmem:[%s4105_s8 + $0x10] ss:$8 sps:$4 sm:$0xff]   ;;  %v3740_v50 = vld [vmem:[%s4105_s8 + $0x140] ss:$8 sps:$4 sm:$0xff]   ;;  %v3744_v52 = vld [vmem:[%s4105_s8 + $0x154] ss:$8 sps:$4 sm:$0xff]  }
  0x9d   : > { %1541 = vmatpush1.bf16.msra.mxu0 %v3692_v18  ;;  %3625 = vmatpush1.bf16.msra.mxu1 %v3692_v18  ;;  %v3743_v53 = vld [vmem:[%s4105_s8 + $0x20] ss:$8 sps:$4 sm:$0xff]   ;;  %v3746_v54 = vld [vmem:[%s4105_s8 + $0x150] ss:$8 sps:$4 sm:$0xff]   ;;  %v3747_v55 = vld [vmem:[%s4105_s8 + $0x34] ss:$8 sps:$4 sm:$0xff]  }
  0x9e   : > { %1542 = vmatprep.subr.bf16.mxu0 %v3693_v19  ;;  %3610 = vmatprep.subr.bf16.mxu1 %v3693_v19  ;;  %v3750_v56 = vld [vmem:[%s4105_s8 + $0x164] ss:$8 sps:$4 sm:$0xff]   ;;  %v3749_v57 = vld [vmem:[%s4105_s8 + $0x30] ss:$8 sps:$4 sm:$0xff]   ;;  %v3752_v58 = vld [vmem:[%s4105_s8 + $0x160] ss:$8 sps:$4 sm:$0xff]  }
  0x9f   : > { %v3753_v59 = vld [vmem:[%s4105_s8 + $0x44] ss:$8 sps:$4 sm:$0xff]   ;;  %v3756_v60 = vld [vmem:[%s4105_s8 + $0x174] ss:$8 sps:$4 sm:$0xff]   ;;  %v3755_v61 = vld [vmem:[%s4105_s8 + $0x40] ss:$8 sps:$4 sm:$0xff]  }
  0xa0   : > { %v3758_v62 = vld [vmem:[%s4105_s8 + $0x170] ss:$8 sps:$4 sm:$0xff]   ;;  %v3759_v63 = vld [vmem:[%s4105_s8 + $0x54] ss:$8 sps:$4 sm:$0xff]   ;;  %v3762_v0 = vld [vmem:[%s4105_s8 + $0x184] ss:$8 sps:$4 sm:$0xff]  }
  0xa1   : > { %1543 = vmatpush1.bf16.msra.mxu0 %v3695_v20  ;;  %3626 = vmatpush1.bf16.msra.mxu1 %v3695_v20  ;;  %v3761_v1 = vld [vmem:[%s4105_s8 + $0x50] ss:$8 sps:$4 sm:$0xff]   ;;  %v3764_v2 = vld [vmem:[%s4105_s8 + $0x180] ss:$8 sps:$4 sm:$0xff]   ;;  %v3765_v3 = vld [vmem:[%s4105_s8 + $0x64] ss:$8 sps:$4 sm:$0xff]  }
  0xa2   : > { %1544 = vmatprep.subr.bf16.mxu0 %v3696_v21  ;;  %3611 = vmatprep.subr.bf16.mxu1 %v3696_v21  ;;  %v3768_v4 = vld [vmem:[%s4105_s8 + $0x194] ss:$8 sps:$4 sm:$0xff]   ;;  %v3767_v5 = vld [vmem:[%s4105_s8 + $0x60] ss:$8 sps:$4 sm:$0xff]   ;;  %v3770_v6 = vld [vmem:[%s4105_s8 + $0x190] ss:$8 sps:$4 sm:$0xff]  }
  0xa3   : > { %v3771_v7 = vld [vmem:[%s4105_s8 + $0x74] ss:$8 sps:$4 sm:$0xff]   ;;  %v3774_v8 = vld [vmem:[%s4105_s8 + $0x1a4] ss:$8 sps:$4 sm:$0xff]   ;;  %v3773_v9 = vld [vmem:[%s4105_s8 + $0x70] ss:$8 sps:$4 sm:$0xff]  }
  0xa4   : > { %v3776_v10 = vld [vmem:[%s4105_s8 + $0x1a0] ss:$8 sps:$4 sm:$0xff]   ;;  %v3777_v11 = vld [vmem:[%s4105_s8 + $0x84] ss:$8 sps:$4 sm:$0xff]   ;;  %v3780_v12 = vld [vmem:[%s4105_s8 + $0x1b4] ss:$8 sps:$4 sm:$0xff]  }
  0xa5   : > { %1545 = vmatpush1.bf16.msra.mxu0 %v3698_v22  ;;  %3627 = vmatpush1.bf16.msra.mxu1 %v3698_v22  ;;  %v3779_v13 = vld [vmem:[%s4105_s8 + $0x80] ss:$8 sps:$4 sm:$0xff]   ;;  %v3782_v14 = vld [vmem:[%s4105_s8 + $0x1b0] ss:$8 sps:$4 sm:$0xff]   ;;  %v3783_v15 = vld [vmem:[%s4105_s8 + $0x94] ss:$8 sps:$4 sm:$0xff]  }
  0xa6   : > { %1546 = vmatprep.subr.bf16.mxu0 %v3699_v23  ;;  %3612 = vmatprep.subr.bf16.mxu1 %v3699_v23  ;;  %v3786_v16 = vld [vmem:[%s4105_s8 + $0x1c4] ss:$8 sps:$4 sm:$0xff]   ;;  %v3785_v17 = vld [vmem:[%s4105_s8 + $0x90] ss:$8 sps:$4 sm:$0xff]   ;;  %v3788_v18 = vld [vmem:[%s4105_s8 + $0x1c0] ss:$8 sps:$4 sm:$0xff]  }
  0xa7   : > { %v3789_v19 = vld [vmem:[%s4105_s8 + $0xa4] ss:$8 sps:$4 sm:$0xff]   ;;  %v3792_v20 = vld [vmem:[%s4105_s8 + $0x1d4] ss:$8 sps:$4 sm:$0xff]   ;;  %v3791_v21 = vld [vmem:[%s4105_s8 + $0xa0] ss:$8 sps:$4 sm:$0xff]  }
  0xa8   : > { %v3794_v22 = vld [vmem:[%s4105_s8 + $0x1d0] ss:$8 sps:$4 sm:$0xff]   ;;  %v3795_v23 = vld [vmem:[%s4105_s8 + $0xb4] ss:$8 sps:$4 sm:$0xff]   ;;  %v3798_v24 = vld [vmem:[%s4105_s8 + $0x1e4] ss:$8 sps:$4 sm:$0xff]  }
  0xa9   : > { %1547 = vmatpush1.bf16.msra.mxu0 %v3701_v25  ;;  %3628 = vmatpush1.bf16.msra.mxu1 %v3701_v25  ;;  %v3797_v25 = vld [vmem:[%s4105_s8 + $0xb0] ss:$8 sps:$4 sm:$0xff]   ;;  %v3800_v26 = vld [vmem:[%s4105_s8 + $0x1e0] ss:$8 sps:$4 sm:$0xff]   ;;  %p3451_p11 = scmp.ne.s32.totalorder %s3870_s14, 8 }
  0xaa   : > { %1548 = vmatprep.subr.bf16.mxu0 %v3702_v27  ;;  %3613 = vmatprep.subr.bf16.mxu1 %v3702_v27  ;;  %v3801_v27 = vld [vmem:[%s4105_s8 + $0xc4] ss:$8 sps:$4 sm:$0xff]  }
  0xad   : > { %1549 = vmatpush1.bf16.msra.mxu0 %v3704_v28  ;;  %3629 = vmatpush1.bf16.msra.mxu1 %v3704_v28  ;;  %v3804_v28 = vld [vmem:[%s4105_s8 + $0x1f4] ss:$8 sps:$4 sm:$0xff]  }
  0xae   : > { %1550 = vmatprep.subr.bf16.mxu0 %v3705_v29  ;;  %3614 = vmatprep.subr.bf16.mxu1 %v3705_v29  ;;  %v3803_v29 = vld [vmem:[%s4105_s8 + $0xc0] ss:$8 sps:$4 sm:$0xff]  }
  0xb1   : > { %1551 = vmatpush1.bf16.msra.mxu0 %v3707_v30  ;;  %3630 = vmatpush1.bf16.msra.mxu1 %v3707_v30  ;;  %v3806_v30 = vld [vmem:[%s4105_s8 + $0x1f0] ss:$8 sps:$4 sm:$0xff]  }
  0xb2   : > { %1552 = vmatprep.subr.bf16.mxu0 %v3708_v31  ;;  %3615 = vmatprep.subr.bf16.mxu1 %v3708_v31  ;;  %v3807_v31 = vld [vmem:[%s4105_s8 + $0xd4] ss:$8 sps:$4 sm:$0xff]  }
  0xb5   : > { %1553 = vmatpush1.bf16.msra.mxu0 %v3710_v32  ;;  %3631 = vmatpush1.bf16.msra.mxu1 %v3710_v32  ;;  %v3810_v32 = vld [vmem:[%s4105_s8 + $0x204] ss:$8 sps:$4 sm:$0xff]  }
  0xb6   : > { %1554 = vmatprep.subr.bf16.mxu0 %v3711_v33  ;;  %3616 = vmatprep.subr.bf16.mxu1 %v3711_v33  ;;  %v3809_v33 = vld [vmem:[%s4105_s8 + $0xd0] ss:$8 sps:$4 sm:$0xff]  }
  0xb9   : > { %1555 = vmatpush1.bf16.msra.mxu0 %v3713_v34  ;;  %3632 = vmatpush1.bf16.msra.mxu1 %v3713_v34  ;;  %v3812_v34 = vld [vmem:[%s4105_s8 + $0x200] ss:$8 sps:$4 sm:$0xff]  }
  0xba   : > { %1556 = vmatprep.subr.bf16.mxu0 %v3714_v35  ;;  %3617 = vmatprep.subr.bf16.mxu1 %v3714_v35  ;;  %v3813_v35 = vld [vmem:[%s4105_s8 + $0xe4] ss:$8 sps:$4 sm:$0xff]  }
  0xbd   : > { %1557 = vmatpush1.bf16.msra.mxu0 %v3716_v36  ;;  %3633 = vmatpush1.bf16.msra.mxu1 %v3716_v36  ;;  %v3816_v36 = vld [vmem:[%s4105_s8 + $0x214] ss:$8 sps:$4 sm:$0xff]  }
  0xbe   : > { %1558 = vmatprep.subr.bf16.mxu0 %v3717_v37  ;;  %3618 = vmatprep.subr.bf16.mxu1 %v3717_v37  ;;  %v3815_v37 = vld [vmem:[%s4105_s8 + $0xe0] ss:$8 sps:$4 sm:$0xff]  }
  0xc1   : > { %1559 = vmatpush1.bf16.msra.mxu0 %v3719_v38  ;;  %3634 = vmatpush1.bf16.msra.mxu1 %v3719_v38  ;;  %v3818_v38 = vld [vmem:[%s4105_s8 + $0x210] ss:$8 sps:$4 sm:$0xff]  }
  0xc2   : > { %1560 = vmatprep.subr.bf16.mxu0 %v3720_v39  ;;  %3619 = vmatprep.subr.bf16.mxu1 %v3720_v39  ;;  %v3819_v39 = vld [vmem:[%s4105_s8 + $0xf4] ss:$8 sps:$4 sm:$0xff]  }
  0xc5   : > { %1561 = vmatpush1.bf16.msra.mxu0 %v3722_v40  ;;  %3635 = vmatpush1.bf16.msra.mxu1 %v3722_v40  ;;  %v3822_v40 = vld [vmem:[%s4105_s8 + $0x224] ss:$8 sps:$4 sm:$0xff]  }
  0xc6   : > { %1562 = vmatprep.subr.bf16.mxu0 %v3723_v41  ;;  %3620 = vmatprep.subr.bf16.mxu1 %v3723_v41  ;;  %v3821_v41 = vld [vmem:[%s4105_s8 + $0xf0] ss:$8 sps:$4 sm:$0xff]  }
  0xc9   : > { %1563 = vmatpush1.bf16.msra.mxu0 %v3725_v42  ;;  %3636 = vmatpush1.bf16.msra.mxu1 %v3725_v42  ;;  %v3824_v42 = vld [vmem:[%s4105_s8 + $0x220] ss:$8 sps:$4 sm:$0xff]  }
  0xca   : > { %1564 = vmatprep.subr.bf16.mxu0 %v3726_v43  ;;  %3621 = vmatprep.subr.bf16.mxu1 %v3726_v43  ;;  %v3825_v43 = vld [vmem:[%s4105_s8 + $0x104] ss:$8 sps:$4 sm:$0xff]  }
  0xcd   : > { %1565 = vmatpush1.bf16.msra.mxu0 %v3728_v44  ;;  %3637 = vmatpush1.bf16.msra.mxu1 %v3728_v44  ;;  %v3828_v44 = vld [vmem:[%s4105_s8 + $0x234] ss:$8 sps:$4 sm:$0xff]  }
  0xd0   : > { %1567 = vmatmul.mubr.bf16.vlgmr.msra.gmra.mrb[0].mxu0 %v3729_v45  ;;  %1757 = vmatmul.mubr.bf16.vlgmr.msra.gmra.mrb[0].mxu1 %v3732_v46  ;;  %v3827_v45 = vld [vmem:[%s4105_s8 + $0x100] ss:$8 sps:$4 sm:$0xff]   ;;  %v3830_v46 = vld [vmem:[%s4105_s8 + $0x230] ss:$8 sps:$4 sm:$0xff]  }
  0xd1   : > { %1576 = vmatprep.mubr.bf16.mxu0 %v3735_v47  ;;  %1766 = vmatprep.mubr.bf16.mxu1 %v3738_v48  ;;  %v3831_v47 = vld [vmem:[%s4105_s8 + $0x114] ss:$8 sps:$4 sm:$0xff]   ;;  %v3834_v48 = vld [vmem:[%s4105_s8 + $0x244] ss:$8 sps:$4 sm:$0xff]  }
  0xd8   : > { %1577 = vmatmul.mubr.bf16.gmra.mrb[4].mxu0 %v3737_v49  ;;  %1767 = vmatmul.mubr.bf16.gmra.mrb[4].mxu1 %v3740_v50  ;;  %v3833_v49 = vld [vmem:[%s4105_s8 + $0x110] ss:$8 sps:$4 sm:$0xff]   ;;  %v3836_v50 = vld [vmem:[%s4105_s8 + $0x240] ss:$8 sps:$4 sm:$0xff]  }
  0xd9   : > { %1586 = vmatprep.mubr.bf16.mxu0 %v3741_v51  ;;  %1776 = vmatprep.mubr.bf16.mxu1 %v3744_v52  ;;  %v3837_v51 = vld [vmem:[%s4105_s8 + $0x124] ss:$8 sps:$4 sm:$0xff]   ;;  %v3839_v52 = vld [vmem:[%s4105_s8 + $0x120] ss:$8 sps:$4 sm:$0xff]  }
  0xe0   : > { %1587 = vmatmul.mubr.bf16.gmra.mrb[8].mxu0 %v3743_v53  ;;  %1777 = vmatmul.mubr.bf16.gmra.mrb[8].mxu1 %v3746_v54  ;;  %v750_v53 = vld [vmem:[#allocation2] sm:$0xff] }
  0xe1   : > { %1596 = vmatprep.mubr.bf16.mxu0 %v3747_v55  ;;  %1786 = vmatprep.mubr.bf16.mxu1 %v3750_v56  ;;  %v826_v54 = vld [vmem:[#allocation2 + $0x260] sm:$0xff]  ;;  %v751_v55 = vld [vmem:[#allocation2 + $0x8] sm:$0xff] }
  0xe2   : > { %v827_v56 = vld [vmem:[#allocation2 + $0x268] sm:$0xff] }
  0xe8   : > { %1597 = vmatmul.mubr.bf16.gmra.mrb[12].mxu0 %v3749_v57  ;;  %1787 = vmatmul.mubr.bf16.gmra.mrb[12].mxu1 %v3752_v58  ;;  %v752_v58 = vld [vmem:[#allocation2 + $0x10] sm:$0xff] }
  0xe9   : > { %1606 = vmatprep.mubr.bf16.mxu0 %v3753_v59  ;;  %1796 = vmatprep.mubr.bf16.mxu1 %v3756_v60  ;;  %v828_v60 = vld [vmem:[#allocation2 + $0x270] sm:$0xff] }
  0xf0   : > { %1607 = vmatmul.mubr.bf16.gmra.mrb[16].mxu0 %v3755_v61  ;;  %1797 = vmatmul.mubr.bf16.gmra.mrb[16].mxu1 %v3758_v62 }
  0xf1   : > { %1616 = vmatprep.mubr.bf16.mxu0 %v3759_v63  ;;  %1806 = vmatprep.mubr.bf16.mxu1 %v3762_v0  ;;  %v753_v63 = vld [vmem:[#allocation2 + $0x18] sm:$0xff] }
  0xf8   : > { %1617 = vmatmul.mubr.bf16.gmra.mrb[20].mxu0 %v3761_v1  ;;  %1807 = vmatmul.mubr.bf16.gmra.mrb[20].mxu1 %v3764_v2  ;;  %v829_v2 = vld [vmem:[#allocation2 + $0x278] sm:$0xff] }
  0xf9   : > { %1626 = vmatprep.mubr.bf16.mxu0 %v3765_v3  ;;  %1816 = vmatprep.mubr.bf16.mxu1 %v3768_v4 }
 0x100   : > { %1627 = vmatmul.mubr.bf16.gmra.mrb[24].mxu0 %v3767_v5  ;;  %1817 = vmatmul.mubr.bf16.gmra.mrb[24].mxu1 %v3770_v6 }
 0x101   : > { %1636 = vmatprep.mubr.bf16.mxu0 %v3771_v7  ;;  %1826 = vmatprep.mubr.bf16.mxu1 %v3774_v8 }
 0x108   : > { %1637 = vmatmul.mubr.bf16.gmra.mrb[28].mxu0 %v3773_v9  ;;  %1827 = vmatmul.mubr.bf16.gmra.mrb[28].mxu1 %v3776_v10 }
 0x109   : > { %1646 = vmatprep.mubr.bf16.mxu0 %v3777_v11  ;;  %1836 = vmatprep.mubr.bf16.mxu1 %v3780_v12 }
 0x110   : > { %1647 = vmatmul.mubr.bf16.gmra.mrb[32].mxu0 %v3779_v13  ;;  %1837 = vmatmul.mubr.bf16.gmra.mrb[32].mxu1 %v3782_v14  ;;  %v754_v13 = vld [vmem:[#allocation2 + $0x20] sm:$0xff] }
 0x111   : > { %1656 = vmatprep.mubr.bf16.mxu0 %v3783_v15  ;;  %1846 = vmatprep.mubr.bf16.mxu1 %v3786_v16  ;;  %v830_v14 = vld [vmem:[#allocation2 + $0x280] sm:$0xff]  ;;  %v755_v15 = vld [vmem:[#allocation2 + $0x28] sm:$0xff] }
 0x112   : > { %v831_v16 = vld [vmem:[#allocation2 + $0x288] sm:$0xff] }
 0x118   : > { %1657 = vmatmul.mubr.bf16.gmra.mrb[36].mxu0 %v3785_v17  ;;  %1847 = vmatmul.mubr.bf16.gmra.mrb[36].mxu1 %v3788_v18  ;;  %v756_v18 = vld [vmem:[#allocation2 + $0x30] sm:$0xff] }
 0x119   : > { %1666 = vmatprep.mubr.bf16.mxu0 %v3789_v19  ;;  %1856 = vmatprep.mubr.bf16.mxu1 %v3792_v20  ;;  %v832_v20 = vld [vmem:[#allocation2 + $0x290] sm:$0xff] }
 0x120   : > { %1667 = vmatmul.mubr.bf16.gmra.mrb[40].mxu0 %v3791_v21  ;;  %1857 = vmatmul.mubr.bf16.gmra.mrb[40].mxu1 %v3794_v22 }
 0x121   : > { %1676 = vmatprep.mubr.bf16.mxu0 %v3795_v23  ;;  %1866 = vmatprep.mubr.bf16.mxu1 %v3798_v24  ;;  %v757_v23 = vld [vmem:[#allocation2 + $0x38] sm:$0xff] }
 0x128   : > { %1677 = vmatmul.mubr.bf16.gmra.mrb[44].mxu0 %v3797_v25  ;;  %1867 = vmatmul.mubr.bf16.gmra.mrb[44].mxu1 %v3800_v26  ;;  %v833_v26 = vld [vmem:[#allocation2 + $0x298] sm:$0xff] }
 0x129   : > { %1686 = vmatprep.mubr.bf16.mxu0 %v3801_v27  ;;  %1876 = vmatprep.mubr.bf16.mxu1 %v3804_v28 }
 0x130   : > { %1687 = vmatmul.mubr.bf16.gmra.mrb[48].mxu0 %v3803_v29  ;;  %1877 = vmatmul.mubr.bf16.gmra.mrb[48].mxu1 %v3806_v30 }
 0x131   : > { %1696 = vmatprep.mubr.bf16.mxu0 %v3807_v31  ;;  %1886 = vmatprep.mubr.bf16.mxu1 %v3810_v32 }
 0x138   : > { %1697 = vmatmul.mubr.bf16.gmra.mrb[52].mxu0 %v3809_v33  ;;  %1887 = vmatmul.mubr.bf16.gmra.mrb[52].mxu1 %v3812_v34 }
 0x139   : > { %1706 = vmatprep.mubr.bf16.mxu0 %v3813_v35  ;;  %1896 = vmatprep.mubr.bf16.mxu1 %v3816_v36 }
 0x140   : > { %1707 = vmatmul.mubr.bf16.gmra.mrb[56].mxu0 %v3815_v37  ;;  %1897 = vmatmul.mubr.bf16.gmra.mrb[56].mxu1 %v3818_v38  ;;  %v758_v37 = vld [vmem:[#allocation2 + $0x40] sm:$0xff] }
 0x141   : > { %1716 = vmatprep.mubr.bf16.mxu0 %v3819_v39  ;;  %1906 = vmatprep.mubr.bf16.mxu1 %v3822_v40  ;;  %v834_v38 = vld [vmem:[#allocation2 + $0x2a0] sm:$0xff]  ;;  %v759_v39 = vld [vmem:[#allocation2 + $0x48] sm:$0xff] }
 0x142   : > { %v835_v40 = vld [vmem:[#allocation2 + $0x2a8] sm:$0xff] }
 0x148   : > { %1717 = vmatmul.mubr.bf16.gmra.mrb[60].mxu0 %v3821_v41  ;;  %1907 = vmatmul.mubr.bf16.gmra.mrb[60].mxu1 %v3824_v42  ;;  %v760_v42 = vld [vmem:[#allocation2 + $0x50] sm:$0xff] }
 0x149   : > { %1726 = vmatprep.mubr.bf16.mxu0 %v3825_v43  ;;  %1916 = vmatprep.mubr.bf16.mxu1 %v3828_v44  ;;  %v836_v44 = vld [vmem:[#allocation2 + $0x2b0] sm:$0xff] }
 0x150   : > { %1727 = vmatmul.mubr.bf16.gmra.mrb[64].mxu0 %v3827_v45  ;;  %1917 = vmatmul.mubr.bf16.gmra.mrb[64].mxu1 %v3830_v46 }
 0x151   : > { %1736 = vmatprep.mubr.bf16.mxu0 %v3831_v47  ;;  %1926 = vmatprep.mubr.bf16.mxu1 %v3834_v48  ;;  %v761_v47 = vld [vmem:[#allocation2 + $0x58] sm:$0xff] }
 0x158   : > { %1737 = vmatmul.mubr.bf16.gmra.mrb[68].mxu0 %v3833_v49  ;;  %1927 = vmatmul.mubr.bf16.gmra.mrb[68].mxu1 %v3836_v50  ;;  %v837_v50 = vld [vmem:[#allocation2 + $0x2b8] sm:$0xff] }
 0x159   : > { %1746 = vmatprep.mubr.bf16.mxu0 %v3837_v51 }
 0x160   : > { %1747 = vmatmul.mubr.bf16.gmra.mrb[72].mxu0 %v3839_v52 }
 0x1a3   : > { %v1568_v57 = vpop.f32.mrb[0].mxu0  ;;  %v1758_v59 = vpop.f32.mrb[0].mxu1 }
 0x1a4   : > { %v1937_v61 = vadd.f32 %v1568_v57, %v750_v53  ;;  %v1570_v62 = vpop.f32.mrb[1].mxu0  ;;  %v2013_v0 = vadd.f32 %v1758_v59, %v826_v54  ;;  %v1760_v1 = vpop.f32.mrb[1].mxu1 }
 0x1a5   : > { %v1938_v3 = vadd.f32 %v1570_v62, %v751_v55  ;;  %v1572_v4 = vpop.f32.mrb[2].mxu0  ;;  %v2014_v5 = vadd.f32 %v1760_v1, %v827_v56  ;;  %v1762_v6 = vpop.f32.mrb[2].mxu1  ;;  %v838_v62 = vld [vmem:[#allocation2 + $0x2c0] sm:$0xff] }
 0x1a6   : > { %2085 = vst [vmem:[#allocation2] sm:$0xff] %v1937_v61  ;;  %v1939_v7 = vadd.f32 %v1572_v4, %v752_v58  ;;  %v1574_v8 = vpop.f32.mrb[3].mxu0  ;;  %2161 = vst [vmem:[#allocation2 + $0x260] sm:$0xff] %v2013_v0  ;;  %v2015_v9 = vadd.f32 %v1762_v6, %v828_v60  ;;  %v1764_v10 = vpop.f32.mrb[3].mxu1  ;;  %v762_v61 = vld [vmem:[#allocation2 + $0x60] sm:$0xff]  ;;  %v839_v0 = vld [vmem:[#allocation2 + $0x2c8] sm:$0xff] }
 0x1a7   : > { %2086 = vst [vmem:[#allocation2 + $0x8] sm:$0xff] %v1938_v3  ;;  %v1940_v11 = vadd.f32 %v1574_v8, %v753_v63  ;;  %2162 = vst [vmem:[#allocation2 + $0x268] sm:$0xff] %v2014_v5  ;;  %v2016_v12 = vadd.f32 %v1764_v10, %v829_v2  ;;  %v763_v63 = vld [vmem:[#allocation2 + $0x68] sm:$0xff]  ;;  %v764_v2 = vld [vmem:[#allocation2 + $0x70] sm:$0xff] }
 0x1a8   : > { %2087 = vst [vmem:[#allocation2 + $0x10] sm:$0xff] %v1939_v7  ;;  %2163 = vst [vmem:[#allocation2 + $0x270] sm:$0xff] %v2015_v9  ;;  %v840_v4 = vld [vmem:[#allocation2 + $0x2d0] sm:$0xff]  ;;  %v765_v7 = vld [vmem:[#allocation2 + $0x78] sm:$0xff] }
 0x1a9   : > { %2088 = vst [vmem:[#allocation2 + $0x18] sm:$0xff] %v1940_v11  ;;  %2164 = vst [vmem:[#allocation2 + $0x278] sm:$0xff] %v2016_v12  ;;  %v841_v10 = vld [vmem:[#allocation2 + $0x2d8] sm:$0xff] }
 0x1ab   : > { %v1578_v17 = vpop.f32.mrb[4].mxu0  ;;  %v1768_v19 = vpop.f32.mrb[4].mxu1 }
 0x1ac   : > { %v1941_v21 = vadd.f32 %v1578_v17, %v754_v13  ;;  %v1580_v22 = vpop.f32.mrb[5].mxu0  ;;  %v2017_v24 = vadd.f32 %v1768_v19, %v830_v14  ;;  %v1770_v25 = vpop.f32.mrb[5].mxu1 }
 0x1ad   : > { %v1942_v27 = vadd.f32 %v1580_v22, %v755_v15  ;;  %v1582_v28 = vpop.f32.mrb[6].mxu0  ;;  %v2018_v29 = vadd.f32 %v1770_v25, %v831_v16  ;;  %v1772_v30 = vpop.f32.mrb[6].mxu1  ;;  %v842_v22 = vld [vmem:[#allocation2 + $0x2e0] sm:$0xff] }
 0x1ae   : > { %2089 = vst [vmem:[#allocation2 + $0x20] sm:$0xff] %v1941_v21  ;;  %v1943_v31 = vadd.f32 %v1582_v28, %v756_v18  ;;  %v1584_v32 = vpop.f32.mrb[7].mxu0  ;;  %2165 = vst [vmem:[#allocation2 + $0x280] sm:$0xff] %v2017_v24  ;;  %v2019_v33 = vadd.f32 %v1772_v30, %v832_v20  ;;  %v1774_v34 = vpop.f32.mrb[7].mxu1  ;;  %v766_v21 = vld [vmem:[#allocation2 + $0x80] sm:$0xff]  ;;  %v843_v24 = vld [vmem:[#allocation2 + $0x2e8] sm:$0xff] }
 0x1af   : > { %2090 = vst [vmem:[#allocation2 + $0x28] sm:$0xff] %v1942_v27  ;;  %v1944_v35 = vadd.f32 %v1584_v32, %v757_v23  ;;  %2166 = vst [vmem:[#allocation2 + $0x288] sm:$0xff] %v2018_v29  ;;  %v2020_v36 = vadd.f32 %v1774_v34, %v833_v26  ;;  %v767_v23 = vld [vmem:[#allocation2 + $0x88] sm:$0xff]  ;;  %v768_v26 = vld [vmem:[#allocation2 + $0x90] sm:$0xff] }
 0x1b0   : > { %2091 = vst [vmem:[#allocation2 + $0x30] sm:$0xff] %v1943_v31  ;;  %2167 = vst [vmem:[#allocation2 + $0x290] sm:$0xff] %v2019_v33  ;;  %v844_v28 = vld [vmem:[#allocation2 + $0x2f0] sm:$0xff]  ;;  %v769_v31 = vld [vmem:[#allocation2 + $0x98] sm:$0xff] }
 0x1b1   : > { %2092 = vst [vmem:[#allocation2 + $0x38] sm:$0xff] %v1944_v35  ;;  %2168 = vst [vmem:[#allocation2 + $0x298] sm:$0xff] %v2020_v36  ;;  %v845_v34 = vld [vmem:[#allocation2 + $0x2f8] sm:$0xff] }
 0x1b3   : > { %v1588_v41 = vpop.f32.mrb[8].mxu0  ;;  %v1778_v43 = vpop.f32.mrb[8].mxu1 }
 0x1b4   : > { %v1945_v45 = vadd.f32 %v1588_v41, %v758_v37  ;;  %v1590_v46 = vpop.f32.mrb[9].mxu0  ;;  %v2021_v48 = vadd.f32 %v1778_v43, %v834_v38  ;;  %v1780_v49 = vpop.f32.mrb[9].mxu1 }
 0x1b5   : > { %v1946_v51 = vadd.f32 %v1590_v46, %v759_v39  ;;  %v1592_v52 = vpop.f32.mrb[10].mxu0  ;;  %v2022_v53 = vadd.f32 %v1780_v49, %v835_v40  ;;  %v1782_v54 = vpop.f32.mrb[10].mxu1  ;;  %v846_v46 = vld [vmem:[#allocation2 + $0x300] sm:$0xff] }
 0x1b6   : > { %2093 = vst [vmem:[#allocation2 + $0x40] sm:$0xff] %v1945_v45  ;;  %v1947_v55 = vadd.f32 %v1592_v52, %v760_v42  ;;  %v1594_v56 = vpop.f32.mrb[11].mxu0  ;;  %2169 = vst [vmem:[#allocation2 + $0x2a0] sm:$0xff] %v2021_v48  ;;  %v2023_v57 = vadd.f32 %v1782_v54, %v836_v44  ;;  %v1784_v58 = vpop.f32.mrb[11].mxu1  ;;  %v770_v45 = vld [vmem:[#allocation2 + $0xa0] sm:$0xff]  ;;  %v847_v48 = vld [vmem:[#allocation2 + $0x308] sm:$0xff] }
 0x1b7   : > { %2094 = vst [vmem:[#allocation2 + $0x48] sm:$0xff] %v1946_v51  ;;  %v1948_v59 = vadd.f32 %v1594_v56, %v761_v47  ;;  %2170 = vst [vmem:[#allocation2 + $0x2a8] sm:$0xff] %v2022_v53  ;;  %v2024_v60 = vadd.f32 %v1784_v58, %v837_v50  ;;  %v771_v47 = vld [vmem:[#allocation2 + $0xa8] sm:$0xff]  ;;  %v772_v50 = vld [vmem:[#allocation2 + $0xb0] sm:$0xff] }
 0x1b8   : > { %2095 = vst [vmem:[#allocation2 + $0x50] sm:$0xff] %v1947_v55  ;;  %2171 = vst [vmem:[#allocation2 + $0x2b0] sm:$0xff] %v2023_v57  ;;  %v848_v52 = vld [vmem:[#allocation2 + $0x310] sm:$0xff]  ;;  %v773_v55 = vld [vmem:[#allocation2 + $0xb8] sm:$0xff] }
 0x1b9   : > { %2096 = vst [vmem:[#allocation2 + $0x58] sm:$0xff] %v1948_v59  ;;  %2172 = vst [vmem:[#allocation2 + $0x2b8] sm:$0xff] %v2024_v60  ;;  %v849_v58 = vld [vmem:[#allocation2 + $0x318] sm:$0xff] }
 0x1bb   : > { %v1598_v1 = vpop.f32.mrb[12].mxu0  ;;  %v1788_v3 = vpop.f32.mrb[12].mxu1 }
 0x1bc   : > { %v1949_v5 = vadd.f32 %v1598_v1, %v762_v61  ;;  %v1600_v6 = vpop.f32.mrb[13].mxu0  ;;  %v2025_v8 = vadd.f32 %v1788_v3, %v838_v62  ;;  %v1790_v9 = vpop.f32.mrb[13].mxu1 }
 0x1bd   : > { %v1950_v11 = vadd.f32 %v1600_v6, %v763_v63  ;;  %v1602_v12 = vpop.f32.mrb[14].mxu0  ;;  %v2026_v13 = vadd.f32 %v1790_v9, %v839_v0  ;;  %v1792_v14 = vpop.f32.mrb[14].mxu1  ;;  %v850_v6 = vld [vmem:[#allocation2 + $0x320] sm:$0xff] }
 0x1be   : > { %2097 = vst [vmem:[#allocation2 + $0x60] sm:$0xff] %v1949_v5  ;;  %v1951_v15 = vadd.f32 %v1602_v12, %v764_v2  ;;  %v1604_v16 = vpop.f32.mrb[15].mxu0  ;;  %2173 = vst [vmem:[#allocation2 + $0x2c0] sm:$0xff] %v2025_v8  ;;  %v2027_v17 = vadd.f32 %v1792_v14, %v840_v4  ;;  %v1794_v18 = vpop.f32.mrb[15].mxu1  ;;  %v774_v5 = vld [vmem:[#allocation2 + $0xc0] sm:$0xff]  ;;  %v851_v8 = vld [vmem:[#allocation2 + $0x328] sm:$0xff] }
 0x1bf   : > { %2098 = vst [vmem:[#allocation2 + $0x68] sm:$0xff] %v1950_v11  ;;  %v1952_v19 = vadd.f32 %v1604_v16, %v765_v7  ;;  %2174 = vst [vmem:[#allocation2 + $0x2c8] sm:$0xff] %v2026_v13  ;;  %v2028_v20 = vadd.f32 %v1794_v18, %v841_v10  ;;  %v775_v7 = vld [vmem:[#allocation2 + $0xc8] sm:$0xff]  ;;  %v776_v10 = vld [vmem:[#allocation2 + $0xd0] sm:$0xff] }
 0x1c0   : > { %2099 = vst [vmem:[#allocation2 + $0x70] sm:$0xff] %v1951_v15  ;;  %2175 = vst [vmem:[#allocation2 + $0x2d0] sm:$0xff] %v2027_v17  ;;  %v852_v12 = vld [vmem:[#allocation2 + $0x330] sm:$0xff]  ;;  %v777_v15 = vld [vmem:[#allocation2 + $0xd8] sm:$0xff] }
 0x1c1   : > { %2100 = vst [vmem:[#allocation2 + $0x78] sm:$0xff] %v1952_v19  ;;  %2176 = vst [vmem:[#allocation2 + $0x2d8] sm:$0xff] %v2028_v20  ;;  %v853_v18 = vld [vmem:[#allocation2 + $0x338] sm:$0xff] }
 0x1c3   : > { %v1608_v25 = vpop.f32.mrb[16].mxu0  ;;  %v1798_v27 = vpop.f32.mrb[16].mxu1 }
 0x1c4   : > { %v1953_v29 = vadd.f32 %v1608_v25, %v766_v21  ;;  %v1610_v30 = vpop.f32.mrb[17].mxu0  ;;  %v2029_v32 = vadd.f32 %v1798_v27, %v842_v22  ;;  %v1800_v33 = vpop.f32.mrb[17].mxu1 }
 0x1c5   : > { %v1954_v35 = vadd.f32 %v1610_v30, %v767_v23  ;;  %v1612_v36 = vpop.f32.mrb[18].mxu0  ;;  %v2030_v37 = vadd.f32 %v1800_v33, %v843_v24  ;;  %v1802_v38 = vpop.f32.mrb[18].mxu1  ;;  %v854_v30 = vld [vmem:[#allocation2 + $0x340] sm:$0xff] }
 0x1c6   : > { %2101 = vst [vmem:[#allocation2 + $0x80] sm:$0xff] %v1953_v29  ;;  %v1955_v39 = vadd.f32 %v1612_v36, %v768_v26  ;;  %v1614_v40 = vpop.f32.mrb[19].mxu0  ;;  %2177 = vst [vmem:[#allocation2 + $0x2e0] sm:$0xff] %v2029_v32  ;;  %v2031_v41 = vadd.f32 %v1802_v38, %v844_v28  ;;  %v1804_v42 = vpop.f32.mrb[19].mxu1  ;;  %v778_v29 = vld [vmem:[#allocation2 + $0xe0] sm:$0xff]  ;;  %v855_v32 = vld [vmem:[#allocation2 + $0x348] sm:$0xff] }
 0x1c7   : > { %2102 = vst [vmem:[#allocation2 + $0x88] sm:$0xff] %v1954_v35  ;;  %v1956_v43 = vadd.f32 %v1614_v40, %v769_v31  ;;  %2178 = vst [vmem:[#allocation2 + $0x2e8] sm:$0xff] %v2030_v37  ;;  %v2032_v44 = vadd.f32 %v1804_v42, %v845_v34  ;;  %v779_v31 = vld [vmem:[#allocation2 + $0xe8] sm:$0xff]  ;;  %v780_v34 = vld [vmem:[#allocation2 + $0xf0] sm:$0xff] }
 0x1c8   : > { %2103 = vst [vmem:[#allocation2 + $0x90] sm:$0xff] %v1955_v39  ;;  %2179 = vst [vmem:[#allocation2 + $0x2f0] sm:$0xff] %v2031_v41  ;;  %v856_v36 = vld [vmem:[#allocation2 + $0x350] sm:$0xff]  ;;  %v781_v39 = vld [vmem:[#allocation2 + $0xf8] sm:$0xff] }
 0x1c9   : > { %2104 = vst [vmem:[#allocation2 + $0x98] sm:$0xff] %v1956_v43  ;;  %2180 = vst [vmem:[#allocation2 + $0x2f8] sm:$0xff] %v2032_v44  ;;  %v857_v42 = vld [vmem:[#allocation2 + $0x358] sm:$0xff] }
 0x1cb   : > { %v1618_v49 = vpop.f32.mrb[20].mxu0  ;;  %v1808_v51 = vpop.f32.mrb[20].mxu1 }
 0x1cc   : > { %v1957_v53 = vadd.f32 %v1618_v49, %v770_v45  ;;  %v1620_v54 = vpop.f32.mrb[21].mxu0  ;;  %v2033_v56 = vadd.f32 %v1808_v51, %v846_v46  ;;  %v1810_v57 = vpop.f32.mrb[21].mxu1 }
 0x1cd   : > { %v1958_v59 = vadd.f32 %v1620_v54, %v771_v47  ;;  %v1622_v60 = vpop.f32.mrb[22].mxu0  ;;  %v2034_v61 = vadd.f32 %v1810_v57, %v847_v48  ;;  %v1812_v62 = vpop.f32.mrb[22].mxu1  ;;  %v858_v54 = vld [vmem:[#allocation2 + $0x360] sm:$0xff] }
 0x1ce   : > { %2105 = vst [vmem:[#allocation2 + $0xa0] sm:$0xff] %v1957_v53  ;;  %v1959_v63 = vadd.f32 %v1622_v60, %v772_v50  ;;  %v1624_v0 = vpop.f32.mrb[23].mxu0  ;;  %2181 = vst [vmem:[#allocation2 + $0x300] sm:$0xff] %v2033_v56  ;;  %v2035_v1 = vadd.f32 %v1812_v62, %v848_v52  ;;  %v1814_v2 = vpop.f32.mrb[23].mxu1  ;;  %v782_v53 = vld [vmem:[#allocation2 + $0x100] sm:$0xff]  ;;  %v859_v56 = vld [vmem:[#allocation2 + $0x368] sm:$0xff] }
 0x1cf   : > { %2106 = vst [vmem:[#allocation2 + $0xa8] sm:$0xff] %v1958_v59  ;;  %v1960_v3 = vadd.f32 %v1624_v0, %v773_v55  ;;  %2182 = vst [vmem:[#allocation2 + $0x308] sm:$0xff] %v2034_v61  ;;  %v2036_v4 = vadd.f32 %v1814_v2, %v849_v58  ;;  %v783_v55 = vld [vmem:[#allocation2 + $0x108] sm:$0xff]  ;;  %v784_v58 = vld [vmem:[#allocation2 + $0x110] sm:$0xff] }
 0x1d0   : > { %2107 = vst [vmem:[#allocation2 + $0xb0] sm:$0xff] %v1959_v63  ;;  %2183 = vst [vmem:[#allocation2 + $0x310] sm:$0xff] %v2035_v1  ;;  %v860_v60 = vld [vmem:[#allocation2 + $0x370] sm:$0xff]  ;;  %v785_v63 = vld [vmem:[#allocation2 + $0x118] sm:$0xff] }
 0x1d1   : > { %2108 = vst [vmem:[#allocation2 + $0xb8] sm:$0xff] %v1960_v3  ;;  %2184 = vst [vmem:[#allocation2 + $0x318] sm:$0xff] %v2036_v4  ;;  %v861_v2 = vld [vmem:[#allocation2 + $0x378] sm:$0xff] }
 0x1d3   : > { %v1628_v9 = vpop.f32.mrb[24].mxu0  ;;  %v1818_v11 = vpop.f32.mrb[24].mxu1 }
 0x1d4   : > { %v1961_v13 = vadd.f32 %v1628_v9, %v774_v5  ;;  %v1630_v14 = vpop.f32.mrb[25].mxu0  ;;  %v2037_v16 = vadd.f32 %v1818_v11, %v850_v6  ;;  %v1820_v17 = vpop.f32.mrb[25].mxu1 }
 0x1d5   : > { %v1962_v19 = vadd.f32 %v1630_v14, %v775_v7  ;;  %v1632_v20 = vpop.f32.mrb[26].mxu0  ;;  %v2038_v21 = vadd.f32 %v1820_v17, %v851_v8  ;;  %v1822_v22 = vpop.f32.mrb[26].mxu1  ;;  %v862_v14 = vld [vmem:[#allocation2 + $0x380] sm:$0xff] }
 0x1d6   : > { %2109 = vst [vmem:[#allocation2 + $0xc0] sm:$0xff] %v1961_v13  ;;  %v1963_v23 = vadd.f32 %v1632_v20, %v776_v10  ;;  %v1634_v24 = vpop.f32.mrb[27].mxu0  ;;  %2185 = vst [vmem:[#allocation2 + $0x320] sm:$0xff] %v2037_v16  ;;  %v2039_v25 = vadd.f32 %v1822_v22, %v852_v12  ;;  %v1824_v26 = vpop.f32.mrb[27].mxu1  ;;  %v786_v13 = vld [vmem:[#allocation2 + $0x120] sm:$0xff]  ;;  %v863_v16 = vld [vmem:[#allocation2 + $0x388] sm:$0xff] }
 0x1d7   : > { %2110 = vst [vmem:[#allocation2 + $0xc8] sm:$0xff] %v1962_v19  ;;  %v1964_v27 = vadd.f32 %v1634_v24, %v777_v15  ;;  %2186 = vst [vmem:[#allocation2 + $0x328] sm:$0xff] %v2038_v21  ;;  %v2040_v28 = vadd.f32 %v1824_v26, %v853_v18  ;;  %v787_v15 = vld [vmem:[#allocation2 + $0x128] sm:$0xff]  ;;  %v788_v18 = vld [vmem:[#allocation2 + $0x130] sm:$0xff] }
 0x1d8   : > { %2111 = vst [vmem:[#allocation2 + $0xd0] sm:$0xff] %v1963_v23  ;;  %2187 = vst [vmem:[#allocation2 + $0x330] sm:$0xff] %v2039_v25  ;;  %v864_v20 = vld [vmem:[#allocation2 + $0x390] sm:$0xff]  ;;  %v789_v23 = vld [vmem:[#allocation2 + $0x138] sm:$0xff] }
 0x1d9   : > { %2112 = vst [vmem:[#allocation2 + $0xd8] sm:$0xff] %v1964_v27  ;;  %2188 = vst [vmem:[#allocation2 + $0x338] sm:$0xff] %v2040_v28  ;;  %v865_v26 = vld [vmem:[#allocation2 + $0x398] sm:$0xff] }
 0x1db   : > { %v1638_v33 = vpop.f32.mrb[28].mxu0  ;;  %v1828_v35 = vpop.f32.mrb[28].mxu1 }
 0x1dc   : > { %v1965_v37 = vadd.f32 %v1638_v33, %v778_v29  ;;  %v1640_v38 = vpop.f32.mrb[29].mxu0  ;;  %v2041_v40 = vadd.f32 %v1828_v35, %v854_v30  ;;  %v1830_v41 = vpop.f32.mrb[29].mxu1 }
 0x1dd   : > { %v1966_v43 = vadd.f32 %v1640_v38, %v779_v31  ;;  %v1642_v44 = vpop.f32.mrb[30].mxu0  ;;  %v2042_v45 = vadd.f32 %v1830_v41, %v855_v32  ;;  %v1832_v46 = vpop.f32.mrb[30].mxu1  ;;  %v866_v38 = vld [vmem:[#allocation2 + $0x3a0] sm:$0xff] }
 0x1de   : > { %2113 = vst [vmem:[#allocation2 + $0xe0] sm:$0xff] %v1965_v37  ;;  %v1967_v47 = vadd.f32 %v1642_v44, %v780_v34  ;;  %v1644_v48 = vpop.f32.mrb[31].mxu0  ;;  %2189 = vst [vmem:[#allocation2 + $0x340] sm:$0xff] %v2041_v40  ;;  %v2043_v49 = vadd.f32 %v1832_v46, %v856_v36  ;;  %v1834_v50 = vpop.f32.mrb[31].mxu1  ;;  %v790_v37 = vld [vmem:[#allocation2 + $0x140] sm:$0xff]  ;;  %v867_v40 = vld [vmem:[#allocation2 + $0x3a8] sm:$0xff] }
 0x1df   : > { %2114 = vst [vmem:[#allocation2 + $0xe8] sm:$0xff] %v1966_v43  ;;  %v1968_v51 = vadd.f32 %v1644_v48, %v781_v39  ;;  %2190 = vst [vmem:[#allocation2 + $0x348] sm:$0xff] %v2042_v45  ;;  %v2044_v52 = vadd.f32 %v1834_v50, %v857_v42  ;;  %v791_v39 = vld [vmem:[#allocation2 + $0x148] sm:$0xff]  ;;  %v792_v42 = vld [vmem:[#allocation2 + $0x150] sm:$0xff] }
 0x1e0   : > { %2115 = vst [vmem:[#allocation2 + $0xf0] sm:$0xff] %v1967_v47  ;;  %2191 = vst [vmem:[#allocation2 + $0x350] sm:$0xff] %v2043_v49  ;;  %v868_v44 = vld [vmem:[#allocation2 + $0x3b0] sm:$0xff]  ;;  %v793_v47 = vld [vmem:[#allocation2 + $0x158] sm:$0xff] }
 0x1e1   : > { %2116 = vst [vmem:[#allocation2 + $0xf8] sm:$0xff] %v1968_v51  ;;  %2192 = vst [vmem:[#allocation2 + $0x358] sm:$0xff] %v2044_v52  ;;  %v869_v50 = vld [vmem:[#allocation2 + $0x3b8] sm:$0xff] }
 0x1e3   : > { %v1648_v57 = vpop.f32.mrb[32].mxu0  ;;  %v1838_v59 = vpop.f32.mrb[32].mxu1 }
 0x1e4   : > { %v1969_v61 = vadd.f32 %v1648_v57, %v782_v53  ;;  %v1650_v62 = vpop.f32.mrb[33].mxu0  ;;  %v2045_v0 = vadd.f32 %v1838_v59, %v858_v54  ;;  %v1840_v1 = vpop.f32.mrb[33].mxu1 }
 0x1e5   : > { %v1970_v3 = vadd.f32 %v1650_v62, %v783_v55  ;;  %v1652_v4 = vpop.f32.mrb[34].mxu0  ;;  %v2046_v5 = vadd.f32 %v1840_v1, %v859_v56  ;;  %v1842_v6 = vpop.f32.mrb[34].mxu1  ;;  %v870_v62 = vld [vmem:[#allocation2 + $0x3c0] sm:$0xff] }
 0x1e6   : > { %2117 = vst [vmem:[#allocation2 + $0x100] sm:$0xff] %v1969_v61  ;;  %v1971_v7 = vadd.f32 %v1652_v4, %v784_v58  ;;  %v1654_v8 = vpop.f32.mrb[35].mxu0  ;;  %2193 = vst [vmem:[#allocation2 + $0x360] sm:$0xff] %v2045_v0  ;;  %v2047_v9 = vadd.f32 %v1842_v6, %v860_v60  ;;  %v1844_v10 = vpop.f32.mrb[35].mxu1  ;;  %v794_v61 = vld [vmem:[#allocation2 + $0x160] sm:$0xff]  ;;  %v871_v0 = vld [vmem:[#allocation2 + $0x3c8] sm:$0xff] }
 0x1e7   : > { %2118 = vst [vmem:[#allocation2 + $0x108] sm:$0xff] %v1970_v3  ;;  %v1972_v11 = vadd.f32 %v1654_v8, %v785_v63  ;;  %2194 = vst [vmem:[#allocation2 + $0x368] sm:$0xff] %v2046_v5  ;;  %v2048_v12 = vadd.f32 %v1844_v10, %v861_v2  ;;  %v795_v63 = vld [vmem:[#allocation2 + $0x168] sm:$0xff]  ;;  %v796_v2 = vld [vmem:[#allocation2 + $0x170] sm:$0xff] }
 0x1e8   : > { %2119 = vst [vmem:[#allocation2 + $0x110] sm:$0xff] %v1971_v7  ;;  %2195 = vst [vmem:[#allocation2 + $0x370] sm:$0xff] %v2047_v9  ;;  %v872_v4 = vld [vmem:[#allocation2 + $0x3d0] sm:$0xff]  ;;  %v797_v7 = vld [vmem:[#allocation2 + $0x178] sm:$0xff] }
 0x1e9   : > { %2120 = vst [vmem:[#allocation2 + $0x118] sm:$0xff] %v1972_v11  ;;  %2196 = vst [vmem:[#allocation2 + $0x378] sm:$0xff] %v2048_v12  ;;  %v873_v10 = vld [vmem:[#allocation2 + $0x3d8] sm:$0xff] }
 0x1eb   : > { %v1658_v17 = vpop.f32.mrb[36].mxu0  ;;  %v1848_v19 = vpop.f32.mrb[36].mxu1 }
 0x1ec   : > { %v1973_v21 = vadd.f32 %v1658_v17, %v786_v13  ;;  %v1660_v22 = vpop.f32.mrb[37].mxu0  ;;  %v2049_v24 = vadd.f32 %v1848_v19, %v862_v14  ;;  %v1850_v25 = vpop.f32.mrb[37].mxu1 }
 0x1ed   : > { %v1974_v27 = vadd.f32 %v1660_v22, %v787_v15  ;;  %v1662_v28 = vpop.f32.mrb[38].mxu0  ;;  %v2050_v29 = vadd.f32 %v1850_v25, %v863_v16  ;;  %v1852_v30 = vpop.f32.mrb[38].mxu1  ;;  %v874_v22 = vld [vmem:[#allocation2 + $0x3e0] sm:$0xff] }
 0x1ee   : > { %2121 = vst [vmem:[#allocation2 + $0x120] sm:$0xff] %v1973_v21  ;;  %v1975_v31 = vadd.f32 %v1662_v28, %v788_v18  ;;  %v1664_v32 = vpop.f32.mrb[39].mxu0  ;;  %2197 = vst [vmem:[#allocation2 + $0x380] sm:$0xff] %v2049_v24  ;;  %v2051_v33 = vadd.f32 %v1852_v30, %v864_v20  ;;  %v1854_v34 = vpop.f32.mrb[39].mxu1  ;;  %v798_v21 = vld [vmem:[#allocation2 + $0x180] sm:$0xff]  ;;  %v875_v24 = vld [vmem:[#allocation2 + $0x3e8] sm:$0xff] }
 0x1ef   : > { %2122 = vst [vmem:[#allocation2 + $0x128] sm:$0xff] %v1974_v27  ;;  %v1976_v35 = vadd.f32 %v1664_v32, %v789_v23  ;;  %2198 = vst [vmem:[#allocation2 + $0x388] sm:$0xff] %v2050_v29  ;;  %v2052_v36 = vadd.f32 %v1854_v34, %v865_v26  ;;  %v799_v23 = vld [vmem:[#allocation2 + $0x188] sm:$0xff]  ;;  %v800_v26 = vld [vmem:[#allocation2 + $0x190] sm:$0xff] }
 0x1f0   : > { %2123 = vst [vmem:[#allocation2 + $0x130] sm:$0xff] %v1975_v31  ;;  %2199 = vst [vmem:[#allocation2 + $0x390] sm:$0xff] %v2051_v33  ;;  %v876_v28 = vld [vmem:[#allocation2 + $0x3f0] sm:$0xff]  ;;  %v801_v31 = vld [vmem:[#allocation2 + $0x198] sm:$0xff] }
 0x1f1   : > { %2124 = vst [vmem:[#allocation2 + $0x138] sm:$0xff] %v1976_v35  ;;  %2200 = vst [vmem:[#allocation2 + $0x398] sm:$0xff] %v2052_v36  ;;  %v877_v34 = vld [vmem:[#allocation2 + $0x3f8] sm:$0xff] }
 0x1f3   : > { %v1668_v41 = vpop.f32.mrb[40].mxu0  ;;  %v1858_v43 = vpop.f32.mrb[40].mxu1 }
 0x1f4   : > { %v1977_v45 = vadd.f32 %v1668_v41, %v790_v37  ;;  %v1670_v46 = vpop.f32.mrb[41].mxu0  ;;  %v2053_v48 = vadd.f32 %v1858_v43, %v866_v38  ;;  %v1860_v49 = vpop.f32.mrb[41].mxu1 }
 0x1f5   : > { %v1978_v51 = vadd.f32 %v1670_v46, %v791_v39  ;;  %v1672_v52 = vpop.f32.mrb[42].mxu0  ;;  %v2054_v53 = vadd.f32 %v1860_v49, %v867_v40  ;;  %v1862_v54 = vpop.f32.mrb[42].mxu1  ;;  %v878_v46 = vld [vmem:[#allocation2 + $0x400] sm:$0xff] }
 0x1f6   : > { %2125 = vst [vmem:[#allocation2 + $0x140] sm:$0xff] %v1977_v45  ;;  %v1979_v55 = vadd.f32 %v1672_v52, %v792_v42  ;;  %v1674_v56 = vpop.f32.mrb[43].mxu0  ;;  %2201 = vst [vmem:[#allocation2 + $0x3a0] sm:$0xff] %v2053_v48  ;;  %v2055_v57 = vadd.f32 %v1862_v54, %v868_v44  ;;  %v1864_v58 = vpop.f32.mrb[43].mxu1  ;;  %v802_v45 = vld [vmem:[#allocation2 + $0x1a0] sm:$0xff]  ;;  %v879_v48 = vld [vmem:[#allocation2 + $0x408] sm:$0xff] }
 0x1f7   : > { %2126 = vst [vmem:[#allocation2 + $0x148] sm:$0xff] %v1978_v51  ;;  %v1980_v59 = vadd.f32 %v1674_v56, %v793_v47  ;;  %2202 = vst [vmem:[#allocation2 + $0x3a8] sm:$0xff] %v2054_v53  ;;  %v2056_v60 = vadd.f32 %v1864_v58, %v869_v50  ;;  %v803_v47 = vld [vmem:[#allocation2 + $0x1a8] sm:$0xff]  ;;  %v804_v50 = vld [vmem:[#allocation2 + $0x1b0] sm:$0xff] }
 0x1f8   : > { %2127 = vst [vmem:[#allocation2 + $0x150] sm:$0xff] %v1979_v55  ;;  %2203 = vst [vmem:[#allocation2 + $0x3b0] sm:$0xff] %v2055_v57  ;;  %v880_v52 = vld [vmem:[#allocation2 + $0x410] sm:$0xff]  ;;  %v805_v55 = vld [vmem:[#allocation2 + $0x1b8] sm:$0xff] }
 0x1f9   : > { %2128 = vst [vmem:[#allocation2 + $0x158] sm:$0xff] %v1980_v59  ;;  %2204 = vst [vmem:[#allocation2 + $0x3b8] sm:$0xff] %v2056_v60  ;;  %v881_v58 = vld [vmem:[#allocation2 + $0x418] sm:$0xff] }
 0x1fb   : > { %v1678_v1 = vpop.f32.mrb[44].mxu0  ;;  %v1868_v3 = vpop.f32.mrb[44].mxu1 }
 0x1fc   : > { %v1981_v5 = vadd.f32 %v1678_v1, %v794_v61  ;;  %v1680_v6 = vpop.f32.mrb[45].mxu0  ;;  %v2057_v8 = vadd.f32 %v1868_v3, %v870_v62  ;;  %v1870_v9 = vpop.f32.mrb[45].mxu1 }
 0x1fd   : > { %v1982_v11 = vadd.f32 %v1680_v6, %v795_v63  ;;  %v1682_v12 = vpop.f32.mrb[46].mxu0  ;;  %v2058_v13 = vadd.f32 %v1870_v9, %v871_v0  ;;  %v1872_v14 = vpop.f32.mrb[46].mxu1  ;;  %v882_v6 = vld [vmem:[#allocation2 + $0x420] sm:$0xff] }
 0x1fe   : > { %2129 = vst [vmem:[#allocation2 + $0x160] sm:$0xff] %v1981_v5  ;;  %v1983_v15 = vadd.f32 %v1682_v12, %v796_v2  ;;  %v1684_v16 = vpop.f32.mrb[47].mxu0  ;;  %2205 = vst [vmem:[#allocation2 + $0x3c0] sm:$0xff] %v2057_v8  ;;  %v2059_v17 = vadd.f32 %v1872_v14, %v872_v4  ;;  %v1874_v18 = vpop.f32.mrb[47].mxu1  ;;  %v806_v5 = vld [vmem:[#allocation2 + $0x1c0] sm:$0xff]  ;;  %v883_v8 = vld [vmem:[#allocation2 + $0x428] sm:$0xff] }
 0x1ff   : > { %2130 = vst [vmem:[#allocation2 + $0x168] sm:$0xff] %v1982_v11  ;;  %v1984_v19 = vadd.f32 %v1684_v16, %v797_v7  ;;  %2206 = vst [vmem:[#allocation2 + $0x3c8] sm:$0xff] %v2058_v13  ;;  %v2060_v20 = vadd.f32 %v1874_v18, %v873_v10  ;;  %v807_v7 = vld [vmem:[#allocation2 + $0x1c8] sm:$0xff]  ;;  %v808_v10 = vld [vmem:[#allocation2 + $0x1d0] sm:$0xff] }
 0x200   : > { %2131 = vst [vmem:[#allocation2 + $0x170] sm:$0xff] %v1983_v15  ;;  %2207 = vst [vmem:[#allocation2 + $0x3d0] sm:$0xff] %v2059_v17  ;;  %v884_v12 = vld [vmem:[#allocation2 + $0x430] sm:$0xff]  ;;  %v809_v15 = vld [vmem:[#allocation2 + $0x1d8] sm:$0xff] }
 0x201   : > { %2132 = vst [vmem:[#allocation2 + $0x178] sm:$0xff] %v1984_v19  ;;  %2208 = vst [vmem:[#allocation2 + $0x3d8] sm:$0xff] %v2060_v20  ;;  %v885_v18 = vld [vmem:[#allocation2 + $0x438] sm:$0xff] }
 0x203   : > { %v1688_v25 = vpop.f32.mrb[48].mxu0  ;;  %v1878_v27 = vpop.f32.mrb[48].mxu1 }
 0x204   : > { %v1985_v29 = vadd.f32 %v1688_v25, %v798_v21  ;;  %v1690_v30 = vpop.f32.mrb[49].mxu0  ;;  %v2061_v32 = vadd.f32 %v1878_v27, %v874_v22  ;;  %v1880_v33 = vpop.f32.mrb[49].mxu1 }
 0x205   : > { %v1986_v35 = vadd.f32 %v1690_v30, %v799_v23  ;;  %v1692_v36 = vpop.f32.mrb[50].mxu0  ;;  %v2062_v37 = vadd.f32 %v1880_v33, %v875_v24  ;;  %v1882_v38 = vpop.f32.mrb[50].mxu1  ;;  %v886_v30 = vld [vmem:[#allocation2 + $0x440] sm:$0xff] }
 0x206   : > { %2133 = vst [vmem:[#allocation2 + $0x180] sm:$0xff] %v1985_v29  ;;  %v1987_v39 = vadd.f32 %v1692_v36, %v800_v26  ;;  %v1694_v40 = vpop.f32.mrb[51].mxu0  ;;  %2209 = vst [vmem:[#allocation2 + $0x3e0] sm:$0xff] %v2061_v32  ;;  %v2063_v41 = vadd.f32 %v1882_v38, %v876_v28  ;;  %v1884_v42 = vpop.f32.mrb[51].mxu1  ;;  %v810_v29 = vld [vmem:[#allocation2 + $0x1e0] sm:$0xff]  ;;  %v887_v32 = vld [vmem:[#allocation2 + $0x448] sm:$0xff] }
 0x207   : > { %2134 = vst [vmem:[#allocation2 + $0x188] sm:$0xff] %v1986_v35  ;;  %v1988_v43 = vadd.f32 %v1694_v40, %v801_v31  ;;  %2210 = vst [vmem:[#allocation2 + $0x3e8] sm:$0xff] %v2062_v37  ;;  %v2064_v44 = vadd.f32 %v1884_v42, %v877_v34  ;;  %v811_v31 = vld [vmem:[#allocation2 + $0x1e8] sm:$0xff]  ;;  %v812_v34 = vld [vmem:[#allocation2 + $0x1f0] sm:$0xff] }
 0x208   : > { %2135 = vst [vmem:[#allocation2 + $0x190] sm:$0xff] %v1987_v39  ;;  %2211 = vst [vmem:[#allocation2 + $0x3f0] sm:$0xff] %v2063_v41  ;;  %v888_v36 = vld [vmem:[#allocation2 + $0x450] sm:$0xff]  ;;  %v813_v39 = vld [vmem:[#allocation2 + $0x1f8] sm:$0xff] }
 0x209   : > { %2136 = vst [vmem:[#allocation2 + $0x198] sm:$0xff] %v1988_v43  ;;  %2212 = vst [vmem:[#allocation2 + $0x3f8] sm:$0xff] %v2064_v44  ;;  %v889_v42 = vld [vmem:[#allocation2 + $0x458] sm:$0xff] }
 0x20b   : > { %v1698_v49 = vpop.f32.mrb[52].mxu0  ;;  %v1888_v51 = vpop.f32.mrb[52].mxu1 }
 0x20c   : > { %v1989_v53 = vadd.f32 %v1698_v49, %v802_v45  ;;  %v1700_v54 = vpop.f32.mrb[53].mxu0  ;;  %v2065_v56 = vadd.f32 %v1888_v51, %v878_v46  ;;  %v1890_v57 = vpop.f32.mrb[53].mxu1 }
 0x20d   : > { %v1990_v59 = vadd.f32 %v1700_v54, %v803_v47  ;;  %v1702_v60 = vpop.f32.mrb[54].mxu0  ;;  %v2066_v61 = vadd.f32 %v1890_v57, %v879_v48  ;;  %v1892_v62 = vpop.f32.mrb[54].mxu1  ;;  %v890_v54 = vld [vmem:[#allocation2 + $0x460] sm:$0xff] }
 0x20e   : > { %2137 = vst [vmem:[#allocation2 + $0x1a0] sm:$0xff] %v1989_v53  ;;  %v1991_v63 = vadd.f32 %v1702_v60, %v804_v50  ;;  %v1704_v0 = vpop.f32.mrb[55].mxu0  ;;  %2213 = vst [vmem:[#allocation2 + $0x400] sm:$0xff] %v2065_v56  ;;  %v2067_v1 = vadd.f32 %v1892_v62, %v880_v52  ;;  %v1894_v2 = vpop.f32.mrb[55].mxu1  ;;  %v814_v53 = vld [vmem:[#allocation2 + $0x200] sm:$0xff]  ;;  %v891_v56 = vld [vmem:[#allocation2 + $0x468] sm:$0xff] }
 0x20f   : > { %2138 = vst [vmem:[#allocation2 + $0x1a8] sm:$0xff] %v1990_v59  ;;  %v1992_v3 = vadd.f32 %v1704_v0, %v805_v55  ;;  %2214 = vst [vmem:[#allocation2 + $0x408] sm:$0xff] %v2066_v61  ;;  %v2068_v4 = vadd.f32 %v1894_v2, %v881_v58  ;;  %v815_v55 = vld [vmem:[#allocation2 + $0x208] sm:$0xff]  ;;  %v816_v58 = vld [vmem:[#allocation2 + $0x210] sm:$0xff] }
 0x210   : > { %2139 = vst [vmem:[#allocation2 + $0x1b0] sm:$0xff] %v1991_v63  ;;  %2215 = vst [vmem:[#allocation2 + $0x410] sm:$0xff] %v2067_v1  ;;  %v892_v60 = vld [vmem:[#allocation2 + $0x470] sm:$0xff]  ;;  %v817_v63 = vld [vmem:[#allocation2 + $0x218] sm:$0xff] }
 0x211   : > { %2140 = vst [vmem:[#allocation2 + $0x1b8] sm:$0xff] %v1992_v3  ;;  %2216 = vst [vmem:[#allocation2 + $0x418] sm:$0xff] %v2068_v4  ;;  %v893_v2 = vld [vmem:[#allocation2 + $0x478] sm:$0xff] }
 0x213   : > { %v1708_v9 = vpop.f32.mrb[56].mxu0  ;;  %v1898_v11 = vpop.f32.mrb[56].mxu1 }
 0x214   : > { %v1993_v13 = vadd.f32 %v1708_v9, %v806_v5  ;;  %v1710_v14 = vpop.f32.mrb[57].mxu0  ;;  %v2069_v16 = vadd.f32 %v1898_v11, %v882_v6  ;;  %v1900_v17 = vpop.f32.mrb[57].mxu1 }
 0x215   : > { %v1994_v19 = vadd.f32 %v1710_v14, %v807_v7  ;;  %v1712_v20 = vpop.f32.mrb[58].mxu0  ;;  %v2070_v21 = vadd.f32 %v1900_v17, %v883_v8  ;;  %v1902_v22 = vpop.f32.mrb[58].mxu1  ;;  %v894_v14 = vld [vmem:[#allocation2 + $0x480] sm:$0xff] }
 0x216   : > { %2141 = vst [vmem:[#allocation2 + $0x1c0] sm:$0xff] %v1993_v13  ;;  %v1995_v23 = vadd.f32 %v1712_v20, %v808_v10  ;;  %v1714_v24 = vpop.f32.mrb[59].mxu0  ;;  %2217 = vst [vmem:[#allocation2 + $0x420] sm:$0xff] %v2069_v16  ;;  %v2071_v25 = vadd.f32 %v1902_v22, %v884_v12  ;;  %v1904_v26 = vpop.f32.mrb[59].mxu1  ;;  %v818_v13 = vld [vmem:[#allocation2 + $0x220] sm:$0xff]  ;;  %v895_v16 = vld [vmem:[#allocation2 + $0x488] sm:$0xff] }
 0x217   : > { %2142 = vst [vmem:[#allocation2 + $0x1c8] sm:$0xff] %v1994_v19  ;;  %v1996_v27 = vadd.f32 %v1714_v24, %v809_v15  ;;  %2218 = vst [vmem:[#allocation2 + $0x428] sm:$0xff] %v2070_v21  ;;  %v2072_v28 = vadd.f32 %v1904_v26, %v885_v18  ;;  %v819_v15 = vld [vmem:[#allocation2 + $0x228] sm:$0xff]  ;;  %v820_v18 = vld [vmem:[#allocation2 + $0x230] sm:$0xff] }
 0x218   : > { %2143 = vst [vmem:[#allocation2 + $0x1d0] sm:$0xff] %v1995_v23  ;;  %2219 = vst [vmem:[#allocation2 + $0x430] sm:$0xff] %v2071_v25  ;;  %v896_v20 = vld [vmem:[#allocation2 + $0x490] sm:$0xff]  ;;  %v821_v23 = vld [vmem:[#allocation2 + $0x238] sm:$0xff] }
 0x219   : > { %2144 = vst [vmem:[#allocation2 + $0x1d8] sm:$0xff] %v1996_v27  ;;  %2220 = vst [vmem:[#allocation2 + $0x438] sm:$0xff] %v2072_v28  ;;  %v897_v26 = vld [vmem:[#allocation2 + $0x498] sm:$0xff] }
 0x21b   : > { %v1718_v33 = vpop.f32.mrb[60].mxu0  ;;  %v1908_v35 = vpop.f32.mrb[60].mxu1 }
 0x21c   : > { %v1997_v37 = vadd.f32 %v1718_v33, %v810_v29  ;;  %v1720_v38 = vpop.f32.mrb[61].mxu0  ;;  %v2073_v40 = vadd.f32 %v1908_v35, %v886_v30  ;;  %v1910_v41 = vpop.f32.mrb[61].mxu1 }
 0x21d   : > { %v1998_v43 = vadd.f32 %v1720_v38, %v811_v31  ;;  %v1722_v44 = vpop.f32.mrb[62].mxu0  ;;  %v2074_v45 = vadd.f32 %v1910_v41, %v887_v32  ;;  %v1912_v46 = vpop.f32.mrb[62].mxu1  ;;  %v823_v38 = vld [vmem:[#allocation2 + $0x248] sm:$0xff] }
 0x21e   : > { %2145 = vst [vmem:[#allocation2 + $0x1e0] sm:$0xff] %v1997_v37  ;;  %v1999_v47 = vadd.f32 %v1722_v44, %v812_v34  ;;  %v1724_v48 = vpop.f32.mrb[63].mxu0  ;;  %2221 = vst [vmem:[#allocation2 + $0x440] sm:$0xff] %v2073_v40  ;;  %v2075_v49 = vadd.f32 %v1912_v46, %v888_v36  ;;  %v1914_v50 = vpop.f32.mrb[63].mxu1  ;;  %v822_v37 = vld [vmem:[#allocation2 + $0x240] sm:$0xff]  ;;  %v824_v40 = vld [vmem:[#allocation2 + $0x250] sm:$0xff] }
 0x21f   : > { %2146 = vst [vmem:[#allocation2 + $0x1e8] sm:$0xff] %v1998_v43  ;;  %v2000_v51 = vadd.f32 %v1724_v48, %v813_v39  ;;  %2222 = vst [vmem:[#allocation2 + $0x448] sm:$0xff] %v2074_v45  ;;  %v2076_v52 = vadd.f32 %v1914_v50, %v889_v42  ;;  %v825_v43 = vld [vmem:[#allocation2 + $0x258] sm:$0xff] }
 0x220   : > { %2147 = vst [vmem:[#allocation2 + $0x1f0] sm:$0xff] %v1999_v47  ;;  %2223 = vst [vmem:[#allocation2 + $0x450] sm:$0xff] %v2075_v49  ;;  %v2387_v49 = vlaneseq (!%p3451_p11) }
 0x221   : > { %2148 = vst [vmem:[#allocation2 + $0x1f8] sm:$0xff] %v2000_v51  ;;  %2224 = vst [vmem:[#allocation2 + $0x458] sm:$0xff] %v2076_v52  ;;  %v2385_v51 = vld [vmem:[%s4757_s2] sm:$0x3] (!%p3451_p11) }
 0x222   : > { %v2388_v50 = vshrl.u32 (!%p3451_p11), %v2387_v49, 7  ;;  %v2237_v52 = vld [vmem:[#allocation2] sm:$0xff] (!%p3451_p11)  ;;  %v2258_v49 = vld [vmem:[#allocation2 + $0xa8] sm:$0xff] (!%p3451_p11) }
 0x223   : > { %v1728_v57 = vpop.f32.mrb[64].mxu0  ;;  %v1918_v59 = vpop.f32.mrb[64].mxu1 }
 0x224   : > { %v2001_v61 = vadd.f32 %v1728_v57, %v814_v53  ;;  %v1730_v62 = vpop.f32.mrb[65].mxu0  ;;  %v2077_v0 = vadd.f32 %v1918_v59, %v890_v54  ;;  %v1920_v1 = vpop.f32.mrb[65].mxu1  ;;  %v2238_v53 = vld [vmem:[#allocation2 + $0x8] sm:$0xff] (!%p3451_p11)  ;;  %v2389_v54 = vsub.s32 (!%p3451_p11), 0, %v2388_v50  ;;  %v2240_v57 = vld [vmem:[#allocation2 + $0x18] sm:$0xff] (!%p3451_p11) }
 0x225   : > { %v2002_v3 = vadd.f32 %v1730_v62, %v815_v55  ;;  %v1732_v4 = vpop.f32.mrb[66].mxu0  ;;  %v2078_v5 = vadd.f32 %v1920_v1, %v891_v56  ;;  %v1922_v6 = vpop.f32.mrb[66].mxu1  ;;  %v2393_v55 = vsub.s32 (!%p3451_p11), 1, %v2388_v50  ;;  %v2239_v56 = vld [vmem:[#allocation2 + $0x10] sm:$0xff] (!%p3451_p11) }
 0x226   : > { %2149 = vst [vmem:[#allocation2 + $0x200] sm:$0xff] %v2001_v61  ;;  %v2003_v7 = vadd.f32 %v1732_v4, %v816_v58  ;;  %v1734_v8 = vpop.f32.mrb[67].mxu0  ;;  %2225 = vst [vmem:[#allocation2 + $0x460] sm:$0xff] %v2077_v0  ;;  %v2079_v9 = vadd.f32 %v1922_v6, %v892_v60  ;;  %v1924_v10 = vpop.f32.mrb[67].mxu1  ;;  %v2241_v58 = vld [vmem:[#allocation2 + $0x20] sm:$0xff] (!%p3451_p11)  ;;  %v4366_v59 = vrot.slane (!%p3451_p11), %v2385_v51, %v2389_v54  ;;  %v2242_v61 = vld [vmem:[#allocation2 + $0x28] sm:$0xff] (!%p3451_p11) }
 0x227   : > { %2150 = vst [vmem:[#allocation2 + $0x208] sm:$0xff] %v2002_v3  ;;  %v2004_v11 = vadd.f32 %v1734_v8, %v817_v63  ;;  %2226 = vst [vmem:[#allocation2 + $0x468] sm:$0xff] %v2078_v5  ;;  %v2080_v12 = vadd.f32 %v1924_v10, %v893_v2  ;;  %v4368_v60 = vrot.slane (!%p3451_p11), %v2385_v51, %v2393_v55  ;;  %v2243_v62 = vld [vmem:[#allocation2 + $0x30] sm:$0xff] (!%p3451_p11)  ;;  %v2244_v63 = vld [vmem:[#allocation2 + $0x38] sm:$0xff] (!%p3451_p11) }
 0x228   : > { %2151 = vst [vmem:[#allocation2 + $0x210] sm:$0xff] %v2003_v7  ;;  %2227 = vst [vmem:[#allocation2 + $0x470] sm:$0xff] %v2079_v9  ;;  %v2397_v0 = vadd.f32 (!%p3451_p11), %v4366_v59, %v2237_v52  ;;  %v2399_v2 = vadd.f32 (!%p3451_p11), %v4366_v59, %v2239_v56  ;;  %v2401_v4 = vadd.f32 (!%p3451_p11), %v4366_v59, %v2241_v58  ;;  %v2245_v8 = vld [vmem:[#allocation2 + $0x40] sm:$0xff] (!%p3451_p11)  ;;  %v2246_v9 = vld [vmem:[#allocation2 + $0x48] sm:$0xff] (!%p3451_p11) }
 0x229   : > { %2152 = vst [vmem:[#allocation2 + $0x218] sm:$0xff] %v2004_v11  ;;  %2228 = vst [vmem:[#allocation2 + $0x478] sm:$0xff] %v2080_v12  ;;  %v2398_v1 = vadd.f32 (!%p3451_p11), %v4368_v60, %v2238_v53  ;;  %v2400_v3 = vadd.f32 (!%p3451_p11), %v4368_v60, %v2240_v57  ;;  %v2402_v5 = vadd.f32 (!%p3451_p11), %v4368_v60, %v2242_v61  ;;  %v2259_v54 = vld [vmem:[#allocation2 + $0xb0] sm:$0xff] (!%p3451_p11)  ;;  %v2260_v55 = vld [vmem:[#allocation2 + $0xb8] sm:$0xff] (!%p3451_p11) }
 0x22a   : > { %v2403_v6 = vadd.f32 (!%p3451_p11), %v4366_v59, %v2243_v62  ;;  %v2404_v7 = vadd.f32 (!%p3451_p11), %v4368_v60, %v2244_v63  ;;  %v2545_v10 = vmax.f32 (!%p3451_p11), %v2397_v0, 0.0  ;;  %v2547_v12 = vmax.f32 (!%p3451_p11), %v2399_v2, 0.0  ;;  %v2261_v62 = vld [vmem:[#allocation2 + $0xc0] sm:$0xff] (!%p3451_p11) }
 0x22b   : > { %v1738_v17 = vpop.f32.mrb[68].mxu0  ;;  %v1928_v19 = vpop.f32.mrb[68].mxu1  ;;  %v2546_v11 = vmax.f32 (!%p3451_p11), %v2398_v1, 0.0  ;;  %v2418_v2 = vadd.f32 (!%p3451_p11), %v4368_v60, %v2258_v49  ;;  %v2276_v49 = vld [vmem:[#allocation2 + $0x138] sm:$0xff] (!%p3451_p11) }
 0x22c   : > { %v2005_v21 = vadd.f32 %v1738_v17, %v818_v13  ;;  %v1740_v22 = vpop.f32.mrb[69].mxu0  ;;  %v2081_v24 = vadd.f32 %v1928_v19, %v894_v14  ;;  %v1930_v25 = vpop.f32.mrb[69].mxu1  ;;  %v2548_v13 = vmax.f32 (!%p3451_p11), %v2400_v3, 0.0  ;;  %v2247_v14 = vld [vmem:[#allocation2 + $0x50] sm:$0xff] (!%p3451_p11)  ;;  %v2550_v17 = vmax.f32 (!%p3451_p11), %v2402_v5, 0.0  ;;  %v2262_v3 = vld [vmem:[#allocation2 + $0xc8] sm:$0xff] (!%p3451_p11) }
 0x22d   : > { %v2006_v27 = vadd.f32 %v1740_v22, %v819_v15  ;;  %v1742_v28 = vpop.f32.mrb[70].mxu0  ;;  %v2082_v29 = vadd.f32 %v1930_v25, %v895_v16  ;;  %v1932_v30 = vpop.f32.mrb[70].mxu1  ;;  %v2248_v15 = vld [vmem:[#allocation2 + $0x58] sm:$0xff] (!%p3451_p11)  ;;  %v2549_v16 = vmax.f32 (!%p3451_p11), %v2401_v4, 0.0  ;;  %v2552_v19 = vmax.f32 (!%p3451_p11), %v2404_v7, 0.0 }
 0x22e   : > { %2153 = vst [vmem:[#allocation2 + $0x220] sm:$0xff] %v2005_v21  ;;  %v2007_v31 = vadd.f32 %v1742_v28, %v820_v18  ;;  %v1744_v32 = vpop.f32.mrb[71].mxu0  ;;  %2229 = vst [vmem:[#allocation2 + $0x480] sm:$0xff] %v2081_v24  ;;  %v2083_v33 = vadd.f32 %v1932_v30, %v896_v20  ;;  %v1934_v34 = vpop.f32.mrb[71].mxu1  ;;  %v2551_v18 = vmax.f32 (!%p3451_p11), %v2403_v6, 0.0  ;;  %v2249_v20 = vld [vmem:[#allocation2 + $0x60] sm:$0xff] (!%p3451_p11)  ;;  %v3532_v22 = vpack.c.bf16 (!%p3451_p11), %v2546_v11, %v2545_v10 }
 0x22f   : > { %2154 = vst [vmem:[#allocation2 + $0x228] sm:$0xff] %v2006_v27  ;;  %v2008_v35 = vadd.f32 %v1744_v32, %v821_v23  ;;  %2230 = vst [vmem:[#allocation2 + $0x488] sm:$0xff] %v2082_v29  ;;  %v2084_v36 = vadd.f32 %v1934_v34, %v897_v26  ;;  %v2250_v21 = vld [vmem:[#allocation2 + $0x68] sm:$0xff] (!%p3451_p11)  ;;  %v3533_v23 = vpack.c.bf16 (!%p3451_p11), %v2548_v13, %v2547_v12  ;;  %v2251_v26 = vld [vmem:[#allocation2 + $0x70] sm:$0xff] (!%p3451_p11)  ;;  %v2566_v12 = vmax.f32 (!%p3451_p11), %v2418_v2, 0.0 }
 0x230   : > { %2155 = vst [vmem:[#allocation2 + $0x230] sm:$0xff] %v2007_v31  ;;  %2231 = vst [vmem:[#allocation2 + $0x490] sm:$0xff] %v2083_v33  ;;  %v2405_v24 = vadd.f32 (!%p3451_p11), %v4366_v59, %v2245_v8  ;;  %v2406_v25 = vadd.f32 (!%p3451_p11), %v4368_v60, %v2246_v9  ;;  %v2252_v27 = vld [vmem:[#allocation2 + $0x78] sm:$0xff] (!%p3451_p11)  ;;  %v3534_v28 = vpack.c.bf16 (!%p3451_p11), %v2550_v17, %v2549_v16  ;;  %v2253_v32 = vld [vmem:[#allocation2 + $0x80] sm:$0xff] (!%p3451_p11) }
 0x231   : > { %2156 = vst [vmem:[#allocation2 + $0x238] sm:$0xff] %v2008_v35  ;;  %2232 = vst [vmem:[#allocation2 + $0x498] sm:$0xff] %v2084_v36  ;;  %v3535_v29 = vpack.c.bf16 (!%p3451_p11), %v2552_v19, %v2551_v18  ;;  %v2407_v30 = vadd.f32 (!%p3451_p11), %v4366_v59, %v2247_v14  ;;  %v2408_v31 = vadd.f32 (!%p3451_p11), %v4368_v60, %v2248_v15  ;;  %v2263_v8 = vld [vmem:[#allocation2 + $0xd0] sm:$0xff] (!%p3451_p11)  ;;  %v2264_v9 = vld [vmem:[#allocation2 + $0xd8] sm:$0xff] (!%p3451_p11) }
 0x232   : > { %3137 = vst [vmem:[%s4758_s3] sm:$0xff] (!%p3451_p11), %v3532_v22  ;;  %3138 = vst [vmem:[%s4758_s3 + $0x8] sm:$0xff] (!%p3451_p11), %v3533_v23  ;;  %v2553_v33 = vmax.f32 (!%p3451_p11), %v2405_v24, 0.0  ;;  %v2554_v34 = vmax.f32 (!%p3451_p11), %v2406_v25, 0.0  ;;  %v2409_v35 = vadd.f32 (!%p3451_p11), %v4366_v59, %v2249_v20  ;;  %v2410_v36 = vadd.f32 (!%p3451_p11), %v4368_v60, %v2250_v21  ;;  %v2265_v14 = vld [vmem:[#allocation2 + $0xe0] sm:$0xff] (!%p3451_p11)  ;;  %v2266_v15 = vld [vmem:[#allocation2 + $0xe8] sm:$0xff] (!%p3451_p11) }
 0x233   : > { %v1748_v39 = vpop.f32.mrb[72].mxu0  ;;  %2236 = sbr.rel (%p3451_p11) target bundleno = 654 (0x28e), region = 78  ;;  %3139 = vst [vmem:[%s4758_s3 + $0x10] sm:$0xff] (!%p3451_p11), %v3534_v28  ;;  %3140 = vst [vmem:[%s4758_s3 + $0x18] sm:$0xff] (!%p3451_p11), %v3535_v29  ;;  %v2419_v6 = vadd.f32 (!%p3451_p11), %v4366_v59, %v2259_v54  ;;  %v2420_v7 = vadd.f32 (!%p3451_p11), %v4368_v60, %v2260_v55  ;;  %v2421_v13 = vadd.f32 (!%p3451_p11), %v4366_v59, %v2261_v62  ;;  %v2267_v20 = vld [vmem:[#allocation2 + $0xf0] sm:$0xff] (!%p3451_p11)  ;;  %v2268_v21 = vld [vmem:[#allocation2 + $0xf8] sm:$0xff] (!%p3451_p11) }
 0x234   : > { %v2009_v41 = vadd.f32 %v1748_v39, %v822_v37  ;;  %v1750_v42 = vpop.f32.mrb[73].mxu0  ;;  %v2254_v37 = vld [vmem:[#allocation2 + $0x88] sm:$0xff] (!%p3451_p11)  ;;  %v2556_v39 = vmax.f32 (!%p3451_p11), %v2408_v31, 0.0  ;;  %v2422_v19 = vadd.f32 (!%p3451_p11), %v4368_v60, %v2262_v3  ;;  %v2423_v24 = vadd.f32 (!%p3451_p11), %v4366_v59, %v2263_v8  ;;  %v2277_v54 = vld [vmem:[#allocation2 + $0x140] sm:$0xff] (!%p3451_p11)  ;;  %v2279_v2 = vld [vmem:[#allocation2 + $0x150] sm:$0xff] (!%p3451_p11) }
 0x235   : > { %v2010_v44 = vadd.f32 %v1750_v42, %v823_v38  ;;  %v1752_v45 = vpop.f32.mrb[74].mxu0  ;;  %v2555_v38 = vmax.f32 (!%p3451_p11), %v2407_v30, 0.0  ;;  %v2255_v42 = vld [vmem:[#allocation2 + $0x90] sm:$0xff] (!%p3451_p11)  ;;  %v2414_v53 = vadd.f32 (!%p3451_p11), %v4368_v60, %v2254_v37  ;;  %v2567_v17 = vmax.f32 (!%p3451_p11), %v2419_v6, 0.0  ;;  %v2270_v31 = vld [vmem:[#allocation2 + $0x108] sm:$0xff] (!%p3451_p11)  ;;  %v2272_v37 = vld [vmem:[#allocation2 + $0x118] sm:$0xff] (!%p3451_p11) }
 0x236   : > { %2157 = vst [vmem:[#allocation2 + $0x240] sm:$0xff] %v2009_v41  ;;  %v2011_v46 = vadd.f32 %v1752_v45, %v824_v40  ;;  %v1754_v47 = vpop.f32.mrb[75].mxu0  ;;  %v2411_v40 = vadd.f32 (!%p3451_p11), %v4366_v59, %v2251_v26  ;;  %v2412_v41 = vadd.f32 (!%p3451_p11), %v4368_v60, %v2252_v27  ;;  %v2557_v45 = vmax.f32 (!%p3451_p11), %v2409_v35, 0.0  ;;  %v2269_v26 = vld [vmem:[#allocation2 + $0x100] sm:$0xff] (!%p3451_p11)  ;;  %v2280_v3 = vld [vmem:[#allocation2 + $0x158] sm:$0xff] (!%p3451_p11) }
 0x237   : > { %2158 = vst [vmem:[#allocation2 + $0x248] sm:$0xff] %v2010_v44  ;;  %v2012_v48 = vadd.f32 %v1754_v47, %v825_v43  ;;  %v2256_v43 = vld [vmem:[#allocation2 + $0x98] sm:$0xff] (!%p3451_p11)  ;;  %v3536_v44 = vpack.c.bf16 (!%p3451_p11), %v2554_v34, %v2553_v33  ;;  %v2413_v47 = vadd.f32 (!%p3451_p11), %v4366_v59, %v2253_v32  ;;  %v3537_v50 = vpack.c.bf16 (!%p3451_p11), %v2556_v39, %v2555_v38  ;;  %v2281_v8 = vld [vmem:[#allocation2 + $0x160] sm:$0xff] (!%p3451_p11) }
 0x238   : > { %2159 = vst [vmem:[#allocation2 + $0x250] sm:$0xff] %v2011_v46  ;;  %v2558_v46 = vmax.f32 (!%p3451_p11), %v2410_v36, 0.0  ;;  %v2559_v51 = vmax.f32 (!%p3451_p11), %v2411_v40, 0.0  ;;  %v2560_v52 = vmax.f32 (!%p3451_p11), %v2412_v41, 0.0  ;;  %v2415_v58 = vadd.f32 (!%p3451_p11), %v4366_v59, %v2255_v42  ;;  %v2271_v36 = vld [vmem:[#allocation2 + $0x110] sm:$0xff] (!%p3451_p11)  ;;  %v2273_v42 = vld [vmem:[#allocation2 + $0x120] sm:$0xff] (!%p3451_p11) }
 0x239   : > { %2160 = vst [vmem:[#allocation2 + $0x258] sm:$0xff] %v2012_v48  ;;  %v2257_v48 = vld [vmem:[#allocation2 + $0xa0] sm:$0xff] (!%p3451_p11)  ;;  %3141 = vst [vmem:[%s4758_s3 + $0x20] sm:$0xff] (!%p3451_p11), %v3536_v44  ;;  %v2561_v57 = vmax.f32 (!%p3451_p11), %v2413_v47, 0.0  ;;  %v2416_v61 = vadd.f32 (!%p3451_p11), %v4368_v60, %v2256_v43  ;;  %v2562_v0 = vmax.f32 (!%p3451_p11), %v2414_v53, 0.0  ;;  %v2568_v18 = vmax.f32 (!%p3451_p11), %v2420_v7, 0.0 }
 0x23a   : > { %v3538_v56 = vpack.c.bf16 %v2558_v46, %v2557_v45  ;;  %3142 = vst [vmem:[%s4758_s3 + $0x28] sm:$0xff] %v3537_v50  ;;  %v3539_v63 = vpack.c.bf16 %v2560_v52, %v2559_v51  ;;  %v2417_v1 = vadd.f32 %v4366_v59, %v2257_v48  ;;  %v2563_v4 = vmax.f32 %v2415_v58, 0.0  ;;  %v2274_v43 = vld [vmem:[#allocation2 + $0x128] sm:$0xff]  ;;  %v2275_v48 = vld [vmem:[#allocation2 + $0x130] sm:$0xff] }
 0x23b   : > { %v2564_v5 = vmax.f32 %v2416_v61, 0.0  ;;  %v3540_v10 = vpack.c.bf16 %v2562_v0, %v2561_v57  ;;  %v2569_v23 = vmax.f32 %v2421_v13, 0.0  ;;  %v2424_v25 = vadd.f32 %v4368_v60, %v2264_v9  ;;  %v2278_v61 = vld [vmem:[#allocation2 + $0x148] sm:$0xff] }
 0x23c   : > { %3143 = vst [vmem:[%s4758_s3 + $0x30] sm:$0xff] %v3538_v56  ;;  %3144 = vst [vmem:[%s4758_s3 + $0x38] sm:$0xff] %v3539_v63  ;;  %v2565_v11 = vmax.f32 %v2417_v1, 0.0  ;;  %v3543_v27 = vpack.c.bf16 %v2568_v18, %v2567_v17  ;;  %v2570_v28 = vmax.f32 %v2422_v19, 0.0  ;;  %v2425_v29 = vadd.f32 %v4366_v59, %v2265_v14  ;;  %v2282_v9 = vld [vmem:[#allocation2 + $0x168] sm:$0xff]  ;;  %v2283_v14 = vld [vmem:[#allocation2 + $0x170] sm:$0xff] }
 0x23d   : > { %v3541_v16 = vpack.c.bf16 %v2564_v5, %v2563_v4  ;;  %3145 = vst [vmem:[%s4758_s3 + $0x40] sm:$0xff] %v3540_v10  ;;  %v2426_v30 = vadd.f32 %v4368_v60, %v2266_v15  ;;  %v2571_v32 = vmax.f32 %v2423_v24, 0.0  ;;  %v2572_v33 = vmax.f32 %v2424_v25, 0.0  ;;  %v2284_v15 = vld [vmem:[#allocation2 + $0x178] sm:$0xff]  ;;  %v2286_v25 = vld [vmem:[#allocation2 + $0x188] sm:$0xff] }
 0x23e   : > { %v3542_v22 = vpack.c.bf16 %v2566_v12, %v2565_v11  ;;  %v2427_v34 = vadd.f32 %v4366_v59, %v2267_v20  ;;  %v2428_v35 = vadd.f32 %v4368_v60, %v2268_v21  ;;  %3148 = vst [vmem:[%s4758_s3 + $0x58] sm:$0xff] %v3543_v27  ;;  %v3544_v38 = vpack.c.bf16 %v2570_v28, %v2569_v23  ;;  %v2285_v20 = vld [vmem:[#allocation2 + $0x180] sm:$0xff] }
 0x23f   : > { %3146 = vst [vmem:[%s4758_s3 + $0x48] sm:$0xff] %v3541_v16  ;;  %v2573_v39 = vmax.f32 %v2425_v29, 0.0  ;;  %v2574_v40 = vmax.f32 %v2426_v30, 0.0  ;;  %v2429_v41 = vadd.f32 %v4366_v59, %v2269_v26  ;;  %v3545_v44 = vpack.c.bf16 %v2572_v33, %v2571_v32  ;;  %v2287_v30 = vld [vmem:[#allocation2 + $0x190] sm:$0xff] }
 0x240   : > { %3147 = vst [vmem:[%s4758_s3 + $0x50] sm:$0xff] %v3542_v22  ;;  %v2575_v45 = vmax.f32 %v2427_v34, 0.0  ;;  %v2576_v46 = vmax.f32 %v2428_v35, 0.0  ;;  %v2430_v47 = vadd.f32 %v4368_v60, %v2270_v31  ;;  %3149 = vst [vmem:[%s4758_s3 + $0x60] sm:$0xff] %v3544_v38  ;;  %v2431_v52 = vadd.f32 %v4366_v59, %v2271_v36  ;;  %v2288_v31 = vld [vmem:[#allocation2 + $0x198] sm:$0xff]  ;;  %v2289_v36 = vld [vmem:[#allocation2 + $0x1a0] sm:$0xff] }
 0x241   : > { %v3546_v50 = vpack.c.bf16 %v2574_v40, %v2573_v39  ;;  %v2577_v51 = vmax.f32 %v2429_v41, 0.0  ;;  %v2432_v53 = vadd.f32 %v4368_v60, %v2272_v37  ;;  %3150 = vst [vmem:[%s4758_s3 + $0x68] sm:$0xff] %v3545_v44  ;;  %v2433_v57 = vadd.f32 %v4366_v59, %v2273_v42  ;;  %v2290_v37 = vld [vmem:[#allocation2 + $0x1a8] sm:$0xff]  ;;  %v2291_v42 = vld [vmem:[#allocation2 + $0x1b0] sm:$0xff] }
 0x242   : > { %v3547_v55 = vpack.c.bf16 %v2576_v46, %v2575_v45  ;;  %v2578_v56 = vmax.f32 %v2430_v47, 0.0  ;;  %v2434_v58 = vadd.f32 %v4368_v60, %v2274_v43  ;;  %v2579_v62 = vmax.f32 %v2431_v52, 0.0  ;;  %v2292_v43 = vld [vmem:[#allocation2 + $0x1b8] sm:$0xff] }
 0x243   : > { %3151 = vst [vmem:[%s4758_s3 + $0x70] sm:$0xff] %v3546_v50  ;;  %v2580_v63 = vmax.f32 %v2432_v53, 0.0  ;;  %v2435_v0 = vadd.f32 %v4366_v59, %v2275_v48  ;;  %v2436_v1 = vadd.f32 %v4368_v60, %v2276_v49  ;;  %v2581_v5 = vmax.f32 %v2433_v57, 0.0  ;;  %v2293_v48 = vld [vmem:[#allocation2 + $0x1c0] sm:$0xff]  ;;  %v2294_v53 = vld [vmem:[#allocation2 + $0x1c8] sm:$0xff] }
 0x244   : > { %3152 = vst [vmem:[%s4758_s3 + $0x78] sm:$0xff] %v3547_v55  ;;  %v3548_v4 = vpack.c.bf16 %v2578_v56, %v2577_v51  ;;  %v2582_v6 = vmax.f32 %v2434_v58, 0.0  ;;  %v2437_v7 = vadd.f32 %v4366_v59, %v2277_v54  ;;  %v2438_v13 = vadd.f32 %v4368_v60, %v2278_v61  ;;  %v2295_v58 = vld [vmem:[#allocation2 + $0x1d0] sm:$0xff]  ;;  %v2296_v61 = vld [vmem:[#allocation2 + $0x1d8] sm:$0xff] }
 0x245   : > { %v3549_v10 = vpack.c.bf16 %v2580_v63, %v2579_v62  ;;  %v2583_v11 = vmax.f32 %v2435_v0, 0.0  ;;  %v2584_v12 = vmax.f32 %v2436_v1, 0.0  ;;  %v2439_v18 = vadd.f32 %v4366_v59, %v2279_v2  ;;  %v2297_v2 = vld [vmem:[#allocation2 + $0x1e0] sm:$0xff] }
 0x246   : > { %3153 = vst [vmem:[%s4758_s3 + $0x80] sm:$0xff] %v3548_v4  ;;  %v3550_v16 = vpack.c.bf16 %v2582_v6, %v2581_v5  ;;  %v2585_v17 = vmax.f32 %v2437_v7, 0.0  ;;  %v2440_v19 = vadd.f32 %v4368_v60, %v2280_v3  ;;  %v2586_v22 = vmax.f32 %v2438_v13, 0.0  ;;  %v2298_v3 = vld [vmem:[#allocation2 + $0x1e8] sm:$0xff] }
 0x247   : > { %3154 = vst [vmem:[%s4758_s3 + $0x88] sm:$0xff] %v3549_v10  ;;  %v3551_v21 = vpack.c.bf16 %v2584_v12, %v2583_v11  ;;  %v2441_v23 = vadd.f32 %v4366_v59, %v2281_v8  ;;  %v2442_v24 = vadd.f32 %v4368_v60, %v2282_v9  ;;  %v2587_v26 = vmax.f32 %v2439_v18, 0.0  ;;  %v2299_v8 = vld [vmem:[#allocation2 + $0x1f0] sm:$0xff]  ;;  %v2300_v9 = vld [vmem:[#allocation2 + $0x1f8] sm:$0xff] }
 0x248   : > { %3155 = vst [vmem:[%s4758_s3 + $0x90] sm:$0xff] %v3550_v16  ;;  %v2588_v27 = vmax.f32 %v2440_v19, 0.0  ;;  %v2443_v28 = vadd.f32 %v4366_v59, %v2283_v14  ;;  %v2444_v29 = vadd.f32 %v4368_v60, %v2284_v15  ;;  %v3552_v32 = vpack.c.bf16 %v2586_v22, %v2585_v17  ;;  %v2301_v14 = vld [vmem:[#allocation2 + $0x200] sm:$0xff]  ;;  %v2302_v19 = vld [vmem:[#allocation2 + $0x208] sm:$0xff] }
 0x249   : > { %3156 = vst [vmem:[%s4758_s3 + $0x98] sm:$0xff] %v3551_v21  ;;  %v2589_v33 = vmax.f32 %v2441_v23, 0.0  ;;  %v2590_v34 = vmax.f32 %v2442_v24, 0.0  ;;  %v2445_v35 = vadd.f32 %v4366_v59, %v2285_v20  ;;  %v2446_v41 = vadd.f32 %v4368_v60, %v2286_v25  ;;  %v2303_v24 = vld [vmem:[#allocation2 + $0x210] sm:$0xff]  ;;  %v2304_v25 = vld [vmem:[#allocation2 + $0x218] sm:$0xff] }
 0x24a   : > { %v3553_v38 = vpack.c.bf16 %v2588_v27, %v2587_v26  ;;  %v2591_v39 = vmax.f32 %v2443_v28, 0.0  ;;  %v2592_v40 = vmax.f32 %v2444_v29, 0.0  ;;  %3157 = vst [vmem:[%s4758_s3 + $0xa0] sm:$0xff] %v3552_v32  ;;  %v2447_v46 = vadd.f32 %v4366_v59, %v2287_v30  ;;  %v2305_v30 = vld [vmem:[#allocation2 + $0x220] sm:$0xff] }
 0x24b   : > { %v3554_v44 = vpack.c.bf16 %v2590_v34, %v2589_v33  ;;  %v2593_v45 = vmax.f32 %v2445_v35, 0.0  ;;  %v2448_v47 = vadd.f32 %v4368_v60, %v2288_v31  ;;  %v2594_v50 = vmax.f32 %v2446_v41, 0.0  ;;  %v2306_v31 = vld [vmem:[#allocation2 + $0x228] sm:$0xff] }
 0x24c   : > { %3158 = vst [vmem:[%s4758_s3 + $0xa8] sm:$0xff] %v3553_v38  ;;  %v3555_v49 = vpack.c.bf16 %v2592_v40, %v2591_v39  ;;  %v2449_v51 = vadd.f32 %v4366_v59, %v2289_v36  ;;  %v2450_v52 = vadd.f32 %v4368_v60, %v2290_v37  ;;  %v2595_v54 = vmax.f32 %v2447_v46, 0.0  ;;  %v2307_v36 = vld [vmem:[#allocation2 + $0x230] sm:$0xff]  ;;  %v2308_v37 = vld [vmem:[#allocation2 + $0x238] sm:$0xff] }
 0x24d   : > { %3159 = vst [vmem:[%s4758_s3 + $0xb0] sm:$0xff] %v3554_v44  ;;  %v2596_v55 = vmax.f32 %v2448_v47, 0.0  ;;  %v2451_v56 = vadd.f32 %v4366_v59, %v2291_v42  ;;  %v2452_v57 = vadd.f32 %v4368_v60, %v2292_v43  ;;  %v3556_v62 = vpack.c.bf16 %v2594_v50, %v2593_v45  ;;  %v2309_v42 = vld [vmem:[#allocation2 + $0x240] sm:$0xff]  ;;  %v2310_v47 = vld [vmem:[#allocation2 + $0x248] sm:$0xff] }
 0x24e   : > { %3160 = vst [vmem:[%s4758_s3 + $0xb8] sm:$0xff] %v3555_v49  ;;  %v2597_v63 = vmax.f32 %v2449_v51, 0.0  ;;  %v2598_v0 = vmax.f32 %v2450_v52, 0.0  ;;  %v2453_v1 = vadd.f32 %v4366_v59, %v2293_v48  ;;  %v2454_v7 = vadd.f32 %v4368_v60, %v2294_v53  ;;  %v2311_v52 = vld [vmem:[#allocation2 + $0x250] sm:$0xff]  ;;  %v2312_v53 = vld [vmem:[#allocation2 + $0x258] sm:$0xff] }
 0x24f   : > { %v3557_v4 = vpack.c.bf16 %v2596_v55, %v2595_v54  ;;  %v2599_v5 = vmax.f32 %v2451_v56, 0.0  ;;  %v2600_v6 = vmax.f32 %v2452_v57, 0.0  ;;  %3161 = vst [vmem:[%s4758_s3 + $0xc0] sm:$0xff] %v3556_v62  ;;  %v2455_v12 = vadd.f32 %v4366_v59, %v2295_v58  ;;  %v2313_v58 = vld [vmem:[#allocation2 + $0x260] sm:$0xff] }
 0x250   : > { %v3558_v10 = vpack.c.bf16 %v2598_v0, %v2597_v63  ;;  %v2601_v11 = vmax.f32 %v2453_v1, 0.0  ;;  %v2456_v13 = vadd.f32 %v4368_v60, %v2296_v61  ;;  %v2602_v16 = vmax.f32 %v2454_v7, 0.0  ;;  %v2314_v61 = vld [vmem:[#allocation2 + $0x268] sm:$0xff] }
 0x251   : > { %3162 = vst [vmem:[%s4758_s3 + $0xc8] sm:$0xff] %v3557_v4  ;;  %v3559_v15 = vpack.c.bf16 %v2600_v6, %v2599_v5  ;;  %v2457_v17 = vadd.f32 %v4366_v59, %v2297_v2  ;;  %v2458_v18 = vadd.f32 %v4368_v60, %v2298_v3  ;;  %v2603_v20 = vmax.f32 %v2455_v12, 0.0  ;;  %v2315_v2 = vld [vmem:[#allocation2 + $0x270] sm:$0xff]  ;;  %v2316_v3 = vld [vmem:[#allocation2 + $0x278] sm:$0xff] }
 0x252   : > { %3163 = vst [vmem:[%s4758_s3 + $0xd0] sm:$0xff] %v3558_v10  ;;  %v2604_v21 = vmax.f32 %v2456_v13, 0.0  ;;  %v2459_v22 = vadd.f32 %v4366_v59, %v2299_v8  ;;  %v2460_v23 = vadd.f32 %v4368_v60, %v2300_v9  ;;  %v3560_v26 = vpack.c.bf16 %v2602_v16, %v2601_v11  ;;  %v2317_v8 = vld [vmem:[#allocation2 + $0x280] sm:$0xff]  ;;  %v2318_v13 = vld [vmem:[#allocation2 + $0x288] sm:$0xff] }
 0x253   : > { %3164 = vst [vmem:[%s4758_s3 + $0xd8] sm:$0xff] %v3559_v15  ;;  %v2605_v27 = vmax.f32 %v2457_v17, 0.0  ;;  %v2606_v28 = vmax.f32 %v2458_v18, 0.0  ;;  %v2461_v29 = vadd.f32 %v4366_v59, %v2301_v14  ;;  %v2462_v35 = vadd.f32 %v4368_v60, %v2302_v19  ;;  %v2319_v18 = vld [vmem:[#allocation2 + $0x290] sm:$0xff]  ;;  %v2320_v19 = vld [vmem:[#allocation2 + $0x298] sm:$0xff] }
 0x254   : > { %v3561_v32 = vpack.c.bf16 %v2604_v21, %v2603_v20  ;;  %v2607_v33 = vmax.f32 %v2459_v22, 0.0  ;;  %v2608_v34 = vmax.f32 %v2460_v23, 0.0  ;;  %3165 = vst [vmem:[%s4758_s3 + $0xe0] sm:$0xff] %v3560_v26  ;;  %v2463_v40 = vadd.f32 %v4366_v59, %v2303_v24  ;;  %v2321_v24 = vld [vmem:[#allocation2 + $0x2a0] sm:$0xff] }
 0x255   : > { %v3562_v38 = vpack.c.bf16 %v2606_v28, %v2605_v27  ;;  %v2609_v39 = vmax.f32 %v2461_v29, 0.0  ;;  %v2464_v41 = vadd.f32 %v4368_v60, %v2304_v25  ;;  %v2610_v44 = vmax.f32 %v2462_v35, 0.0  ;;  %v2322_v25 = vld [vmem:[#allocation2 + $0x2a8] sm:$0xff] }
 0x256   : > { %3166 = vst [vmem:[%s4758_s3 + $0xe8] sm:$0xff] %v3561_v32  ;;  %v3563_v43 = vpack.c.bf16 %v2608_v34, %v2607_v33  ;;  %v2465_v45 = vadd.f32 %v4366_v59, %v2305_v30  ;;  %v2466_v46 = vadd.f32 %v4368_v60, %v2306_v31  ;;  %v2611_v48 = vmax.f32 %v2463_v40, 0.0  ;;  %v2323_v30 = vld [vmem:[#allocation2 + $0x2b0] sm:$0xff]  ;;  %v2324_v31 = vld [vmem:[#allocation2 + $0x2b8] sm:$0xff] }
 0x257   : > { %3167 = vst [vmem:[%s4758_s3 + $0xf0] sm:$0xff] %v3562_v38  ;;  %v2612_v49 = vmax.f32 %v2464_v41, 0.0  ;;  %v2467_v50 = vadd.f32 %v4366_v59, %v2307_v36  ;;  %v2468_v51 = vadd.f32 %v4368_v60, %v2308_v37  ;;  %v3564_v54 = vpack.c.bf16 %v2610_v44, %v2609_v39  ;;  %v2325_v36 = vld [vmem:[#allocation2 + $0x2c0] sm:$0xff]  ;;  %v2326_v41 = vld [vmem:[#allocation2 + $0x2c8] sm:$0xff] }
 0x258   : > { %3168 = vst [vmem:[%s4758_s3 + $0xf8] sm:$0xff] %v3563_v43  ;;  %v2613_v55 = vmax.f32 %v2465_v45, 0.0  ;;  %v2614_v56 = vmax.f32 %v2466_v46, 0.0  ;;  %v2469_v57 = vadd.f32 %v4366_v59, %v2309_v42  ;;  %v2470_v1 = vadd.f32 %v4368_v60, %v2310_v47  ;;  %v2327_v46 = vld [vmem:[#allocation2 + $0x2d0] sm:$0xff]  ;;  %v2328_v47 = vld [vmem:[#allocation2 + $0x2d8] sm:$0xff] }
 0x259   : > { %v3565_v62 = vpack.c.bf16 %v2612_v49, %v2611_v48  ;;  %v2615_v63 = vmax.f32 %v2467_v50, 0.0  ;;  %v2616_v0 = vmax.f32 %v2468_v51, 0.0  ;;  %3169 = vst [vmem:[%s4758_s3 + $0x100] sm:$0xff] %v3564_v54  ;;  %v2471_v6 = vadd.f32 %v4366_v59, %v2311_v52  ;;  %v2329_v52 = vld [vmem:[#allocation2 + $0x2e0] sm:$0xff] }
 0x25a   : > { %v3566_v4 = vpack.c.bf16 %v2614_v56, %v2613_v55  ;;  %v2617_v5 = vmax.f32 %v2469_v57, 0.0  ;;  %v2472_v7 = vadd.f32 %v4368_v60, %v2312_v53  ;;  %v2618_v10 = vmax.f32 %v2470_v1, 0.0  ;;  %v2330_v53 = vld [vmem:[#allocation2 + $0x2e8] sm:$0xff] }
 0x25b   : > { %3170 = vst [vmem:[%s4758_s3 + $0x108] sm:$0xff] %v3565_v62  ;;  %v3567_v9 = vpack.c.bf16 %v2616_v0, %v2615_v63  ;;  %v2473_v11 = vadd.f32 %v4366_v59, %v2313_v58  ;;  %v2474_v12 = vadd.f32 %v4368_v60, %v2314_v61  ;;  %v2619_v14 = vmax.f32 %v2471_v6, 0.0  ;;  %v2331_v58 = vld [vmem:[#allocation2 + $0x2f0] sm:$0xff]  ;;  %v2332_v61 = vld [vmem:[#allocation2 + $0x2f8] sm:$0xff] }
 0x25c   : > { %3171 = vst [vmem:[%s4758_s3 + $0x110] sm:$0xff] %v3566_v4  ;;  %v2620_v15 = vmax.f32 %v2472_v7, 0.0  ;;  %v2475_v16 = vadd.f32 %v4366_v59, %v2315_v2  ;;  %v2476_v17 = vadd.f32 %v4368_v60, %v2316_v3  ;;  %v3568_v20 = vpack.c.bf16 %v2618_v10, %v2617_v5  ;;  %v2333_v2 = vld [vmem:[#allocation2 + $0x300] sm:$0xff]  ;;  %v2334_v7 = vld [vmem:[#allocation2 + $0x308] sm:$0xff] }
 0x25d   : > { %3172 = vst [vmem:[%s4758_s3 + $0x118] sm:$0xff] %v3567_v9  ;;  %v2621_v21 = vmax.f32 %v2473_v11, 0.0  ;;  %v2622_v22 = vmax.f32 %v2474_v12, 0.0  ;;  %v2477_v23 = vadd.f32 %v4366_v59, %v2317_v8  ;;  %v2478_v29 = vadd.f32 %v4368_v60, %v2318_v13  ;;  %v2335_v12 = vld [vmem:[#allocation2 + $0x310] sm:$0xff]  ;;  %v2336_v13 = vld [vmem:[#allocation2 + $0x318] sm:$0xff] }
 0x25e   : > { %v3569_v26 = vpack.c.bf16 %v2620_v15, %v2619_v14  ;;  %v2623_v27 = vmax.f32 %v2475_v16, 0.0  ;;  %v2624_v28 = vmax.f32 %v2476_v17, 0.0  ;;  %3173 = vst [vmem:[%s4758_s3 + $0x120] sm:$0xff] %v3568_v20  ;;  %v2479_v34 = vadd.f32 %v4366_v59, %v2319_v18  ;;  %v2337_v18 = vld [vmem:[#allocation2 + $0x320] sm:$0xff] }
 0x25f   : > { %v3570_v32 = vpack.c.bf16 %v2622_v22, %v2621_v21  ;;  %v2625_v33 = vmax.f32 %v2477_v23, 0.0  ;;  %v2480_v35 = vadd.f32 %v4368_v60, %v2320_v19  ;;  %v2626_v38 = vmax.f32 %v2478_v29, 0.0  ;;  %v2338_v19 = vld [vmem:[#allocation2 + $0x328] sm:$0xff] }
 0x260   : > { %3174 = vst [vmem:[%s4758_s3 + $0x128] sm:$0xff] %v3569_v26  ;;  %v3571_v37 = vpack.c.bf16 %v2624_v28, %v2623_v27  ;;  %v2481_v39 = vadd.f32 %v4366_v59, %v2321_v24  ;;  %v2482_v40 = vadd.f32 %v4368_v60, %v2322_v25  ;;  %v2627_v42 = vmax.f32 %v2479_v34, 0.0  ;;  %v2339_v24 = vld [vmem:[#allocation2 + $0x330] sm:$0xff]  ;;  %v2340_v25 = vld [vmem:[#allocation2 + $0x338] sm:$0xff] }
 0x261   : > { %3175 = vst [vmem:[%s4758_s3 + $0x130] sm:$0xff] %v3570_v32  ;;  %v2628_v43 = vmax.f32 %v2480_v35, 0.0  ;;  %v2483_v44 = vadd.f32 %v4366_v59, %v2323_v30  ;;  %v2484_v45 = vadd.f32 %v4368_v60, %v2324_v31  ;;  %v3572_v48 = vpack.c.bf16 %v2626_v38, %v2625_v33  ;;  %v2341_v30 = vld [vmem:[#allocation2 + $0x340] sm:$0xff]  ;;  %v2342_v35 = vld [vmem:[#allocation2 + $0x348] sm:$0xff] }
 0x262   : > { %3176 = vst [vmem:[%s4758_s3 + $0x138] sm:$0xff] %v3571_v37  ;;  %v2629_v49 = vmax.f32 %v2481_v39, 0.0  ;;  %v2630_v50 = vmax.f32 %v2482_v40, 0.0  ;;  %v2485_v51 = vadd.f32 %v4366_v59, %v2325_v36  ;;  %v2486_v57 = vadd.f32 %v4368_v60, %v2326_v41  ;;  %v2343_v40 = vld [vmem:[#allocation2 + $0x350] sm:$0xff]  ;;  %v2344_v41 = vld [vmem:[#allocation2 + $0x358] sm:$0xff] }
 0x263   : > { %v3573_v54 = vpack.c.bf16 %v2628_v43, %v2627_v42  ;;  %v2631_v55 = vmax.f32 %v2483_v44, 0.0  ;;  %v2632_v56 = vmax.f32 %v2484_v45, 0.0  ;;  %3177 = vst [vmem:[%s4758_s3 + $0x140] sm:$0xff] %v3572_v48  ;;  %v2487_v0 = vadd.f32 %v4366_v59, %v2327_v46  ;;  %v2345_v46 = vld [vmem:[#allocation2 + $0x360] sm:$0xff] }
 0x264   : > { %v3574_v62 = vpack.c.bf16 %v2630_v50, %v2629_v49  ;;  %v2633_v63 = vmax.f32 %v2485_v51, 0.0  ;;  %v2488_v1 = vadd.f32 %v4368_v60, %v2328_v47  ;;  %v2634_v4 = vmax.f32 %v2486_v57, 0.0  ;;  %v2346_v47 = vld [vmem:[#allocation2 + $0x368] sm:$0xff] }
 0x265   : > { %3178 = vst [vmem:[%s4758_s3 + $0x148] sm:$0xff] %v3573_v54  ;;  %v3575_v3 = vpack.c.bf16 %v2632_v56, %v2631_v55  ;;  %v2489_v5 = vadd.f32 %v4366_v59, %v2329_v52  ;;  %v2490_v6 = vadd.f32 %v4368_v60, %v2330_v53  ;;  %v2635_v8 = vmax.f32 %v2487_v0, 0.0  ;;  %v2347_v52 = vld [vmem:[#allocation2 + $0x370] sm:$0xff]  ;;  %v2348_v53 = vld [vmem:[#allocation2 + $0x378] sm:$0xff] }
 0x266   : > { %3179 = vst [vmem:[%s4758_s3 + $0x150] sm:$0xff] %v3574_v62  ;;  %v2636_v9 = vmax.f32 %v2488_v1, 0.0  ;;  %v2491_v10 = vadd.f32 %v4366_v59, %v2331_v58  ;;  %v2492_v11 = vadd.f32 %v4368_v60, %v2332_v61  ;;  %v3576_v14 = vpack.c.bf16 %v2634_v4, %v2633_v63  ;;  %v2349_v58 = vld [vmem:[#allocation2 + $0x380] sm:$0xff]  ;;  %v2350_v1 = vld [vmem:[#allocation2 + $0x388] sm:$0xff] }
 0x267   : > { %3180 = vst [vmem:[%s4758_s3 + $0x158] sm:$0xff] %v3575_v3  ;;  %v2637_v15 = vmax.f32 %v2489_v5, 0.0  ;;  %v2638_v16 = vmax.f32 %v2490_v6, 0.0  ;;  %v2493_v17 = vadd.f32 %v4366_v59, %v2333_v2  ;;  %v2494_v23 = vadd.f32 %v4368_v60, %v2334_v7  ;;  %v2351_v6 = vld [vmem:[#allocation2 + $0x390] sm:$0xff]  ;;  %v2352_v7 = vld [vmem:[#allocation2 + $0x398] sm:$0xff] }
 0x268   : > { %v3577_v20 = vpack.c.bf16 %v2636_v9, %v2635_v8  ;;  %v2639_v21 = vmax.f32 %v2491_v10, 0.0  ;;  %v2640_v22 = vmax.f32 %v2492_v11, 0.0  ;;  %3181 = vst [vmem:[%s4758_s3 + $0x160] sm:$0xff] %v3576_v14  ;;  %v2495_v28 = vadd.f32 %v4366_v59, %v2335_v12  ;;  %v2353_v12 = vld [vmem:[#allocation2 + $0x3a0] sm:$0xff] }
 0x269   : > { %v3578_v26 = vpack.c.bf16 %v2638_v16, %v2637_v15  ;;  %v2641_v27 = vmax.f32 %v2493_v17, 0.0  ;;  %v2496_v29 = vadd.f32 %v4368_v60, %v2336_v13  ;;  %v2642_v32 = vmax.f32 %v2494_v23, 0.0  ;;  %v2354_v13 = vld [vmem:[#allocation2 + $0x3a8] sm:$0xff] }
 0x26a   : > { %3182 = vst [vmem:[%s4758_s3 + $0x168] sm:$0xff] %v3577_v20  ;;  %v3579_v31 = vpack.c.bf16 %v2640_v22, %v2639_v21  ;;  %v2497_v33 = vadd.f32 %v4366_v59, %v2337_v18  ;;  %v2498_v34 = vadd.f32 %v4368_v60, %v2338_v19  ;;  %v2643_v36 = vmax.f32 %v2495_v28, 0.0  ;;  %v2355_v18 = vld [vmem:[#allocation2 + $0x3b0] sm:$0xff]  ;;  %v2356_v19 = vld [vmem:[#allocation2 + $0x3b8] sm:$0xff] }
 0x26b   : > { %3183 = vst [vmem:[%s4758_s3 + $0x170] sm:$0xff] %v3578_v26  ;;  %v2644_v37 = vmax.f32 %v2496_v29, 0.0  ;;  %v2499_v38 = vadd.f32 %v4366_v59, %v2339_v24  ;;  %v2500_v39 = vadd.f32 %v4368_v60, %v2340_v25  ;;  %v3580_v42 = vpack.c.bf16 %v2642_v32, %v2641_v27  ;;  %v2357_v24 = vld [vmem:[#allocation2 + $0x3c0] sm:$0xff]  ;;  %v2358_v29 = vld [vmem:[#allocation2 + $0x3c8] sm:$0xff] }
 0x26c   : > { %3184 = vst [vmem:[%s4758_s3 + $0x178] sm:$0xff] %v3579_v31  ;;  %v2645_v43 = vmax.f32 %v2497_v33, 0.0  ;;  %v2646_v44 = vmax.f32 %v2498_v34, 0.0  ;;  %v2501_v45 = vadd.f32 %v4366_v59, %v2341_v30  ;;  %v2502_v51 = vadd.f32 %v4368_v60, %v2342_v35  ;;  %v2359_v34 = vld [vmem:[#allocation2 + $0x3d0] sm:$0xff]  ;;  %v2360_v35 = vld [vmem:[#allocation2 + $0x3d8] sm:$0xff] }
 0x26d   : > { %v3581_v48 = vpack.c.bf16 %v2644_v37, %v2643_v36  ;;  %v2647_v49 = vmax.f32 %v2499_v38, 0.0  ;;  %v2648_v50 = vmax.f32 %v2500_v39, 0.0  ;;  %3185 = vst [vmem:[%s4758_s3 + $0x180] sm:$0xff] %v3580_v42  ;;  %v2503_v56 = vadd.f32 %v4366_v59, %v2343_v40  ;;  %v2361_v40 = vld [vmem:[#allocation2 + $0x3e0] sm:$0xff] }
 0x26e   : > { %v3582_v54 = vpack.c.bf16 %v2646_v44, %v2645_v43  ;;  %v2649_v55 = vmax.f32 %v2501_v45, 0.0  ;;  %v2504_v57 = vadd.f32 %v4368_v60, %v2344_v41  ;;  %v2650_v62 = vmax.f32 %v2502_v51, 0.0  ;;  %v2362_v41 = vld [vmem:[#allocation2 + $0x3e8] sm:$0xff] }
 0x26f   : > { %3186 = vst [vmem:[%s4758_s3 + $0x188] sm:$0xff] %v3581_v48  ;;  %v3583_v61 = vpack.c.bf16 %v2648_v50, %v2647_v49  ;;  %v2505_v63 = vadd.f32 %v4366_v59, %v2345_v46  ;;  %v2506_v0 = vadd.f32 %v4368_v60, %v2346_v47  ;;  %v2651_v2 = vmax.f32 %v2503_v56, 0.0  ;;  %v2363_v46 = vld [vmem:[#allocation2 + $0x3f0] sm:$0xff]  ;;  %v2364_v47 = vld [vmem:[#allocation2 + $0x3f8] sm:$0xff] }
 0x270   : > { %3187 = vst [vmem:[%s4758_s3 + $0x190] sm:$0xff] %v3582_v54  ;;  %v2652_v3 = vmax.f32 %v2504_v57, 0.0  ;;  %v2507_v4 = vadd.f32 %v4366_v59, %v2347_v52  ;;  %v2508_v5 = vadd.f32 %v4368_v60, %v2348_v53  ;;  %v3584_v8 = vpack.c.bf16 %v2650_v62, %v2649_v55  ;;  %v2365_v52 = vld [vmem:[#allocation2 + $0x400] sm:$0xff]  ;;  %v2366_v57 = vld [vmem:[#allocation2 + $0x408] sm:$0xff] }
 0x271   : > { %3188 = vst [vmem:[%s4758_s3 + $0x198] sm:$0xff] %v3583_v61  ;;  %v2653_v9 = vmax.f32 %v2505_v63, 0.0  ;;  %v2654_v10 = vmax.f32 %v2506_v0, 0.0  ;;  %v2509_v11 = vadd.f32 %v4366_v59, %v2349_v58  ;;  %v2510_v17 = vadd.f32 %v4368_v60, %v2350_v1  ;;  %v2367_v0 = vld [vmem:[#allocation2 + $0x410] sm:$0xff]  ;;  %v2368_v1 = vld [vmem:[#allocation2 + $0x418] sm:$0xff] }
 0x272   : > { %v3585_v14 = vpack.c.bf16 %v2652_v3, %v2651_v2  ;;  %v2655_v15 = vmax.f32 %v2507_v4, 0.0  ;;  %v2656_v16 = vmax.f32 %v2508_v5, 0.0  ;;  %3189 = vst [vmem:[%s4758_s3 + $0x1a0] sm:$0xff] %v3584_v8  ;;  %v2511_v22 = vadd.f32 %v4366_v59, %v2351_v6  ;;  %v2369_v6 = vld [vmem:[#allocation2 + $0x420] sm:$0xff] }
 0x273   : > { %v3586_v20 = vpack.c.bf16 %v2654_v10, %v2653_v9  ;;  %v2657_v21 = vmax.f32 %v2509_v11, 0.0  ;;  %v2512_v23 = vadd.f32 %v4368_v60, %v2352_v7  ;;  %v2658_v26 = vmax.f32 %v2510_v17, 0.0  ;;  %v2370_v7 = vld [vmem:[#allocation2 + $0x428] sm:$0xff] }
 0x274   : > { %3190 = vst [vmem:[%s4758_s3 + $0x1a8] sm:$0xff] %v3585_v14  ;;  %v3587_v25 = vpack.c.bf16 %v2656_v16, %v2655_v15  ;;  %v2513_v27 = vadd.f32 %v4366_v59, %v2353_v12  ;;  %v2514_v28 = vadd.f32 %v4368_v60, %v2354_v13  ;;  %v2659_v30 = vmax.f32 %v2511_v22, 0.0  ;;  %v2371_v12 = vld [vmem:[#allocation2 + $0x430] sm:$0xff]  ;;  %v2372_v13 = vld [vmem:[#allocation2 + $0x438] sm:$0xff] }
 0x275   : > { %3191 = vst [vmem:[%s4758_s3 + $0x1b0] sm:$0xff] %v3586_v20  ;;  %v2660_v31 = vmax.f32 %v2512_v23, 0.0  ;;  %v2515_v32 = vadd.f32 %v4366_v59, %v2355_v18  ;;  %v2516_v33 = vadd.f32 %v4368_v60, %v2356_v19  ;;  %v3588_v36 = vpack.c.bf16 %v2658_v26, %v2657_v21  ;;  %v2373_v18 = vld [vmem:[#allocation2 + $0x440] sm:$0xff]  ;;  %v2374_v23 = vld [vmem:[#allocation2 + $0x448] sm:$0xff] }
 0x276   : > { %3192 = vst [vmem:[%s4758_s3 + $0x1b8] sm:$0xff] %v3587_v25  ;;  %v2661_v37 = vmax.f32 %v2513_v27, 0.0  ;;  %v2662_v38 = vmax.f32 %v2514_v28, 0.0  ;;  %v2517_v39 = vadd.f32 %v4366_v59, %v2357_v24  ;;  %v2518_v45 = vadd.f32 %v4368_v60, %v2358_v29  ;;  %v2375_v28 = vld [vmem:[#allocation2 + $0x450] sm:$0xff]  ;;  %v2376_v29 = vld [vmem:[#allocation2 + $0x458] sm:$0xff] }
 0x277   : > { %v3589_v42 = vpack.c.bf16 %v2660_v31, %v2659_v30  ;;  %v2663_v43 = vmax.f32 %v2515_v32, 0.0  ;;  %v2664_v44 = vmax.f32 %v2516_v33, 0.0  ;;  %3193 = vst [vmem:[%s4758_s3 + $0x1c0] sm:$0xff] %v3588_v36  ;;  %v2519_v50 = vadd.f32 %v4366_v59, %v2359_v34  ;;  %v2377_v34 = vld [vmem:[#allocation2 + $0x460] sm:$0xff] }
 0x278   : > { %v3590_v48 = vpack.c.bf16 %v2662_v38, %v2661_v37  ;;  %v2665_v49 = vmax.f32 %v2517_v39, 0.0  ;;  %v2520_v51 = vadd.f32 %v4368_v60, %v2360_v35  ;;  %v2666_v54 = vmax.f32 %v2518_v45, 0.0  ;;  %v2378_v35 = vld [vmem:[#allocation2 + $0x468] sm:$0xff] }
 0x279   : > { %3194 = vst [vmem:[%s4758_s3 + $0x1c8] sm:$0xff] %v3589_v42  ;;  %v3591_v53 = vpack.c.bf16 %v2664_v44, %v2663_v43  ;;  %v2521_v55 = vadd.f32 %v4366_v59, %v2361_v40  ;;  %v2522_v56 = vadd.f32 %v4368_v60, %v2362_v41  ;;  %v2667_v58 = vmax.f32 %v2519_v50, 0.0  ;;  %v2379_v40 = vld [vmem:[#allocation2 + $0x470] sm:$0xff]  ;;  %v2380_v41 = vld [vmem:[#allocation2 + $0x478] sm:$0xff] }
 0x27a   : > { %3195 = vst [vmem:[%s4758_s3 + $0x1d0] sm:$0xff] %v3590_v48  ;;  %v2668_v61 = vmax.f32 %v2520_v51, 0.0  ;;  %v2523_v62 = vadd.f32 %v4366_v59, %v2363_v46  ;;  %v2524_v63 = vadd.f32 %v4368_v60, %v2364_v47  ;;  %v3592_v2 = vpack.c.bf16 %v2666_v54, %v2665_v49  ;;  %v2381_v46 = vld [vmem:[#allocation2 + $0x480] sm:$0xff]  ;;  %v2382_v51 = vld [vmem:[#allocation2 + $0x488] sm:$0xff] }
 0x27b   : > { %3196 = vst [vmem:[%s4758_s3 + $0x1d8] sm:$0xff] %v3591_v53  ;;  %v2669_v3 = vmax.f32 %v2521_v55, 0.0  ;;  %v2670_v4 = vmax.f32 %v2522_v56, 0.0  ;;  %v2525_v5 = vadd.f32 %v4366_v59, %v2365_v52  ;;  %v2526_v11 = vadd.f32 %v4368_v60, %v2366_v57  ;;  %v2383_v56 = vld [vmem:[#allocation2 + $0x490] sm:$0xff]  ;;  %v2384_v57 = vld [vmem:[#allocation2 + $0x498] sm:$0xff] }
 0x27c   : > { %v3593_v8 = vpack.c.bf16 %v2668_v61, %v2667_v58  ;;  %v2671_v9 = vmax.f32 %v2523_v62, 0.0  ;;  %v2672_v10 = vmax.f32 %v2524_v63, 0.0  ;;  %3197 = vst [vmem:[%s4758_s3 + $0x1e0] sm:$0xff] %v3592_v2  ;;  %v2527_v16 = vadd.f32 %v4366_v59, %v2367_v0 }
 0x27d   : > { %v3594_v14 = vpack.c.bf16 %v2670_v4, %v2669_v3  ;;  %v2673_v15 = vmax.f32 %v2525_v5, 0.0  ;;  %v2528_v17 = vadd.f32 %v4368_v60, %v2368_v1  ;;  %v2674_v20 = vmax.f32 %v2526_v11, 0.0 }
 0x27e   : > { %3198 = vst [vmem:[%s4758_s3 + $0x1e8] sm:$0xff] %v3593_v8  ;;  %v3595_v19 = vpack.c.bf16 %v2672_v10, %v2671_v9  ;;  %v2529_v21 = vadd.f32 %v4366_v59, %v2369_v6  ;;  %v2530_v22 = vadd.f32 %v4368_v60, %v2370_v7  ;;  %v2675_v24 = vmax.f32 %v2527_v16, 0.0 }
 0x27f   : > { %3199 = vst [vmem:[%s4758_s3 + $0x1f0] sm:$0xff] %v3594_v14  ;;  %v2676_v25 = vmax.f32 %v2528_v17, 0.0  ;;  %v2531_v26 = vadd.f32 %v4366_v59, %v2371_v12  ;;  %v2532_v27 = vadd.f32 %v4368_v60, %v2372_v13  ;;  %v3596_v30 = vpack.c.bf16 %v2674_v20, %v2673_v15 }
 0x280   : > { %3200 = vst [vmem:[%s4758_s3 + $0x1f8] sm:$0xff] %v3595_v19  ;;  %v2677_v31 = vmax.f32 %v2529_v21, 0.0  ;;  %v2678_v32 = vmax.f32 %v2530_v22, 0.0  ;;  %v2533_v33 = vadd.f32 %v4366_v59, %v2373_v18  ;;  %v2534_v39 = vadd.f32 %v4368_v60, %v2374_v23 }
 0x281   : > { %v3597_v36 = vpack.c.bf16 %v2676_v25, %v2675_v24  ;;  %v2679_v37 = vmax.f32 %v2531_v26, 0.0  ;;  %v2680_v38 = vmax.f32 %v2532_v27, 0.0  ;;  %3201 = vst [vmem:[%s4758_s3 + $0x200] sm:$0xff] %v3596_v30  ;;  %v2535_v44 = vadd.f32 %v4366_v59, %v2375_v28 }
 0x282   : > { %v3598_v42 = vpack.c.bf16 %v2678_v32, %v2677_v31  ;;  %v2681_v43 = vmax.f32 %v2533_v33, 0.0  ;;  %v2536_v45 = vadd.f32 %v4368_v60, %v2376_v29  ;;  %v2682_v48 = vmax.f32 %v2534_v39, 0.0 }
 0x283   : > { %3202 = vst [vmem:[%s4758_s3 + $0x208] sm:$0xff] %v3597_v36  ;;  %v3599_v47 = vpack.c.bf16 %v2680_v38, %v2679_v37  ;;  %v2537_v49 = vadd.f32 %v4366_v59, %v2377_v34  ;;  %v2538_v50 = vadd.f32 %v4368_v60, %v2378_v35  ;;  %v2683_v52 = vmax.f32 %v2535_v44, 0.0 }
 0x284   : > { %3203 = vst [vmem:[%s4758_s3 + $0x210] sm:$0xff] %v3598_v42  ;;  %v2684_v53 = vmax.f32 %v2536_v45, 0.0  ;;  %v2539_v54 = vadd.f32 %v4366_v59, %v2379_v40  ;;  %v2540_v55 = vadd.f32 %v4368_v60, %v2380_v41  ;;  %v3600_v58 = vpack.c.bf16 %v2682_v48, %v2681_v43 }
 0x285   : > { %3204 = vst [vmem:[%s4758_s3 + $0x218] sm:$0xff] %v3599_v47  ;;  %v2685_v61 = vmax.f32 %v2537_v49, 0.0  ;;  %v2686_v62 = vmax.f32 %v2538_v50, 0.0  ;;  %v2541_v63 = vadd.f32 %v4366_v59, %v2381_v46  ;;  %v2542_v3 = vadd.f32 %v4368_v60, %v2382_v51 }
 0x286   : > { %v3601_v0 = vpack.c.bf16 %v2684_v53, %v2683_v52  ;;  %v2687_v1 = vmax.f32 %v2539_v54, 0.0  ;;  %v2688_v2 = vmax.f32 %v2540_v55, 0.0  ;;  %3205 = vst [vmem:[%s4758_s3 + $0x220] sm:$0xff] %v3600_v58  ;;  %v2543_v6 = vadd.f32 %v4366_v59, %v2383_v56 }
 0x287   : > { %v3602_v4 = vpack.c.bf16 %v2686_v62, %v2685_v61  ;;  %v2689_v5 = vmax.f32 %v2541_v63, 0.0  ;;  %v2544_v7 = vadd.f32 %v4368_v60, %v2384_v57  ;;  %v2690_v9 = vmax.f32 %v2542_v3, 0.0 }
 0x288   : > { %3206 = vst [vmem:[%s4758_s3 + $0x228] sm:$0xff] %v3601_v0  ;;  %v3603_v8 = vpack.c.bf16 %v2688_v2, %v2687_v1  ;;  %v2691_v10 = vmax.f32 %v2543_v6, 0.0 }
 0x289   : > { %3207 = vst [vmem:[%s4758_s3 + $0x230] sm:$0xff] %v3602_v4  ;;  %v2692_v11 = vmax.f32 %v2544_v7, 0.0  ;;  %v3604_v12 = vpack.c.bf16 %v2690_v9, %v2689_v5 }
 0x28a   : > { %3208 = vst [vmem:[%s4758_s3 + $0x238] sm:$0xff] %v3603_v8 }
 0x28b   : > { %v3605_v59 = vpack.c.bf16 %v2692_v11, %v2691_v10  ;;  %3209 = vst [vmem:[%s4758_s3 + $0x240] sm:$0xff] %v3604_v12 }
 0x28d   : > { %3210 = vst [vmem:[%s4758_s3 + $0x248] sm:$0xff] %v3605_v59 }
 0x28e PF: > { %s13_s16 = sadd.s32 1, %s3878_s16   ;;  %s4759_s12 = smov %s3866_s13 }
 0x28f   : > { %p10_p12 = scmp.ge.s32.totalorder %s13_s16, 11   ;;  %s4760_s13 = smov %s3936_s20 }
 0x290   : > { %s4761_s14 = smov %s3874_s15  ;;  %s4762_s15 = smov %s4764_s17 }
 0x291   :  { %12 = sbr.rel (!%p10_p12) target bundleno = 3 (0x3), region = 119 }

// kernel: mixed7a_forward.10
= control target key start
LH: loop header
LB: loop body
LE: loop exit
PB: predicated region body
PF: predicated region fallthrough
CT: control target
= control target key end

     0   :  { %s1552_s12 = smov 0   ;;  %s1554_s13 = smov 0   ;;  %s1776_s0 = inlined_call_operand.vmem [shape: bf16[128,2304], index: 0, kind: input, shape index: {}]   ;;  %s1777_s1 = inlined_call_operand.vmem [shape: bf16[2304,256], index: 1, kind: input, shape index: {}]   ;;  %s1778_s2 = inlined_call_operand.vmem [shape: f32[1,256], index: 2, kind: input, shape index: {}]   ;;  %s1779_s3 = inlined_call_operand.vmem [shape: bf16[128,256], index: 3, kind: output, shape index: {}]  }
   0x1   :  { %s1556_s14 = smov 0   ;;  %s1558_s15 = smov 0  }
   0x2   :  { %s1560_s16 = smov 0  }
   0x3 LB: > { %s25_s17 = sadd.s32 1, %s1525_s15  ;;  %p48_p1 = scmp.ne.s32.totalorder %s1517_s13, %s1513_s12  ;;  %s1529_s16 = sphi %s1560_s16, %s13_s16   ;;  %s1525_s15 = sphi %s1558_s15, %s1783_s15   ;;  %s1521_s14 = sphi %s1556_s14, %s1782_s14   ;;  %s1517_s13 = sphi %s1554_s13, %s1781_s13   ;;  %s1513_s12 = sphi %s1552_s12, %s1780_s12  }
   0x4   : > { %p26_p0 = scmp.ge.s32.totalorder %s25_s17, 9  ;;  %p49_p2 = scmp.eq.s32.totalorder %s1529_s16, 0 }
   0x5   : > { %s41_s19 = sadd.s32 1, %s1517_s13  ;;  %p1249_p5 = scmp.ge.s32.totalorder %s1529_s16, 9 }
   0x6   : > { %s1785_s17 = smov (%p26_p0, %s25_s17), 0  ;;  %p50_p3 = por %p49_p2, %p48_p1 }
   0x7   : > { %s37_s18 = ssub.s32 %s1525_s15, %s1785_s17  ;;  %164 = sbr.rel (%p1249_p5) target bundleno = 26 (0x1a), region = 20 }
   0x8   : > { %p39_p4 = scmp.eq.s32.totalorder %s37_s18, 0 }
   0xa   : > { %s1587_s20 = scalar_select %p39_p4, %s1517_s13, %s41_s19  }
   0xe   : > { %167 = sbr.rel (!%p50_p3) target bundleno = 26 (0x1a), region = 24  ;;  %s169_s21 = sand.u32 (%p50_p3), 1, %s1517_s13  }
   0xf   : > { %s1328_s22 = sshll.u32 (%p50_p3), %s1525_s15, 3  ;;  %s1250_s23 = sshll.u32 (%p50_p3), %s169_s21, 7 }
  0x10   : > { %s1595_s26 = scalar_lea.vmem (%p50_p3), %s1776_s0, %s1328_s22  ;;  %s171_s27 = scalar_lea.vmem (%p50_p3), [#allocation3], %s1250_s23 }
  0x11   : > { %v235_v0 = vld [vmem:[%s1595_s26] sm:$0xff] (%p50_p3)  ;;  %v237_v1 = vld [vmem:[%s1595_s26 + $0x48] sm:$0xff] (%p50_p3)  ;;  %v239_v2 = vld [vmem:[%s1595_s26 + $0x90] sm:$0xff] (%p50_p3) }
  0x12   : > { %236 = vst [vmem:[%s171_s27] sm:$0xff] (%p50_p3), %v235_v0  ;;  %238 = vst [vmem:[%s171_s27 + $0x8] sm:$0xff] (%p50_p3), %v237_v1  ;;  %v241_v3 = vld [vmem:[%s1595_s26 + $0xd8] sm:$0xff] (%p50_p3)  ;;  %v243_v4 = vld [vmem:[%s1595_s26 + $0x120] sm:$0xff] (%p50_p3) }
  0x13   : > { %240 = vst [vmem:[%s171_s27 + $0x10] sm:$0xff] (%p50_p3), %v239_v2  ;;  %v245_v5 = vld [vmem:[%s1595_s26 + $0x168] sm:$0xff] (%p50_p3)  ;;  %242 = vst [vmem:[%s171_s27 + $0x18] sm:$0xff] (%p50_p3), %v241_v3  ;;  %v247_v6 = vld [vmem:[%s1595_s26 + $0x1b0] sm:$0xff] (%p50_p3) }
  0x14   : > { %244 = vst [vmem:[%s171_s27 + $0x20] sm:$0xff] (%p50_p3), %v243_v4  ;;  %246 = vst [vmem:[%s171_s27 + $0x28] sm:$0xff] (%p50_p3), %v245_v5  ;;  %v249_v7 = vld [vmem:[%s1595_s26 + $0x1f8] sm:$0xff] (%p50_p3)  ;;  %v251_v8 = vld [vmem:[%s1595_s26 + $0x240] sm:$0xff] (%p50_p3) }
  0x15   : > { %248 = vst [vmem:[%s171_s27 + $0x30] sm:$0xff] %v247_v6  ;;  %250 = vst [vmem:[%s171_s27 + $0x38] sm:$0xff] %v249_v7  ;;  %v253_v9 = vld [vmem:[%s1595_s26 + $0x288] sm:$0xff]  ;;  %v255_v10 = vld [vmem:[%s1595_s26 + $0x2d0] sm:$0xff] }
  0x16   : > { %252 = vst [vmem:[%s171_s27 + $0x40] sm:$0xff] %v251_v8  ;;  %v257_v11 = vld [vmem:[%s1595_s26 + $0x318] sm:$0xff]  ;;  %254 = vst [vmem:[%s171_s27 + $0x48] sm:$0xff] %v253_v9  ;;  %v259_v12 = vld [vmem:[%s1595_s26 + $0x360] sm:$0xff] }
  0x17   : > { %256 = vst [vmem:[%s171_s27 + $0x50] sm:$0xff] %v255_v10  ;;  %258 = vst [vmem:[%s171_s27 + $0x58] sm:$0xff] %v257_v11  ;;  %v261_v13 = vld [vmem:[%s1595_s26 + $0x3a8] sm:$0xff]  ;;  %v263_v14 = vld [vmem:[%s1595_s26 + $0x3f0] sm:$0xff] }
  0x18   : > { %260 = vst [vmem:[%s171_s27 + $0x60] sm:$0xff] %v259_v12  ;;  %262 = vst [vmem:[%s171_s27 + $0x68] sm:$0xff] %v261_v13  ;;  %v265_v15 = vld [vmem:[%s1595_s26 + $0x438] sm:$0xff] }
  0x19   : > { %264 = vst [vmem:[%s171_s27 + $0x70] sm:$0xff] %v263_v14  ;;  %266 = vst [vmem:[%s171_s27 + $0x78] sm:$0xff] %v265_v15 }
  0x1a PF: > { %p1253_p6 = scmp.ge.s32.totalorder %s1529_s16, 1  ;;  %p286_p7 = scmp.lt.s32.totalorder %s1529_s16, 10 }
  0x1c   : > { %p287_p8 = pnand %p1253_p6, %p286_p7 }
  0x1d   : > { %s293_s28 = sand.u32 (!%p287_p8), 1, %s1513_s12   ;;  %s1255_s29 = sshll.u32 (!%p287_p8), %s1521_s14, 5 }
  0x1e   : > { %290 = sbr.rel (%p287_p8) target bundleno = 378 (0x17a), region = 66  ;;  %s1254_s30 = sshll.u32 (!%p287_p8), %s293_s28, 7 }
  0x1f   : > { %p339_p9 = scmp.lt.s32.totalorder (!%p287_p8), %s1255_s29, 287  ;;  %s1622_s8 = scalar_lea.vmem (!%p287_p8), [#allocation3], %s1254_s30 }
  0x20   : > { %p1258_p10 = scmp.ne.s32.totalorder (!%p287_p8), %s1521_s14, 0 }
  0x25   : > { %s1787_s29 = smov (!%p339_p9, %s1255_s29), 287  ;;  %369 = sbr.rel (%p1258_p10) target bundleno = 55 (0x37), region = 74 }
  0x26   : > { %s1329_s4 = sshll.u32 %s1787_s29, 3  ;;  %v1531_v16 = vmov (!%p1258_p10), 0.0  }
  0x27   : > { %s1620_s7 = scalar_lea.vmem %s1777_s1, %s1329_s4  ;;  %370 = vst [vmem:[#allocation2] sm:$0xff] (!%p1258_p10), %v1531_v16  ;;  %371 = vst [vmem:[#allocation2 + $0x8] sm:$0xff] (!%p1258_p10), %v1531_v16 }
  0x28   : > { %372 = vst [vmem:[#allocation2 + $0x10] sm:$0xff] (!%p1258_p10), %v1531_v16  ;;  %373 = vst [vmem:[#allocation2 + $0x18] sm:$0xff] (!%p1258_p10), %v1531_v16 }
  0x29   : > { %374 = vst [vmem:[#allocation2 + $0x20] sm:$0xff] (!%p1258_p10), %v1531_v16  ;;  %375 = vst [vmem:[#allocation2 + $0x28] sm:$0xff] (!%p1258_p10), %v1531_v16 }
  0x2a   : > { %376 = vst [vmem:[#allocation2 + $0x30] sm:$0xff] (!%p1258_p10), %v1531_v16  ;;  %377 = vst [vmem:[#allocation2 + $0x38] sm:$0xff] (!%p1258_p10), %v1531_v16 }
  0x2b   : > { %378 = vst [vmem:[#allocation2 + $0x40] sm:$0xff] (!%p1258_p10), %v1531_v16  ;;  %379 = vst [vmem:[#allocation2 + $0x48] sm:$0xff] (!%p1258_p10), %v1531_v16 }
  0x2c   : > { %380 = vst [vmem:[#allocation2 + $0x50] sm:$0xff] %v1531_v16  ;;  %381 = vst [vmem:[#allocation2 + $0x58] sm:$0xff] %v1531_v16 }
  0x2d   : > { %382 = vst [vmem:[#allocation2 + $0x60] sm:$0xff] %v1531_v16  ;;  %383 = vst [vmem:[#allocation2 + $0x68] sm:$0xff] %v1531_v16 }
  0x2e   : > { %384 = vst [vmem:[#allocation2 + $0x70] sm:$0xff] %v1531_v16  ;;  %385 = vst [vmem:[#allocation2 + $0x78] sm:$0xff] %v1531_v16 }
  0x2f   : > { %386 = vst [vmem:[#allocation2 + $0x80] sm:$0xff] %v1531_v16  ;;  %387 = vst [vmem:[#allocation2 + $0x88] sm:$0xff] %v1531_v16 }
  0x30   : > { %388 = vst [vmem:[#allocation2 + $0x90] sm:$0xff] %v1531_v16  ;;  %389 = vst [vmem:[#allocation2 + $0x98] sm:$0xff] %v1531_v16 }
  0x31   : > { %390 = vst [vmem:[#allocation2 + $0xa0] sm:$0xff] %v1531_v16  ;;  %391 = vst [vmem:[#allocation2 + $0xa8] sm:$0xff] %v1531_v16 }
  0x32   : > { %392 = vst [vmem:[#allocation2 + $0xb0] sm:$0xff] %v1531_v16  ;;  %393 = vst [vmem:[#allocation2 + $0xb8] sm:$0xff] %v1531_v16 }
  0x33   : > { %394 = vst [vmem:[#allocation2 + $0xc0] sm:$0xff] %v1531_v16  ;;  %395 = vst [vmem:[#allocation2 + $0xc8] sm:$0xff] %v1531_v16 }
  0x34   : > { %396 = vst [vmem:[#allocation2 + $0xd0] sm:$0xff] %v1531_v16  ;;  %397 = vst [vmem:[#allocation2 + $0xd8] sm:$0xff] %v1531_v16 }
  0x35   : > { %398 = vst [vmem:[#allocation2 + $0xe0] sm:$0xff] %v1531_v16  ;;  %399 = vst [vmem:[#allocation2 + $0xe8] sm:$0xff] %v1531_v16 }
  0x36   : > { %400 = vst [vmem:[#allocation2 + $0xf0] sm:$0xff] %v1531_v16  ;;  %401 = vst [vmem:[#allocation2 + $0xf8] sm:$0xff] %v1531_v16 }
  0x37 PF: > { %v1419_v17 = vld [vmem:[%s1620_s7 + $0x4] ss:$8 sps:$4 sm:$0xff]   ;;  %v1421_v18 = vld [vmem:[%s1620_s7] ss:$8 sps:$4 sm:$0xff]   ;;  %v1422_v19 = vld [vmem:[%s1620_s7 + $0x14] ss:$8 sps:$4 sm:$0xff]  }
  0x38   : > { %722 = vmatprep.subr.bf16.mxu0 %v1419_v17  ;;  %1346 = vmatprep.subr.bf16.mxu1 %v1419_v17  ;;  %v1424_v20 = vld [vmem:[%s1620_s7 + $0x10] ss:$8 sps:$4 sm:$0xff]   ;;  %v1425_v21 = vld [vmem:[%s1620_s7 + $0x24] ss:$8 sps:$4 sm:$0xff]   ;;  %v1427_v22 = vld [vmem:[%s1620_s7 + $0x20] ss:$8 sps:$4 sm:$0xff]  }
  0x39   : > { %723 = vmatpush1.bf16.msra.mxu0 %v1421_v18  ;;  %1362 = vmatpush1.bf16.msra.mxu1 %v1421_v18  ;;  %v1428_v23 = vld [vmem:[%s1620_s7 + $0x34] ss:$8 sps:$4 sm:$0xff]   ;;  %v1430_v24 = vld [vmem:[%s1620_s7 + $0x30] ss:$8 sps:$4 sm:$0xff]   ;;  %v1431_v25 = vld [vmem:[%s1620_s7 + $0x44] ss:$8 sps:$4 sm:$0xff]  }
  0x3a   : > { %724 = vmatprep.subr.bf16.mxu0 %v1422_v19  ;;  %1347 = vmatprep.subr.bf16.mxu1 %v1422_v19  ;;  %v1433_v26 = vld [vmem:[%s1620_s7 + $0x40] ss:$8 sps:$4 sm:$0xff]   ;;  %v1434_v27 = vld [vmem:[%s1620_s7 + $0x54] ss:$8 sps:$4 sm:$0xff]   ;;  %v1436_v28 = vld [vmem:[%s1620_s7 + $0x50] ss:$8 sps:$4 sm:$0xff]  }
  0x3b   : > { %v1437_v29 = vld [vmem:[%s1620_s7 + $0x64] ss:$8 sps:$4 sm:$0xff]   ;;  %v1439_v31 = vld [vmem:[%s1620_s7 + $0x60] ss:$8 sps:$4 sm:$0xff]   ;;  %v1440_v33 = vld [vmem:[%s1620_s7 + $0x74] ss:$8 sps:$4 sm:$0xff]  }
  0x3c   : > { %v1469_v30 = vld [vmem:[%s1622_s8 + $0x4] ss:$8 sps:$4 sm:$0xff]   ;;  %v1442_v34 = vld [vmem:[%s1620_s7 + $0x70] ss:$8 sps:$4 sm:$0xff]   ;;  %v1445_v36 = vld [vmem:[%s1620_s7 + $0x80] ss:$8 sps:$4 sm:$0xff]  }
  0x3d   : > { %725 = vmatpush1.bf16.msra.mxu0 %v1424_v20  ;;  %1363 = vmatpush1.bf16.msra.mxu1 %v1424_v20  ;;  %v1472_v32 = vld [vmem:[%s1622_s8 + $0x44] ss:$8 sps:$4 sm:$0xff]   ;;  %v1446_v37 = vld [vmem:[%s1620_s7 + $0x94] ss:$8 sps:$4 sm:$0xff]   ;;  %v1448_v38 = vld [vmem:[%s1620_s7 + $0x90] ss:$8 sps:$4 sm:$0xff]  }
  0x3e   : > { %726 = vmatprep.subr.bf16.mxu0 %v1425_v21  ;;  %1348 = vmatprep.subr.bf16.mxu1 %v1425_v21  ;;  %v1443_v35 = vld [vmem:[%s1620_s7 + $0x84] ss:$8 sps:$4 sm:$0xff]   ;;  %v1451_v40 = vld [vmem:[%s1620_s7 + $0xa0] ss:$8 sps:$4 sm:$0xff]   ;;  %v1452_v41 = vld [vmem:[%s1620_s7 + $0xb4] ss:$8 sps:$4 sm:$0xff]  }
  0x3f   : > { %754 = vmatprep.mubr.bf16.mxu0 %v1469_v30  ;;  %794 = vmatprep.mubr.bf16.mxu1 %v1472_v32  ;;  %v1449_v39 = vld [vmem:[%s1620_s7 + $0xa4] ss:$8 sps:$4 sm:$0xff]   ;;  %v1454_v42 = vld [vmem:[%s1620_s7 + $0xb0] ss:$8 sps:$4 sm:$0xff]   ;;  %v1457_v44 = vld [vmem:[%s1620_s7 + $0xc0] ss:$8 sps:$4 sm:$0xff]  }
  0x40   : > { %v1455_v43 = vld [vmem:[%s1620_s7 + $0xc4] ss:$8 sps:$4 sm:$0xff]   ;;  %v1458_v45 = vld [vmem:[%s1620_s7 + $0xd4] ss:$8 sps:$4 sm:$0xff]   ;;  %v1460_v46 = vld [vmem:[%s1620_s7 + $0xd0] ss:$8 sps:$4 sm:$0xff]  }
  0x41   : > { %727 = vmatpush1.bf16.msra.mxu0 %v1427_v22  ;;  %1364 = vmatpush1.bf16.msra.mxu1 %v1427_v22  ;;  %v1461_v47 = vld [vmem:[%s1620_s7 + $0xe4] ss:$8 sps:$4 sm:$0xff]   ;;  %v1463_v48 = vld [vmem:[%s1620_s7 + $0xe0] ss:$8 sps:$4 sm:$0xff]   ;;  %v1464_v49 = vld [vmem:[%s1620_s7 + $0xf4] ss:$8 sps:$4 sm:$0xff]  }
  0x42   : > { %728 = vmatprep.subr.bf16.mxu0 %v1428_v23  ;;  %1349 = vmatprep.subr.bf16.mxu1 %v1428_v23  ;;  %v1466_v50 = vld [vmem:[%s1620_s7 + $0xf0] ss:$8 sps:$4 sm:$0xff]   ;;  %v1467_v51 = vld [vmem:[%s1622_s8] ss:$8 sps:$4 sm:$0xff]   ;;  %v1473_v53 = vld [vmem:[%s1622_s8 + $0x14] ss:$8 sps:$4 sm:$0xff]  }
  0x43   : > { %v1470_v52 = vld [vmem:[%s1622_s8 + $0x40] ss:$8 sps:$4 sm:$0xff]   ;;  %v1475_v54 = vld [vmem:[%s1622_s8 + $0x54] ss:$8 sps:$4 sm:$0xff]   ;;  %v1477_v55 = vld [vmem:[%s1622_s8 + $0x10] ss:$8 sps:$4 sm:$0xff]  }
  0x44   : > { %v1478_v56 = vld [vmem:[%s1622_s8 + $0x50] ss:$8 sps:$4 sm:$0xff]   ;;  %v1479_v57 = vld [vmem:[%s1622_s8 + $0x24] ss:$8 sps:$4 sm:$0xff]   ;;  %v1483_v59 = vld [vmem:[%s1622_s8 + $0x20] ss:$8 sps:$4 sm:$0xff]  }
  0x45   : > { %729 = vmatpush1.bf16.msra.mxu0 %v1430_v24  ;;  %1365 = vmatpush1.bf16.msra.mxu1 %v1430_v24  ;;  %v1481_v58 = vld [vmem:[%s1622_s8 + $0x64] ss:$8 sps:$4 sm:$0xff]   ;;  %v1484_v60 = vld [vmem:[%s1622_s8 + $0x60] ss:$8 sps:$4 sm:$0xff]   ;;  %v1485_v61 = vld [vmem:[%s1622_s8 + $0x34] ss:$8 sps:$4 sm:$0xff]  }
  0x46   : > { %730 = vmatprep.subr.bf16.mxu0 %v1431_v25  ;;  %1350 = vmatprep.subr.bf16.mxu1 %v1431_v25  ;;  %v1487_v62 = vld [vmem:[%s1622_s8 + $0x74] ss:$8 sps:$4 sm:$0xff]   ;;  %v1489_v63 = vld [vmem:[%s1622_s8 + $0x30] ss:$8 sps:$4 sm:$0xff]   ;;  %v402_v1 = vld [vmem:[#allocation2] sm:$0xff]  ;;  %p1307_p11 = scmp.ne.s32.totalorder %s1521_s14, 8 }
  0x47   : > { %v1490_v0 = vld [vmem:[%s1622_s8 + $0x70] ss:$8 sps:$4 sm:$0xff]   ;;  %v418_v2 = vld [vmem:[#allocation2 + $0x80] sm:$0xff]  ;;  %v403_v3 = vld [vmem:[#allocation2 + $0x8] sm:$0xff] }
  0x48   : > { %v419_v4 = vld [vmem:[#allocation2 + $0x88] sm:$0xff]  ;;  %v404_v7 = vld [vmem:[#allocation2 + $0x10] sm:$0xff]  ;;  %v405_v13 = vld [vmem:[#allocation2 + $0x18] sm:$0xff] }
  0x49   : > { %731 = vmatpush1.bf16.msra.mxu0 %v1433_v26  ;;  %1366 = vmatpush1.bf16.msra.mxu1 %v1433_v26  ;;  %v420_v8 = vld [vmem:[#allocation2 + $0x90] sm:$0xff]  ;;  %v421_v14 = vld [vmem:[#allocation2 + $0x98] sm:$0xff]  ;;  %v406_v25 = vld [vmem:[#allocation2 + $0x20] sm:$0xff] }
  0x4a   : > { %732 = vmatprep.subr.bf16.mxu0 %v1434_v27  ;;  %1351 = vmatprep.subr.bf16.mxu1 %v1434_v27  ;;  %v422_v26 = vld [vmem:[#allocation2 + $0xa0] sm:$0xff]  ;;  %v407_v27 = vld [vmem:[#allocation2 + $0x28] sm:$0xff]  ;;  %v424_v32 = vld [vmem:[#allocation2 + $0xb0] sm:$0xff] }
  0x4d   : > { %733 = vmatpush1.bf16.msra.mxu0 %v1436_v28  ;;  %1367 = vmatpush1.bf16.msra.mxu1 %v1436_v28  ;;  %v423_v28 = vld [vmem:[#allocation2 + $0xa8] sm:$0xff] }
  0x4e   : > { %734 = vmatprep.subr.bf16.mxu0 %v1437_v29  ;;  %1352 = vmatprep.subr.bf16.mxu1 %v1437_v29 }
  0x51   : > { %735 = vmatpush1.bf16.msra.mxu0 %v1439_v31  ;;  %1368 = vmatpush1.bf16.msra.mxu1 %v1439_v31  ;;  %v408_v31 = vld [vmem:[#allocation2 + $0x30] sm:$0xff] }
  0x52   : > { %736 = vmatprep.subr.bf16.mxu0 %v1440_v33  ;;  %1353 = vmatprep.subr.bf16.mxu1 %v1440_v33 }
  0x55   : > { %737 = vmatpush1.bf16.msra.mxu0 %v1442_v34  ;;  %1369 = vmatpush1.bf16.msra.mxu1 %v1442_v34 }
  0x56   : > { %738 = vmatprep.subr.bf16.mxu0 %v1443_v35  ;;  %1354 = vmatprep.subr.bf16.mxu1 %v1443_v35 }
  0x59   : > { %739 = vmatpush1.bf16.msra.mxu0 %v1445_v36  ;;  %1370 = vmatpush1.bf16.msra.mxu1 %v1445_v36 }
  0x5a   : > { %740 = vmatprep.subr.bf16.mxu0 %v1446_v37  ;;  %1355 = vmatprep.subr.bf16.mxu1 %v1446_v37  ;;  %v409_v37 = vld [vmem:[#allocation2 + $0x38] sm:$0xff] }
  0x5d   : > { %741 = vmatpush1.bf16.msra.mxu0 %v1448_v38  ;;  %1371 = vmatpush1.bf16.msra.mxu1 %v1448_v38  ;;  %v425_v38 = vld [vmem:[#allocation2 + $0xb8] sm:$0xff] }
  0x5e   : > { %742 = vmatprep.subr.bf16.mxu0 %v1449_v39  ;;  %1356 = vmatprep.subr.bf16.mxu1 %v1449_v39 }
  0x61   : > { %743 = vmatpush1.bf16.msra.mxu0 %v1451_v40  ;;  %1372 = vmatpush1.bf16.msra.mxu1 %v1451_v40 }
  0x62   : > { %744 = vmatprep.subr.bf16.mxu0 %v1452_v41  ;;  %1357 = vmatprep.subr.bf16.mxu1 %v1452_v41 }
  0x65   : > { %745 = vmatpush1.bf16.msra.mxu0 %v1454_v42  ;;  %1373 = vmatpush1.bf16.msra.mxu1 %v1454_v42 }
  0x66   : > { %746 = vmatprep.subr.bf16.mxu0 %v1455_v43  ;;  %1358 = vmatprep.subr.bf16.mxu1 %v1455_v43 }
  0x69   : > { %747 = vmatpush1.bf16.msra.mxu0 %v1457_v44  ;;  %1374 = vmatpush1.bf16.msra.mxu1 %v1457_v44 }
  0x6a   : > { %748 = vmatprep.subr.bf16.mxu0 %v1458_v45  ;;  %1359 = vmatprep.subr.bf16.mxu1 %v1458_v45 }
  0x6d   : > { %749 = vmatpush1.bf16.msra.mxu0 %v1460_v46  ;;  %1375 = vmatpush1.bf16.msra.mxu1 %v1460_v46 }
  0x6e   : > { %750 = vmatprep.subr.bf16.mxu0 %v1461_v47  ;;  %1360 = vmatprep.subr.bf16.mxu1 %v1461_v47 }
  0x71   : > { %751 = vmatpush1.bf16.msra.mxu0 %v1463_v48  ;;  %1376 = vmatpush1.bf16.msra.mxu1 %v1463_v48 }
  0x72   : > { %752 = vmatprep.subr.bf16.mxu0 %v1464_v49  ;;  %1361 = vmatprep.subr.bf16.mxu1 %v1464_v49  ;;  %v410_v49 = vld [vmem:[#allocation2 + $0x40] sm:$0xff] }
  0x75   : > { %753 = vmatpush1.bf16.msra.mxu0 %v1466_v50  ;;  %1377 = vmatpush1.bf16.msra.mxu1 %v1466_v50  ;;  %v426_v50 = vld [vmem:[#allocation2 + $0xc0] sm:$0xff] }
  0x78   : > { %755 = vmatmul.mubr.bf16.vlgmr.msra.gmra.mrb[0].mxu0 %v1467_v51  ;;  %795 = vmatmul.mubr.bf16.vlgmr.msra.gmra.mrb[0].mxu1 %v1470_v52  ;;  %v411_v51 = vld [vmem:[#allocation2 + $0x48] sm:$0xff] }
  0x79   : > { %764 = vmatprep.mubr.bf16.mxu0 %v1473_v53  ;;  %804 = vmatprep.mubr.bf16.mxu1 %v1475_v54  ;;  %v427_v52 = vld [vmem:[#allocation2 + $0xc8] sm:$0xff] }
  0x80   : > { %765 = vmatmul.mubr.bf16.gmra.mrb[4].mxu0 %v1477_v55  ;;  %805 = vmatmul.mubr.bf16.gmra.mrb[4].mxu1 %v1478_v56  ;;  %v412_v55 = vld [vmem:[#allocation2 + $0x50] sm:$0xff] }
  0x81   : > { %774 = vmatprep.mubr.bf16.mxu0 %v1479_v57  ;;  %814 = vmatprep.mubr.bf16.mxu1 %v1481_v58  ;;  %v428_v56 = vld [vmem:[#allocation2 + $0xd0] sm:$0xff] }
  0x88   : > { %775 = vmatmul.mubr.bf16.gmra.mrb[8].mxu0 %v1483_v59  ;;  %815 = vmatmul.mubr.bf16.gmra.mrb[8].mxu1 %v1484_v60 }
  0x89   : > { %784 = vmatprep.mubr.bf16.mxu0 %v1485_v61  ;;  %824 = vmatprep.mubr.bf16.mxu1 %v1487_v62  ;;  %v413_v61 = vld [vmem:[#allocation2 + $0x58] sm:$0xff] }
  0x8a   : > { %v429_v62 = vld [vmem:[#allocation2 + $0xd8] sm:$0xff] }
  0x90   : > { %785 = vmatmul.mubr.bf16.gmra.mrb[12].mxu0 %v1489_v63  ;;  %825 = vmatmul.mubr.bf16.gmra.mrb[12].mxu1 %v1490_v0 }
 0x14b   : > { %v756_v5 = vpop.f32.mrb[0].mxu0  ;;  %v796_v6 = vpop.f32.mrb[0].mxu1 }
 0x14c   : > { %v835_v9 = vadd.f32 %v756_v5, %v402_v1  ;;  %v851_v10 = vadd.f32 %v796_v6, %v418_v2  ;;  %v758_v11 = vpop.f32.mrb[1].mxu0  ;;  %v798_v12 = vpop.f32.mrb[1].mxu1 }
 0x14d   : > { %v836_v15 = vadd.f32 %v758_v11, %v403_v3  ;;  %v852_v16 = vadd.f32 %v798_v12, %v419_v4  ;;  %v760_v17 = vpop.f32.mrb[2].mxu0  ;;  %v800_v18 = vpop.f32.mrb[2].mxu1  ;;  %v415_v11 = vld [vmem:[#allocation2 + $0x68] sm:$0xff] }
 0x14e   : > { %867 = vst [vmem:[#allocation2] sm:$0xff] %v835_v9  ;;  %883 = vst [vmem:[#allocation2 + $0x80] sm:$0xff] %v851_v10  ;;  %v837_v19 = vadd.f32 %v760_v17, %v404_v7  ;;  %v853_v20 = vadd.f32 %v800_v18, %v420_v8  ;;  %v762_v21 = vpop.f32.mrb[3].mxu0  ;;  %v802_v22 = vpop.f32.mrb[3].mxu1  ;;  %v414_v9 = vld [vmem:[#allocation2 + $0x60] sm:$0xff]  ;;  %v431_v12 = vld [vmem:[#allocation2 + $0xe8] sm:$0xff] }
 0x14f   : > { %868 = vst [vmem:[#allocation2 + $0x8] sm:$0xff] %v836_v15  ;;  %884 = vst [vmem:[#allocation2 + $0x88] sm:$0xff] %v852_v16  ;;  %v838_v23 = vadd.f32 %v762_v21, %v405_v13  ;;  %v854_v24 = vadd.f32 %v802_v22, %v421_v14  ;;  %v430_v10 = vld [vmem:[#allocation2 + $0xe0] sm:$0xff]  ;;  %v416_v15 = vld [vmem:[#allocation2 + $0x70] sm:$0xff] }
 0x150   : > { %869 = vst [vmem:[#allocation2 + $0x10] sm:$0xff] %v837_v19  ;;  %885 = vst [vmem:[#allocation2 + $0x90] sm:$0xff] %v853_v20  ;;  %v432_v16 = vld [vmem:[#allocation2 + $0xf0] sm:$0xff]  ;;  %v417_v21 = vld [vmem:[#allocation2 + $0x78] sm:$0xff] }
 0x151   : > { %870 = vst [vmem:[#allocation2 + $0x18] sm:$0xff] %v838_v23  ;;  %886 = vst [vmem:[#allocation2 + $0x98] sm:$0xff] %v854_v24  ;;  %v433_v22 = vld [vmem:[#allocation2 + $0xf8] sm:$0xff] }
 0x153   : > { %v766_v29 = vpop.f32.mrb[4].mxu0  ;;  %v806_v30 = vpop.f32.mrb[4].mxu1 }
 0x154   : > { %v839_v33 = vadd.f32 %v766_v29, %v406_v25  ;;  %v855_v34 = vadd.f32 %v806_v30, %v422_v26  ;;  %v768_v35 = vpop.f32.mrb[5].mxu0  ;;  %v808_v36 = vpop.f32.mrb[5].mxu1 }
 0x155   : > { %v840_v39 = vadd.f32 %v768_v35, %v407_v27  ;;  %v856_v40 = vadd.f32 %v808_v36, %v423_v28  ;;  %v770_v41 = vpop.f32.mrb[6].mxu0  ;;  %v810_v42 = vpop.f32.mrb[6].mxu1  ;;  %v935_v35 = vld [vmem:[%s1778_s2] sm:$0x3] (!%p1307_p11) }
 0x156   : > { %871 = vst [vmem:[#allocation2 + $0x20] sm:$0xff] %v839_v33  ;;  %887 = vst [vmem:[#allocation2 + $0xa0] sm:$0xff] %v855_v34  ;;  %v841_v43 = vadd.f32 %v770_v41, %v408_v31  ;;  %v857_v44 = vadd.f32 %v810_v42, %v424_v32  ;;  %v772_v45 = vpop.f32.mrb[7].mxu0  ;;  %v812_v46 = vpop.f32.mrb[7].mxu1  ;;  %v937_v33 = vlaneseq (!%p1307_p11)  ;;  %v903_v36 = vld [vmem:[#allocation2] sm:$0xff] (!%p1307_p11) }
 0x157   : > { %872 = vst [vmem:[#allocation2 + $0x28] sm:$0xff] %v840_v39  ;;  %888 = vst [vmem:[#allocation2 + $0xa8] sm:$0xff] %v856_v40  ;;  %v842_v47 = vadd.f32 %v772_v45, %v409_v37  ;;  %v858_v48 = vadd.f32 %v812_v46, %v425_v38  ;;  %v904_v37 = vld [vmem:[#allocation2 + $0x8] sm:$0xff] (!%p1307_p11)  ;;  %v905_v40 = vld [vmem:[#allocation2 + $0x10] sm:$0xff] (!%p1307_p11) }
 0x158   : > { %873 = vst [vmem:[#allocation2 + $0x30] sm:$0xff] %v841_v43  ;;  %889 = vst [vmem:[#allocation2 + $0xb0] sm:$0xff] %v857_v44  ;;  %v938_v34 = vshrl.u32 (!%p1307_p11), %v937_v33, 7  ;;  %v906_v41 = vld [vmem:[#allocation2 + $0x18] sm:$0xff] (!%p1307_p11) }
 0x159   : > { %874 = vst [vmem:[#allocation2 + $0x38] sm:$0xff] %v842_v47  ;;  %890 = vst [vmem:[#allocation2 + $0xb8] sm:$0xff] %v858_v48 }
 0x15a   : > { %v939_v38 = vsub.s32 (!%p1307_p11), 0, %v938_v34  ;;  %v943_v39 = vsub.s32 (!%p1307_p11), 1, %v938_v34 }
 0x15b   : > { %v776_v53 = vpop.f32.mrb[8].mxu0  ;;  %v816_v54 = vpop.f32.mrb[8].mxu1 }
 0x15c   : > { %v843_v57 = vadd.f32 %v776_v53, %v410_v49  ;;  %v859_v58 = vadd.f32 %v816_v54, %v426_v50  ;;  %v778_v59 = vpop.f32.mrb[9].mxu0  ;;  %v818_v60 = vpop.f32.mrb[9].mxu1  ;;  %v1677_v43 = vrot.slane (!%p1307_p11), %v935_v35, %v939_v38  ;;  %v1679_v44 = vrot.slane (!%p1307_p11), %v935_v35, %v943_v39 }
 0x15d   : > { %v844_v63 = vadd.f32 %v778_v59, %v411_v51  ;;  %v860_v0 = vadd.f32 %v818_v60, %v427_v52  ;;  %v780_v1 = vpop.f32.mrb[10].mxu0  ;;  %v820_v2 = vpop.f32.mrb[10].mxu1  ;;  %v907_v42 = vld [vmem:[#allocation2 + $0x20] sm:$0xff] (!%p1307_p11) }
 0x15e   : > { %875 = vst [vmem:[#allocation2 + $0x40] sm:$0xff] %v843_v57  ;;  %891 = vst [vmem:[#allocation2 + $0xc0] sm:$0xff] %v859_v58  ;;  %v845_v3 = vadd.f32 %v780_v1, %v412_v55  ;;  %v861_v4 = vadd.f32 %v820_v2, %v428_v56  ;;  %v782_v5 = vpop.f32.mrb[11].mxu0  ;;  %v822_v6 = vpop.f32.mrb[11].mxu1  ;;  %v908_v45 = vld [vmem:[#allocation2 + $0x28] sm:$0xff] (!%p1307_p11)  ;;  %v947_v48 = vadd.f32 (!%p1307_p11), %v1677_v43, %v903_v36 }
 0x15f   : > { %876 = vst [vmem:[#allocation2 + $0x48] sm:$0xff] %v844_v63  ;;  %892 = vst [vmem:[#allocation2 + $0xc8] sm:$0xff] %v860_v0  ;;  %v846_v7 = vadd.f32 %v782_v5, %v413_v61  ;;  %v862_v8 = vadd.f32 %v822_v6, %v429_v62  ;;  %v909_v46 = vld [vmem:[#allocation2 + $0x30] sm:$0xff] (!%p1307_p11)  ;;  %v948_v49 = vadd.f32 (!%p1307_p11), %v1679_v44, %v904_v37  ;;  %v924_v33 = vld [vmem:[#allocation2 + $0xa8] sm:$0xff] (!%p1307_p11) }
 0x160   : > { %877 = vst [vmem:[#allocation2 + $0x50] sm:$0xff] %v845_v3  ;;  %893 = vst [vmem:[#allocation2 + $0xd0] sm:$0xff] %v861_v4  ;;  %v910_v47 = vld [vmem:[#allocation2 + $0x38] sm:$0xff] (!%p1307_p11)  ;;  %v949_v50 = vadd.f32 (!%p1307_p11), %v1677_v43, %v905_v40  ;;  %v950_v51 = vadd.f32 (!%p1307_p11), %v1679_v44, %v906_v41  ;;  %v951_v52 = vadd.f32 (!%p1307_p11), %v1677_v43, %v907_v42  ;;  %v979_v58 = vmax.f32 (!%p1307_p11), %v947_v48, 0.0  ;;  %v925_v38 = vld [vmem:[#allocation2 + $0xb0] sm:$0xff] (!%p1307_p11) }
 0x161   : > { %878 = vst [vmem:[#allocation2 + $0x58] sm:$0xff] %v846_v7  ;;  %894 = vst [vmem:[#allocation2 + $0xd8] sm:$0xff] %v862_v8  ;;  %v952_v53 = vadd.f32 (!%p1307_p11), %v1679_v44, %v908_v45  ;;  %v953_v54 = vadd.f32 (!%p1307_p11), %v1677_v43, %v909_v46  ;;  %v954_v55 = vadd.f32 (!%p1307_p11), %v1679_v44, %v910_v47  ;;  %v980_v59 = vmax.f32 (!%p1307_p11), %v948_v49, 0.0  ;;  %v926_v39 = vld [vmem:[#allocation2 + $0xb8] sm:$0xff] (!%p1307_p11) }
 0x162   : > { %v981_v60 = vmax.f32 (!%p1307_p11), %v949_v50, 0.0  ;;  %v982_v61 = vmax.f32 (!%p1307_p11), %v950_v51, 0.0  ;;  %v983_v0 = vmax.f32 (!%p1307_p11), %v951_v52, 0.0  ;;  %v968_v50 = vadd.f32 (!%p1307_p11), %v1679_v44, %v924_v33 }
 0x163   : > { %v786_v13 = vpop.f32.mrb[12].mxu0  ;;  %v826_v14 = vpop.f32.mrb[12].mxu1  ;;  %902 = sbr.rel (%p1307_p11) target bundleno = 378 (0x17a), region = 78  ;;  %v984_v1 = vmax.f32 (!%p1307_p11), %v952_v53, 0.0  ;;  %v985_v2 = vmax.f32 (!%p1307_p11), %v953_v54, 0.0  ;;  %v986_v3 = vmax.f32 (!%p1307_p11), %v954_v55, 0.0  ;;  %v1330_v6 = vpack.c.bf16 (!%p1307_p11), %v980_v59, %v979_v58 }
 0x164   : > { %v847_v17 = vadd.f32 %v786_v13, %v414_v9  ;;  %v863_v18 = vadd.f32 %v826_v14, %v430_v10  ;;  %v788_v19 = vpop.f32.mrb[13].mxu0  ;;  %v828_v20 = vpop.f32.mrb[13].mxu1  ;;  %v1331_v7 = vpack.c.bf16 (!%p1307_p11), %v982_v61, %v981_v60  ;;  %v969_v54 = vadd.f32 (!%p1307_p11), %v1677_v43, %v925_v38 }
 0x165   : > { %v848_v23 = vadd.f32 %v788_v19, %v415_v11  ;;  %v864_v24 = vadd.f32 %v828_v20, %v431_v12  ;;  %v790_v25 = vpop.f32.mrb[14].mxu0  ;;  %v830_v26 = vpop.f32.mrb[14].mxu1  ;;  %v911_v56 = vld [vmem:[#allocation2 + $0x40] sm:$0xff] (!%p1307_p11)  ;;  %v1332_v12 = vpack.c.bf16 (!%p1307_p11), %v984_v1, %v983_v0  ;;  %v1333_v13 = vpack.c.bf16 (!%p1307_p11), %v986_v3, %v985_v2  ;;  %1107 = vst [vmem:[%s1779_s3] sm:$0xff] (!%p1307_p11), %v1330_v6 }
 0x166   : > { %879 = vst [vmem:[#allocation2 + $0x60] sm:$0xff] %v847_v17  ;;  %895 = vst [vmem:[#allocation2 + $0xe0] sm:$0xff] %v863_v18  ;;  %v849_v27 = vadd.f32 %v790_v25, %v416_v15  ;;  %v865_v28 = vadd.f32 %v830_v26, %v432_v16  ;;  %v792_v29 = vpop.f32.mrb[15].mxu0  ;;  %v832_v30 = vpop.f32.mrb[15].mxu1  ;;  %v912_v57 = vld [vmem:[#allocation2 + $0x48] sm:$0xff] (!%p1307_p11)  ;;  %v955_v8 = vadd.f32 (!%p1307_p11), %v1677_v43, %v911_v56  ;;  %v919_v16 = vld [vmem:[#allocation2 + $0x80] sm:$0xff] (!%p1307_p11) }
 0x167   : > { %880 = vst [vmem:[#allocation2 + $0x68] sm:$0xff] %v848_v23  ;;  %896 = vst [vmem:[#allocation2 + $0xe8] sm:$0xff] %v864_v24  ;;  %v850_v31 = vadd.f32 %v792_v29, %v417_v21  ;;  %v866_v32 = vadd.f32 %v832_v30, %v433_v22  ;;  %v913_v62 = vld [vmem:[#allocation2 + $0x50] sm:$0xff] (!%p1307_p11)  ;;  %v956_v9 = vadd.f32 (!%p1307_p11), %v1679_v44, %v912_v57  ;;  %v920_v21 = vld [vmem:[#allocation2 + $0x88] sm:$0xff] (!%p1307_p11)  ;;  %v1000_v60 = vmax.f32 (!%p1307_p11), %v968_v50, 0.0 }
 0x168   : > { %881 = vst [vmem:[#allocation2 + $0x70] sm:$0xff] %v849_v27  ;;  %897 = vst [vmem:[#allocation2 + $0xf0] sm:$0xff] %v865_v28  ;;  %v914_v63 = vld [vmem:[#allocation2 + $0x58] sm:$0xff] (!%p1307_p11)  ;;  %v957_v14 = vadd.f32 (!%p1307_p11), %v1677_v43, %v913_v62  ;;  %v987_v17 = vmax.f32 (!%p1307_p11), %v955_v8, 0.0  ;;  %v921_v26 = vld [vmem:[#allocation2 + $0x90] sm:$0xff] (!%p1307_p11)  ;;  %v964_v37 = vadd.f32 (!%p1307_p11), %v1679_v44, %v920_v21  ;;  %v970_v55 = vadd.f32 (!%p1307_p11), %v1679_v44, %v926_v39 }
 0x169   : > { %882 = vst [vmem:[#allocation2 + $0x78] sm:$0xff] %v850_v31  ;;  %898 = vst [vmem:[#allocation2 + $0xf8] sm:$0xff] %v866_v32  ;;  %v958_v15 = vadd.f32 (!%p1307_p11), %v1679_v44, %v914_v63  ;;  %v988_v18 = vmax.f32 (!%p1307_p11), %v956_v9, 0.0  ;;  %v922_v27 = vld [vmem:[#allocation2 + $0x98] sm:$0xff] (!%p1307_p11)  ;;  %v963_v31 = vadd.f32 (!%p1307_p11), %v1677_v43, %v919_v16  ;;  %v923_v32 = vld [vmem:[#allocation2 + $0xa0] sm:$0xff] (!%p1307_p11)  ;;  %v965_v42 = vadd.f32 (!%p1307_p11), %v1677_v43, %v921_v26 }
 0x16a   : > { %1108 = vst [vmem:[%s1779_s3 + $0x8] sm:$0xff] %v1331_v7  ;;  %1109 = vst [vmem:[%s1779_s3 + $0x10] sm:$0xff] %v1332_v12  ;;  %v989_v22 = vmax.f32 %v957_v14, 0.0  ;;  %v966_v45 = vadd.f32 %v1679_v44, %v922_v27  ;;  %v927_v46 = vld [vmem:[#allocation2 + $0xc0] sm:$0xff]  ;;  %v996_v48 = vmax.f32 %v964_v37, 0.0  ;;  %v967_v49 = vadd.f32 %v1677_v43, %v923_v32  ;;  %v928_v51 = vld [vmem:[#allocation2 + $0xc8] sm:$0xff] }
 0x16b   : > { %1110 = vst [vmem:[%s1779_s3 + $0x18] sm:$0xff] %v1333_v13  ;;  %v990_v23 = vmax.f32 %v958_v15, 0.0  ;;  %v1334_v28 = vpack.c.bf16 %v988_v18, %v987_v17  ;;  %v995_v41 = vmax.f32 %v963_v31, 0.0  ;;  %v997_v52 = vmax.f32 %v965_v42, 0.0  ;;  %v929_v56 = vld [vmem:[#allocation2 + $0xd0] sm:$0xff]  ;;  %v930_v57 = vld [vmem:[#allocation2 + $0xd8] sm:$0xff] }
 0x16c   : > { %v998_v53 = vmax.f32 %v966_v45, 0.0  ;;  %v999_v59 = vmax.f32 %v967_v49, 0.0  ;;  %v971_v61 = vadd.f32 %v1677_v43, %v927_v46  ;;  %v1001_v1 = vmax.f32 %v969_v54, 0.0 }
 0x16d   : > { %v915_v4 = vld [vmem:[#allocation2 + $0x60] sm:$0xff]  ;;  %v1335_v34 = vpack.c.bf16 %v990_v23, %v989_v22  ;;  %1111 = vst [vmem:[%s1779_s3 + $0x20] sm:$0xff] %v1334_v28  ;;  %v1338_v58 = vpack.c.bf16 %v996_v48, %v995_v41  ;;  %v1002_v2 = vmax.f32 %v970_v55, 0.0  ;;  %v972_v3 = vadd.f32 %v1679_v44, %v928_v51 }
 0x16e   : > { %v916_v5 = vld [vmem:[#allocation2 + $0x68] sm:$0xff]  ;;  %v959_v19 = vadd.f32 %v1677_v43, %v915_v4  ;;  %v931_v62 = vld [vmem:[#allocation2 + $0xe0] sm:$0xff]  ;;  %v1339_v0 = vpack.c.bf16 %v998_v53, %v997_v52  ;;  %v1340_v6 = vpack.c.bf16 %v1000_v60, %v999_v59  ;;  %v1003_v7 = vmax.f32 %v971_v61, 0.0 }
 0x16f   : > { %v917_v10 = vld [vmem:[#allocation2 + $0x70] sm:$0xff]  ;;  %v960_v20 = vadd.f32 %v1679_v44, %v916_v5  ;;  %1112 = vst [vmem:[%s1779_s3 + $0x28] sm:$0xff] %v1335_v34  ;;  %v932_v63 = vld [vmem:[#allocation2 + $0xe8] sm:$0xff]  ;;  %1115 = vst [vmem:[%s1779_s3 + $0x40] sm:$0xff] %v1338_v58  ;;  %v973_v8 = vadd.f32 %v1677_v43, %v929_v56  ;;  %v974_v9 = vadd.f32 %v1679_v44, %v930_v57 }
 0x170   : > { %v918_v11 = vld [vmem:[#allocation2 + $0x78] sm:$0xff]  ;;  %v961_v24 = vadd.f32 %v1677_v43, %v917_v10  ;;  %v991_v29 = vmax.f32 %v959_v19, 0.0  ;;  %v933_v4 = vld [vmem:[#allocation2 + $0xf0] sm:$0xff]  ;;  %1116 = vst [vmem:[%s1779_s3 + $0x48] sm:$0xff] %v1339_v0  ;;  %v1341_v10 = vpack.c.bf16 %v1002_v2, %v1001_v1  ;;  %v975_v12 = vadd.f32 %v1677_v43, %v931_v62  ;;  %1117 = vst [vmem:[%s1779_s3 + $0x50] sm:$0xff] %v1340_v6 }
 0x171   : > { %v962_v25 = vadd.f32 %v1679_v44, %v918_v11  ;;  %v992_v30 = vmax.f32 %v960_v20, 0.0  ;;  %v934_v5 = vld [vmem:[#allocation2 + $0xf8] sm:$0xff]  ;;  %v1004_v11 = vmax.f32 %v972_v3, 0.0  ;;  %v976_v13 = vadd.f32 %v1679_v44, %v932_v63 }
 0x172   : > { %v993_v35 = vmax.f32 %v961_v24, 0.0  ;;  %v1005_v14 = vmax.f32 %v973_v8, 0.0  ;;  %v1006_v15 = vmax.f32 %v974_v9, 0.0  ;;  %v977_v16 = vadd.f32 %v1677_v43, %v933_v4  ;;  %1118 = vst [vmem:[%s1779_s3 + $0x58] sm:$0xff] %v1341_v10 }
 0x173   : > { %v994_v36 = vmax.f32 %v962_v25, 0.0  ;;  %v1336_v40 = vpack.c.bf16 %v992_v30, %v991_v29  ;;  %v978_v17 = vadd.f32 %v1679_v44, %v934_v5  ;;  %v1342_v18 = vpack.c.bf16 %v1004_v11, %v1003_v7 }
 0x174   : > { %v1007_v19 = vmax.f32 %v975_v12, 0.0  ;;  %v1008_v20 = vmax.f32 %v976_v13, 0.0  ;;  %v1343_v21 = vpack.c.bf16 %v1006_v15, %v1005_v14  ;;  %v1009_v22 = vmax.f32 %v977_v16, 0.0 }
 0x175   : > { %v1337_v47 = vpack.c.bf16 %v994_v36, %v993_v35  ;;  %1113 = vst [vmem:[%s1779_s3 + $0x30] sm:$0xff] %v1336_v40  ;;  %v1010_v23 = vmax.f32 %v978_v17, 0.0  ;;  %1119 = vst [vmem:[%s1779_s3 + $0x60] sm:$0xff] %v1342_v18 }
 0x176   : > { %v1344_v24 = vpack.c.bf16 %v1008_v20, %v1007_v19  ;;  %1120 = vst [vmem:[%s1779_s3 + $0x68] sm:$0xff] %v1343_v21 }
 0x177   : > { %1114 = vst [vmem:[%s1779_s3 + $0x38] sm:$0xff] %v1337_v47  ;;  %v1345_v43 = vpack.c.bf16 %v1010_v23, %v1009_v22 }
 0x178   : > { %1121 = vst [vmem:[%s1779_s3 + $0x70] sm:$0xff] %v1344_v24 }
 0x179   : > { %1122 = vst [vmem:[%s1779_s3 + $0x78] sm:$0xff] %v1345_v43 }
 0x17a PF: > { %s13_s16 = sadd.s32 1, %s1529_s16   ;;  %s1780_s12 = smov %s1517_s13 }
 0x17b   : > { %p10_p12 = scmp.ge.s32.totalorder %s13_s16, 11   ;;  %s1781_s13 = smov %s1587_s20 }
 0x17c   : > { %s1782_s14 = smov %s1525_s15  ;;  %s1783_s15 = smov %s1785_s17 }
 0x17d   :  { %12 = sbr.rel (!%p10_p12) target bundleno = 3 (0x3), region = 119 }

// kernel: mixed7a_forward.7
= control target key start
LH: loop header
LB: loop body
LE: loop exit
PB: predicated region body
PF: predicated region fallthrough
CT: control target
= control target key end

     0   :  { %s2013_s0 = inlined_call_operand.vmem [shape: bf16[128,2304], index: 0, kind: input, shape index: {}]   ;;  %s2014_s1 = inlined_call_operand.vmem [shape: bf16[2304,384], index: 1, kind: input, shape index: {}]   ;;  %s2015_s2 = inlined_call_operand.vmem [shape: f32[1,384], index: 2, kind: input, shape index: {}]   ;;  %s2016_s3 = inlined_call_operand.vmem [shape: bf16[128,384], index: 3, kind: output, shape index: {}]  }
   0x1   :  { %2018 = sst [smem:[#allocation7_spill]] %s2013_s0 }
   0x2   :  { %2019 = sst [smem:[#allocation8_spill]] %s2014_s1 }
   0x3   :  { %s1692_s12 = smov 0   ;;  %s1694_s13 = smov 0  }
   0x4   :  { %s1696_s14 = smov 0   ;;  %s1698_s15 = smov 0  }
   0x5   :  { %s1700_s16 = smov 0   ;;  %s1702_s17 = smov 0  }
   0x6   :  { %s1704_s18 = smov 0   ;;  %s1706_s19 = smov 0  }
   0x7   :  { %s1708_s20 = smov 0   ;;  %s1710_s21 = smov 0  }
   0x8   :  { %s1712_s22 = smov 0  }
   0x9 LB: > { %s1239_s23 = sadd.s32 4294967295, %s1669_s22   ;;  %s25_s24 = sadd.s32 1, %s1661_s20  ;;  %s1669_s22 = sphi %s1712_s22, %s13_s22   ;;  %s1665_s21 = sphi %s1710_s21, %s2036_s21   ;;  %s1661_s20 = sphi %s1708_s20, %s2035_s20   ;;  %s1657_s19 = sphi %s1706_s19, %s2034_s19   ;;  %s1653_s18 = sphi %s1704_s18, %s2033_s18   ;;  %s1649_s17 = sphi %s1702_s17, %s2032_s17   ;;  %s1645_s16 = sphi %s1700_s16, %s2031_s16   ;;  %s1641_s15 = sphi %s1698_s15, %s2030_s15   ;;  %s1637_s14 = sphi %s1696_s14, %s2029_s14   ;;  %s1633_s13 = sphi %s1694_s13, %s2028_s13   ;;  %s1629_s12 = sphi %s1692_s12, %s2027_s12  }
   0xa   : > { %p26_p0 = scmp.ge.s32.totalorder %s25_s24, 9  ;;  %s28_s25 = sadd.s32 1, %s1665_s21 }
   0xb   : > { %s41_s26 = sadd.s32 1, %s1649_s17  ;;  %p48_p1 = scmp.ne.s32.totalorder %s1649_s17, %s1645_s16 }
   0xc   : > { %s2038_s24 = smov (%p26_p0, %s25_s24), 0  ;;  %s2040_s25 = smov (!%p26_p0, %s28_s25), %s1665_s21 }
   0xd   : > { %s37_s27 = ssub.s32 %s1661_s20, %s2038_s24  ;;  %p49_p2 = scmp.eq.s32.totalorder %s1669_s22, 0 }
   0xe   : > { %p30_p3 = scmp.ge.s32.totalorder %s2040_s25, 3  ;;  %p39_p4 = scmp.eq.s32.totalorder %s37_s27, 0 }
   0xf   : > { %p1759_p5 = por %p49_p2, %p48_p1  ;;  %s69_s29 = sadd.s32 1, %s1641_s15 }
  0x10   : > { %s2042_s25 = smov (%p30_p3, %s2040_s25), 0  ;;  %p76_p6 = scmp.ne.s32.totalorder %s1641_s15, %s1637_s14 }
  0x11   : > { %2021 = sst [smem:[#allocation6_spill]] %s2042_s25  ;;  %s65_s4 = ssub.s32 %s1665_s21, %s2042_s25 }
  0x12   : > { %s1767_s30 = scalar_select %p39_p4, %s1649_s17, %s41_s26  }
  0x13   : > { %s66_s5 = sor.u32 %s65_s4, %s37_s27  ;;  %p121_p7 = scmp.eq.s32.totalorder %s65_s4, 0 }
  0x14   : > { %p67_p8 = scmp.eq.s32.totalorder %s66_s5, 0  ;;  %p1773_p9 = por %p76_p6, %p49_p2 }
  0x15   : > { %s123_s7 = sadd.s32 1, %s1633_s13  ;;  %p133_p10 = scmp.ne.s32.totalorder %s1633_s13, %s1629_s12 }
  0x16   : > { %s1781_s8 = scalar_select %p67_p8, %s1641_s15, %s69_s29  }
  0x17   : > { %s1784_s9 = scalar_select %p121_p7, %s1633_s13, %s123_s7  }
  0x18   : > { %p134_p11 = scmp.eq.s32.totalorder %s1239_s23, 26  ;;  %p1242_p13 = scmp.ge.s32.totalorder %s1669_s22, 27 }
  0x1a   : > { %p1786_p12 = por %p134_p11, %p133_p10  ;;  %156 = sbr.rel (%p1242_p13) target bundleno = 82 (0x52), region = 16 }
  0x21   : > { %159 = sbr.rel (!%p1759_p5) target bundleno = 51 (0x33), region = 20  ;;  %s161_s11 = sand.u32 (%p1759_p5), 1, %s1649_s17  }
  0x22   : > { %s1309_s26 = sshll.u32 (%p1759_p5), %s1661_s20, 3  ;;  %s1243_s27 = sshll.u32 (%p1759_p5), %s161_s11, 7 }
  0x23   : > { %s2024_s0 = sld [smem:[#allocation7_spill]] (%p1759_p5)  ;;  %s163_s23 = scalar_lea.vmem (%p1759_p5), [#allocation3], %s1243_s27 }
  0x29   : > { %s1798_s5 = scalar_lea.vmem %s2024_s0, %s1309_s26 }
  0x2a   : > { %v227_v0 = vld [vmem:[%s1798_s5] sm:$0xff]  ;;  %v229_v1 = vld [vmem:[%s1798_s5 + $0x48] sm:$0xff]  ;;  %v231_v2 = vld [vmem:[%s1798_s5 + $0x90] sm:$0xff] }
  0x2b   : > { %228 = vst [vmem:[%s163_s23] sm:$0xff] %v227_v0  ;;  %230 = vst [vmem:[%s163_s23 + $0x8] sm:$0xff] %v229_v1  ;;  %v233_v3 = vld [vmem:[%s1798_s5 + $0xd8] sm:$0xff]  ;;  %v235_v4 = vld [vmem:[%s1798_s5 + $0x120] sm:$0xff] }
  0x2c   : > { %232 = vst [vmem:[%s163_s23 + $0x10] sm:$0xff] %v231_v2  ;;  %v237_v5 = vld [vmem:[%s1798_s5 + $0x168] sm:$0xff]  ;;  %234 = vst [vmem:[%s163_s23 + $0x18] sm:$0xff] %v233_v3  ;;  %v239_v6 = vld [vmem:[%s1798_s5 + $0x1b0] sm:$0xff] }
  0x2d   : > { %236 = vst [vmem:[%s163_s23 + $0x20] sm:$0xff] %v235_v4  ;;  %238 = vst [vmem:[%s163_s23 + $0x28] sm:$0xff] %v237_v5  ;;  %v241_v7 = vld [vmem:[%s1798_s5 + $0x1f8] sm:$0xff]  ;;  %v243_v8 = vld [vmem:[%s1798_s5 + $0x240] sm:$0xff] }
  0x2e   : > { %240 = vst [vmem:[%s163_s23 + $0x30] sm:$0xff] %v239_v6  ;;  %242 = vst [vmem:[%s163_s23 + $0x38] sm:$0xff] %v241_v7  ;;  %v245_v9 = vld [vmem:[%s1798_s5 + $0x288] sm:$0xff]  ;;  %v247_v10 = vld [vmem:[%s1798_s5 + $0x2d0] sm:$0xff] }
  0x2f   : > { %244 = vst [vmem:[%s163_s23 + $0x40] sm:$0xff] %v243_v8  ;;  %v249_v11 = vld [vmem:[%s1798_s5 + $0x318] sm:$0xff]  ;;  %246 = vst [vmem:[%s163_s23 + $0x48] sm:$0xff] %v245_v9  ;;  %v251_v12 = vld [vmem:[%s1798_s5 + $0x360] sm:$0xff] }
  0x30   : > { %248 = vst [vmem:[%s163_s23 + $0x50] sm:$0xff] %v247_v10  ;;  %250 = vst [vmem:[%s163_s23 + $0x58] sm:$0xff] %v249_v11  ;;  %v253_v13 = vld [vmem:[%s1798_s5 + $0x3a8] sm:$0xff]  ;;  %v255_v14 = vld [vmem:[%s1798_s5 + $0x3f0] sm:$0xff] }
  0x31   : > { %252 = vst [vmem:[%s163_s23 + $0x60] sm:$0xff] %v251_v12  ;;  %254 = vst [vmem:[%s163_s23 + $0x68] sm:$0xff] %v253_v13  ;;  %v257_v15 = vld [vmem:[%s1798_s5 + $0x438] sm:$0xff] }
  0x32   : > { %256 = vst [vmem:[%s163_s23 + $0x70] sm:$0xff] %v255_v14  ;;  %258 = vst [vmem:[%s163_s23 + $0x78] sm:$0xff] %v257_v15 }
  0x33 PF: > { %264 = sbr.rel (!%p1773_p9) target bundleno = 82 (0x52), region = 58  ;;  %s266_s28 = sand.u32 (%p1773_p9), 1, %s1641_s15  }
  0x34   : > { %s1453_s7 = smul.u32 (%p1773_p9), 96, %s1661_s20  ;;  %s1246_s11 = sshll.u32 (%p1773_p9), %s266_s28, 7 }
  0x35   : > { %s2025_s1 = sld [smem:[#allocation8_spill]] (%p1773_p9)  ;;  %s1829_s6 = scalar_lea.vmem (%p1773_p9), [#allocation4], %s1246_s11 }
  0x36   : > { %s271_s26 = sadd.s32 (%p1773_p9), %s1665_s21, %s1453_s7 }
  0x37   : > { %s1249_s27 = sshll.u32 (%p1773_p9), %s271_s26, 2 }
  0x3b   : > { %s1824_s0 = scalar_lea.vmem %s2025_s1, %s1249_s27 }
  0x3c   : > { %v289_v16 = vld [vmem:[%s1824_s0] sm:$0xf]  ;;  %v291_v17 = vld [vmem:[%s1824_s0 + $0xc] sm:$0xf]  ;;  %v293_v18 = vld [vmem:[%s1824_s0 + $0x18] sm:$0xf] }
  0x3d   : > { %290 = vst [vmem:[%s1829_s6] sm:$0xf] %v289_v16  ;;  %292 = vst [vmem:[%s1829_s6 + $0x4] sm:$0xf] %v291_v17  ;;  %v295_v19 = vld [vmem:[%s1824_s0 + $0x24] sm:$0xf] }
  0x3e   : > { %294 = vst [vmem:[%s1829_s6 + $0x8] sm:$0xf] %v293_v18  ;;  %v297_v20 = vld [vmem:[%s1824_s0 + $0x30] sm:$0xf]  ;;  %v299_v21 = vld [vmem:[%s1824_s0 + $0x3c] sm:$0xf] }
  0x3f   : > { %296 = vst [vmem:[%s1829_s6 + $0xc] sm:$0xf] %v295_v19  ;;  %298 = vst [vmem:[%s1829_s6 + $0x10] sm:$0xf] %v297_v20  ;;  %v301_v22 = vld [vmem:[%s1824_s0 + $0x48] sm:$0xf] }
  0x40   : > { %300 = vst [vmem:[%s1829_s6 + $0x14] sm:$0xf] %v299_v21  ;;  %v303_v23 = vld [vmem:[%s1824_s0 + $0x54] sm:$0xf]  ;;  %v305_v24 = vld [vmem:[%s1824_s0 + $0x60] sm:$0xf] }
  0x41   : > { %302 = vst [vmem:[%s1829_s6 + $0x18] sm:$0xf] %v301_v22  ;;  %304 = vst [vmem:[%s1829_s6 + $0x1c] sm:$0xf] %v303_v23  ;;  %v307_v25 = vld [vmem:[%s1824_s0 + $0x6c] sm:$0xf] }
  0x42   : > { %306 = vst [vmem:[%s1829_s6 + $0x20] sm:$0xf] %v305_v24  ;;  %v309_v26 = vld [vmem:[%s1824_s0 + $0x78] sm:$0xf]  ;;  %v311_v27 = vld [vmem:[%s1824_s0 + $0x84] sm:$0xf] }
  0x43   : > { %308 = vst [vmem:[%s1829_s6 + $0x24] sm:$0xf] %v307_v25  ;;  %310 = vst [vmem:[%s1829_s6 + $0x28] sm:$0xf] %v309_v26  ;;  %v313_v28 = vld [vmem:[%s1824_s0 + $0x90] sm:$0xf] }
  0x44   : > { %312 = vst [vmem:[%s1829_s6 + $0x2c] sm:$0xf] %v311_v27  ;;  %v315_v29 = vld [vmem:[%s1824_s0 + $0x9c] sm:$0xf]  ;;  %v317_v30 = vld [vmem:[%s1824_s0 + $0xa8] sm:$0xf] }
  0x45   : > { %314 = vst [vmem:[%s1829_s6 + $0x30] sm:$0xf] %v313_v28  ;;  %316 = vst [vmem:[%s1829_s6 + $0x34] sm:$0xf] %v315_v29  ;;  %v319_v31 = vld [vmem:[%s1824_s0 + $0xb4] sm:$0xf] }
  0x46   : > { %318 = vst [vmem:[%s1829_s6 + $0x38] sm:$0xf] %v317_v30  ;;  %v321_v32 = vld [vmem:[%s1824_s0 + $0xc0] sm:$0xf]  ;;  %v323_v33 = vld [vmem:[%s1824_s0 + $0xcc] sm:$0xf] }
  0x47   : > { %320 = vst [vmem:[%s1829_s6 + $0x3c] sm:$0xf] %v319_v31  ;;  %322 = vst [vmem:[%s1829_s6 + $0x40] sm:$0xf] %v321_v32  ;;  %v325_v34 = vld [vmem:[%s1824_s0 + $0xd8] sm:$0xf] }
  0x48   : > { %324 = vst [vmem:[%s1829_s6 + $0x44] sm:$0xf] %v323_v33  ;;  %v327_v35 = vld [vmem:[%s1824_s0 + $0xe4] sm:$0xf]  ;;  %v329_v36 = vld [vmem:[%s1824_s0 + $0xf0] sm:$0xf] }
  0x49   : > { %326 = vst [vmem:[%s1829_s6 + $0x48] sm:$0xf] %v325_v34  ;;  %328 = vst [vmem:[%s1829_s6 + $0x4c] sm:$0xf] %v327_v35  ;;  %v331_v37 = vld [vmem:[%s1824_s0 + $0xfc] sm:$0xf] }
  0x4a   : > { %330 = vst [vmem:[%s1829_s6 + $0x50] sm:$0xf] %v329_v36  ;;  %v333_v38 = vld [vmem:[%s1824_s0 + $0x108] sm:$0xf]  ;;  %v335_v39 = vld [vmem:[%s1824_s0 + $0x114] sm:$0xf] }
  0x4b   : > { %332 = vst [vmem:[%s1829_s6 + $0x54] sm:$0xf] %v331_v37  ;;  %334 = vst [vmem:[%s1829_s6 + $0x58] sm:$0xf] %v333_v38  ;;  %v337_v40 = vld [vmem:[%s1824_s0 + $0x120] sm:$0xf] }
  0x4c   : > { %336 = vst [vmem:[%s1829_s6 + $0x5c] sm:$0xf] %v335_v39  ;;  %v339_v41 = vld [vmem:[%s1824_s0 + $0x12c] sm:$0xf]  ;;  %v341_v42 = vld [vmem:[%s1824_s0 + $0x138] sm:$0xf] }
  0x4d   : > { %338 = vst [vmem:[%s1829_s6 + $0x60] sm:$0xf] %v337_v40  ;;  %340 = vst [vmem:[%s1829_s6 + $0x64] sm:$0xf] %v339_v41  ;;  %v343_v43 = vld [vmem:[%s1824_s0 + $0x144] sm:$0xf] }
  0x4e   : > { %342 = vst [vmem:[%s1829_s6 + $0x68] sm:$0xf] %v341_v42  ;;  %v345_v44 = vld [vmem:[%s1824_s0 + $0x150] sm:$0xf]  ;;  %v347_v45 = vld [vmem:[%s1824_s0 + $0x15c] sm:$0xf] }
  0x4f   : > { %344 = vst [vmem:[%s1829_s6 + $0x6c] sm:$0xf] %v343_v43  ;;  %346 = vst [vmem:[%s1829_s6 + $0x70] sm:$0xf] %v345_v44  ;;  %v349_v46 = vld [vmem:[%s1824_s0 + $0x168] sm:$0xf] }
  0x50   : > { %348 = vst [vmem:[%s1829_s6 + $0x74] sm:$0xf] %v347_v45  ;;  %v351_v47 = vld [vmem:[%s1824_s0 + $0x174] sm:$0xf]  ;;  %350 = vst [vmem:[%s1829_s6 + $0x78] sm:$0xf] %v349_v46 }
  0x51   : > { %352 = vst [vmem:[%s1829_s6 + $0x7c] sm:$0xf] %v351_v47 }
  0x52 PF: > { %p1250_p0 = scmp.ge.s32.totalorder %s1669_s22, 1  ;;  %p444_p1 = scmp.lt.s32.totalorder %s1669_s22, 28 }
  0x54   : > { %p445_p2 = pnand %p1250_p0, %p444_p1 }
  0x55   : > { %s451_s5 = sand.u32 (!%p445_p2), 1, %s1645_s16   ;;  %s458_s23 = sand.u32 (!%p445_p2), 1, %s1637_s14  }
  0x56   : > { %448 = sbr.rel (%p445_p2) target bundleno = 407 (0x197), region = 103  ;;  %s1251_s28 = sshll.u32 (!%p445_p2), %s451_s5, 7 }
  0x57   : > { %s1252_s7 = sshll.u32 (!%p445_p2), %s458_s23, 7  ;;  %s484_s0 = sand.u32 (!%p445_p2), 1, %s1629_s12  }
  0x58   : > { %p490_p3 = scmp.lt.s32.totalorder (!%p445_p2), %s1657_s19, 2  ;;  %s1253_s11 = sshll.u32 (!%p445_p2), %s484_s0, 6 }
  0x59   : > { %s1905_s6 = scalar_lea.vmem (!%p445_p2), [#allocation3], %s1251_s28  ;;  %s1907_s1 = scalar_lea.vmem (!%p445_p2), [#allocation4], %s1252_s7 }
  0x5a   : > { %s1909_s25 = scalar_lea.vmem (!%p445_p2), [#allocation5], %s1253_s11  ;;  %p1254_p4 = scmp.ne.s32.totalorder (!%p445_p2), %s1653_s18, 0 }
  0x5d   : > { %s1899_s26 = scalar_select %p490_p3, %s1657_s19, 2 }
  0x5e   : > { %498 = sbr.rel (%p1254_p4) target bundleno = 103 (0x67), region = 115  ;;  %v1671_v48 = vmov (!%p1254_p4), 0.0  }
  0x5f   : > { %s492_s4 = scalar_lea.vmem %s2015_s2, %s1899_s26  ;;  %499 = vst [vmem:[#allocation2] sm:$0xff] (!%p1254_p4), %v1671_v48  ;;  %500 = vst [vmem:[#allocation2 + $0x8] sm:$0xff] (!%p1254_p4), %v1671_v48 }
  0x60   : > { %501 = vst [vmem:[#allocation2 + $0x10] sm:$0xff] (!%p1254_p4), %v1671_v48  ;;  %502 = vst [vmem:[#allocation2 + $0x18] sm:$0xff] (!%p1254_p4), %v1671_v48 }
  0x61   : > { %503 = vst [vmem:[#allocation2 + $0x20] sm:$0xff] (!%p1254_p4), %v1671_v48  ;;  %504 = vst [vmem:[#allocation2 + $0x28] sm:$0xff] (!%p1254_p4), %v1671_v48 }
  0x62   : > { %505 = vst [vmem:[#allocation2 + $0x30] sm:$0xff] (!%p1254_p4), %v1671_v48  ;;  %506 = vst [vmem:[#allocation2 + $0x38] sm:$0xff] (!%p1254_p4), %v1671_v48 }
  0x63   : > { %507 = vst [vmem:[#allocation2 + $0x40] sm:$0xff] (!%p1254_p4), %v1671_v48  ;;  %508 = vst [vmem:[#allocation2 + $0x48] sm:$0xff] (!%p1254_p4), %v1671_v48 }
  0x64   : > { %509 = vst [vmem:[#allocation2 + $0x50] sm:$0xff] (!%p1254_p4), %v1671_v48  ;;  %510 = vst [vmem:[#allocation2 + $0x58] sm:$0xff] (!%p1254_p4), %v1671_v48 }
  0x65   : > { %511 = vst [vmem:[#allocation2 + $0x60] sm:$0xff] %v1671_v48  ;;  %512 = vst [vmem:[#allocation2 + $0x68] sm:$0xff] %v1671_v48 }
  0x66   : > { %513 = vst [vmem:[#allocation2 + $0x70] sm:$0xff] %v1671_v48  ;;  %514 = vst [vmem:[#allocation2 + $0x78] sm:$0xff] %v1671_v48 }
  0x67 PF: > { %v1543_v49 = vld [vmem:[%s1907_s1 + $0x40] sm:$0xff]   ;;  %v1545_v51 = vld [vmem:[%s1907_s1 + $0x48] sm:$0xff]   ;;  %v1547_v53 = vld [vmem:[%s1907_s1 + $0x50] sm:$0xff]   ;;  %p1287_p5 = scmp.ne.s32.totalorder %s1653_s18, 8 }
  0x68   : > { %v1544_v50 = vld [vmem:[%s1907_s1] sm:$0xff]   ;;  %1373 = vmatprep.subr.bf16.mxu0 %v1543_v49  ;;  %1437 = vmatprep.subr.bf16.mxu1 %v1543_v49  ;;  %v1546_v52 = vld [vmem:[%s1907_s1 + $0x8] sm:$0xff]   ;;  %v1548_v54 = vld [vmem:[%s1907_s1 + $0x10] sm:$0xff]  }
  0x69   : > { %1374 = vmatpush3.bf16.msra.mxu0 %v1544_v50  ;;  %1445 = vmatpush3.bf16.msra.mxu1 %v1544_v50  ;;  %v1549_v55 = vld [vmem:[%s1907_s1 + $0x58] sm:$0xff]   ;;  %v1551_v57 = vld [vmem:[%s1907_s1 + $0x60] sm:$0xff]   ;;  %v1553_v59 = vld [vmem:[%s1907_s1 + $0x68] sm:$0xff]  }
  0x6a   : > { %1375 = vmatprep.subr.bf16.mxu0 %v1545_v51  ;;  %1438 = vmatprep.subr.bf16.mxu1 %v1545_v51  ;;  %v1550_v56 = vld [vmem:[%s1907_s1 + $0x18] sm:$0xff]   ;;  %v1552_v58 = vld [vmem:[%s1907_s1 + $0x20] sm:$0xff]   ;;  %v1554_v62 = vld [vmem:[%s1907_s1 + $0x28] sm:$0xff]  }
  0x6b   : > { %v1561_v60 = vld [vmem:[%s1905_s6 + $0x4] ss:$8 sps:$4 sm:$0xff]   ;;  %v1555_v63 = vld [vmem:[%s1907_s1 + $0x70] sm:$0xff]   ;;  %v1557_v1 = vld [vmem:[%s1907_s1 + $0x78] sm:$0xff]  }
  0x6c   : > { %v1564_v61 = vld [vmem:[%s1905_s6 + $0x44] ss:$8 sps:$4 sm:$0xff]   ;;  %787 = vmatprep.mubr.bf16.mxu0 %v1561_v60  ;;  %v1556_v0 = vld [vmem:[%s1907_s1 + $0x30] sm:$0xff]   ;;  %v1558_v2 = vld [vmem:[%s1907_s1 + $0x38] sm:$0xff]  }
  0x6d   : > { %1376 = vmatpush3.bf16.msra.mxu0 %v1546_v52  ;;  %1446 = vmatpush3.bf16.msra.mxu1 %v1546_v52  ;;  %v1559_v3 = vld [vmem:[%s1905_s6] ss:$8 sps:$4 sm:$0xff]   ;;  %v1565_v5 = vld [vmem:[%s1905_s6 + $0x14] ss:$8 sps:$4 sm:$0xff]   ;;  %v1569_v7 = vld [vmem:[%s1905_s6 + $0x10] ss:$8 sps:$4 sm:$0xff]  }
  0x6e   : > { %1377 = vmatprep.subr.bf16.mxu0 %v1547_v53  ;;  %1439 = vmatprep.subr.bf16.mxu1 %v1547_v53  ;;  %v1562_v4 = vld [vmem:[%s1905_s6 + $0x40] ss:$8 sps:$4 sm:$0xff]   ;;  %v1567_v6 = vld [vmem:[%s1905_s6 + $0x54] ss:$8 sps:$4 sm:$0xff]   ;;  %v1570_v8 = vld [vmem:[%s1905_s6 + $0x50] ss:$8 sps:$4 sm:$0xff]  }
  0x6f   : > { %819 = vmatprep.mubr.bf16.mxu1 %v1564_v61  ;;  %v1571_v9 = vld [vmem:[%s1905_s6 + $0x24] ss:$8 sps:$4 sm:$0xff]   ;;  %v1575_v11 = vld [vmem:[%s1905_s6 + $0x20] ss:$8 sps:$4 sm:$0xff]   ;;  %v1577_v13 = vld [vmem:[%s1905_s6 + $0x34] ss:$8 sps:$4 sm:$0xff]  }
  0x70   : > { %v1573_v10 = vld [vmem:[%s1905_s6 + $0x64] ss:$8 sps:$4 sm:$0xff]   ;;  %v1576_v12 = vld [vmem:[%s1905_s6 + $0x60] ss:$8 sps:$4 sm:$0xff]   ;;  %v1579_v14 = vld [vmem:[%s1905_s6 + $0x74] ss:$8 sps:$4 sm:$0xff]  }
  0x71   : > { %1378 = vmatpush3.bf16.msra.mxu0 %v1548_v54  ;;  %1447 = vmatpush3.bf16.msra.mxu1 %v1548_v54  ;;  %v1581_v15 = vld [vmem:[%s1905_s6 + $0x30] ss:$8 sps:$4 sm:$0xff]   ;;  %v515_v19 = vld [vmem:[#allocation2] sm:$0xff]  ;;  %v516_v27 = vld [vmem:[#allocation2 + $0x8] sm:$0xff] }
  0x72   : > { %1379 = vmatprep.subr.bf16.mxu0 %v1549_v55  ;;  %1440 = vmatprep.subr.bf16.mxu1 %v1549_v55  ;;  %v1582_v16 = vld [vmem:[%s1905_s6 + $0x70] ss:$8 sps:$4 sm:$0xff]   ;;  %v523_v21 = vld [vmem:[#allocation2 + $0x40] sm:$0xff]  ;;  %v524_v29 = vld [vmem:[#allocation2 + $0x48] sm:$0xff] }
  0x73   : > { %v517_v39 = vld [vmem:[#allocation2 + $0x10] sm:$0xff]  ;;  %v518_v47 = vld [vmem:[#allocation2 + $0x18] sm:$0xff]  ;;  %v527_v61 = vld [vmem:[#allocation2 + $0x60] sm:$0xff] }
  0x74   : > { %v525_v41 = vld [vmem:[#allocation2 + $0x50] sm:$0xff]  ;;  %v526_v49 = vld [vmem:[#allocation2 + $0x58] sm:$0xff] }
  0x75   : > { %1380 = vmatpush3.bf16.msra.mxu0 %v1550_v56  ;;  %1448 = vmatpush3.bf16.msra.mxu1 %v1550_v56 }
  0x76   : > { %1381 = vmatprep.subr.bf16.mxu0 %v1551_v57  ;;  %1441 = vmatprep.subr.bf16.mxu1 %v1551_v57 }
  0x79   : > { %1382 = vmatpush3.bf16.msra.mxu0 %v1552_v58  ;;  %1449 = vmatpush3.bf16.msra.mxu1 %v1552_v58 }
  0x7a   : > { %1383 = vmatprep.subr.bf16.mxu0 %v1553_v59  ;;  %1442 = vmatprep.subr.bf16.mxu1 %v1553_v59  ;;  %v519_v59 = vld [vmem:[#allocation2 + $0x20] sm:$0xff] }
  0x7d   : > { %1384 = vmatpush3.bf16.msra.mxu0 %v1554_v62  ;;  %1450 = vmatpush3.bf16.msra.mxu1 %v1554_v62 }
  0x7e   : > { %1385 = vmatprep.subr.bf16.mxu0 %v1555_v63  ;;  %1443 = vmatprep.subr.bf16.mxu1 %v1555_v63 }
  0x81   : > { %1386 = vmatpush3.bf16.msra.mxu0 %v1556_v0  ;;  %1451 = vmatpush3.bf16.msra.mxu1 %v1556_v0 }
  0x82   : > { %1387 = vmatprep.subr.bf16.mxu0 %v1557_v1  ;;  %1444 = vmatprep.subr.bf16.mxu1 %v1557_v1 }
  0x85   : > { %1388 = vmatpush3.bf16.msra.mxu0 %v1558_v2  ;;  %1452 = vmatpush3.bf16.msra.mxu1 %v1558_v2 }
  0x88   : > { %788 = vmatmul.mubr.bf16.vlgmr.msra.gmra.mrb[0].mxu0 %v1559_v3  ;;  %820 = vmatmul.mubr.bf16.vlgmr.msra.gmra.mrb[0].mxu1 %v1562_v4  ;;  %v520_v3 = vld [vmem:[#allocation2 + $0x28] sm:$0xff] }
  0x89   : > { %795 = vmatprep.mubr.bf16.mxu0 %v1565_v5  ;;  %827 = vmatprep.mubr.bf16.mxu1 %v1567_v6  ;;  %v528_v5 = vld [vmem:[#allocation2 + $0x68] sm:$0xff] }
  0x90   : > { %796 = vmatmul.mubr.bf16.gmra.mrb[4].mxu0 %v1569_v7  ;;  %828 = vmatmul.mubr.bf16.gmra.mrb[4].mxu1 %v1570_v8 }
  0x91   : > { %803 = vmatprep.mubr.bf16.mxu0 %v1571_v9  ;;  %835 = vmatprep.mubr.bf16.mxu1 %v1573_v10 }
  0x98   : > { %804 = vmatmul.mubr.bf16.gmra.mrb[8].mxu0 %v1575_v11  ;;  %836 = vmatmul.mubr.bf16.gmra.mrb[8].mxu1 %v1576_v12 }
  0x99   : > { %811 = vmatprep.mubr.bf16.mxu0 %v1577_v13  ;;  %843 = vmatprep.mubr.bf16.mxu1 %v1579_v14 }
  0xa0   : > { %812 = vmatmul.mubr.bf16.gmra.mrb[12].mxu0 %v1581_v15  ;;  %844 = vmatmul.mubr.bf16.gmra.mrb[12].mxu1 %v1582_v16  ;;  %v521_v15 = vld [vmem:[#allocation2 + $0x30] sm:$0xff] }
 0x15b   : > { %v1389_v17 = vpop.f32.mrb[0].mxu0  ;;  %v1413_v18 = vpop.f32.mrb[0].mxu1 }
 0x15c   : > { %v1390_v20 = vpop.f32.mrb[1].mxu0  ;;  %v1414_v22 = vpop.f32.mrb[1].mxu1 }
 0x15d   : > { %v1391_v23 = vadd.f32 %v1390_v20, %v1389_v17  ;;  %v1415_v24 = vadd.f32 %v1414_v22, %v1413_v18  ;;  %v1392_v25 = vpop.f32.mrb[2].mxu0  ;;  %v1416_v26 = vpop.f32.mrb[2].mxu1  ;;  %v529_v17 = vld [vmem:[#allocation2 + $0x70] sm:$0xff] }
 0x15e   : > { %v1393_v28 = vpop.f32.mrb[3].mxu0  ;;  %v1417_v30 = vpop.f32.mrb[3].mxu1 }
 0x15f   : > { %v852_v31 = vadd.f32 %v1391_v23, %v515_v19  ;;  %v860_v32 = vadd.f32 %v1415_v24, %v523_v21  ;;  %v1394_v33 = vadd.f32 %v1393_v28, %v1392_v25  ;;  %v1418_v34 = vadd.f32 %v1417_v30, %v1416_v26  ;;  %v522_v23 = vld [vmem:[#allocation2 + $0x38] sm:$0xff] }
 0x160   : > { %v530_v25 = vld [vmem:[#allocation2 + $0x78] sm:$0xff] }
 0x161   : > { %868 = vst [vmem:[#allocation2] sm:$0xff] %v852_v31  ;;  %876 = vst [vmem:[#allocation2 + $0x40] sm:$0xff] %v860_v32  ;;  %v853_v35 = vadd.f32 %v1394_v33, %v516_v27  ;;  %v861_v36 = vadd.f32 %v1418_v34, %v524_v29 }
 0x163   : > { %869 = vst [vmem:[#allocation2 + $0x8] sm:$0xff] %v853_v35  ;;  %877 = vst [vmem:[#allocation2 + $0x48] sm:$0xff] %v861_v36  ;;  %v1395_v37 = vpop.f32.mrb[4].mxu0  ;;  %v1419_v38 = vpop.f32.mrb[4].mxu1  ;;  %v1288_v35 = vld [vmem:[%s492_s4] ss:$0 sm:$0xff] (!%p1287_p5) }
 0x164   : > { %v1396_v40 = vpop.f32.mrb[5].mxu0  ;;  %v1420_v42 = vpop.f32.mrb[5].mxu1 }
 0x165   : > { %v1397_v43 = vadd.f32 %v1396_v40, %v1395_v37  ;;  %v1421_v44 = vadd.f32 %v1420_v42, %v1419_v38  ;;  %v1398_v45 = vpop.f32.mrb[6].mxu0  ;;  %v1422_v46 = vpop.f32.mrb[6].mxu1 }
 0x166   : > { %v1399_v48 = vpop.f32.mrb[7].mxu0  ;;  %v1423_v50 = vpop.f32.mrb[7].mxu1 }
 0x167   : > { %v854_v51 = vadd.f32 %v1397_v43, %v517_v39  ;;  %v862_v52 = vadd.f32 %v1421_v44, %v525_v41  ;;  %v1400_v53 = vadd.f32 %v1399_v48, %v1398_v45  ;;  %v1424_v54 = vadd.f32 %v1423_v50, %v1422_v46 }
 0x168   : > { %v888_v33 = vld [vmem:[#allocation2] sm:$0xff] (!%p1287_p5) }
 0x169   : > { %870 = vst [vmem:[#allocation2 + $0x10] sm:$0xff] %v854_v51  ;;  %878 = vst [vmem:[#allocation2 + $0x50] sm:$0xff] %v862_v52  ;;  %v855_v55 = vadd.f32 %v1400_v53, %v518_v47  ;;  %v863_v56 = vadd.f32 %v1424_v54, %v526_v49  ;;  %v911_v36 = vadd.f32 (!%p1287_p5), %v1288_v35, %v888_v33  ;;  %v896_v51 = vld [vmem:[#allocation2 + $0x40] sm:$0xff] (!%p1287_p5) }
 0x16a   : > { %v889_v34 = vld [vmem:[#allocation2 + $0x8] sm:$0xff] (!%p1287_p5) }
 0x16b   : > { %871 = vst [vmem:[#allocation2 + $0x18] sm:$0xff] %v855_v55  ;;  %879 = vst [vmem:[#allocation2 + $0x58] sm:$0xff] %v863_v56  ;;  %v1401_v57 = vpop.f32.mrb[8].mxu0  ;;  %v1425_v58 = vpop.f32.mrb[8].mxu1  ;;  %v912_v37 = vadd.f32 (!%p1287_p5), %v1288_v35, %v889_v34  ;;  %v927_v47 = vmax.f32 (!%p1287_p5), %v911_v36, 0.0  ;;  %v897_v52 = vld [vmem:[#allocation2 + $0x48] sm:$0xff] (!%p1287_p5) }
 0x16c   : > { %v1402_v60 = vpop.f32.mrb[9].mxu0  ;;  %v1426_v62 = vpop.f32.mrb[9].mxu1 }
 0x16d   : > { %v1403_v63 = vadd.f32 %v1402_v60, %v1401_v57  ;;  %v1427_v0 = vadd.f32 %v1426_v62, %v1425_v58  ;;  %v1404_v1 = vpop.f32.mrb[10].mxu0  ;;  %v1428_v2 = vpop.f32.mrb[10].mxu1  ;;  %v928_v48 = vmax.f32 (!%p1287_p5), %v912_v37, 0.0 }
 0x16e   : > { %v1405_v4 = vpop.f32.mrb[11].mxu0  ;;  %v1429_v6 = vpop.f32.mrb[11].mxu1 }
 0x16f   : > { %v856_v7 = vadd.f32 %v1403_v63, %v519_v59  ;;  %v864_v8 = vadd.f32 %v1427_v0, %v527_v61  ;;  %v1406_v9 = vadd.f32 %v1405_v4, %v1404_v1  ;;  %v1430_v10 = vadd.f32 %v1429_v6, %v1428_v2 }
 0x170   : > { %v890_v38 = vld [vmem:[#allocation2 + $0x10] sm:$0xff] (!%p1287_p5)  ;;  %v1329_v60 = vpack.c.bf16 (!%p1287_p5), %v928_v48, %v927_v47  ;;  %v919_v63 = vadd.f32 (!%p1287_p5), %v1288_v35, %v896_v51 }
 0x171   : > { %872 = vst [vmem:[#allocation2 + $0x20] sm:$0xff] %v856_v7  ;;  %880 = vst [vmem:[#allocation2 + $0x60] sm:$0xff] %v864_v8  ;;  %v857_v11 = vadd.f32 %v1406_v9, %v520_v3  ;;  %v865_v12 = vadd.f32 %v1430_v10, %v528_v5  ;;  %v913_v41 = vadd.f32 (!%p1287_p5), %v1288_v35, %v890_v38  ;;  %v898_v53 = vld [vmem:[#allocation2 + $0x50] sm:$0xff] (!%p1287_p5) }
 0x172   : > { %v891_v39 = vld [vmem:[#allocation2 + $0x18] sm:$0xff] (!%p1287_p5)  ;;  %v920_v3 = vadd.f32 (!%p1287_p5), %v1288_v35, %v897_v52  ;;  %v921_v4 = vadd.f32 (!%p1287_p5), %v1288_v35, %v898_v53  ;;  %1330 = vst [vmem:[%s1909_s25] sm:$0xff] (!%p1287_p5), %v1329_v60   ;;  %v935_v8 = vmax.f32 (!%p1287_p5), %v919_v63, 0.0 }
 0x173   : > { %873 = vst [vmem:[#allocation2 + $0x28] sm:$0xff] %v857_v11  ;;  %881 = vst [vmem:[#allocation2 + $0x68] sm:$0xff] %v865_v12  ;;  %v1407_v13 = vpop.f32.mrb[12].mxu0  ;;  %v1431_v14 = vpop.f32.mrb[12].mxu1  ;;  %v914_v42 = vadd.f32 (!%p1287_p5), %v1288_v35, %v891_v39  ;;  %v929_v54 = vmax.f32 (!%p1287_p5), %v913_v41, 0.0  ;;  %v899_v58 = vld [vmem:[#allocation2 + $0x58] sm:$0xff] (!%p1287_p5) }
 0x174   : > { %v1408_v16 = vpop.f32.mrb[13].mxu0  ;;  %v1432_v18 = vpop.f32.mrb[13].mxu1  ;;  %v922_v9 = vadd.f32 (!%p1287_p5), %v1288_v35, %v899_v58  ;;  %v936_v12 = vmax.f32 (!%p1287_p5), %v920_v3, 0.0 }
 0x175   : > { %v1409_v19 = vadd.f32 %v1408_v16, %v1407_v13  ;;  %v1433_v20 = vadd.f32 %v1432_v18, %v1431_v14  ;;  %v1410_v21 = vpop.f32.mrb[14].mxu0  ;;  %v1434_v22 = vpop.f32.mrb[14].mxu1  ;;  %887 = sbr.rel (%p1287_p5) target bundleno = 395 (0x18b), region = 119  ;;  %v930_v55 = vmax.f32 (!%p1287_p5), %v914_v42, 0.0  ;;  %v937_v13 = vmax.f32 (!%p1287_p5), %v921_v4, 0.0 }
 0x176   : > { %v1411_v24 = vpop.f32.mrb[15].mxu0  ;;  %v1435_v26 = vpop.f32.mrb[15].mxu1 }
 0x177   : > { %v858_v27 = vadd.f32 %v1409_v19, %v521_v15  ;;  %v866_v28 = vadd.f32 %v1433_v20, %v529_v17  ;;  %v1412_v29 = vadd.f32 %v1411_v24, %v1410_v21  ;;  %v1436_v30 = vadd.f32 %v1435_v26, %v1434_v22 }
 0x178   : > { %v892_v40 = vld [vmem:[#allocation2 + $0x20] sm:$0xff] (!%p1287_p5)  ;;  %v1334_v1 = vpack.c.bf16 (!%p1287_p5), %v930_v55, %v929_v54  ;;  %v938_v15 = vmax.f32 (!%p1287_p5), %v922_v9, 0.0  ;;  %v1349_v19 = vpack.c.bf16 (!%p1287_p5), %v936_v12, %v935_v8 }
 0x179   : > { %874 = vst [vmem:[#allocation2 + $0x30] sm:$0xff] %v858_v27  ;;  %882 = vst [vmem:[#allocation2 + $0x70] sm:$0xff] %v866_v28  ;;  %v859_v31 = vadd.f32 %v1412_v29, %v522_v23  ;;  %v867_v32 = vadd.f32 %v1436_v30, %v530_v25  ;;  %v915_v44 = vadd.f32 (!%p1287_p5), %v1288_v35, %v892_v40  ;;  %v900_v59 = vld [vmem:[#allocation2 + $0x60] sm:$0xff] (!%p1287_p5) }
 0x17a   : > { %v893_v43 = vld [vmem:[#allocation2 + $0x28] sm:$0xff] (!%p1287_p5)  ;;  %v923_v10 = vadd.f32 (!%p1287_p5), %v1288_v35, %v900_v59  ;;  %1366 = vst [vmem:[%s1909_s25 + $0x8] sm:$0xff] (!%p1287_p5), %v1334_v1   ;;  %v1354_v21 = vpack.c.bf16 (!%p1287_p5), %v938_v15, %v937_v13  ;;  %1369 = vst [vmem:[%s1909_s25 + $0x20] sm:$0xff] (!%p1287_p5), %v1349_v19  }
 0x17b   : > { %875 = vst [vmem:[#allocation2 + $0x38] sm:$0xff] %v859_v31  ;;  %883 = vst [vmem:[#allocation2 + $0x78] sm:$0xff] %v867_v32  ;;  %v916_v49 = vadd.f32 (!%p1287_p5), %v1288_v35, %v893_v43  ;;  %v931_v56 = vmax.f32 (!%p1287_p5), %v915_v44, 0.0  ;;  %v901_v0 = vld [vmem:[#allocation2 + $0x68] sm:$0xff] (!%p1287_p5) }
 0x17c   : > { %v924_v14 = vadd.f32 %v1288_v35, %v901_v0  ;;  %v939_v16 = vmax.f32 %v923_v10, 0.0  ;;  %1370 = vst [vmem:[%s1909_s25 + $0x28] sm:$0xff] %v1354_v21  }
 0x17d   : > { %v932_v61 = vmax.f32 %v916_v49, 0.0 }
 0x17e   : > { %v940_v20 = vmax.f32 %v924_v14, 0.0 }
 0x17f   : > { %v1339_v7 = vpack.c.bf16 %v932_v61, %v931_v56 }
 0x180   : > { %v894_v45 = vld [vmem:[#allocation2 + $0x30] sm:$0xff]  ;;  %v1359_v24 = vpack.c.bf16 %v940_v20, %v939_v16 }
 0x181   : > { %v917_v50 = vadd.f32 %v1288_v35, %v894_v45  ;;  %v902_v5 = vld [vmem:[#allocation2 + $0x70] sm:$0xff]  ;;  %1367 = vst [vmem:[%s1909_s25 + $0x10] sm:$0xff] %v1339_v7  }
 0x182   : > { %v895_v46 = vld [vmem:[#allocation2 + $0x38] sm:$0xff]  ;;  %v925_v17 = vadd.f32 %v1288_v35, %v902_v5  ;;  %1371 = vst [vmem:[%s1909_s25 + $0x30] sm:$0xff] %v1359_v24  }
 0x183   : > { %v918_v57 = vadd.f32 %v1288_v35, %v895_v46  ;;  %v933_v62 = vmax.f32 %v917_v50, 0.0  ;;  %v903_v6 = vld [vmem:[#allocation2 + $0x78] sm:$0xff] }
 0x184   : > { %v926_v18 = vadd.f32 %v1288_v35, %v903_v6  ;;  %v941_v22 = vmax.f32 %v925_v17, 0.0 }
 0x185   : > { %v934_v2 = vmax.f32 %v918_v57, 0.0 }
 0x186   : > { %v942_v23 = vmax.f32 %v926_v18, 0.0 }
 0x187   : > { %v1344_v11 = vpack.c.bf16 %v934_v2, %v933_v62 }
 0x188   : > { %v1364_v25 = vpack.c.bf16 %v942_v23, %v941_v22 }
 0x189   : > { %1368 = vst [vmem:[%s1909_s25 + $0x18] sm:$0xff] %v1344_v11  }
 0x18a   : > { %1372 = vst [vmem:[%s1909_s25 + $0x38] sm:$0xff] %v1364_v25  }
 0x18b PF: > { %1029 = sbr.rel (!%p1786_p12) target bundleno = 407 (0x197), region = 123  ;;  %s1306_s14 = sshll.u32 (%p1786_p12), %s1657_s19, 2  ;;  %v1050_v26 = vld [vmem:[%s1909_s25] sm:$0xf] (%p1786_p12)  ;;  %v1052_v27 = vld [vmem:[%s1909_s25 + $0x4] sm:$0xf] (%p1786_p12) }
 0x18c   : > { %s1034_s5 = scalar_lea.vmem (%p1786_p12), %s2016_s3, %s1306_s14  ;;  %v1058_v30 = vld [vmem:[%s1909_s25 + $0x10] sm:$0xf] (%p1786_p12)  ;;  %v1060_v31 = vld [vmem:[%s1909_s25 + $0x14] sm:$0xf] (%p1786_p12) }
 0x18d   : > { %1051 = vst [vmem:[%s1034_s5] sm:$0xf] (%p1786_p12), %v1050_v26  ;;  %1053 = vst [vmem:[%s1034_s5 + $0xc] sm:$0xf] (%p1786_p12), %v1052_v27  ;;  %v1074_v38 = vld [vmem:[%s1909_s25 + $0x30] sm:$0xf] (%p1786_p12) }
 0x18e   : > { %1059 = vst [vmem:[%s1034_s5 + $0x30] sm:$0xf] (%p1786_p12), %v1058_v30  ;;  %1061 = vst [vmem:[%s1034_s5 + $0x3c] sm:$0xf] (%p1786_p12), %v1060_v31  ;;  %v1076_v39 = vld [vmem:[%s1909_s25 + $0x34] sm:$0xf] (%p1786_p12) }
 0x18f   : > { %1075 = vst [vmem:[%s1034_s5 + $0x90] sm:$0xf] (%p1786_p12), %v1074_v38  ;;  %1077 = vst [vmem:[%s1034_s5 + $0x9c] sm:$0xf] (%p1786_p12), %v1076_v39 }
 0x190   : > { %v1054_v28 = vld [vmem:[%s1909_s25 + $0x8] sm:$0xf] (%p1786_p12)  ;;  %v1056_v29 = vld [vmem:[%s1909_s25 + $0xc] sm:$0xf] (%p1786_p12)  ;;  %v1062_v32 = vld [vmem:[%s1909_s25 + $0x18] sm:$0xf] (%p1786_p12) }
 0x191   : > { %1055 = vst [vmem:[%s1034_s5 + $0x18] sm:$0xf] (%p1786_p12), %v1054_v28  ;;  %1057 = vst [vmem:[%s1034_s5 + $0x24] sm:$0xf] (%p1786_p12), %v1056_v29  ;;  %v1064_v33 = vld [vmem:[%s1909_s25 + $0x1c] sm:$0xf] (%p1786_p12) }
 0x192   : > { %1063 = vst [vmem:[%s1034_s5 + $0x48] sm:$0xf] %v1062_v32  ;;  %1065 = vst [vmem:[%s1034_s5 + $0x54] sm:$0xf] %v1064_v33  ;;  %v1066_v34 = vld [vmem:[%s1909_s25 + $0x20] sm:$0xf] }
 0x193   : > { %v1068_v35 = vld [vmem:[%s1909_s25 + $0x24] sm:$0xf]  ;;  %v1070_v36 = vld [vmem:[%s1909_s25 + $0x28] sm:$0xf]  ;;  %1067 = vst [vmem:[%s1034_s5 + $0x60] sm:$0xf] %v1066_v34 }
 0x194   : > { %1069 = vst [vmem:[%s1034_s5 + $0x6c] sm:$0xf] %v1068_v35  ;;  %1071 = vst [vmem:[%s1034_s5 + $0x78] sm:$0xf] %v1070_v36  ;;  %v1072_v37 = vld [vmem:[%s1909_s25 + $0x2c] sm:$0xf] }
 0x195   : > { %1073 = vst [vmem:[%s1034_s5 + $0x84] sm:$0xf] %v1072_v37  ;;  %v1078_v40 = vld [vmem:[%s1909_s25 + $0x38] sm:$0xf]  ;;  %v1080_v41 = vld [vmem:[%s1909_s25 + $0x3c] sm:$0xf] }
 0x196   : > { %1079 = vst [vmem:[%s1034_s5 + $0xa8] sm:$0xf] %v1078_v40  ;;  %1081 = vst [vmem:[%s1034_s5 + $0xb4] sm:$0xf] %v1080_v41 }
 0x197 PF: > { %s13_s22 = sadd.s32 1, %s1669_s22   ;;  %s2026_s10 = sld [smem:[#allocation6_spill]] }
 0x198   : > { %p10_p6 = scmp.ge.s32.totalorder %s13_s22, 29   ;;  %s2027_s12 = smov %s1633_s13 }
 0x199   : > { %s2028_s13 = smov %s1784_s9  ;;  %s2029_s14 = smov %s1641_s15 }
 0x19a   : > { %s2030_s15 = smov %s1781_s8  ;;  %s2031_s16 = smov %s1649_s17 }
 0x19b   : > { %s2032_s17 = smov %s1767_s30  ;;  %s2033_s18 = smov %s1661_s20 }
 0x19c   : > { %s2034_s19 = smov %s1665_s21  ;;  %s2035_s20 = smov %s2038_s24 }
 0x19d   : > { %s2036_s21 = smov %s2026_s10  ;;  %12 = sbr.rel (!%p10_p6) target bundleno = 9 (0x9), region = 206 }

</bundles_post_ra>
